<compile_context>
chip_gen: v7x
topology: tpu7x:2x2x1
jax: 0.10.0
libtpu: 0.0.40
codegen_flags: <defaults>
</compile_context>

<pallas_src>
import functools

import jax
import jax.numpy as jnp
from jax.experimental import pallas as pl
from jax.experimental.pallas import tpu as pltpu


_BN_EPS = 1e-5
# eval-mode BN with default params (mean=0, var=1, gamma=1, beta=0) folds to a pure scale.
_BN_SCALE = 1.0 / (1.0 + _BN_EPS) ** 0.5

_DEFAULT_ROW_TILE = 1024          # points per grid step; multiple of 8
_VMEM_LIMIT = 32 * 1024 * 1024    # explicit scoped-VMEM limit (raises v5e's 16 MiB default)


def _round_up(x, m):
    return (x + m - 1) // m * m


def _mm(a, b):
    """MXU matmul with bf16 inputs and f32 accumulation."""
    return jnp.dot(a.astype(jnp.bfloat16), b.astype(jnp.bfloat16),
                   preferred_element_type=jnp.float32)


def _update_gmax(gmax_ref, h, nb, row_tile, n_valid, mask_tail):
    """Running max over the point axis; the pad mask only runs on the last N tile."""
    if not mask_tail:
        gmax_ref[...] = jnp.maximum(gmax_ref[...], jnp.max(h, axis=0, keepdims=True))
        return

    last = pl.num_programs(1) - 1

    @pl.when(nb != last)
    def _full():
        gmax_ref[...] = jnp.maximum(gmax_ref[...], jnp.max(h, axis=0, keepdims=True))

    @pl.when(nb == last)
    def _tail():
        row = nb * row_tile + jax.lax.broadcasted_iota(jnp.int32, (h.shape[0], 1), 0)
        hm = jnp.where(row < n_valid, h, -jnp.inf)
        gmax_ref[...] = jnp.maximum(gmax_ref[...], jnp.max(hm, axis=0, keepdims=True))


# ------------------------------------------------------------------ Pallas kernels

def _tnet_conv_pool_kernel(x_ref, w1_ref, b1_ref, w2_ref, b2_ref, w3_ref, b3_ref,
                           gmax_ref, *, n_valid, row_tile, mask_tail):
    """Input T-net point-MLP (conv1/2/3 + bn + relu) fused with the global max pool."""
    nb = pl.program_id(1)

    @pl.when(nb == 0)
    def _init():
        gmax_ref[...] = jnp.full(gmax_ref.shape, -jnp.inf, gmax_ref.dtype)

    h = jnp.maximum(_mm(x_ref[...], w1_ref[...]) + b1_ref[...], 0.0).astype(jnp.bfloat16)
    h = jnp.maximum(_mm(h, w2_ref[...]) + b2_ref[...], 0.0).astype(jnp.bfloat16)
    h = jnp.maximum(_mm(h, w3_ref[...]) + b3_ref[...], 0.0)          # (TN, 1024) f32
    _update_gmax(gmax_ref, h, nb, row_tile, n_valid, mask_tail)


def _conv1_feat_tnet_kernel(x_ref, tw_ref, b1_ref,
                            fw1_ref, fb1_ref, fw2_ref, fb2_ref, fw3_ref, fb3_ref,
                            h1_ref, gmax_ref, *, n_valid, row_tile, mask_tail):
    """Fused: trunk conv1 (input transform folded in) + feature T-net conv1/2/3 + max pool.

    h1 is written to HBM for the trunk pass and consumed from VMEM in the same grid step.
    """
    nb = pl.program_id(1)

    @pl.when(nb == 0)
    def _init():
        gmax_ref[...] = jnp.full(gmax_ref.shape, -jnp.inf, gmax_ref.dtype)

    # conv1 with the per-batch (3,3) input transform pre-folded: relu(x @ (T@W1) + b1)
    h1 = jnp.maximum(_mm(x_ref[...], tw_ref[...]) + b1_ref[...], 0.0).astype(jnp.bfloat16)
    h1_ref[...] = h1                                                 # (TN, 64) bf16

    # feature T-net conv1/2/3 on the same tile (intermediates never leave VMEM)
    h = jnp.maximum(_mm(h1, fw1_ref[...]) + fb1_ref[...], 0.0).astype(jnp.bfloat16)
    h = jnp.maximum(_mm(h, fw2_ref[...]) + fb2_ref[...], 0.0).astype(jnp.bfloat16)
    h = jnp.maximum(_mm(h, fw3_ref[...]) + fb3_ref[...], 0.0)        # (TN, 1024) f32
    _update_gmax(gmax_ref, h, nb, row_tile, n_valid, mask_tail)


def _trunk_conv_pool_kernel(h1_ref, tfw2_ref, b2_ref, w3_ref, b3_ref, w4_ref, b4_ref,
                            gmax_ref, *, n_valid, row_tile, mask_tail):
    """Trunk conv2 (feature transform folded in) -> conv3 -> conv4 -> global max pool."""
    nb = pl.program_id(1)

    @pl.when(nb == 0)
    def _init():
        gmax_ref[...] = jnp.full(gmax_ref.shape, -jnp.inf, gmax_ref.dtype)

    # conv2 with the per-batch (64,64) feature transform pre-folded: relu(h1 @ (Tf@W2) + b2)
    h = jnp.maximum(_mm(h1_ref[...], tfw2_ref[...]) + b2_ref[...], 0.0).astype(jnp.bfloat16)
    h = jnp.maximum(_mm(h, w3_ref[...]) + b3_ref[...], 0.0).astype(jnp.bfloat16)
    h = jnp.maximum(_mm(h, w4_ref[...]) + b4_ref[...], 0.0)          # (TN, 512) f32
    _update_gmax(gmax_ref, h, nb, row_tile, n_valid, mask_tail)


def _mlp_head_kernel(g_ref, w1_ref, b1_ref, w2_ref, b2_ref, w3_ref, b3_ref, o_ref, *, final):
    """fc1(+bn+relu) -> fc2(+bn+relu) -> fc3 [+ log_softmax], all in one kernel."""
    h = jnp.maximum(_mm(g_ref[...], w1_ref[...]) + b1_ref[...], 0.0)
    h = jnp.maximum(_mm(h, w2_ref[...]) + b2_ref[...], 0.0)
    y = _mm(h, w3_ref[...]) + b3_ref[...]
    if final == "log_softmax":
        m = jnp.max(y, axis=-1, keepdims=True)
        s = y - m
        y = s - jnp.log(jnp.sum(jnp.exp(s), axis=-1, keepdims=True))
    o_ref[...] = y.astype(o_ref.dtype)


# ------------------------------------------------------------------ pallas_call wrappers

def tnet_conv_pool(x, p, *, n_valid, row_tile):
    """(B, N_pad, Cin) -> (B, 1024) global-max-pooled input-T-net features."""
    bsz, n_pad, cin = x.shape
    n_tiles = n_pad // row_tile
    kern = functools.partial(_tnet_conv_pool_kernel, n_valid=n_valid,
                             row_tile=row_tile, mask_tail=(n_pad != n_valid))
    wconst = lambda b, i: (0, 0)   # weights/biases stay resident in VMEM across the grid
    out = pl.pallas_call(
        kern,
        out_shape=jax.ShapeDtypeStruct((bsz, 1, 1024), jnp.float32),
        grid=(bsz, n_tiles),
        in_specs=[
            pl.BlockSpec((None, row_tile, cin), lambda b, i: (b, i, 0)),
            pl.BlockSpec(p["conv1_w"].shape, wconst),
            pl.BlockSpec(p["conv1_b"].shape, wconst),
            pl.BlockSpec(p["conv2_w"].shape, wconst),
            pl.BlockSpec(p["conv2_b"].shape, wconst),
            pl.BlockSpec(p["conv3_w"].shape, wconst),
            pl.BlockSpec(p["conv3_b"].shape, wconst),
        ],
        out_specs=pl.BlockSpec((None, 1, 1024), lambda b, i: (b, 0, 0)),
        compiler_params=pltpu.CompilerParams(
            dimension_semantics=("parallel", "arbitrary"),
            vmem_limit_bytes=_VMEM_LIMIT),
    )(x, p["conv1_w"], p["conv1_b"], p["conv2_w"], p["conv2_b"],
      p["conv3_w"], p["conv3_b"])
    return out.reshape(bsz, 1024)


def conv1_feature_tnet(x, tw, b1, pfeat, *, n_valid, row_tile):
    """Fused conv1 + feature-T-net pass.

    Returns h1 (B, N_pad, 64) bf16 and the pooled feature-T-net features (B, 1024) f32.
    """
    bsz, n_pad, cin = x.shape
    cout = tw.shape[-1]
    n_tiles = n_pad // row_tile
    kern = functools.partial(_conv1_feat_tnet_kernel, n_valid=n_valid,
                             row_tile=row_tile, mask_tail=(n_pad != n_valid))
    wconst = lambda b, i: (0, 0)
    h1, gmax = pl.pallas_call(
        kern,
        out_shape=(jax.ShapeDtypeStruct((bsz, n_pad, cout), jnp.bfloat16),
                   jax.ShapeDtypeStruct((bsz, 1, 1024), jnp.float32)),
        grid=(bsz, n_tiles),
        in_specs=[
            pl.BlockSpec((None, row_tile, cin), lambda b, i: (b, i, 0)),
            pl.BlockSpec((None, cin, cout), lambda b, i: (b, 0, 0)),   # per-batch T @ W1
            pl.BlockSpec(b1.shape, wconst),
            pl.BlockSpec(pfeat["conv1_w"].shape, wconst),
            pl.BlockSpec(pfeat["conv1_b"].shape, wconst),
            pl.BlockSpec(pfeat["conv2_w"].shape, wconst),
            pl.BlockSpec(pfeat["conv2_b"].shape, wconst),
            pl.BlockSpec(pfeat["conv3_w"].shape, wconst),
            pl.BlockSpec(pfeat["conv3_b"].shape, wconst),
        ],
        out_specs=(pl.BlockSpec((None, row_tile, cout), lambda b, i: (b, i, 0)),
                   pl.BlockSpec((None, 1, 1024), lambda b, i: (b, 0, 0))),
        compiler_params=pltpu.CompilerParams(
            dimension_semantics=("parallel", "arbitrary"),
            vmem_limit_bytes=_VMEM_LIMIT),
    )(x, tw, b1, pfeat["conv1_w"], pfeat["conv1_b"], pfeat["conv2_w"],
      pfeat["conv2_b"], pfeat["conv3_w"], pfeat["conv3_b"])
    return h1, gmax.reshape(bsz, 1024)


def trunk_conv_pool(h1, tfw2, p, *, n_valid, row_tile):
    """(B, N_pad, 64) with pre-folded Tf@W2 -> conv2/3/4 + global max pool -> (B, 512)."""
    bsz, n_pad, c = h1.shape
    c2 = tfw2.shape[-1]
    n_tiles = n_pad // row_tile
    kern = functools.partial(_trunk_conv_pool_kernel, n_valid=n_valid,
                             row_tile=row_tile, mask_tail=(n_pad != n_valid))
    wconst = lambda b, i: (0, 0)
    out = pl.pallas_call(
        kern,
        out_shape=jax.ShapeDtypeStruct((bsz, 1, 512), jnp.float32),
        grid=(bsz, n_tiles),
        in_specs=[
            pl.BlockSpec((None, row_tile, c), lambda b, i: (b, i, 0)),
            pl.BlockSpec((None, c, c2), lambda b, i: (b, 0, 0)),       # per-batch Tf @ W2
            pl.BlockSpec(p["conv2_b"].shape, wconst),
            pl.BlockSpec(p["conv3_w"].shape, wconst),
            pl.BlockSpec(p["conv3_b"].shape, wconst),
            pl.BlockSpec(p["conv4_w"].shape, wconst),
            pl.BlockSpec(p["conv4_b"].shape, wconst),
        ],
        out_specs=pl.BlockSpec((None, 1, 512), lambda b, i: (b, 0, 0)),
        compiler_params=pltpu.CompilerParams(
            dimension_semantics=("parallel", "arbitrary"),
            vmem_limit_bytes=_VMEM_LIMIT),
    )(h1, tfw2, p["conv2_b"], p["conv3_w"], p["conv3_b"], p["conv4_w"], p["conv4_b"])
    return out.reshape(bsz, 512)


def mlp_head(g, w1, b1, w2, b2, w3, b3, *, final="none"):
    """Fused fc1 -> fc2 -> fc3 head on the pooled (B, C) features, tiled over batch."""
    bsz, cin = g.shape
    cout = w3.shape[1]
    tb = 256 if bsz >= 256 else _round_up(bsz, 8)   # sublane-aligned batch tile
    bp = _round_up(bsz, tb)
    if bp != bsz:
        g = jnp.pad(g, ((0, bp - bsz), (0, 0)))
    wconst = lambda i: (0, 0)
    out = pl.pallas_call(
        functools.partial(_mlp_head_kernel, final=final),
        out_shape=jax.ShapeDtypeStruct((bp, cout), jnp.float32),
        grid=(bp // tb,),
        in_specs=[
            pl.BlockSpec((tb, cin), lambda i: (i, 0)),
            pl.BlockSpec(w1.shape, wconst), pl.BlockSpec(b1.shape, wconst),
            pl.BlockSpec(w2.shape, wconst), pl.BlockSpec(b2.shape, wconst),
            pl.BlockSpec(w3.shape, wconst), pl.BlockSpec(b3.shape, wconst),
        ],
        out_specs=pl.BlockSpec((tb, cout), lambda i: (i, 0)),
        compiler_params=pltpu.CompilerParams(
            dimension_semantics=("parallel",),
            vmem_limit_bytes=_VMEM_LIMIT),
    )(g, w1, b1, w2, b2, w3, b3)
    return out[:bsz] if bp != bsz else out


# ------------------------------------------------------------------ parameter setup (glue)

def _init_layer(key, cin, cout, *, bn, extra_bias=None):
    """PyTorch default Conv1d(k=1)/Linear init; eval-mode BN folded in when bn=True.

    Returns w: (cin, cout) bf16 (MXU friendly), b: (1, cout) f32.
    """
    kw, kb = jax.random.split(key)
    bound = 1.0 / (cin ** 0.5)
    w = jax.random.uniform(kw, (cout, cin), jnp.float32, -bound, bound).T  # torch (out, in)
    b = jax.random.uniform(kb, (cout,), jnp.float32, -bound, bound)
    if bn:
        # TODO(synk): with a trained checkpoint, fold the real per-channel BN stats/affine.
        w = w * _BN_SCALE
        b = b * _BN_SCALE
    if extra_bias is not None:
        b = b + extra_bias
    return w.astype(jnp.bfloat16), b.reshape(1, cout)


def init_transform_params(key, k):
    ks = jax.random.split(key, 6)
    p = {}
    p["conv1_w"], p["conv1_b"] = _init_layer(ks[0], k, 64, bn=True)
    p["conv2_w"], p["conv2_b"] = _init_layer(ks[1], 64, 128, bn=True)
    p["conv3_w"], p["conv3_b"] = _init_layer(ks[2], 128, 1024, bn=True)
    p["fc1_w"], p["fc1_b"] = _init_layer(ks[3], 1024, 512, bn=True)
    p["fc2_w"], p["fc2_b"] = _init_layer(ks[4], 512, 256, bn=True)
    # the "x + eye(k)" of Transform3d is folded into the fc3 bias
    p["fc3_w"], p["fc3_b"] = _init_layer(
        ks[5], 256, k * k, bn=False,
        extra_bias=jnp.eye(k, dtype=jnp.float32).reshape(-1))
    return p


def init_pointnet_params(key, num_classes):
    ks = jax.random.split(key, 9)
    p = {
        "input_transform": init_transform_params(ks[0], 3),
        "feature_transform": init_transform_params(ks[1], 64),
    }
    p["conv1_w"], p["conv1_b"] = _init_layer(ks[2], 3, 64, bn=True)
    p["conv2_w"], p["conv2_b"] = _init_layer(ks[3], 64, 128, bn=True)
    p["conv3_w"], p["conv3_b"] = _init_layer(ks[4], 128, 256, bn=True)
    p["conv4_w"], p["conv4_b"] = _init_layer(ks[5], 256, 512, bn=True)
    p["fc1_w"], p["fc1_b"] = _init_layer(ks[6], 512, 512, bn=True)
    p["fc2_w"], p["fc2_b"] = _init_layer(ks[7], 512, 256, bn=True)
    p["fc3_w"], p["fc3_b"] = _init_layer(ks[8], 256, num_classes, bn=False)
    return p


# ------------------------------------------------------------------ forward passes

def transform_head(p, g, k):
    """Transform3d FC head: pooled (B, 1024) -> (B, k, k) transform matrix."""
    t = mlp_head(g, p["fc1_w"], p["fc1_b"], p["fc2_w"], p["fc2_b"],
                 p["fc3_w"], p["fc3_b"], final="none")
    return t.reshape(-1, k, k)


def pointnet_forward(p, x, *, row_tile=_DEFAULT_ROW_TILE):
    """PointNet: x (B, N, 3) -> log-probs (B, num_classes)."""
    bsz, n, _ = x.shape
    rt = min(row_tile, _round_up(n, 8))
    n_pad = _round_up(n, rt)
    if n_pad != n:
        x = jnp.pad(x, ((0, 0), (0, n_pad - n), (0, 0)))  # padded rows masked at each max

    # Pass 1: input T-net point-MLP + max pool, then its FC head -> (B, 3, 3).
    g_in = tnet_conv_pool(x, p["input_transform"], n_valid=n, row_tile=rt)
    trans = transform_head(p["input_transform"], g_in, 3)

    # Fold the input transform into conv1 once per batch: TW = T @ W1  (B, 3, 64).
    tw = jnp.einsum("bij,jk->bik", trans,
                    p["conv1_w"].astype(jnp.float32)).astype(jnp.bfloat16)

    # Pass 2 (fused): h1 = relu(x @ TW + b1) written once to HBM, and the feature T-net
    # conv stack + max pool run on the same tile.  Then its FC head -> (B, 64, 64).
    h1, g_feat = conv1_feature_tnet(x, tw, p["conv1_b"], p["feature_transform"],
                                    n_valid=n, row_tile=rt)
    trans_feat = transform_head(p["feature_transform"], g_feat, 64)

    # Fold the feature transform into conv2 once per batch: TfW2 = Tf @ W2  (B, 64, 128).
    tfw2 = jnp.einsum("bij,jk->bik", trans_feat,
                      p["conv2_w"].astype(jnp.float32)).astype(jnp.bfloat16)

    # Pass 3: trunk conv2/3/4 + global max pool -> (B, 512).
    g = trunk_conv_pool(h1, tfw2, p, n_valid=n, row_tile=rt)

    # dropout(p=0.3): identity in eval mode.
    return mlp_head(g, p["fc1_w"], p["fc1_b"], p["fc2_w"], p["fc2_b"],
                    p["fc3_w"], p["fc3_b"], final="log_softmax")


# ------------------------------------------------------------------ demo

if __name__ == "__main__":
    B, N, NUM_CLASSES = 2, 64, 10
    key = jax.random.PRNGKey(0)
    k_x, k_p = jax.random.split(key)

    x = jax.random.normal(k_x, (B, N, 3), jnp.float32)   # (batch, points, xyz)
    params = init_pointnet_params(k_p, NUM_CLASSES)

    fwd = jax.jit(pointnet_forward)
    out = fwd(params, x)
    jax.block_until_ready(out)

    assert out.shape == (B, NUM_CLASSES)
    # valid log-probabilities: each row sums to 1 in prob space
    assert bool(jnp.all(jnp.abs(jnp.sum(jnp.exp(out), axis=1) - 1.0) < 1e-3))
    print("KERNEL_OK")
</pallas_src>

<mosaic_0001>
module attributes {stable_mosaic.version = 11 : i64} {
  func.func @_tnet_conv_pool_kernel(%arg0: i32, %arg1: i32, %arg2: memref<1x64x3xf32, #tpu.memory_space<vmem>>, %arg3: memref<3x64xbf16, #tpu.memory_space<vmem>>, %arg4: memref<1x64xf32, #tpu.memory_space<vmem>>, %arg5: memref<64x128xbf16, #tpu.memory_space<vmem>>, %arg6: memref<1x128xf32, #tpu.memory_space<vmem>>, %arg7: memref<128x1024xbf16, #tpu.memory_space<vmem>>, %arg8: memref<1x1024xf32, #tpu.memory_space<vmem>>, %arg9: memref<1x1x1024xf32, #tpu.memory_space<vmem>>) attributes {dimension_semantics = [#tpu.dimension_semantics<parallel>, #tpu.dimension_semantics<arbitrary>], iteration_bounds = array<i64: 2, 1>, scalar_prefetch = 0 : i64, scratch_operands = 0 : i64, tpu.core_type = #tpu.core_type<tc>, window_params = [{transform_indices = @transform_0, window_bounds = array<i64: 1, 64, 3>}, {pipeline_mode = #tpu.pipeline_mode<synchronous>, transform_indices = @transform_1, window_bounds = array<i64: 3, 64>}, {pipeline_mode = #tpu.pipeline_mode<synchronous>, transform_indices = @transform_2, window_bounds = array<i64: 1, 64>}, {pipeline_mode = #tpu.pipeline_mode<synchronous>, transform_indices = @transform_3, window_bounds = array<i64: 64, 128>}, {pipeline_mode = #tpu.pipeline_mode<synchronous>, transform_indices = @transform_4, window_bounds = array<i64: 1, 128>}, {pipeline_mode = #tpu.pipeline_mode<synchronous>, transform_indices = @transform_5, window_bounds = array<i64: 128, 1024>}, {pipeline_mode = #tpu.pipeline_mode<synchronous>, transform_indices = @transform_6, window_bounds = array<i64: 1, 1024>}, {transform_indices = @transform_7, window_bounds = array<i64: 1, 1, 1024>}]} {
    %c0_i32 = arith.constant 0 : i32
    %0 = arith.cmpi eq, %arg1, %c0_i32 : i32
    %1 = arith.extui %0 : i1 to i32
    %c0_i32_0 = arith.constant 0 : i32
    %2 = arith.cmpi ne, %1, %c0_i32_0 : i32
    scf.if %2 {
      %cst_27 = arith.constant 0xFF800000 : f32
      %37 = vector.broadcast %cst_27 : f32 to vector<1x1024xf32>
      %c0_28 = arith.constant 0 : index
      %c0_29 = arith.constant 0 : index
      %c0_30 = arith.constant 0 : index
      %38 = vector.load %arg9[%c0_28, %c0_29, %c0_30] : memref<1x1x1024xf32, #tpu.memory_space<vmem>>, vector<1x1x1024xf32>
      %39 = vector.shape_cast %38 : vector<1x1x1024xf32> to vector<1x1024xf32>
      %40 = vector.shape_cast %37 : vector<1x1024xf32> to vector<1x1x1024xf32>
      tpu.vector_store %arg9[%c0_28, %c0_29, %c0_30], %40 {strides = array<i32>} : memref<1x1x1024xf32, #tpu.memory_space<vmem>>, vector<1x1x1024xf32>,
    } else {
    }
    %c0 = arith.constant 0 : index
    %c0_1 = arith.constant 0 : index
    %c0_2 = arith.constant 0 : index
    %3 = vector.load %arg2[%c0, %c0_1, %c0_2] : memref<1x64x3xf32, #tpu.memory_space<vmem>>, vector<1x64x3xf32>
    %4 = vector.shape_cast %3 : vector<1x64x3xf32> to vector<64x3xf32>
    %c0_3 = arith.constant 0 : index
    %c0_4 = arith.constant 0 : index
    %5 = vector.load %arg3[%c0_3, %c0_4] : memref<3x64xbf16, #tpu.memory_space<vmem>>, vector<3x64xbf16>
    %6 = arith.truncf %4 : vector<64x3xf32> to vector<64x3xbf16>
    %cst = arith.constant dense<0.000000e+00> : vector<64x64xf32>
    %7 = tpu.matmul %6, %5, %cst {dimension_numbers = #tpu.dot_dimension_numbers<[1], [0], [0], [1], [0, 0, 1, 1], [], []>} : vector<64x3xbf16>, vector<3x64xbf16>, vector<64x64xf32> -> vector<64x64xf32>
    %c0_5 = arith.constant 0 : index
    %c0_6 = arith.constant 0 : index
    %8 = vector.load %arg4[%c0_5, %c0_6] : memref<1x64xf32, #tpu.memory_space<vmem>>, vector<1x64xf32>
    %9 = vector.broadcast %8 : vector<1x64xf32> to vector<64x64xf32>
    %10 = arith.addf %7, %9 : vector<64x64xf32>
    %cst_7 = arith.constant 0.000000e+00 : f32
    %11 = vector.broadcast %cst_7 : f32 to vector<64x64xf32>
    %12 = arith.maximumf %10, %11 : vector<64x64xf32>
    %13 = arith.truncf %12 : vector<64x64xf32> to vector<64x64xbf16>
    %c0_8 = arith.constant 0 : index
    %c0_9 = arith.constant 0 : index
    %14 = vector.load %arg5[%c0_8, %c0_9] : memref<64x128xbf16, #tpu.memory_space<vmem>>, vector<64x128xbf16>
    %cst_10 = arith.constant dense<0.000000e+00> : vector<64x128xf32>
    %15 = tpu.matmul %13, %14, %cst_10 {dimension_numbers = #tpu.dot_dimension_numbers<[1], [0], [0], [1], [0, 0, 1, 1], [], []>} : vector<64x64xbf16>, vector<64x128xbf16>, vector<64x128xf32> -> vector<64x128xf32>
    %c0_11 = arith.constant 0 : index
    %c0_12 = arith.constant 0 : index
    %16 = vector.load %arg6[%c0_11, %c0_12] : memref<1x128xf32, #tpu.memory_space<vmem>>, vector<1x128xf32>
    %17 = vector.broadcast %16 : vector<1x128xf32> to vector<64x128xf32>
    %18 = arith.addf %15, %17 : vector<64x128xf32>
    %cst_13 = arith.constant 0.000000e+00 : f32
    %19 = vector.broadcast %cst_13 : f32 to vector<64x128xf32>
    %20 = arith.maximumf %18, %19 : vector<64x128xf32>
    %21 = arith.truncf %20 : vector<64x128xf32> to vector<64x128xbf16>
    %c0_14 = arith.constant 0 : index
    %c0_15 = arith.constant 0 : index
    %22 = vector.load %arg7[%c0_14, %c0_15] : memref<128x1024xbf16, #tpu.memory_space<vmem>>, vector<128x1024xbf16>
    %cst_16 = arith.constant dense<0.000000e+00> : vector<64x1024xf32>
    %23 = tpu.matmul %21, %22, %cst_16 {dimension_numbers = #tpu.dot_dimension_numbers<[1], [0], [0], [1], [0, 0, 1, 1], [], []>} : vector<64x128xbf16>, vector<128x1024xbf16>, vector<64x1024xf32> -> vector<64x1024xf32>
    %c0_17 = arith.constant 0 : index
    %c0_18 = arith.constant 0 : index
    %24 = vector.load %arg8[%c0_17, %c0_18] : memref<1x1024xf32, #tpu.memory_space<vmem>>, vector<1x1024xf32>
    %25 = vector.broadcast %24 : vector<1x1024xf32> to vector<64x1024xf32>
    %26 = arith.addf %23, %25 : vector<64x1024xf32>
    %cst_19 = arith.constant 0.000000e+00 : f32
    %27 = vector.broadcast %cst_19 : f32 to vector<64x1024xf32>
    %28 = arith.maximumf %26, %27 : vector<64x1024xf32>
    %c0_20 = arith.constant 0 : index
    %c0_21 = arith.constant 0 : index
    %c0_22 = arith.constant 0 : index
    %29 = vector.load %arg9[%c0_20, %c0_21, %c0_22] : memref<1x1x1024xf32, #tpu.memory_space<vmem>>, vector<1x1x1024xf32>
    %30 = vector.shape_cast %29 : vector<1x1x1024xf32> to vector<1x1024xf32>
    %cst_23 = arith.constant dense<0xFF800000> : vector<1024xf32>
    %31 = vector.multi_reduction <maximumf>, %28, %cst_23 [0] : vector<64x1024xf32> to vector<1024xf32>
    %32 = vector.shape_cast %31 : vector<1024xf32> to vector<1x1024xf32>
    %33 = arith.maximumf %30, %32 : vector<1x1024xf32>
    %c0_24 = arith.constant 0 : index
    %c0_25 = arith.constant 0 : index
    %c0_26 = arith.constant 0 : index
    %34 = vector.load %arg9[%c0_24, %c0_25, %c0_26] : memref<1x1x1024xf32, #tpu.memory_space<vmem>>, vector<1x1x1024xf32>
    %35 = vector.shape_cast %34 : vector<1x1x1024xf32> to vector<1x1024xf32>
    %36 = vector.shape_cast %33 : vector<1x1024xf32> to vector<1x1x1024xf32>
    tpu.vector_store %arg9[%c0_24, %c0_25, %c0_26], %36 {strides = array<i32>} : memref<1x1x1024xf32, #tpu.memory_space<vmem>>, vector<1x1x1024xf32>,
    return
  }
  func.func @transform_0(%arg0: i32, %arg1: i32) -> (i32, i32, i32) {
    %c0_i32 = arith.constant 0 : i32
    %c0_i32_0 = arith.constant 0 : i32
    return %arg0, %arg1, %c0_i32 : i32, i32, i32
  }
  func.func @transform_1(%arg0: i32, %arg1: i32) -> (i32, i32) {
    %c0_i32 = arith.constant 0 : i32
    %c0_i32_0 = arith.constant 0 : i32
    %c0_i32_1 = arith.constant 0 : i32
    return %c0_i32, %c0_i32_0 : i32, i32
  }
  func.func @transform_2(%arg0: i32, %arg1: i32) -> (i32, i32) {
    %c0_i32 = arith.constant 0 : i32
    %c0_i32_0 = arith.constant 0 : i32
    %c0_i32_1 = arith.constant 0 : i32
    return %c0_i32, %c0_i32_0 : i32, i32
  }
  func.func @transform_3(%arg0: i32, %arg1: i32) -> (i32, i32) {
    %c0_i32 = arith.constant 0 : i32
    %c0_i32_0 = arith.constant 0 : i32
    %c0_i32_1 = arith.constant 0 : i32
    return %c0_i32, %c0_i32_0 : i32, i32
  }
  func.func @transform_4(%arg0: i32, %arg1: i32) -> (i32, i32) {
    %c0_i32 = arith.constant 0 : i32
    %c0_i32_0 = arith.constant 0 : i32
    %c0_i32_1 = arith.constant 0 : i32
    return %c0_i32, %c0_i32_0 : i32, i32
  }
  func.func @transform_5(%arg0: i32, %arg1: i32) -> (i32, i32) {
    %c0_i32 = arith.constant 0 : i32
    %c0_i32_0 = arith.constant 0 : i32
    %c0_i32_1 = arith.constant 0 : i32
    return %c0_i32, %c0_i32_0 : i32, i32
  }
  func.func @transform_6(%arg0: i32, %arg1: i32) -> (i32, i32) {
    %c0_i32 = arith.constant 0 : i32
    %c0_i32_0 = arith.constant 0 : i32
    %c0_i32_1 = arith.constant 0 : i32
    return %c0_i32, %c0_i32_0 : i32, i32
  }
  func.func @transform_7(%arg0: i32, %arg1: i32) -> (i32, i32, i32) {
    %c0_i32 = arith.constant 0 : i32
    %c0_i32_0 = arith.constant 0 : i32
    %c0_i32_1 = arith.constant 0 : i32
    return %arg0, %c0_i32, %c0_i32_0 : i32, i32, i32
  }
}

module attributes {stable_mosaic.version = 11 : i64} {
  func.func @_mlp_head_kernel(%arg0: i32, %arg1: memref<8x1024xf32, #tpu.memory_space<vmem>>, %arg2: memref<1024x512xbf16, #tpu.memory_space<vmem>>, %arg3: memref<1x512xf32, #tpu.memory_space<vmem>>, %arg4: memref<512x256xbf16, #tpu.memory_space<vmem>>, %arg5: memref<1x256xf32, #tpu.memory_space<vmem>>, %arg6: memref<256x9xbf16, #tpu.memory_space<vmem>>, %arg7: memref<1x9xf32, #tpu.memory_space<vmem>>, %arg8: memref<8x9xf32, #tpu.memory_space<vmem>>) attributes {dimension_semantics = [#tpu.dimension_semantics<parallel>], iteration_bounds = array<i64: 1>, scalar_prefetch = 0 : i64, scratch_operands = 0 : i64, tpu.core_type = #tpu.core_type<tc>, window_params = [{transform_indices = @transform_0, window_bounds = array<i64: 8, 1024>}, {pipeline_mode = #tpu.pipeline_mode<synchronous>, transform_indices = @transform_1, window_bounds = array<i64: 1024, 512>}, {pipeline_mode = #tpu.pipeline_mode<synchronous>, transform_indices = @transform_2, window_bounds = array<i64: 1, 512>}, {pipeline_mode = #tpu.pipeline_mode<synchronous>, transform_indices = @transform_3, window_bounds = array<i64: 512, 256>}, {pipeline_mode = #tpu.pipeline_mode<synchronous>, transform_indices = @transform_4, window_bounds = array<i64: 1, 256>}, {pipeline_mode = #tpu.pipeline_mode<synchronous>, transform_indices = @transform_5, window_bounds = array<i64: 256, 9>}, {pipeline_mode = #tpu.pipeline_mode<synchronous>, transform_indices = @transform_6, window_bounds = array<i64: 1, 9>}, {transform_indices = @transform_7, window_bounds = array<i64: 8, 9>}]} {
    %c0 = arith.constant 0 : index
    %c0_0 = arith.constant 0 : index
    %0 = vector.load %arg1[%c0, %c0_0] : memref<8x1024xf32, #tpu.memory_space<vmem>>, vector<8x1024xf32>
    %c0_1 = arith.constant 0 : index
    %c0_2 = arith.constant 0 : index
    %1 = vector.load %arg2[%c0_1, %c0_2] : memref<1024x512xbf16, #tpu.memory_space<vmem>>, vector<1024x512xbf16>
    %2 = arith.truncf %0 : vector<8x1024xf32> to vector<8x1024xbf16>
    %cst = arith.constant dense<0.000000e+00> : vector<8x512xf32>
    %3 = tpu.matmul %2, %1, %cst {dimension_numbers = #tpu.dot_dimension_numbers<[1], [0], [0], [1], [0, 0, 1, 1], [], []>} : vector<8x1024xbf16>, vector<1024x512xbf16>, vector<8x512xf32> -> vector<8x512xf32>
    %c0_3 = arith.constant 0 : index
    %c0_4 = arith.constant 0 : index
    %4 = vector.load %arg3[%c0_3, %c0_4] : memref<1x512xf32, #tpu.memory_space<vmem>>, vector<1x512xf32>
    %5 = vector.broadcast %4 : vector<1x512xf32> to vector<8x512xf32>
    %6 = arith.addf %3, %5 : vector<8x512xf32>
    %cst_5 = arith.constant 0.000000e+00 : f32
    %7 = vector.broadcast %cst_5 : f32 to vector<8x512xf32>
    %8 = arith.maximumf %6, %7 : vector<8x512xf32>
    %c0_6 = arith.constant 0 : index
    %c0_7 = arith.constant 0 : index
    %9 = vector.load %arg4[%c0_6, %c0_7] : memref<512x256xbf16, #tpu.memory_space<vmem>>, vector<512x256xbf16>
    %10 = arith.truncf %8 : vector<8x512xf32> to vector<8x512xbf16>
    %cst_8 = arith.constant dense<0.000000e+00> : vector<8x256xf32>
    %11 = tpu.matmul %10, %9, %cst_8 {dimension_numbers = #tpu.dot_dimension_numbers<[1], [0], [0], [1], [0, 0, 1, 1], [], []>} : vector<8x512xbf16>, vector<512x256xbf16>, vector<8x256xf32> -> vector<8x256xf32>
    %c0_9 = arith.constant 0 : index
    %c0_10 = arith.constant 0 : index
    %12 = vector.load %arg5[%c0_9, %c0_10] : memref<1x256xf32, #tpu.memory_space<vmem>>, vector<1x256xf32>
    %13 = vector.broadcast %12 : vector<1x256xf32> to vector<8x256xf32>
    %14 = arith.addf %11, %13 : vector<8x256xf32>
    %cst_11 = arith.constant 0.000000e+00 : f32
    %15 = vector.broadcast %cst_11 : f32 to vector<8x256xf32>
    %16 = arith.maximumf %14, %15 : vector<8x256xf32>
    %c0_12 = arith.constant 0 : index
    %c0_13 = arith.constant 0 : index
    %17 = vector.load %arg6[%c0_12, %c0_13] : memref<256x9xbf16, #tpu.memory_space<vmem>>, vector<256x9xbf16>
    %18 = arith.truncf %16 : vector<8x256xf32> to vector<8x256xbf16>
    %cst_14 = arith.constant dense<0.000000e+00> : vector<8x9xf32>
    %19 = tpu.matmul %18, %17, %cst_14 {dimension_numbers = #tpu.dot_dimension_numbers<[1], [0], [0], [1], [0, 0, 1, 1], [], []>} : vector<8x256xbf16>, vector<256x9xbf16>, vector<8x9xf32> -> vector<8x9xf32>
    %c0_15 = arith.constant 0 : index
    %c0_16 = arith.constant 0 : index
    %20 = vector.load %arg7[%c0_15, %c0_16] : memref<1x9xf32, #tpu.memory_space<vmem>>, vector<1x9xf32>
    %21 = vector.broadcast %20 : vector<1x9xf32> to vector<8x9xf32>
    %22 = arith.addf %19, %21 : vector<8x9xf32>
    %c0_17 = arith.constant 0 : index
    %c0_18 = arith.constant 0 : index
    %23 = vector.load %arg8[%c0_17, %c0_18] : memref<8x9xf32, #tpu.memory_space<vmem>>, vector<8x9xf32>
    tpu.vector_store %arg8[%c0_17, %c0_18], %22 {strides = array<i32>} : memref<8x9xf32, #tpu.memory_space<vmem>>, vector<8x9xf32>,
    return
  }
  func.func @transform_0(%arg0: i32) -> (i32, i32) {
    %c0_i32 = arith.constant 0 : i32
    %c0_i32_0 = arith.constant 0 : i32
    return %arg0, %c0_i32 : i32, i32
  }
  func.func @transform_1(%arg0: i32) -> (i32, i32) {
    %c0_i32 = arith.constant 0 : i32
    %c0_i32_0 = arith.constant 0 : i32
    %c0_i32_1 = arith.constant 0 : i32
    return %c0_i32, %c0_i32_0 : i32, i32
  }
  func.func @transform_2(%arg0: i32) -> (i32, i32) {
    %c0_i32 = arith.constant 0 : i32
    %c0_i32_0 = arith.constant 0 : i32
    %c0_i32_1 = arith.constant 0 : i32
    return %c0_i32, %c0_i32_0 : i32, i32
  }
  func.func @transform_3(%arg0: i32) -> (i32, i32) {
    %c0_i32 = arith.constant 0 : i32
    %c0_i32_0 = arith.constant 0 : i32
    %c0_i32_1 = arith.constant 0 : i32
    return %c0_i32, %c0_i32_0 : i32, i32
  }
  func.func @transform_4(%arg0: i32) -> (i32, i32) {
    %c0_i32 = arith.constant 0 : i32
    %c0_i32_0 = arith.constant 0 : i32
    %c0_i32_1 = arith.constant 0 : i32
    return %c0_i32, %c0_i32_0 : i32, i32
  }
  func.func @transform_5(%arg0: i32) -> (i32, i32) {
    %c0_i32 = arith.constant 0 : i32
    %c0_i32_0 = arith.constant 0 : i32
    %c0_i32_1 = arith.constant 0 : i32
    return %c0_i32, %c0_i32_0 : i32, i32
  }
  func.func @transform_6(%arg0: i32) -> (i32, i32) {
    %c0_i32 = arith.constant 0 : i32
    %c0_i32_0 = arith.constant 0 : i32
    %c0_i32_1 = arith.constant 0 : i32
    return %c0_i32, %c0_i32_0 : i32, i32
  }
  func.func @transform_7(%arg0: i32) -> (i32, i32) {
    %c0_i32 = arith.constant 0 : i32
    %c0_i32_0 = arith.constant 0 : i32
    return %arg0, %c0_i32 : i32, i32
  }
}

module attributes {stable_mosaic.version = 11 : i64} {
  func.func @_conv1_feat_tnet_kernel(%arg0: i32, %arg1: i32, %arg2: memref<1x64x3xf32, #tpu.memory_space<vmem>>, %arg3: memref<1x3x64xbf16, #tpu.memory_space<vmem>>, %arg4: memref<1x64xf32, #tpu.memory_space<vmem>>, %arg5: memref<64x64xbf16, #tpu.memory_space<vmem>>, %arg6: memref<1x64xf32, #tpu.memory_space<vmem>>, %arg7: memref<64x128xbf16, #tpu.memory_space<vmem>>, %arg8: memref<1x128xf32, #tpu.memory_space<vmem>>, %arg9: memref<128x1024xbf16, #tpu.memory_space<vmem>>, %arg10: memref<1x1024xf32, #tpu.memory_space<vmem>>, %arg11: memref<1x64x64xbf16, #tpu.memory_space<vmem>>, %arg12: memref<1x1x1024xf32, #tpu.memory_space<vmem>>) attributes {dimension_semantics = [#tpu.dimension_semantics<parallel>, #tpu.dimension_semantics<arbitrary>], iteration_bounds = array<i64: 2, 1>, scalar_prefetch = 0 : i64, scratch_operands = 0 : i64, tpu.core_type = #tpu.core_type<tc>, window_params = [{transform_indices = @transform_0, window_bounds = array<i64: 1, 64, 3>}, {transform_indices = @transform_1, window_bounds = array<i64: 1, 3, 64>}, {pipeline_mode = #tpu.pipeline_mode<synchronous>, transform_indices = @transform_2, window_bounds = array<i64: 1, 64>}, {pipeline_mode = #tpu.pipeline_mode<synchronous>, transform_indices = @transform_3, window_bounds = array<i64: 64, 64>}, {pipeline_mode = #tpu.pipeline_mode<synchronous>, transform_indices = @transform_4, window_bounds = array<i64: 1, 64>}, {pipeline_mode = #tpu.pipeline_mode<synchronous>, transform_indices = @transform_5, window_bounds = array<i64: 64, 128>}, {pipeline_mode = #tpu.pipeline_mode<synchronous>, transform_indices = @transform_6, window_bounds = array<i64: 1, 128>}, {pipeline_mode = #tpu.pipeline_mode<synchronous>, transform_indices = @transform_7, window_bounds = array<i64: 128, 1024>}, {pipeline_mode = #tpu.pipeline_mode<synchronous>, transform_indices = @transform_8, window_bounds = array<i64: 1, 1024>}, {transform_indices = @transform_9, window_bounds = array<i64: 1, 64, 64>}, {transform_indices = @transform_10, window_bounds = array<i64: 1, 1, 1024>}]} {
    %c0_i32 = arith.constant 0 : i32
    %0 = arith.cmpi eq, %arg1, %c0_i32 : i32
    %1 = arith.extui %0 : i1 to i32
    %c0_i32_0 = arith.constant 0 : i32
    %2 = arith.cmpi ne, %1, %c0_i32_0 : i32
    scf.if %2 {
      %cst_37 = arith.constant 0xFF800000 : f32
      %49 = vector.broadcast %cst_37 : f32 to vector<1x1024xf32>
      %c0_38 = arith.constant 0 : index
      %c0_39 = arith.constant 0 : index
      %c0_40 = arith.constant 0 : index
      %50 = vector.load %arg12[%c0_38, %c0_39, %c0_40] : memref<1x1x1024xf32, #tpu.memory_space<vmem>>, vector<1x1x1024xf32>
      %51 = vector.shape_cast %50 : vector<1x1x1024xf32> to vector<1x1024xf32>
      %52 = vector.shape_cast %49 : vector<1x1024xf32> to vector<1x1x1024xf32>
      tpu.vector_store %arg12[%c0_38, %c0_39, %c0_40], %52 {strides = array<i32>} : memref<1x1x1024xf32, #tpu.memory_space<vmem>>, vector<1x1x1024xf32>,
    } else {
    }
    %c0 = arith.constant 0 : index
    %c0_1 = arith.constant 0 : index
    %c0_2 = arith.constant 0 : index
    %3 = vector.load %arg2[%c0, %c0_1, %c0_2] : memref<1x64x3xf32, #tpu.memory_space<vmem>>, vector<1x64x3xf32>
    %4 = vector.shape_cast %3 : vector<1x64x3xf32> to vector<64x3xf32>
    %c0_3 = arith.constant 0 : index
    %c0_4 = arith.constant 0 : index
    %c0_5 = arith.constant 0 : index
    %5 = vector.load %arg3[%c0_3, %c0_4, %c0_5] : memref<1x3x64xbf16, #tpu.memory_space<vmem>>, vector<1x3x64xbf16>
    %6 = vector.shape_cast %5 : vector<1x3x64xbf16> to vector<3x64xbf16>
    %7 = arith.truncf %4 : vector<64x3xf32> to vector<64x3xbf16>
    %cst = arith.constant dense<0.000000e+00> : vector<64x64xf32>
    %8 = tpu.matmul %7, %6, %cst {dimension_numbers = #tpu.dot_dimension_numbers<[1], [0], [0], [1], [0, 0, 1, 1], [], []>} : vector<64x3xbf16>, vector<3x64xbf16>, vector<64x64xf32> -> vector<64x64xf32>
    %c0_6 = arith.constant 0 : index
    %c0_7 = arith.constant 0 : index
    %9 = vector.load %arg4[%c0_6, %c0_7] : memref<1x64xf32, #tpu.memory_space<vmem>>, vector<1x64xf32>
    %10 = vector.broadcast %9 : vector<1x64xf32> to vector<64x64xf32>
    %11 = arith.addf %8, %10 : vector<64x64xf32>
    %cst_8 = arith.constant 0.000000e+00 : f32
    %12 = vector.broadcast %cst_8 : f32 to vector<64x64xf32>
    %13 = arith.maximumf %11, %12 : vector<64x64xf32>
    %14 = arith.truncf %13 : vector<64x64xf32> to vector<64x64xbf16>
    %c0_9 = arith.constant 0 : index
    %c0_10 = arith.constant 0 : index
    %c0_11 = arith.constant 0 : index
    %15 = vector.load %arg11[%c0_9, %c0_10, %c0_11] : memref<1x64x64xbf16, #tpu.memory_space<vmem>>, vector<1x64x64xbf16>
    %16 = vector.shape_cast %15 : vector<1x64x64xbf16> to vector<64x64xbf16>
    %17 = vector.shape_cast %14 : vector<64x64xbf16> to vector<1x64x64xbf16>
    tpu.vector_store %arg11[%c0_9, %c0_10, %c0_11], %17 {strides = array<i32>} : memref<1x64x64xbf16, #tpu.memory_space<vmem>>, vector<1x64x64xbf16>,
    %c0_12 = arith.constant 0 : index
    %c0_13 = arith.constant 0 : index
    %18 = vector.load %arg5[%c0_12, %c0_13] : memref<64x64xbf16, #tpu.memory_space<vmem>>, vector<64x64xbf16>
    %cst_14 = arith.constant dense<0.000000e+00> : vector<64x64xf32>
    %19 = tpu.matmul %14, %18, %cst_14 {dimension_numbers = #tpu.dot_dimension_numbers<[1], [0], [0], [1], [0, 0, 1, 1], [], []>} : vector<64x64xbf16>, vector<64x64xbf16>, vector<64x64xf32> -> vector<64x64xf32>
    %c0_15 = arith.constant 0 : index
    %c0_16 = arith.constant 0 : index
    %20 = vector.load %arg6[%c0_15, %c0_16] : memref<1x64xf32, #tpu.memory_space<vmem>>, vector<1x64xf32>
    %21 = vector.broadcast %20 : vector<1x64xf32> to vector<64x64xf32>
    %22 = arith.addf %19, %21 : vector<64x64xf32>
    %cst_17 = arith.constant 0.000000e+00 : f32
    %23 = vector.broadcast %cst_17 : f32 to vector<64x64xf32>
    %24 = arith.maximumf %22, %23 : vector<64x64xf32>
    %25 = arith.truncf %24 : vector<64x64xf32> to vector<64x64xbf16>
    %c0_18 = arith.constant 0 : index
    %c0_19 = arith.constant 0 : index
    %26 = vector.load %arg7[%c0_18, %c0_19] : memref<64x128xbf16, #tpu.memory_space<vmem>>, vector<64x128xbf16>
    %cst_20 = arith.constant dense<0.000000e+00> : vector<64x128xf32>
    %27 = tpu.matmul %25, %26, %cst_20 {dimension_numbers = #tpu.dot_dimension_numbers<[1], [0], [0], [1], [0, 0, 1, 1], [], []>} : vector<64x64xbf16>, vector<64x128xbf16>, vector<64x128xf32> -> vector<64x128xf32>
    %c0_21 = arith.constant 0 : index
    %c0_22 = arith.constant 0 : index
    %28 = vector.load %arg8[%c0_21, %c0_22] : memref<1x128xf32, #tpu.memory_space<vmem>>, vector<1x128xf32>
    %29 = vector.broadcast %28 : vector<1x128xf32> to vector<64x128xf32>
    %30 = arith.addf %27, %29 : vector<64x128xf32>
    %cst_23 = arith.constant 0.000000e+00 : f32
    %31 = vector.broadcast %cst_23 : f32 to vector<64x128xf32>
    %32 = arith.maximumf %30, %31 : vector<64x128xf32>
    %33 = arith.truncf %32 : vector<64x128xf32> to vector<64x128xbf16>
    %c0_24 = arith.constant 0 : index
    %c0_25 = arith.constant 0 : index
    %34 = vector.load %arg9[%c0_24, %c0_25] : memref<128x1024xbf16, #tpu.memory_space<vmem>>, vector<128x1024xbf16>
    %cst_26 = arith.constant dense<0.000000e+00> : vector<64x1024xf32>
    %35 = tpu.matmul %33, %34, %cst_26 {dimension_numbers = #tpu.dot_dimension_numbers<[1], [0], [0], [1], [0, 0, 1, 1], [], []>} : vector<64x128xbf16>, vector<128x1024xbf16>, vector<64x1024xf32> -> vector<64x1024xf32>
    %c0_27 = arith.constant 0 : index
    %c0_28 = arith.constant 0 : index
    %36 = vector.load %arg10[%c0_27, %c0_28] : memref<1x1024xf32, #tpu.memory_space<vmem>>, vector<1x1024xf32>
    %37 = vector.broadcast %36 : vector<1x1024xf32> to vector<64x1024xf32>
    %38 = arith.addf %35, %37 : vector<64x1024xf32>
    %cst_29 = arith.constant 0.000000e+00 : f32
    %39 = vector.broadcast %cst_29 : f32 to vector<64x1024xf32>
    %40 = arith.maximumf %38, %39 : vector<64x1024xf32>
    %c0_30 = arith.constant 0 : index
    %c0_31 = arith.constant 0 : index
    %c0_32 = arith.constant 0 : index
    %41 = vector.load %arg12[%c0_30, %c0_31, %c0_32] : memref<1x1x1024xf32, #tpu.memory_space<vmem>>, vector<1x1x1024xf32>
    %42 = vector.shape_cast %41 : vector<1x1x1024xf32> to vector<1x1024xf32>
    %cst_33 = arith.constant dense<0xFF800000> : vector<1024xf32>
    %43 = vector.multi_reduction <maximumf>, %40, %cst_33 [0] : vector<64x1024xf32> to vector<1024xf32>
    %44 = vector.shape_cast %43 : vector<1024xf32> to vector<1x1024xf32>
    %45 = arith.maximumf %42, %44 : vector<1x1024xf32>
    %c0_34 = arith.constant 0 : index
    %c0_35 = arith.constant 0 : index
    %c0_36 = arith.constant 0 : index
    %46 = vector.load %arg12[%c0_34, %c0_35, %c0_36] : memref<1x1x1024xf32, #tpu.memory_space<vmem>>, vector<1x1x1024xf32>
    %47 = vector.shape_cast %46 : vector<1x1x1024xf32> to vector<1x1024xf32>
    %48 = vector.shape_cast %45 : vector<1x1024xf32> to vector<1x1x1024xf32>
    tpu.vector_store %arg12[%c0_34, %c0_35, %c0_36], %48 {strides = array<i32>} : memref<1x1x1024xf32, #tpu.memory_space<vmem>>, vector<1x1x1024xf32>,
    return
  }
  func.func @transform_0(%arg0: i32, %arg1: i32) -> (i32, i32, i32) {
    %c0_i32 = arith.constant 0 : i32
    %c0_i32_0 = arith.constant 0 : i32
    return %arg0, %arg1, %c0_i32 : i32, i32, i32
  }
  func.func @transform_1(%arg0: i32, %arg1: i32) -> (i32, i32, i32) {
    %c0_i32 = arith.constant 0 : i32
    %c0_i32_0 = arith.constant 0 : i32
    %c0_i32_1 = arith.constant 0 : i32
    return %arg0, %c0_i32, %c0_i32_0 : i32, i32, i32
  }
  func.func @transform_2(%arg0: i32, %arg1: i32) -> (i32, i32) {
    %c0_i32 = arith.constant 0 : i32
    %c0_i32_0 = arith.constant 0 : i32
    %c0_i32_1 = arith.constant 0 : i32
    return %c0_i32, %c0_i32_0 : i32, i32
  }
  func.func @transform_3(%arg0: i32, %arg1: i32) -> (i32, i32) {
    %c0_i32 = arith.constant 0 : i32
    %c0_i32_0 = arith.constant 0 : i32
    %c0_i32_1 = arith.constant 0 : i32
    return %c0_i32, %c0_i32_0 : i32, i32
  }
  func.func @transform_4(%arg0: i32, %arg1: i32) -> (i32, i32) {
    %c0_i32 = arith.constant 0 : i32
    %c0_i32_0 = arith.constant 0 : i32
    %c0_i32_1 = arith.constant 0 : i32
    return %c0_i32, %c0_i32_0 : i32, i32
  }
  func.func @transform_5(%arg0: i32, %arg1: i32) -> (i32, i32) {
    %c0_i32 = arith.constant 0 : i32
    %c0_i32_0 = arith.constant 0 : i32
    %c0_i32_1 = arith.constant 0 : i32
    return %c0_i32, %c0_i32_0 : i32, i32
  }
  func.func @transform_6(%arg0: i32, %arg1: i32) -> (i32, i32) {
    %c0_i32 = arith.constant 0 : i32
    %c0_i32_0 = arith.constant 0 : i32
    %c0_i32_1 = arith.constant 0 : i32
    return %c0_i32, %c0_i32_0 : i32, i32
  }
  func.func @transform_7(%arg0: i32, %arg1: i32) -> (i32, i32) {
    %c0_i32 = arith.constant 0 : i32
    %c0_i32_0 = arith.constant 0 : i32
    %c0_i32_1 = arith.constant 0 : i32
    return %c0_i32, %c0_i32_0 : i32, i32
  }
  func.func @transform_8(%arg0: i32, %arg1: i32) -> (i32, i32) {
    %c0_i32 = arith.constant 0 : i32
    %c0_i32_0 = arith.constant 0 : i32
    %c0_i32_1 = arith.constant 0 : i32
    return %c0_i32, %c0_i32_0 : i32, i32
  }
  func.func @transform_9(%arg0: i32, %arg1: i32) -> (i32, i32, i32) {
    %c0_i32 = arith.constant 0 : i32
    %c0_i32_0 = arith.constant 0 : i32
    return %arg0, %arg1, %c0_i32 : i32, i32, i32
  }
  func.func @transform_10(%arg0: i32, %arg1: i32) -> (i32, i32, i32) {
    %c0_i32 = arith.constant 0 : i32
    %c0_i32_0 = arith.constant 0 : i32
    %c0_i32_1 = arith.constant 0 : i32
    return %arg0, %c0_i32, %c0_i32_0 : i32, i32, i32
  }
}

module attributes {stable_mosaic.version = 11 : i64} {
  func.func @_mlp_head_kernel(%arg0: i32, %arg1: memref<8x1024xf32, #tpu.memory_space<vmem>>, %arg2: memref<1024x512xbf16, #tpu.memory_space<vmem>>, %arg3: memref<1x512xf32, #tpu.memory_space<vmem>>, %arg4: memref<512x256xbf16, #tpu.memory_space<vmem>>, %arg5: memref<1x256xf32, #tpu.memory_space<vmem>>, %arg6: memref<256x4096xbf16, #tpu.memory_space<vmem>>, %arg7: memref<1x4096xf32, #tpu.memory_space<vmem>>, %arg8: memref<8x4096xf32, #tpu.memory_space<vmem>>) attributes {dimension_semantics = [#tpu.dimension_semantics<parallel>], iteration_bounds = array<i64: 1>, scalar_prefetch = 0 : i64, scratch_operands = 0 : i64, tpu.core_type = #tpu.core_type<tc>, window_params = [{transform_indices = @transform_0, window_bounds = array<i64: 8, 1024>}, {pipeline_mode = #tpu.pipeline_mode<synchronous>, transform_indices = @transform_1, window_bounds = array<i64: 1024, 512>}, {pipeline_mode = #tpu.pipeline_mode<synchronous>, transform_indices = @transform_2, window_bounds = array<i64: 1, 512>}, {pipeline_mode = #tpu.pipeline_mode<synchronous>, transform_indices = @transform_3, window_bounds = array<i64: 512, 256>}, {pipeline_mode = #tpu.pipeline_mode<synchronous>, transform_indices = @transform_4, window_bounds = array<i64: 1, 256>}, {pipeline_mode = #tpu.pipeline_mode<synchronous>, transform_indices = @transform_5, window_bounds = array<i64: 256, 4096>}, {pipeline_mode = #tpu.pipeline_mode<synchronous>, transform_indices = @transform_6, window_bounds = array<i64: 1, 4096>}, {transform_indices = @transform_7, window_bounds = array<i64: 8, 4096>}]} {
    %c0 = arith.constant 0 : index
    %c0_0 = arith.constant 0 : index
    %0 = vector.load %arg1[%c0, %c0_0] : memref<8x1024xf32, #tpu.memory_space<vmem>>, vector<8x1024xf32>
    %c0_1 = arith.constant 0 : index
    %c0_2 = arith.constant 0 : index
    %1 = vector.load %arg2[%c0_1, %c0_2] : memref<1024x512xbf16, #tpu.memory_space<vmem>>, vector<1024x512xbf16>
    %2 = arith.truncf %0 : vector<8x1024xf32> to vector<8x1024xbf16>
    %cst = arith.constant dense<0.000000e+00> : vector<8x512xf32>
    %3 = tpu.matmul %2, %1, %cst {dimension_numbers = #tpu.dot_dimension_numbers<[1], [0], [0], [1], [0, 0, 1, 1], [], []>} : vector<8x1024xbf16>, vector<1024x512xbf16>, vector<8x512xf32> -> vector<8x512xf32>
    %c0_3 = arith.constant 0 : index
    %c0_4 = arith.constant 0 : index
    %4 = vector.load %arg3[%c0_3, %c0_4] : memref<1x512xf32, #tpu.memory_space<vmem>>, vector<1x512xf32>
    %5 = vector.broadcast %4 : vector<1x512xf32> to vector<8x512xf32>
    %6 = arith.addf %3, %5 : vector<8x512xf32>
    %cst_5 = arith.constant 0.000000e+00 : f32
    %7 = vector.broadcast %cst_5 : f32 to vector<8x512xf32>
    %8 = arith.maximumf %6, %7 : vector<8x512xf32>
    %c0_6 = arith.constant 0 : index
    %c0_7 = arith.constant 0 : index
    %9 = vector.load %arg4[%c0_6, %c0_7] : memref<512x256xbf16, #tpu.memory_space<vmem>>, vector<512x256xbf16>
    %10 = arith.truncf %8 : vector<8x512xf32> to vector<8x512xbf16>
    %cst_8 = arith.constant dense<0.000000e+00> : vector<8x256xf32>
    %11 = tpu.matmul %10, %9, %cst_8 {dimension_numbers = #tpu.dot_dimension_numbers<[1], [0], [0], [1], [0, 0, 1, 1], [], []>} : vector<8x512xbf16>, vector<512x256xbf16>, vector<8x256xf32> -> vector<8x256xf32>
    %c0_9 = arith.constant 0 : index
    %c0_10 = arith.constant 0 : index
    %12 = vector.load %arg5[%c0_9, %c0_10] : memref<1x256xf32, #tpu.memory_space<vmem>>, vector<1x256xf32>
    %13 = vector.broadcast %12 : vector<1x256xf32> to vector<8x256xf32>
    %14 = arith.addf %11, %13 : vector<8x256xf32>
    %cst_11 = arith.constant 0.000000e+00 : f32
    %15 = vector.broadcast %cst_11 : f32 to vector<8x256xf32>
    %16 = arith.maximumf %14, %15 : vector<8x256xf32>
    %c0_12 = arith.constant 0 : index
    %c0_13 = arith.constant 0 : index
    %17 = vector.load %arg6[%c0_12, %c0_13] : memref<256x4096xbf16, #tpu.memory_space<vmem>>, vector<256x4096xbf16>
    %18 = arith.truncf %16 : vector<8x256xf32> to vector<8x256xbf16>
    %cst_14 = arith.constant dense<0.000000e+00> : vector<8x4096xf32>
    %19 = tpu.matmul %18, %17, %cst_14 {dimension_numbers = #tpu.dot_dimension_numbers<[1], [0], [0], [1], [0, 0, 1, 1], [], []>} : vector<8x256xbf16>, vector<256x4096xbf16>, vector<8x4096xf32> -> vector<8x4096xf32>
    %c0_15 = arith.constant 0 : index
    %c0_16 = arith.constant 0 : index
    %20 = vector.load %arg7[%c0_15, %c0_16] : memref<1x4096xf32, #tpu.memory_space<vmem>>, vector<1x4096xf32>
    %21 = vector.broadcast %20 : vector<1x4096xf32> to vector<8x4096xf32>
    %22 = arith.addf %19, %21 : vector<8x4096xf32>
    %c0_17 = arith.constant 0 : index
    %c0_18 = arith.constant 0 : index
    %23 = vector.load %arg8[%c0_17, %c0_18] : memref<8x4096xf32, #tpu.memory_space<vmem>>, vector<8x4096xf32>
    tpu.vector_store %arg8[%c0_17, %c0_18], %22 {strides = array<i32>} : memref<8x4096xf32, #tpu.memory_space<vmem>>, vector<8x4096xf32>,
    return
  }
  func.func @transform_0(%arg0: i32) -> (i32, i32) {
    %c0_i32 = arith.constant 0 : i32
    %c0_i32_0 = arith.constant 0 : i32
    return %arg0, %c0_i32 : i32, i32
  }
  func.func @transform_1(%arg0: i32) -> (i32, i32) {
    %c0_i32 = arith.constant 0 : i32
    %c0_i32_0 = arith.constant 0 : i32
    %c0_i32_1 = arith.constant 0 : i32
    return %c0_i32, %c0_i32_0 : i32, i32
  }
  func.func @transform_2(%arg0: i32) -> (i32, i32) {
    %c0_i32 = arith.constant 0 : i32
    %c0_i32_0 = arith.constant 0 : i32
    %c0_i32_1 = arith.constant 0 : i32
    return %c0_i32, %c0_i32_0 : i32, i32
  }
  func.func @transform_3(%arg0: i32) -> (i32, i32) {
    %c0_i32 = arith.constant 0 : i32
    %c0_i32_0 = arith.constant 0 : i32
    %c0_i32_1 = arith.constant 0 : i32
    return %c0_i32, %c0_i32_0 : i32, i32
  }
  func.func @transform_4(%arg0: i32) -> (i32, i32) {
    %c0_i32 = arith.constant 0 : i32
    %c0_i32_0 = arith.constant 0 : i32
    %c0_i32_1 = arith.constant 0 : i32
    return %c0_i32, %c0_i32_0 : i32, i32
  }
  func.func @transform_5(%arg0: i32) -> (i32, i32) {
    %c0_i32 = arith.constant 0 : i32
    %c0_i32_0 = arith.constant 0 : i32
    %c0_i32_1 = arith.constant 0 : i32
    return %c0_i32, %c0_i32_0 : i32, i32
  }
  func.func @transform_6(%arg0: i32) -> (i32, i32) {
    %c0_i32 = arith.constant 0 : i32
    %c0_i32_0 = arith.constant 0 : i32
    %c0_i32_1 = arith.constant 0 : i32
    return %c0_i32, %c0_i32_0 : i32, i32
  }
  func.func @transform_7(%arg0: i32) -> (i32, i32) {
    %c0_i32 = arith.constant 0 : i32
    %c0_i32_0 = arith.constant 0 : i32
    return %arg0, %c0_i32 : i32, i32
  }
}

module attributes {stable_mosaic.version = 11 : i64} {
  func.func @_trunk_conv_pool_kernel(%arg0: i32, %arg1: i32, %arg2: memref<1x64x64xbf16, #tpu.memory_space<vmem>>, %arg3: memref<1x64x128xbf16, #tpu.memory_space<vmem>>, %arg4: memref<1x128xf32, #tpu.memory_space<vmem>>, %arg5: memref<128x256xbf16, #tpu.memory_space<vmem>>, %arg6: memref<1x256xf32, #tpu.memory_space<vmem>>, %arg7: memref<256x512xbf16, #tpu.memory_space<vmem>>, %arg8: memref<1x512xf32, #tpu.memory_space<vmem>>, %arg9: memref<1x1x512xf32, #tpu.memory_space<vmem>>) attributes {dimension_semantics = [#tpu.dimension_semantics<parallel>, #tpu.dimension_semantics<arbitrary>], iteration_bounds = array<i64: 2, 1>, scalar_prefetch = 0 : i64, scratch_operands = 0 : i64, tpu.core_type = #tpu.core_type<tc>, window_params = [{transform_indices = @transform_0, window_bounds = array<i64: 1, 64, 64>}, {transform_indices = @transform_1, window_bounds = array<i64: 1, 64, 128>}, {pipeline_mode = #tpu.pipeline_mode<synchronous>, transform_indices = @transform_2, window_bounds = array<i64: 1, 128>}, {pipeline_mode = #tpu.pipeline_mode<synchronous>, transform_indices = @transform_3, window_bounds = array<i64: 128, 256>}, {pipeline_mode = #tpu.pipeline_mode<synchronous>, transform_indices = @transform_4, window_bounds = array<i64: 1, 256>}, {pipeline_mode = #tpu.pipeline_mode<synchronous>, transform_indices = @transform_5, window_bounds = array<i64: 256, 512>}, {pipeline_mode = #tpu.pipeline_mode<synchronous>, transform_indices = @transform_6, window_bounds = array<i64: 1, 512>}, {transform_indices = @transform_7, window_bounds = array<i64: 1, 1, 512>}]} {
    %c0_i32 = arith.constant 0 : i32
    %0 = arith.cmpi eq, %arg1, %c0_i32 : i32
    %1 = arith.extui %0 : i1 to i32
    %c0_i32_0 = arith.constant 0 : i32
    %2 = arith.cmpi ne, %1, %c0_i32_0 : i32
    scf.if %2 {
      %cst_28 = arith.constant 0xFF800000 : f32
      %37 = vector.broadcast %cst_28 : f32 to vector<1x512xf32>
      %c0_29 = arith.constant 0 : index
      %c0_30 = arith.constant 0 : index
      %c0_31 = arith.constant 0 : index
      %38 = vector.load %arg9[%c0_29, %c0_30, %c0_31] : memref<1x1x512xf32, #tpu.memory_space<vmem>>, vector<1x1x512xf32>
      %39 = vector.shape_cast %38 : vector<1x1x512xf32> to vector<1x512xf32>
      %40 = vector.shape_cast %37 : vector<1x512xf32> to vector<1x1x512xf32>
      tpu.vector_store %arg9[%c0_29, %c0_30, %c0_31], %40 {strides = array<i32>} : memref<1x1x512xf32, #tpu.memory_space<vmem>>, vector<1x1x512xf32>,
    } else {
    }
    %c0 = arith.constant 0 : index
    %c0_1 = arith.constant 0 : index
    %c0_2 = arith.constant 0 : index
    %3 = vector.load %arg2[%c0, %c0_1, %c0_2] : memref<1x64x64xbf16, #tpu.memory_space<vmem>>, vector<1x64x64xbf16>
    %4 = vector.shape_cast %3 : vector<1x64x64xbf16> to vector<64x64xbf16>
    %c0_3 = arith.constant 0 : index
    %c0_4 = arith.constant 0 : index
    %c0_5 = arith.constant 0 : index
    %5 = vector.load %arg3[%c0_3, %c0_4, %c0_5] : memref<1x64x128xbf16, #tpu.memory_space<vmem>>, vector<1x64x128xbf16>
    %6 = vector.shape_cast %5 : vector<1x64x128xbf16> to vector<64x128xbf16>
    %cst = arith.constant dense<0.000000e+00> : vector<64x128xf32>
    %7 = tpu.matmul %4, %6, %cst {dimension_numbers = #tpu.dot_dimension_numbers<[1], [0], [0], [1], [0, 0, 1, 1], [], []>} : vector<64x64xbf16>, vector<64x128xbf16>, vector<64x128xf32> -> vector<64x128xf32>
    %c0_6 = arith.constant 0 : index
    %c0_7 = arith.constant 0 : index
    %8 = vector.load %arg4[%c0_6, %c0_7] : memref<1x128xf32, #tpu.memory_space<vmem>>, vector<1x128xf32>
    %9 = vector.broadcast %8 : vector<1x128xf32> to vector<64x128xf32>
    %10 = arith.addf %7, %9 : vector<64x128xf32>
    %cst_8 = arith.constant 0.000000e+00 : f32
    %11 = vector.broadcast %cst_8 : f32 to vector<64x128xf32>
    %12 = arith.maximumf %10, %11 : vector<64x128xf32>
    %13 = arith.truncf %12 : vector<64x128xf32> to vector<64x128xbf16>
    %c0_9 = arith.constant 0 : index
    %c0_10 = arith.constant 0 : index
    %14 = vector.load %arg5[%c0_9, %c0_10] : memref<128x256xbf16, #tpu.memory_space<vmem>>, vector<128x256xbf16>
    %cst_11 = arith.constant dense<0.000000e+00> : vector<64x256xf32>
    %15 = tpu.matmul %13, %14, %cst_11 {dimension_numbers = #tpu.dot_dimension_numbers<[1], [0], [0], [1], [0, 0, 1, 1], [], []>} : vector<64x128xbf16>, vector<128x256xbf16>, vector<64x256xf32> -> vector<64x256xf32>
    %c0_12 = arith.constant 0 : index
    %c0_13 = arith.constant 0 : index
    %16 = vector.load %arg6[%c0_12, %c0_13] : memref<1x256xf32, #tpu.memory_space<vmem>>, vector<1x256xf32>
    %17 = vector.broadcast %16 : vector<1x256xf32> to vector<64x256xf32>
    %18 = arith.addf %15, %17 : vector<64x256xf32>
    %cst_14 = arith.constant 0.000000e+00 : f32
    %19 = vector.broadcast %cst_14 : f32 to vector<64x256xf32>
    %20 = arith.maximumf %18, %19 : vector<64x256xf32>
    %21 = arith.truncf %20 : vector<64x256xf32> to vector<64x256xbf16>
    %c0_15 = arith.constant 0 : index
    %c0_16 = arith.constant 0 : index
    %22 = vector.load %arg7[%c0_15, %c0_16] : memref<256x512xbf16, #tpu.memory_space<vmem>>, vector<256x512xbf16>
    %cst_17 = arith.constant dense<0.000000e+00> : vector<64x512xf32>
    %23 = tpu.matmul %21, %22, %cst_17 {dimension_numbers = #tpu.dot_dimension_numbers<[1], [0], [0], [1], [0, 0, 1, 1], [], []>} : vector<64x256xbf16>, vector<256x512xbf16>, vector<64x512xf32> -> vector<64x512xf32>
    %c0_18 = arith.constant 0 : index
    %c0_19 = arith.constant 0 : index
    %24 = vector.load %arg8[%c0_18, %c0_19] : memref<1x512xf32, #tpu.memory_space<vmem>>, vector<1x512xf32>
    %25 = vector.broadcast %24 : vector<1x512xf32> to vector<64x512xf32>
    %26 = arith.addf %23, %25 : vector<64x512xf32>
    %cst_20 = arith.constant 0.000000e+00 : f32
    %27 = vector.broadcast %cst_20 : f32 to vector<64x512xf32>
    %28 = arith.maximumf %26, %27 : vector<64x512xf32>
    %c0_21 = arith.constant 0 : index
    %c0_22 = arith.constant 0 : index
    %c0_23 = arith.constant 0 : index
    %29 = vector.load %arg9[%c0_21, %c0_22, %c0_23] : memref<1x1x512xf32, #tpu.memory_space<vmem>>, vector<1x1x512xf32>
    %30 = vector.shape_cast %29 : vector<1x1x512xf32> to vector<1x512xf32>
    %cst_24 = arith.constant dense<0xFF800000> : vector<512xf32>
    %31 = vector.multi_reduction <maximumf>, %28, %cst_24 [0] : vector<64x512xf32> to vector<512xf32>
    %32 = vector.shape_cast %31 : vector<512xf32> to vector<1x512xf32>
    %33 = arith.maximumf %30, %32 : vector<1x512xf32>
    %c0_25 = arith.constant 0 : index
    %c0_26 = arith.constant 0 : index
    %c0_27 = arith.constant 0 : index
    %34 = vector.load %arg9[%c0_25, %c0_26, %c0_27] : memref<1x1x512xf32, #tpu.memory_space<vmem>>, vector<1x1x512xf32>
    %35 = vector.shape_cast %34 : vector<1x1x512xf32> to vector<1x512xf32>
    %36 = vector.shape_cast %33 : vector<1x512xf32> to vector<1x1x512xf32>
    tpu.vector_store %arg9[%c0_25, %c0_26, %c0_27], %36 {strides = array<i32>} : memref<1x1x512xf32, #tpu.memory_space<vmem>>, vector<1x1x512xf32>,
    return
  }
  func.func @transform_0(%arg0: i32, %arg1: i32) -> (i32, i32, i32) {
    %c0_i32 = arith.constant 0 : i32
    %c0_i32_0 = arith.constant 0 : i32
    return %arg0, %arg1, %c0_i32 : i32, i32, i32
  }
  func.func @transform_1(%arg0: i32, %arg1: i32) -> (i32, i32, i32) {
    %c0_i32 = arith.constant 0 : i32
    %c0_i32_0 = arith.constant 0 : i32
    %c0_i32_1 = arith.constant 0 : i32
    return %arg0, %c0_i32, %c0_i32_0 : i32, i32, i32
  }
  func.func @transform_2(%arg0: i32, %arg1: i32) -> (i32, i32) {
    %c0_i32 = arith.constant 0 : i32
    %c0_i32_0 = arith.constant 0 : i32
    %c0_i32_1 = arith.constant 0 : i32
    return %c0_i32, %c0_i32_0 : i32, i32
  }
  func.func @transform_3(%arg0: i32, %arg1: i32) -> (i32, i32) {
    %c0_i32 = arith.constant 0 : i32
    %c0_i32_0 = arith.constant 0 : i32
    %c0_i32_1 = arith.constant 0 : i32
    return %c0_i32, %c0_i32_0 : i32, i32
  }
  func.func @transform_4(%arg0: i32, %arg1: i32) -> (i32, i32) {
    %c0_i32 = arith.constant 0 : i32
    %c0_i32_0 = arith.constant 0 : i32
    %c0_i32_1 = arith.constant 0 : i32
    return %c0_i32, %c0_i32_0 : i32, i32
  }
  func.func @transform_5(%arg0: i32, %arg1: i32) -> (i32, i32) {
    %c0_i32 = arith.constant 0 : i32
    %c0_i32_0 = arith.constant 0 : i32
    %c0_i32_1 = arith.constant 0 : i32
    return %c0_i32, %c0_i32_0 : i32, i32
  }
  func.func @transform_6(%arg0: i32, %arg1: i32) -> (i32, i32) {
    %c0_i32 = arith.constant 0 : i32
    %c0_i32_0 = arith.constant 0 : i32
    %c0_i32_1 = arith.constant 0 : i32
    return %c0_i32, %c0_i32_0 : i32, i32
  }
  func.func @transform_7(%arg0: i32, %arg1: i32) -> (i32, i32, i32) {
    %c0_i32 = arith.constant 0 : i32
    %c0_i32_0 = arith.constant 0 : i32
    %c0_i32_1 = arith.constant 0 : i32
    return %arg0, %c0_i32, %c0_i32_0 : i32, i32, i32
  }
}

module attributes {stable_mosaic.version = 11 : i64} {
  func.func @_mlp_head_kernel(%arg0: i32, %arg1: memref<8x512xf32, #tpu.memory_space<vmem>>, %arg2: memref<512x512xbf16, #tpu.memory_space<vmem>>, %arg3: memref<1x512xf32, #tpu.memory_space<vmem>>, %arg4: memref<512x256xbf16, #tpu.memory_space<vmem>>, %arg5: memref<1x256xf32, #tpu.memory_space<vmem>>, %arg6: memref<256x10xbf16, #tpu.memory_space<vmem>>, %arg7: memref<1x10xf32, #tpu.memory_space<vmem>>, %arg8: memref<8x10xf32, #tpu.memory_space<vmem>>) attributes {dimension_semantics = [#tpu.dimension_semantics<parallel>], iteration_bounds = array<i64: 1>, scalar_prefetch = 0 : i64, scratch_operands = 0 : i64, tpu.core_type = #tpu.core_type<tc>, window_params = [{transform_indices = @transform_0, window_bounds = array<i64: 8, 512>}, {pipeline_mode = #tpu.pipeline_mode<synchronous>, transform_indices = @transform_1, window_bounds = array<i64: 512, 512>}, {pipeline_mode = #tpu.pipeline_mode<synchronous>, transform_indices = @transform_2, window_bounds = array<i64: 1, 512>}, {pipeline_mode = #tpu.pipeline_mode<synchronous>, transform_indices = @transform_3, window_bounds = array<i64: 512, 256>}, {pipeline_mode = #tpu.pipeline_mode<synchronous>, transform_indices = @transform_4, window_bounds = array<i64: 1, 256>}, {pipeline_mode = #tpu.pipeline_mode<synchronous>, transform_indices = @transform_5, window_bounds = array<i64: 256, 10>}, {pipeline_mode = #tpu.pipeline_mode<synchronous>, transform_indices = @transform_6, window_bounds = array<i64: 1, 10>}, {transform_indices = @transform_7, window_bounds = array<i64: 8, 10>}]} {
    %c0 = arith.constant 0 : index
    %c0_0 = arith.constant 0 : index
    %0 = vector.load %arg1[%c0, %c0_0] : memref<8x512xf32, #tpu.memory_space<vmem>>, vector<8x512xf32>
    %c0_1 = arith.constant 0 : index
    %c0_2 = arith.constant 0 : index
    %1 = vector.load %arg2[%c0_1, %c0_2] : memref<512x512xbf16, #tpu.memory_space<vmem>>, vector<512x512xbf16>
    %2 = arith.truncf %0 : vector<8x512xf32> to vector<8x512xbf16>
    %cst = arith.constant dense<0.000000e+00> : vector<8x512xf32>
    %3 = tpu.matmul %2, %1, %cst {dimension_numbers = #tpu.dot_dimension_numbers<[1], [0], [0], [1], [0, 0, 1, 1], [], []>} : vector<8x512xbf16>, vector<512x512xbf16>, vector<8x512xf32> -> vector<8x512xf32>
    %c0_3 = arith.constant 0 : index
    %c0_4 = arith.constant 0 : index
    %4 = vector.load %arg3[%c0_3, %c0_4] : memref<1x512xf32, #tpu.memory_space<vmem>>, vector<1x512xf32>
    %5 = vector.broadcast %4 : vector<1x512xf32> to vector<8x512xf32>
    %6 = arith.addf %3, %5 : vector<8x512xf32>
    %cst_5 = arith.constant 0.000000e+00 : f32
    %7 = vector.broadcast %cst_5 : f32 to vector<8x512xf32>
    %8 = arith.maximumf %6, %7 : vector<8x512xf32>
    %c0_6 = arith.constant 0 : index
    %c0_7 = arith.constant 0 : index
    %9 = vector.load %arg4[%c0_6, %c0_7] : memref<512x256xbf16, #tpu.memory_space<vmem>>, vector<512x256xbf16>
    %10 = arith.truncf %8 : vector<8x512xf32> to vector<8x512xbf16>
    %cst_8 = arith.constant dense<0.000000e+00> : vector<8x256xf32>
    %11 = tpu.matmul %10, %9, %cst_8 {dimension_numbers = #tpu.dot_dimension_numbers<[1], [0], [0], [1], [0, 0, 1, 1], [], []>} : vector<8x512xbf16>, vector<512x256xbf16>, vector<8x256xf32> -> vector<8x256xf32>
    %c0_9 = arith.constant 0 : index
    %c0_10 = arith.constant 0 : index
    %12 = vector.load %arg5[%c0_9, %c0_10] : memref<1x256xf32, #tpu.memory_space<vmem>>, vector<1x256xf32>
    %13 = vector.broadcast %12 : vector<1x256xf32> to vector<8x256xf32>
    %14 = arith.addf %11, %13 : vector<8x256xf32>
    %cst_11 = arith.constant 0.000000e+00 : f32
    %15 = vector.broadcast %cst_11 : f32 to vector<8x256xf32>
    %16 = arith.maximumf %14, %15 : vector<8x256xf32>
    %c0_12 = arith.constant 0 : index
    %c0_13 = arith.constant 0 : index
    %17 = vector.load %arg6[%c0_12, %c0_13] : memref<256x10xbf16, #tpu.memory_space<vmem>>, vector<256x10xbf16>
    %18 = arith.truncf %16 : vector<8x256xf32> to vector<8x256xbf16>
    %cst_14 = arith.constant dense<0.000000e+00> : vector<8x10xf32>
    %19 = tpu.matmul %18, %17, %cst_14 {dimension_numbers = #tpu.dot_dimension_numbers<[1], [0], [0], [1], [0, 0, 1, 1], [], []>} : vector<8x256xbf16>, vector<256x10xbf16>, vector<8x10xf32> -> vector<8x10xf32>
    %c0_15 = arith.constant 0 : index
    %c0_16 = arith.constant 0 : index
    %20 = vector.load %arg7[%c0_15, %c0_16] : memref<1x10xf32, #tpu.memory_space<vmem>>, vector<1x10xf32>
    %21 = vector.broadcast %20 : vector<1x10xf32> to vector<8x10xf32>
    %22 = arith.addf %19, %21 : vector<8x10xf32>
    %cst_17 = arith.constant dense<0xFF800000> : vector<8xf32>
    %23 = vector.multi_reduction <maximumf>, %22, %cst_17 [1] : vector<8x10xf32> to vector<8xf32>
    %24 = vector.shape_cast %23 : vector<8xf32> to vector<8x1xf32>
    %25 = vector.broadcast %24 : vector<8x1xf32> to vector<8x10xf32>
    %26 = arith.subf %22, %25 : vector<8x10xf32>
    %27 = math.exp %26 : vector<8x10xf32>
    %cst_18 = arith.constant dense<0.000000e+00> : vector<8xf32>
    %28 = vector.multi_reduction <add>, %27, %cst_18 [1] : vector<8x10xf32> to vector<8xf32>
    %29 = vector.shape_cast %28 : vector<8xf32> to vector<8x1xf32>
    %30 = math.log %29 : vector<8x1xf32>
    %31 = vector.broadcast %30 : vector<8x1xf32> to vector<8x10xf32>
    %32 = arith.subf %26, %31 : vector<8x10xf32>
    %c0_19 = arith.constant 0 : index
    %c0_20 = arith.constant 0 : index
    %33 = vector.load %arg8[%c0_19, %c0_20] : memref<8x10xf32, #tpu.memory_space<vmem>>, vector<8x10xf32>
    tpu.vector_store %arg8[%c0_19, %c0_20], %32 {strides = array<i32>} : memref<8x10xf32, #tpu.memory_space<vmem>>, vector<8x10xf32>,
    return
  }
  func.func @transform_0(%arg0: i32) -> (i32, i32) {
    %c0_i32 = arith.constant 0 : i32
    %c0_i32_0 = arith.constant 0 : i32
    return %arg0, %c0_i32 : i32, i32
  }
  func.func @transform_1(%arg0: i32) -> (i32, i32) {
    %c0_i32 = arith.constant 0 : i32
    %c0_i32_0 = arith.constant 0 : i32
    %c0_i32_1 = arith.constant 0 : i32
    return %c0_i32, %c0_i32_0 : i32, i32
  }
  func.func @transform_2(%arg0: i32) -> (i32, i32) {
    %c0_i32 = arith.constant 0 : i32
    %c0_i32_0 = arith.constant 0 : i32
    %c0_i32_1 = arith.constant 0 : i32
    return %c0_i32, %c0_i32_0 : i32, i32
  }
  func.func @transform_3(%arg0: i32) -> (i32, i32) {
    %c0_i32 = arith.constant 0 : i32
    %c0_i32_0 = arith.constant 0 : i32
    %c0_i32_1 = arith.constant 0 : i32
    return %c0_i32, %c0_i32_0 : i32, i32
  }
  func.func @transform_4(%arg0: i32) -> (i32, i32) {
    %c0_i32 = arith.constant 0 : i32
    %c0_i32_0 = arith.constant 0 : i32
    %c0_i32_1 = arith.constant 0 : i32
    return %c0_i32, %c0_i32_0 : i32, i32
  }
  func.func @transform_5(%arg0: i32) -> (i32, i32) {
    %c0_i32 = arith.constant 0 : i32
    %c0_i32_0 = arith.constant 0 : i32
    %c0_i32_1 = arith.constant 0 : i32
    return %c0_i32, %c0_i32_0 : i32, i32
  }
  func.func @transform_6(%arg0: i32) -> (i32, i32) {
    %c0_i32 = arith.constant 0 : i32
    %c0_i32_0 = arith.constant 0 : i32
    %c0_i32_1 = arith.constant 0 : i32
    return %c0_i32, %c0_i32_0 : i32, i32
  }
  func.func @transform_7(%arg0: i32) -> (i32, i32) {
    %c0_i32 = arith.constant 0 : i32
    %c0_i32_0 = arith.constant 0 : i32
    return %arg0, %c0_i32 : i32, i32
  }
}

</mosaic_0001>

<bundles_post_ra>
// kernel: pointnet_forward.6
= control target key start
LH: loop header
LB: loop body
LE: loop exit
PB: predicated region body
PF: predicated region fallthrough
CT: control target
= control target key end

     0   :  { %12 = vsyncpa [#allocation3], 0  ;;  %s2595_s0 = inlined_call_operand.vmem [shape: f32[2,64,3], index: 0, kind: input, shape index: {}]   ;;  %s2596_s1 = inlined_call_operand.hbm [shape: bf16[3,64], index: 1, kind: input, shape index: {}]   ;;  %s2597_s2 = inlined_call_operand.hbm [shape: f32[1,64], index: 2, kind: input, shape index: {}]   ;;  %s2598_s3 = inlined_call_operand.hbm [shape: bf16[64,128], index: 3, kind: input, shape index: {}]   ;;  %s2599_s4 = inlined_call_operand.hbm [shape: f32[1,128], index: 4, kind: input, shape index: {}]   ;;  %s2600_s5 = inlined_call_operand.hbm [shape: bf16[128,1024], index: 5, kind: input, shape index: {}]   ;;  %s2601_s6 = inlined_call_operand.hbm [shape: f32[1,1024], index: 6, kind: input, shape index: {}]   ;;  %s2602_s7 = inlined_call_operand.vmem [shape: f32[2,1,1024], index: 7, kind: output, shape index: {}]  }
   0x1   :  { %13 = vsyncpa [#allocation5], 0 }
   0x2   :  { %14 = vsyncpa [#allocation8], 0 }
   0x3   :  { %15 = vsyncpa [#allocation11], 0  ;;  %s2210_s24 = smov 0   ;;  %s2212_s25 = smov 0  }
   0x4   :  { %s2214_s26 = smov 0  }
   0x5 LB: > { %s2157_s27 = smov [#allocation4]   ;;  %s1712_s29 = sadd.s32 4294967295, %s2155_s26   ;;  %s2155_s26 = sphi %s2214_s26, %s21_s26   ;;  %s2151_s25 = sphi %s2212_s25, %s2615_s25   ;;  %s2147_s24 = sphi %s2210_s24, %s2614_s24  }
   0x6   : > { %s242_s28 = sshll.u32 %s2157_s27, 4  ;;  %p1714_p0 = scmp.ge.s32.totalorder %s2155_s26, 1  ;;  %s243_s28 = int_to_ptr.vmem [resolvable:$true] %s242_s28 }
   0x7   : > { %p218_p1 = scmp.lt.s32.totalorder %s2155_s26, 3  ;;  %p2228_p2 = scmp.eq.s32.totalorder %s1712_s29, 0 }
   0x8   : > { %s2158_s9 = smov [#allocation7]   ;;  %s33_s12 = sadd.s32 1, %s2151_s25 }
   0x9   : > { %s2606_s30 = scalar_select %p2228_p2, 1, 0 }
   0xa   : > { %p2232_p3 = pnand %p1714_p0, %p218_p1  ;;  %s266_s10 = sshll.u32 %s2158_s9, 4  ;;  %s2238_s10 = int_to_ptr.vmem [resolvable:$true] %s266_s10 }
   0xb   : > { %p2249_p6 = scmp.ge.s32.totalorder %s33_s12, 2  ;;  %s1949_s16 = scalar_lea.hbm %s2597_s2, 16 }
   0xc   : > { %s2607_s8 = scalar_select %p2232_p3, 1, 0 }
   0xd   : > { %p1876_p4 = pneg %p2232_p3  ;;  %p1950_p7 = scmp.ne.s32.totalorder %s2597_s2, %s1949_s16 }
   0xe   : > { %s2609_s13 = scalar_select %p2249_p6, 1, 0 }
   0xf   : > { %p2242_p5 = pnand %p2228_p2, %p1876_p4  ;;  %p1956_p11 = scmp.lt.u32.totalorder %s1949_s16, %s2597_s2 }
  0x11   : > { %p2261_p8 = pneg %p2242_p5 }
  0x13   : > { %p1952_p9 = pnand %p2261_p8, %p1950_p7 }
  0x15   : > { %p1953_p10 = pneg %p1952_p9 }
  0x17   : > { %p1958_p12 = pnand %p1956_p11, %p1953_p10 }
  0x19   : > { %1961 = shalt.err (!%p1958_p12)
}
  0x1a   : > { %s1962_s22 = scalar_lea.vmem %s243_s28, 16  ;;  %s1969_s23 = scalar_lea.vmem %s243_s28, 32 }
  0x1b   : > { %p1963_p13 = scmp.ne.s32.totalorder %s243_s28, %s1962_s22  ;;  %p1970_p4 = scmp.lt.s32.totalorder %s243_s28, %s243_s28 }
  0x1c   : > { %p1971_p2 = scmp.lt.s32.totalorder %s1969_s23, %s1962_s22 }
  0x1d   : > { %p1965_p0 = pnand %p1963_p13, %p2261_p8 }
  0x1e   : > { %p1972_p3 = por %p1971_p2, %p1970_p4 }
  0x1f   : > { %p1966_p1 = pneg %p1965_p0 }
  0x21   : > { %p1973_p6 = pnand %p1972_p3, %p1966_p1 }
  0x23   : > { %1976 = shalt.err (!%p1973_p6)
}
  0x24   : > { %1882 = dma.hbm_to_vmem [thread:$0]  (!%p2242_p5), %s2597_s2, 16, %s243_s28, [#allocation5]  }
  0x25   : > { %s1977_s15 = scalar_lea.hbm %s2599_s4, 16 }
  0x26   : > { %p1978_p7 = scmp.ne.s32.totalorder %s2599_s4, %s1977_s15  ;;  %p1984_p3 = scmp.lt.u32.totalorder %s1977_s15, %s2599_s4 }
  0x28   : > { %p1980_p9 = pnand %p1978_p7, %p2261_p8 }
  0x2a   : > { %p1981_p2 = pneg %p1980_p9 }
  0x2c   : > { %p1986_p6 = pnand %p1984_p3, %p1981_p2 }
  0x2e   : > { %1989 = shalt.err (!%p1986_p6)
}
  0x2f   : > { %s1990_s28 = scalar_lea.vmem %s2238_s10, 16  ;;  %s1997_s21 = scalar_lea.vmem %s2238_s10, 32 }
  0x30   : > { %p1991_p10 = scmp.ne.s32.totalorder %s2238_s10, %s1990_s28  ;;  %p1998_p13 = scmp.lt.s32.totalorder %s2238_s10, %s2238_s10 }
  0x31   : > { %p1999_p0 = scmp.lt.s32.totalorder %s1997_s21, %s1990_s28 }
  0x32   : > { %p1993_p11 = pnand %p1991_p10, %p2261_p8 }
  0x33   : > { %p2000_p1 = por %p1999_p0, %p1998_p13 }
  0x34   : > { %p1994_p12 = pneg %p1993_p11 }
  0x36   : > { %p2001_p4 = pnand %p2000_p1, %p1994_p12 }
  0x38   : > { %2004 = shalt.err (!%p2001_p4)
}
  0x39   : > { %1888 = dma.hbm_to_vmem [thread:$0]  (!%p2242_p5), %s2599_s4, 16, %s2238_s10, [#allocation8]  }
  0x3a   : > { %p2611_p7 = scmp.ne.s32.totalorder %s2609_s13, 0  ;;  %s2159_s27 = smov [#allocation2]  }
  0x3b   : > { %s231_s29 = sshll.u32 %s2159_s27, 4  ;;  %s2160_s9 = smov [#allocation6]   ;;  %s232_s29 = int_to_ptr.vmem [resolvable:$true] %s231_s29 }
  0x3c   : > { %s2617_s12 = smov (%p2611_p7, %s33_s12), 0  ;;  %s252_s14 = sshll.u32 %s2160_s9, 4  ;;  %s253_s14 = int_to_ptr.vmem [resolvable:$true] %s252_s14 }
  0x3d   : > { %s2005_s17 = scalar_lea.hbm %s2596_s1, 32 }
  0x3e   : > { %p2006_p9 = scmp.ne.s32.totalorder %s2596_s1, %s2005_s17  ;;  %p2012_p6 = scmp.lt.u32.totalorder %s2005_s17, %s2596_s1 }
  0x40   : > { %p2008_p2 = pnand %p2006_p9, %p2261_p8 }
  0x42   : > { %p2009_p3 = pneg %p2008_p2 }
  0x44   : > { %p2014_p10 = pnand %p2012_p6, %p2009_p3 }
  0x46   : > { %2017 = shalt.err (!%p2014_p10)
}
  0x47   : > { %s2018_s28 = scalar_lea.vmem %s232_s29, 32  ;;  %p2026_p0 = scmp.lt.s32.totalorder %s232_s29, %s232_s29 }
  0x48   : > { %p2019_p11 = scmp.ne.s32.totalorder %s232_s29, %s2018_s28  ;;  %p2027_p1 = scmp.lt.s32.totalorder %s2018_s28, %s2018_s28 }
  0x4a   : > { %p2021_p12 = pnand %p2019_p11, %p2261_p8  ;;  %p2028_p4 = por %p2027_p1, %p2026_p0 }
  0x4c   : > { %p2022_p13 = pneg %p2021_p12 }
  0x4e   : > { %p2029_p7 = pnand %p2028_p4, %p2022_p13 }
  0x50   : > { %2032 = shalt.err (!%p2029_p7)
}
  0x51   : > { %1879 = dma.hbm_to_vmem [thread:$0]  (!%p2242_p5), %s2596_s1, 32, %s232_s29, [#allocation3]  }
  0x52   : > { %s2033_s9 = scalar_lea.hbm %s2598_s3, 512 }
  0x53   : > { %p2034_p9 = scmp.ne.s32.totalorder %s2598_s3, %s2033_s9  ;;  %p2040_p6 = scmp.lt.u32.totalorder %s2033_s9, %s2598_s3 }
  0x55   : > { %p2036_p2 = pnand %p2034_p9, %p2261_p8 }
  0x57   : > { %p2037_p3 = pneg %p2036_p2 }
  0x59   : > { %p2042_p10 = pnand %p2040_p6, %p2037_p3 }
  0x5b   : > { %2045 = shalt.err (!%p2042_p10)
}
  0x5c   : > { %s2046_s20 = scalar_lea.vmem %s253_s14, 512  ;;  %p2054_p0 = scmp.lt.s32.totalorder %s253_s14, %s253_s14 }
  0x5d   : > { %p2047_p11 = scmp.ne.s32.totalorder %s253_s14, %s2046_s20  ;;  %p2055_p1 = scmp.lt.s32.totalorder %s2046_s20, %s2046_s20 }
  0x5f   : > { %p2049_p12 = pnand %p2047_p11, %p2261_p8  ;;  %p2056_p4 = por %p2055_p1, %p2054_p0 }
  0x61   : > { %p2050_p13 = pneg %p2049_p12 }
  0x63   : > { %p2057_p7 = pnand %p2056_p4, %p2050_p13 }
  0x65   : > { %2060 = shalt.err (!%p2057_p7)
}
  0x66   : > { %s2161_s29 = smov 64   ;;  %s2162_s10 = smov 4  }
  0x67   : > { %1885 = dma.hbm_to_vmem [thread:$0]  (!%p2242_p5), %s2598_s3, 512, %s253_s14, [#allocation5], %s2161_s29, %s2161_s29, %s2162_s10  }
  0x68   : > { %s2163_s21 = smov [#allocation9]   ;;  %s2061_s9 = scalar_lea.hbm %s2600_s5, 8192 }
  0x69   : > { %s276_s22 = sshll.u32 %s2163_s21, 4  ;;  %p2062_p9 = scmp.ne.s32.totalorder %s2600_s5, %s2061_s9  ;;  %s277_s22 = int_to_ptr.vmem [resolvable:$true] %s276_s22 }
  0x6a   : > { %p2068_p6 = scmp.lt.u32.totalorder %s2061_s9, %s2600_s5 }
  0x6b   : > { %p2064_p2 = pnand %p2062_p9, %p2261_p8 }
  0x6d   : > { %p2065_p3 = pneg %p2064_p2 }
  0x6f   : > { %p2070_p10 = pnand %p2068_p6, %p2065_p3 }
  0x71   : > { %2073 = shalt.err (!%p2070_p10)
}
  0x72   : > { %s2074_s14 = scalar_lea.vmem %s277_s22, 8192  ;;  %p2082_p0 = scmp.lt.s32.totalorder %s277_s22, %s277_s22 }
  0x73   : > { %p2075_p11 = scmp.ne.s32.totalorder %s277_s22, %s2074_s14  ;;  %p2083_p1 = scmp.lt.s32.totalorder %s2074_s14, %s2074_s14 }
  0x75   : > { %p2077_p12 = pnand %p2075_p11, %p2261_p8  ;;  %p2084_p4 = por %p2083_p1, %p2082_p0 }
  0x77   : > { %p2078_p13 = pneg %p2077_p12 }
  0x79   : > { %p2085_p7 = pnand %p2084_p4, %p2078_p13 }
  0x7b   : > { %2088 = shalt.err (!%p2085_p7)
}
  0x7c   : > { %s2164_s20 = smov 512   ;;  %s2165_s29 = smov 32  }
  0x7d   : > { %1891 = dma.hbm_to_vmem [thread:$0]  (!%p2242_p5), %s2600_s5, 8192, %s277_s22, [#allocation8], %s2164_s20, %s2164_s20, %s2165_s29  }
  0x7e   : > { %s2166_s28 = smov [#allocation10]   ;;  %s2089_s9 = scalar_lea.hbm %s2601_s6, 128 }
  0x7f   : > { %s290_s21 = sshll.u32 %s2166_s28, 4  ;;  %p2090_p9 = scmp.ne.s32.totalorder %s2601_s6, %s2089_s9  ;;  %s291_s21 = int_to_ptr.vmem [resolvable:$true] %s290_s21 }
  0x80   : > { %p2096_p6 = scmp.lt.u32.totalorder %s2089_s9, %s2601_s6 }
  0x81   : > { %p2092_p2 = pnand %p2090_p9, %p2261_p8 }
  0x83   : > { %p2093_p3 = pneg %p2092_p2 }
  0x85   : > { %p2098_p10 = pnand %p2096_p6, %p2093_p3 }
  0x87   : > { %2101 = shalt.err (!%p2098_p10)
}
  0x88   : > { %s2102_s22 = scalar_lea.vmem %s291_s21, 128  ;;  %p2110_p0 = scmp.lt.s32.totalorder %s291_s21, %s291_s21 }
  0x89   : > { %p2103_p11 = scmp.ne.s32.totalorder %s291_s21, %s2102_s22  ;;  %p2111_p1 = scmp.lt.s32.totalorder %s2102_s22, %s2102_s22 }
  0x8b   : > { %p2105_p12 = pnand %p2103_p11, %p2261_p8  ;;  %p2112_p4 = por %p2111_p1, %p2110_p0 }
  0x8d   : > { %p2106_p13 = pneg %p2105_p12 }
  0x8f   : > { %p2113_p7 = pnand %p2112_p4, %p2106_p13 }
  0x91   : > { %2116 = shalt.err (!%p2113_p7)
}
  0x92   : > { %1894 = dma.hbm_to_vmem [thread:$0]  (!%p2242_p5), %s2601_s6, 128, %s291_s21, [#allocation11]  }
  0x93   : > { %p2612_p9 = scmp.ne.s32.totalorder %s2607_s8, 0 }
  0x94   : > { %p2613_p2 = scmp.ne.s32.totalorder (!%p2612_p9), %s2606_s30, 0 }
  0x95   : > { %316 = sbr.rel (%p2612_p9) target bundleno = 915 (0x393), region = 48 }
  0x9c   : > { %2130 = dma.done.wait (%p2613_p2), [#allocation3], 32  }
  0x9d   : > { %2132 = vsyncadd (%p2613_p2), [#allocation3], 4294967264 }
  0x9e   : > { %2134 = dma.done.wait (%p2613_p2), [#allocation5], 528  }
  0x9f   : > { %2136 = vsyncadd (%p2613_p2), [#allocation5], 4294966768 }
  0xa0   : > { %2138 = dma.done.wait (%p2613_p2), [#allocation8], 8208  }
  0xa1   : > { %2140 = vsyncadd (%p2613_p2), [#allocation8], 4294959088 }
  0xa2   : > { %2142 = dma.done.wait (%p2613_p2), [#allocation11], 128  }
  0xa3   : > { %2144 = vsyncadd (%p2613_p2), [#allocation11], 4294967168  ;;  %vm424_vm0 = vcmask 1040384   ;;  %p372_p5 = scmp.lt.s32.totalorder %s2147_s24, 1  ;;  %vm425_vm1 = vcmask 1041408   ;;  %v2167_v0 = vmov 65535  }
  0xa4   : > { %v426_v1 = vsel %vm424_vm0, 4294967295, %v2167_v0  ;;  %v399_v3 = vld [vmem:[#allocation2] sm:$0x3]  ;;  %vm411_vm2 = vcmask 23552   ;;  %v1945_v13 = vld [vmem:[#allocation6] sm:$0xff]   ;;  %v1946_v15 = vld [vmem:[#allocation6 + $0x8] sm:$0xff]  }
  0xa5   : > { %s2619_s24 = smov (!%p372_p5, %s2147_s24), 1  ;;  %v427_v2 = vsel %vm425_vm1, %v426_v1, 0  ;;  %1836 = vmatprep.subr.bf16.mxu1 %v1945_v13  ;;  %v1947_v19 = vld [vmem:[#allocation6 + $0x10] sm:$0xff]   ;;  %v1948_v20 = vld [vmem:[#allocation6 + $0x18] sm:$0xff]   ;;  %v637_v21 = vld [vmem:[#allocation9] sm:$0xff]  ;;  %vm547_vm3 = vcmask 523264  }
  0xa6   : > { %s1812_s8 = sshll.u32 %s2619_s24, 6  ;;  %v429_v6 = vand.u32 %v427_v2, %v399_v3  ;;  %1837 = vmatpush3.bf16.msra.mxu1 %v1945_v13  ;;  %v641_v22 = vld [vmem:[#allocation9 + $0x20] sm:$0xff]  ;;  %v2409_v23 = vld [vmem:[#allocation9 + $0x8] sm:$0xff]  ;;  %v1732_v49 = vld [vmem:[#allocation4] ss:$0 sm:$0xff]  ;;  %s1731_s30 = sshll.u32 %s2619_s24, 3 }
  0xa7   : > { %s379_s29 = scalar_lea.vmem %s2595_s0, %s1812_s8  ;;  %1838 = vmatprep.subr.bf16.mxu1 %v1946_v15  ;;  %v1746_v24 = vcombine.low %v637_v21, %v641_v22  ;;  %v1747_v25 = vcombine.high %v637_v21, %v641_v22  ;;  %v2411_v26 = vld [vmem:[#allocation9 + $0x28] sm:$0xff]  ;;  %v645_v27 = vld [vmem:[#allocation9 + $0x40] sm:$0xff]  ;;  %s384_s28 = scalar_lea.vmem %s2602_s7, %s1731_s30 }
  0xa8   : > { %v391_v4 = vld [vmem:[%s379_s29] sm:$0xff]  ;;  %v392_v5 = vld [vmem:[%s379_s29 + $0x8] sm:$0xff]  ;;  %v393_v8 = vld [vmem:[%s379_s29 + $0x10] sm:$0xff]  ;;  %1826 = vmatprep.subr.bf16.mxu0 %v429_v6  ;;  %v1748_v29 = vcombine.low %v2409_v23, %v2411_v26  ;;  %v1749_v30 = vcombine.high %v2409_v23, %v2411_v26 }
  0xa9   : > { %v400_v7 = vpack.c.bf16 %v392_v5, %v391_v4  ;;  %v394_v9 = vld [vmem:[%s379_s29 + $0x18] sm:$0xff]  ;;  %v395_v10 = vld [vmem:[%s379_s29 + $0x20] sm:$0xff]  ;;  %v396_v11 = vld [vmem:[%s379_s29 + $0x28] sm:$0xff]  ;;  %1827 = vmatpush3.bf16.msra.mxu0 %v429_v6 }
  0xaa   : > { %v401_v12 = vpack.c.bf16 %v394_v9, %v393_v8  ;;  %v402_v14 = vpack.c.bf16 %v396_v11, %v395_v10  ;;  %v397_v16 = vld [vmem:[%s379_s29 + $0x30] sm:$0xff]  ;;  %v398_v17 = vld [vmem:[%s379_s29 + $0x38] sm:$0xff]  ;;  %1839 = vmatpush3.bf16.msra.mxu1 %v1946_v15  ;;  %v649_v28 = vld [vmem:[#allocation9 + $0x60] sm:$0xff]  ;;  %1063 = vmatprep.subr.bf16.mxu0 %v1747_v25 }
  0xab   : > { %1828 = vmatprep.mubr.msk.bf16.mxu0 %vm411_vm2, %v400_v7  ;;  %v403_v18 = vpack.c.bf16 %v398_v17, %v397_v16  ;;  %1840 = vmatprep.subr.bf16.mxu1 %v1947_v19  ;;  %v1755_v31 = vcombine.high %v645_v27, %v649_v28  ;;  %v653_v32 = vld [vmem:[#allocation9 + $0x80] sm:$0xff]  ;;  %v1754_v34 = vcombine.low %v645_v27, %v649_v28  ;;  %v646_v62 = vld [vmem:[#allocation9 + $0x48] sm:$0xff] }
  0xac   : > { %1829 = vmatmul.mubr.msk.bf16.vlgmr.msra.gmra.mrb[0].mxu0 %vm411_vm2, %v401_v12  ;;  %v657_v33 = vld [vmem:[#allocation9 + $0xa0] sm:$0xff]  ;;  %v650_v63 = vld [vmem:[#allocation9 + $0x68] sm:$0xff] }
  0xad   : > { %1832 = vmatprep.mubr.msk.bf16.mxu0 %vm411_vm2, %v402_v14  ;;  %1064 = vmatpush1.bf16.msra.mxu0 %v1746_v24  ;;  %v1763_v35 = vcombine.high %v653_v32, %v657_v33  ;;  %v661_v36 = vld [vmem:[#allocation9 + $0xc0] sm:$0xff]  ;;  %v1762_v38 = vcombine.low %v653_v32, %v657_v33  ;;  %v1757_v5 = vcombine.high %v646_v62, %v650_v63  ;;  %v654_v8 = vld [vmem:[#allocation9 + $0x88] sm:$0xff] }
  0xae   : > { %1841 = vmatpush3.bf16.msra.mxu1 %v1947_v19  ;;  %1065 = vmatprep.subr.bf16.mxu0 %v1755_v31  ;;  %v665_v37 = vld [vmem:[#allocation9 + $0xe0] sm:$0xff]  ;;  %v658_v9 = vld [vmem:[#allocation9 + $0xa8] sm:$0xff]  ;;  %v1756_v15 = vcombine.low %v646_v62, %v650_v63 }
  0xaf   : > { %1842 = vmatprep.subr.bf16.mxu1 %v1948_v20  ;;  %v1771_v39 = vcombine.high %v661_v36, %v665_v37  ;;  %v669_v40 = vld [vmem:[#allocation9 + $0x100] sm:$0xff]  ;;  %v1770_v42 = vcombine.low %v661_v36, %v665_v37  ;;  %v1765_v17 = vcombine.high %v654_v8, %v658_v9  ;;  %v662_v19 = vld [vmem:[#allocation9 + $0xc8] sm:$0xff]  ;;  %v1764_v24 = vcombine.low %v654_v8, %v658_v9  ;;  %v648_v8 = vld [vmem:[#allocation9 + $0x58] sm:$0xff] }
  0xb0   : > { %v673_v41 = vld [vmem:[#allocation9 + $0x120] sm:$0xff]  ;;  %v670_v27 = vld [vmem:[#allocation9 + $0x108] sm:$0xff]  ;;  %v652_v9 = vld [vmem:[#allocation9 + $0x78] sm:$0xff] }
  0xb1   : > { %1066 = vmatpush1.bf16.msra.mxu0 %v1754_v34  ;;  %v1779_v43 = vcombine.high %v669_v40, %v673_v41  ;;  %v677_v44 = vld [vmem:[#allocation9 + $0x140] sm:$0xff]  ;;  %v1778_v46 = vcombine.low %v669_v40, %v673_v41  ;;  %v674_v28 = vld [vmem:[#allocation9 + $0x128] sm:$0xff] }
  0xb2   : > { %1843 = vmatpush3.bf16.msra.mxu1 %v1948_v20  ;;  %1067 = vmatprep.subr.bf16.mxu0 %v1763_v35  ;;  %v681_v45 = vld [vmem:[#allocation9 + $0x160] sm:$0xff]  ;;  %v666_v20 = vld [vmem:[#allocation9 + $0xe8] sm:$0xff]  ;;  %v1781_v26 = vcombine.high %v670_v27, %v674_v28  ;;  %v1780_v31 = vcombine.low %v670_v27, %v674_v28 }
  0xb3   : > { %1136 = vmatprep.subr.bf16.mxu1 %v1749_v30  ;;  %v1787_v47 = vcombine.high %v677_v44, %v681_v45  ;;  %v1786_v48 = vcombine.low %v677_v44, %v681_v45  ;;  %v1773_v25 = vcombine.high %v662_v19, %v666_v20  ;;  %v1772_v23 = vcombine.low %v662_v19, %v666_v20  ;;  %v682_v30 = vld [vmem:[#allocation9 + $0x168] sm:$0xff]  ;;  %v685_v34 = vld [vmem:[#allocation9 + $0x180] sm:$0xff]  ;;  %v659_v20 = vld [vmem:[#allocation9 + $0xb0] sm:$0xff] }
  0xb4   : > { %1833 = vmatmul.mubr.msk.bf16.gmra.mrb[4].mxu0 %vm411_vm2, %v403_v18  ;;  %v689_v35 = vld [vmem:[#allocation9 + $0x1a0] sm:$0xff]  ;;  %v686_v36 = vld [vmem:[#allocation9 + $0x188] sm:$0xff] }
  0xb5   : > { %1068 = vmatpush1.bf16.msra.mxu0 %v1762_v38  ;;  %v1795_v37 = vcombine.high %v685_v34, %v689_v35  ;;  %v690_v38 = vld [vmem:[#allocation9 + $0x1a8] sm:$0xff] }
  0xb6   : > { %1069 = vmatprep.subr.bf16.mxu0 %v1771_v39  ;;  %v1794_v39 = vcombine.low %v685_v34, %v689_v35  ;;  %v1796_v40 = vcombine.low %v686_v36, %v690_v38  ;;  %v1797_v41 = vcombine.high %v686_v36, %v690_v38  ;;  %v694_v44 = vld [vmem:[#allocation9 + $0x1c8] sm:$0xff]  ;;  %v663_v34 = vld [vmem:[#allocation9 + $0xd0] sm:$0xff]  ;;  %v668_v38 = vld [vmem:[#allocation9 + $0xf8] sm:$0xff] }
  0xb7   : > { %v667_v36 = vld [vmem:[#allocation9 + $0xf0] sm:$0xff] }
  0xb9   : > { %1070 = vmatpush1.bf16.msra.mxu0 %v1770_v42  ;;  %v693_v42 = vld [vmem:[#allocation9 + $0x1c0] sm:$0xff] }
  0xba   : > { %1071 = vmatprep.subr.bf16.mxu0 %v1779_v43  ;;  %v697_v43 = vld [vmem:[#allocation9 + $0x1e0] sm:$0xff] }
  0xbb   : > { %v1803_v45 = vcombine.high %v693_v42, %v697_v43 }
  0xbd   : > { %1072 = vmatpush1.bf16.msra.mxu0 %v1778_v46  ;;  %v698_v46 = vld [vmem:[#allocation9 + $0x1e8] sm:$0xff] }
  0xbe   : > { %1073 = vmatprep.subr.bf16.mxu0 %v1787_v47  ;;  %v1802_v47 = vcombine.low %v693_v42, %v697_v43 }
  0xc1   : > { %1074 = vmatpush1.bf16.msra.mxu0 %v1786_v48  ;;  %v1804_v48 = vcombine.low %v694_v44, %v698_v46 }
  0xc2   : > { %1075 = vmatprep.subr.bf16.mxu0 %v1795_v37  ;;  %v664_v37 = vld [vmem:[#allocation9 + $0xd8] sm:$0xff] }
  0xc5   : > { %1076 = vmatpush1.bf16.msra.mxu0 %v1794_v39 }
  0xc6   : > { %1077 = vmatprep.subr.bf16.mxu0 %v1803_v45  ;;  %v1777_v45 = vcombine.high %v664_v37, %v668_v38 }
  0xc9   : > { %1078 = vmatpush1.bf16.msra.mxu0 %v1802_v47  ;;  %v675_v47 = vld [vmem:[#allocation9 + $0x130] sm:$0xff] }
 0x17f   : > { %v1830_v50 = vpop.f32.mrb[0].mxu0 }
 0x180   : > { %v474_v51 = vadd.f32 %v1830_v50, %v1732_v49  ;;  %v465_v52 = vpop.f32.mrb[1].mxu0  ;;  %v639_v50 = vld [vmem:[#allocation9 + $0x10] sm:$0xff] }
 0x181   : > { %v466_v53 = vadd.f32 %v1732_v49, %v465_v52  ;;  %v1831_v54 = vpop.f32.mrb[2].mxu0  ;;  %v640_v52 = vld [vmem:[#allocation9 + $0x18] sm:$0xff] }
 0x182   : > { %v477_v55 = vadd.f32 %v1831_v54, %v1732_v49  ;;  %v468_v56 = vpop.f32.mrb[3].mxu0  ;;  %v498_v58 = vmax.f32 %v474_v51, 0.0  ;;  %v643_v51 = vld [vmem:[#allocation9 + $0x30] sm:$0xff]  ;;  %v644_v54 = vld [vmem:[#allocation9 + $0x38] sm:$0xff] }
 0x183   : > { %v469_v57 = vadd.f32 %v1732_v49, %v468_v56  ;;  %v496_v60 = vmax.f32 %v466_v53, 0.0  ;;  %v1751_v53 = vcombine.high %v639_v50, %v643_v51  ;;  %v1750_v56 = vcombine.low %v639_v50, %v643_v51 }
 0x184   : > { %v499_v59 = vmax.f32 %v477_v55, 0.0  ;;  %v2168_v55 = vmov 0   ;;  %v1774_v50 = vcombine.low %v663_v34, %v667_v36  ;;  %v1776_v51 = vcombine.low %v664_v37, %v668_v38 }
 0x185   : > { %v497_v61 = vmax.f32 %v469_v57, 0.0  ;;  %1095 = vmatprep.mubr.bf16.mxu0 %v2168_v55  ;;  %v1752_v57 = vcombine.low %v640_v52, %v644_v54  ;;  %1209 = vmatprep.subr.bf16.mxu0 %v1751_v53 }
 0x186   : > { %v505_v0 = vpack.c.bf16 %v499_v59, %v498_v58  ;;  %v1753_v58 = vcombine.high %v640_v52, %v644_v54  ;;  %v1737_v59 = vld [vmem:[#allocation7] ss:$0 sm:$0xff]  ;;  %v679_v54 = vld [vmem:[#allocation9 + $0x150] sm:$0xff] }
 0x187   : > { %v1834_v1 = vpop.f32.mrb[4].mxu0  ;;  %v504_v2 = vpack.c.bf16 %v497_v61, %v496_v60 }
 0x188   : > { %v490_v3 = vadd.f32 %v1834_v1, %v1732_v49  ;;  %v481_v4 = vpop.f32.mrb[5].mxu0 }
 0x189   : > { %v482_v6 = vadd.f32 %v1732_v49, %v481_v4  ;;  %1844 = vmatprep.mubr.msk.bf16.mxu1 %vm547_vm3, %v504_v2  ;;  %v1835_v7 = vpop.f32.mrb[6].mxu0  ;;  %v647_v4 = vld [vmem:[#allocation9 + $0x50] sm:$0xff] }
 0x18a   : > { %v502_v10 = vmax.f32 %v490_v3, 0.0  ;;  %v493_v11 = vadd.f32 %v1835_v7, %v1732_v49  ;;  %1845 = vmatmul.mubr.msk.bf16.vlgmr.msra.gmra.mrb[0].mxu1 %vm547_vm3, %v505_v0  ;;  %v484_v12 = vpop.f32.mrb[7].mxu0  ;;  %v651_v7 = vld [vmem:[#allocation9 + $0x70] sm:$0xff] }
 0x18b   : > { %v500_v13 = vmax.f32 %v482_v6, 0.0  ;;  %v485_v14 = vadd.f32 %v1732_v49, %v484_v12  ;;  %1137 = vmatpush1.bf16.msra.mxu1 %v1748_v29  ;;  %v678_v29 = vld [vmem:[#allocation9 + $0x148] sm:$0xff]  ;;  %v1805_v49 = vcombine.high %v694_v44, %v698_v46  ;;  %v1775_v44 = vcombine.high %v663_v34, %v667_v36  ;;  %v671_v46 = vld [vmem:[#allocation9 + $0x110] sm:$0xff] }
 0x18c   : > { %v503_v16 = vmax.f32 %v493_v11, 0.0  ;;  %1138 = vmatprep.subr.bf16.mxu1 %v1757_v5  ;;  %v1789_v32 = vcombine.high %v678_v29, %v682_v30  ;;  %v1788_v33 = vcombine.low %v678_v29, %v682_v30  ;;  %v1760_v29 = vcombine.low %v648_v8, %v652_v9 }
 0x18d   : > { %v501_v18 = vmax.f32 %v485_v14, 0.0  ;;  %v1783_v52 = vcombine.high %v671_v46, %v675_v47 }
 0x18e   : > { %v507_v21 = vpack.c.bf16 %v503_v16, %v502_v10  ;;  %v1761_v16 = vcombine.high %v648_v8, %v652_v9  ;;  %v699_v8 = vld [vmem:[#allocation9 + $0x1f0] sm:$0xff]  ;;  %v696_v9 = vld [vmem:[#allocation9 + $0x1d8] sm:$0xff] }
 0x18f   : > { %v506_v22 = vpack.c.bf16 %v501_v18, %v500_v13  ;;  %1139 = vmatpush1.bf16.msra.mxu1 %v1756_v15  ;;  %v1759_v15 = vcombine.high %v647_v4, %v651_v7 }
 0x190   : > { %1140 = vmatprep.subr.bf16.mxu1 %v1765_v17  ;;  %v655_v17 = vld [vmem:[#allocation9 + $0x90] sm:$0xff] }
 0x191   : > { %1848 = vmatprep.mubr.msk.bf16.mxu1 %vm547_vm3, %v506_v22  ;;  %v660_v22 = vld [vmem:[#allocation9 + $0xb8] sm:$0xff] }
 0x192   : > { %1849 = vmatmul.mubr.msk.bf16.gmra.mrb[4].mxu1 %vm547_vm3, %v507_v21  ;;  %v656_v21 = vld [vmem:[#allocation9 + $0x98] sm:$0xff] }
 0x193   : > { %1141 = vmatpush1.bf16.msra.mxu1 %v1764_v24  ;;  %1168 = vmatprep.mubr.bf16.mxu1 %v2168_v55  ;;  %v1768_v42 = vcombine.low %v656_v21, %v660_v22 }
 0x194   : > { %1142 = vmatprep.subr.bf16.mxu1 %v1773_v25 }
 0x197   : > { %1143 = vmatpush1.bf16.msra.mxu1 %v1772_v23 }
 0x198   : > { %1144 = vmatprep.subr.bf16.mxu1 %v1781_v26  ;;  %v1758_v26 = vcombine.low %v647_v4, %v651_v7  ;;  %v695_v7 = vld [vmem:[#allocation9 + $0x1d0] sm:$0xff] }
 0x19b   : > { %1145 = vmatpush1.bf16.msra.mxu1 %v1780_v31 }
 0x19c   : > { %1146 = vmatprep.subr.bf16.mxu1 %v1789_v32  ;;  %v1767_v32 = vcombine.high %v655_v17, %v659_v20 }
 0x19f   : > { %1147 = vmatpush1.bf16.msra.mxu1 %v1788_v33  ;;  %v1769_v33 = vcombine.high %v656_v21, %v660_v22  ;;  %v2468_v21 = vld [vmem:[#allocation10] sm:$0xff] }
 0x1a0   : > { %1148 = vmatprep.subr.bf16.mxu1 %v1797_v41  ;;  %v1766_v41 = vcombine.low %v655_v17, %v659_v20  ;;  %v1806_v17 = vcombine.low %v695_v7, %v699_v8 }
 0x1a3   : > { %1149 = vmatpush1.bf16.msra.mxu1 %v1796_v40 }
 0x1a4   : > { %1150 = vmatprep.subr.bf16.mxu1 %v1805_v49  ;;  %v676_v49 = vld [vmem:[#allocation9 + $0x138] sm:$0xff] }
 0x1a7   : > { %1151 = vmatpush1.bf16.msra.mxu1 %v1804_v48  ;;  %v672_v48 = vld [vmem:[#allocation9 + $0x118] sm:$0xff] }
 0x1a8   : > { %1282 = vmatprep.subr.bf16.mxu1 %v1753_v58  ;;  %v1785_v53 = vcombine.high %v672_v48, %v676_v49  ;;  %v684_v58 = vld [vmem:[#allocation9 + $0x178] sm:$0xff] }
 0x25d   : > { %v1846_v60 = vpop.f32.mrb[0].mxu1 }
 0x25e   : > { %v603_v61 = vadd.f32 %v1846_v60, %v1737_v59  ;;  %v594_v62 = vpop.f32.mrb[1].mxu1  ;;  %v1784_v60 = vcombine.low %v672_v48, %v676_v49 }
 0x25f   : > { %v595_v63 = vadd.f32 %v1737_v59, %v594_v62  ;;  %v1847_v0 = vpop.f32.mrb[2].mxu1 }
 0x260   : > { %v606_v1 = vadd.f32 %v1847_v0, %v1737_v59  ;;  %v597_v2 = vpop.f32.mrb[3].mxu1  ;;  %v627_v5 = vmax.f32 %v603_v61, 0.0  ;;  %v691_v0 = vld [vmem:[#allocation9 + $0x1b0] sm:$0xff] }
 0x261   : > { %v598_v3 = vadd.f32 %v1737_v59, %v597_v2  ;;  %v625_v10 = vmax.f32 %v595_v63, 0.0  ;;  %v687_v63 = vld [vmem:[#allocation9 + $0x190] sm:$0xff]  ;;  %v692_v2 = vld [vmem:[#allocation9 + $0x1b8] sm:$0xff] }
 0x262   : > { %v628_v6 = vmax.f32 %v606_v1, 0.0  ;;  %v688_v1 = vld [vmem:[#allocation9 + $0x198] sm:$0xff] }
 0x263   : > { %v626_v11 = vmax.f32 %v598_v3, 0.0 }
 0x264   : > { %v2426_v12 = vpack.c.bf16 %v628_v6, %v627_v5  ;;  %v1799_v5 = vcombine.high %v687_v63, %v691_v0  ;;  %v1801_v6 = vcombine.high %v688_v1, %v692_v2 }
 0x265   : > { %v2428_v13 = vpack.c.bf16 %v626_v11, %v625_v10  ;;  %v1850_v14 = vpop.f32.mrb[4].mxu1  ;;  %v700_v10 = vld [vmem:[#allocation9 + $0x1f8] sm:$0xff]  ;;  %v1798_v11 = vcombine.low %v687_v63, %v691_v0 }
 0x266   : > { %v619_v18 = vadd.f32 %v1850_v14, %v1737_v59  ;;  %v610_v19 = vpop.f32.mrb[5].mxu1  ;;  %v1800_v14 = vcombine.low %v688_v1, %v692_v2 }
 0x267   : > { %v611_v24 = vadd.f32 %v1737_v59, %v610_v19  ;;  %1096 = vmatmul.mubr.bf16.vlgmr.msra.gmra.mrb[8].mxu0 %v2428_v13  ;;  %1169 = vmatmul.mubr.bf16.vlgmr.msra.gmra.mrb[8].mxu1 %v2428_v13  ;;  %v1851_v25 = vpop.f32.mrb[6].mxu1 }
 0x268   : > { %v631_v27 = vmax.f32 %v619_v18, 0.0  ;;  %1210 = vmatpush1.bf16.msra.mxu0 %v1750_v56  ;;  %1283 = vmatpush1.bf16.msra.mxu1 %v1752_v57  ;;  %v622_v28 = vadd.f32 %v1851_v25, %v1737_v59  ;;  %v613_v23 = vpop.f32.mrb[7].mxu1  ;;  %v683_v56 = vld [vmem:[#allocation9 + $0x170] sm:$0xff]  ;;  %v680_v57 = vld [vmem:[#allocation9 + $0x158] sm:$0xff]  ;;  %v1808_v18 = vcombine.low %v696_v9, %v700_v10 }
 0x269   : > { %v629_v30 = vmax.f32 %v611_v24, 0.0  ;;  %v614_v31 = vadd.f32 %v1737_v59, %v613_v23  ;;  %1211 = vmatprep.subr.bf16.mxu0 %v1759_v15  ;;  %1284 = vmatprep.subr.bf16.mxu1 %v1761_v16  ;;  %v1782_v59 = vcombine.low %v671_v46, %v675_v47  ;;  %v1791_v61 = vcombine.high %v679_v54, %v683_v56 }
 0x26a   : > { %v632_v35 = vmax.f32 %v622_v28, 0.0  ;;  %1105 = vmatprep.mubr.bf16.mxu0 %v2168_v55  ;;  %1178 = vmatprep.mubr.bf16.mxu1 %v2168_v55  ;;  %v1793_v62 = vcombine.high %v680_v57, %v684_v58  ;;  %v1790_v3 = vcombine.low %v679_v54, %v683_v56  ;;  %v1792_v4 = vcombine.low %v680_v57, %v684_v58 }
 0x26b   : > { %v630_v39 = vmax.f32 %v614_v31, 0.0  ;;  %v1807_v15 = vcombine.high %v695_v7, %v699_v8  ;;  %v1809_v16 = vcombine.high %v696_v9, %v700_v10 }
 0x26c   : > { %v2434_v40 = vpack.c.bf16 %v632_v35, %v631_v27  ;;  %1212 = vmatpush1.bf16.msra.mxu0 %v1758_v26  ;;  %1285 = vmatpush1.bf16.msra.mxu1 %v1760_v29 }
 0x26d   : > { %v2436_v43 = vpack.c.bf16 %v630_v39, %v629_v30  ;;  %1213 = vmatprep.subr.bf16.mxu0 %v1767_v32  ;;  %1286 = vmatprep.subr.bf16.mxu1 %v1769_v33 }
 0x26f   : > { %1106 = vmatmul.mubr.bf16.gmra.mrb[12].mxu0 %v2426_v12  ;;  %1179 = vmatmul.mubr.bf16.gmra.mrb[12].mxu1 %v2426_v12 }
 0x270   : > { %1214 = vmatpush1.bf16.msra.mxu0 %v1766_v41  ;;  %1287 = vmatpush1.bf16.msra.mxu1 %v1768_v42 }
 0x271   : > { %1215 = vmatprep.subr.bf16.mxu0 %v1775_v44  ;;  %1288 = vmatprep.subr.bf16.mxu1 %v1777_v45 }
 0x272   : > { %1115 = vmatprep.mubr.bf16.mxu0 %v2168_v55  ;;  %1188 = vmatprep.mubr.bf16.mxu1 %v2168_v55 }
 0x274   : > { %1216 = vmatpush1.bf16.msra.mxu0 %v1774_v50  ;;  %1289 = vmatpush1.bf16.msra.mxu1 %v1776_v51 }
 0x275   : > { %1217 = vmatprep.subr.bf16.mxu0 %v1783_v52  ;;  %1290 = vmatprep.subr.bf16.mxu1 %v1785_v53 }
 0x277   : > { %1116 = vmatmul.mubr.bf16.gmra.mrb[16].mxu0 %v2436_v43  ;;  %1189 = vmatmul.mubr.bf16.gmra.mrb[16].mxu1 %v2436_v43 }
 0x278   : > { %1218 = vmatpush1.bf16.msra.mxu0 %v1782_v59  ;;  %1291 = vmatpush1.bf16.msra.mxu1 %v1784_v60 }
 0x279   : > { %1219 = vmatprep.subr.bf16.mxu0 %v1791_v61  ;;  %1292 = vmatprep.subr.bf16.mxu1 %v1793_v62 }
 0x27a   : > { %1125 = vmatprep.mubr.bf16.mxu0 %v2168_v55  ;;  %1198 = vmatprep.mubr.bf16.mxu1 %v2168_v55 }
 0x27c   : > { %1220 = vmatpush1.bf16.msra.mxu0 %v1790_v3  ;;  %1293 = vmatpush1.bf16.msra.mxu1 %v1792_v4 }
 0x27d   : > { %1221 = vmatprep.subr.bf16.mxu0 %v1799_v5  ;;  %1294 = vmatprep.subr.bf16.mxu1 %v1801_v6 }
 0x27f   : > { %1126 = vmatmul.mubr.bf16.gmra.mrb[20].mxu0 %v2434_v40  ;;  %1199 = vmatmul.mubr.bf16.gmra.mrb[20].mxu1 %v2434_v40 }
 0x280   : > { %1222 = vmatpush1.bf16.msra.mxu0 %v1798_v11  ;;  %1295 = vmatpush1.bf16.msra.mxu1 %v1800_v14 }
 0x281   : > { %1223 = vmatprep.subr.bf16.mxu0 %v1807_v15  ;;  %1296 = vmatprep.subr.bf16.mxu1 %v1809_v16 }
 0x282   : > { %1241 = vmatprep.mubr.bf16.mxu0 %v2168_v55  ;;  %1314 = vmatprep.mubr.bf16.mxu1 %v2168_v55 }
 0x284   : > { %1224 = vmatpush1.bf16.msra.mxu0 %v1806_v17  ;;  %1297 = vmatpush1.bf16.msra.mxu1 %v1808_v18 }
 0x287   : > { %1242 = vmatmul.mubr.bf16.vlgmr.msra.gmra.mrb[24].mxu0 %v2428_v13  ;;  %1315 = vmatmul.mubr.bf16.vlgmr.msra.gmra.mrb[24].mxu1 %v2428_v13  ;;  %v703_v13 = vlaneseq }
 0x288   : > { %1251 = vmatprep.mubr.bf16.mxu0 %v2168_v55  ;;  %1324 = vmatprep.mubr.bf16.mxu1 %v2168_v55 }
 0x289   : > { %v2464_v19 = vshrl.u32 %v703_v13, 7 }
 0x28b   : > { %v713_v20 = vsub.s32 2, %v2464_v19  ;;  %v709_v22 = vsub.s32 1, %v2464_v19  ;;  %v717_v24 = vsub.s32 3, %v2464_v19 }
 0x28d   : > { %v2479_v27 = vrot.slane %v2468_v21, %v709_v22  ;;  %v2482_v28 = vrot.slane %v2468_v21, %v717_v24 }
 0x28f   : > { %1252 = vmatmul.mubr.bf16.gmra.mrb[28].mxu0 %v2426_v12  ;;  %1325 = vmatmul.mubr.bf16.gmra.mrb[28].mxu1 %v2426_v12  ;;  %v705_v12 = vsub.s32 0, %v2464_v19 }
 0x290   : > { %1261 = vmatprep.mubr.bf16.mxu0 %v2168_v55  ;;  %1334 = vmatprep.mubr.bf16.mxu1 %v2168_v55 }
 0x291   : > { %v2473_v25 = vrot.slane %v2468_v21, %v705_v12 }
 0x297   : > { %1262 = vmatmul.mubr.bf16.gmra.mrb[32].mxu0 %v2436_v43  ;;  %1335 = vmatmul.mubr.bf16.gmra.mrb[32].mxu1 %v2436_v43 }
 0x298   : > { %1271 = vmatprep.mubr.bf16.mxu0 %v2168_v55  ;;  %1344 = vmatprep.mubr.bf16.mxu1 %v2168_v55  ;;  %v2476_v55 = vrot.slane %v2468_v21, %v713_v20 }
 0x29f   : > { %1272 = vmatmul.mubr.bf16.gmra.mrb[36].mxu0 %v2434_v40  ;;  %1345 = vmatmul.mubr.bf16.gmra.mrb[36].mxu1 %v2434_v40 }
 0x33a   : > { %v1097_v23 = vpop.f32.mrb[8].mxu0  ;;  %v1170_v26 = vpop.f32.mrb[8].mxu1 }
 0x33b   : > { %v1098_v29 = vadd.f32 %v1097_v23, %v2473_v25  ;;  %v1171_v30 = vadd.f32 %v1170_v26, %v2476_v55  ;;  %v1099_v31 = vpop.f32.mrb[9].mxu0  ;;  %v1172_v32 = vpop.f32.mrb[9].mxu1 }
 0x33c   : > { %v1100_v33 = vadd.f32 %v1099_v31, %v2479_v27  ;;  %v1173_v34 = vadd.f32 %v1172_v32, %v2482_v28  ;;  %v1101_v35 = vpop.f32.mrb[10].mxu0  ;;  %v1174_v36 = vpop.f32.mrb[10].mxu1  ;;  %v721_v31 = vsub.s32 4, %v2464_v19 }
 0x33d   : > { %v1102_v37 = vadd.f32 %v1101_v35, %v2473_v25  ;;  %v1175_v38 = vadd.f32 %v1174_v36, %v2476_v55  ;;  %v1103_v39 = vpop.f32.mrb[11].mxu0  ;;  %v1176_v40 = vpop.f32.mrb[11].mxu1  ;;  %v1355_v43 = vmax.f32 %v1098_v29, 0.0  ;;  %v1357_v44 = vmax.f32 %v1171_v30, 0.0 }
 0x33e   : > { %v1104_v41 = vadd.f32 %v1103_v39, %v2479_v27  ;;  %v1177_v42 = vadd.f32 %v1176_v40, %v2482_v28  ;;  %v1356_v47 = vmax.f32 %v1100_v33, 0.0  ;;  %v1358_v48 = vmax.f32 %v1173_v34, 0.0 }
 0x33f   : > { %v1363_v45 = vmax.f32 %v1102_v37, 0.0  ;;  %v1365_v46 = vmax.f32 %v1175_v38, 0.0  ;;  %v729_v36 = vsub.s32 6, %v2464_v19  ;;  %v725_v37 = vsub.s32 5, %v2464_v19 }
 0x340   : > { %v1364_v49 = vmax.f32 %v1104_v41, 0.0  ;;  %v1366_v50 = vmax.f32 %v1177_v42, 0.0  ;;  %v2169_v42 = vmov 1966171168  }
 0x341   : > { %v1420_v51 = vmax.f32 %v1355_v43, %v1363_v45  ;;  %v1446_v52 = vmax.f32 %v1357_v44, %v1365_v46  ;;  %v1537_v43 = vunpack.c.l.s4 %v2169_v42  ;;  %v733_v44 = vsub.s32 7, %v2464_v19 }
 0x342   : > { %v1433_v53 = vmax.f32 %v1356_v47, %v1364_v49  ;;  %v1459_v54 = vmax.f32 %v1358_v48, %v1366_v50  ;;  %v1107_v56 = vpop.f32.mrb[12].mxu0  ;;  %v1180_v57 = vpop.f32.mrb[12].mxu1 }
 0x343   : > { %v1108_v58 = vadd.f32 %v1107_v56, %v2473_v25  ;;  %v1181_v59 = vadd.f32 %v1180_v57, %v2476_v55  ;;  %v1109_v60 = vpop.f32.mrb[13].mxu0  ;;  %v1182_v61 = vpop.f32.mrb[13].mxu1 }
 0x344   : > { %v1110_v62 = vadd.f32 %v1109_v60, %v2479_v27  ;;  %v1183_v63 = vadd.f32 %v1182_v61, %v2482_v28  ;;  %v1111_v0 = vpop.f32.mrb[14].mxu0  ;;  %v1184_v1 = vpop.f32.mrb[14].mxu1 }
 0x345   : > { %v1371_v2 = vmax.f32 %v1108_v58, 0.0  ;;  %v1373_v3 = vmax.f32 %v1181_v59, 0.0  ;;  %v1112_v4 = vadd.f32 %v1111_v0, %v2473_v25  ;;  %v1185_v5 = vadd.f32 %v1184_v1, %v2476_v55  ;;  %v1113_v6 = vpop.f32.mrb[15].mxu0  ;;  %v1186_v7 = vpop.f32.mrb[15].mxu1 }
 0x346   : > { %v1372_v8 = vmax.f32 %v1110_v62, 0.0  ;;  %v1374_v9 = vmax.f32 %v1183_v63, 0.0  ;;  %v1114_v10 = vadd.f32 %v1113_v6, %v2479_v27  ;;  %v1187_v11 = vadd.f32 %v1186_v7, %v2482_v28 }
 0x347   : > { %v1421_v14 = vmax.f32 %v1420_v51, %v1371_v2  ;;  %v1447_v15 = vmax.f32 %v1446_v52, %v1373_v3  ;;  %v1379_v16 = vmax.f32 %v1112_v4, 0.0  ;;  %v1381_v17 = vmax.f32 %v1185_v5, 0.0 }
 0x348   : > { %v1434_v18 = vmax.f32 %v1433_v53, %v1372_v8  ;;  %v1460_v13 = vmax.f32 %v1459_v54, %v1374_v9  ;;  %v1380_v12 = vmax.f32 %v1114_v10, 0.0  ;;  %v1382_v20 = vmax.f32 %v1187_v11, 0.0 }
 0x349   : > { %v1422_v22 = vmax.f32 %v1421_v14, %v1379_v16  ;;  %v1448_v24 = vmax.f32 %v1447_v15, %v1381_v17  ;;  %v2513_v6 = vrot.slane %v2468_v21, %v721_v31  ;;  %v2518_v11 = vrot.slane %v2468_v21, %v729_v36 }
 0x34a   : > { %v1435_v23 = vmax.f32 %v1434_v18, %v1380_v12  ;;  %v1461_v26 = vmax.f32 %v1460_v13, %v1382_v20  ;;  %v1117_v29 = vpop.f32.mrb[16].mxu0  ;;  %v1190_v30 = vpop.f32.mrb[16].mxu1  ;;  %v2521_v14 = vrot.slane %v2468_v21, %v725_v37  ;;  %v1538_v13 = vunpack.c.0.s8 %v1537_v43 }
 0x34b   : > { %v1118_v32 = vadd.f32 %v1117_v29, %v2473_v25  ;;  %v1191_v33 = vadd.f32 %v1190_v30, %v2476_v55  ;;  %v1119_v34 = vpop.f32.mrb[17].mxu0  ;;  %v1192_v35 = vpop.f32.mrb[17].mxu1  ;;  %v2526_v12 = vrot.slane %v2468_v21, %v733_v44 }
 0x34c   : > { %v1120_v38 = vadd.f32 %v1119_v34, %v2479_v27  ;;  %v1193_v39 = vadd.f32 %v1192_v35, %v2482_v28  ;;  %v1121_v40 = vpop.f32.mrb[18].mxu0  ;;  %v1194_v41 = vpop.f32.mrb[18].mxu1 }
 0x34d   : > { %v1387_v45 = vmax.f32 %v1118_v32, 0.0  ;;  %v1389_v46 = vmax.f32 %v1191_v33, 0.0  ;;  %v1122_v47 = vadd.f32 %v1121_v40, %v2473_v25  ;;  %v1195_v48 = vadd.f32 %v1194_v41, %v2476_v55  ;;  %v1123_v49 = vpop.f32.mrb[19].mxu0  ;;  %v1196_v50 = vpop.f32.mrb[19].mxu1 }
 0x34e   : > { %v1388_v51 = vmax.f32 %v1120_v38, 0.0  ;;  %v1390_v52 = vmax.f32 %v1193_v39, 0.0  ;;  %v1124_v53 = vadd.f32 %v1123_v49, %v2479_v27  ;;  %v1197_v54 = vadd.f32 %v1196_v50, %v2482_v28 }
 0x34f   : > { %v1423_v56 = vmax.f32 %v1422_v22, %v1387_v45  ;;  %v1449_v57 = vmax.f32 %v1448_v24, %v1389_v46  ;;  %v1395_v58 = vmax.f32 %v1122_v47, 0.0  ;;  %v1397_v59 = vmax.f32 %v1195_v48, 0.0 }
 0x350   : > { %v1436_v60 = vmax.f32 %v1435_v23, %v1388_v51  ;;  %v1462_v61 = vmax.f32 %v1461_v26, %v1390_v52  ;;  %v1396_v62 = vmax.f32 %v1124_v53, 0.0  ;;  %v1398_v63 = vmax.f32 %v1197_v54, 0.0 }
 0x351   : > { %v1424_v0 = vmax.f32 %v1423_v56, %v1395_v58  ;;  %v1450_v1 = vmax.f32 %v1449_v57, %v1397_v59 }
 0x352   : > { %v1437_v2 = vmax.f32 %v1436_v60, %v1396_v62  ;;  %v1463_v3 = vmax.f32 %v1462_v61, %v1398_v63  ;;  %v1127_v4 = vpop.f32.mrb[20].mxu0  ;;  %v1200_v5 = vpop.f32.mrb[20].mxu1 }
 0x353   : > { %v1128_v7 = vadd.f32 %v1127_v4, %v2473_v25  ;;  %v1201_v8 = vadd.f32 %v1200_v5, %v2476_v55  ;;  %v1129_v9 = vpop.f32.mrb[21].mxu0  ;;  %v1202_v10 = vpop.f32.mrb[21].mxu1 }
 0x354   : > { %v1130_v15 = vadd.f32 %v1129_v9, %v2479_v27  ;;  %v1203_v16 = vadd.f32 %v1202_v10, %v2482_v28  ;;  %v1131_v17 = vpop.f32.mrb[22].mxu0  ;;  %v1204_v18 = vpop.f32.mrb[22].mxu1 }
 0x355   : > { %v1403_v20 = vmax.f32 %v1128_v7, 0.0  ;;  %v1405_v22 = vmax.f32 %v1201_v8, 0.0  ;;  %v1132_v24 = vadd.f32 %v1131_v17, %v2473_v25  ;;  %v1205_v23 = vadd.f32 %v1204_v18, %v2476_v55  ;;  %v1133_v26 = vpop.f32.mrb[23].mxu0  ;;  %v1206_v29 = vpop.f32.mrb[23].mxu1 }
 0x356   : > { %v1404_v30 = vmax.f32 %v1130_v15, 0.0  ;;  %v1406_v31 = vmax.f32 %v1203_v16, 0.0  ;;  %v1134_v32 = vadd.f32 %v1133_v26, %v2479_v27  ;;  %v1207_v33 = vadd.f32 %v1206_v29, %v2482_v28 }
 0x357   : > { %v1425_v34 = vmax.f32 %v1424_v0, %v1403_v20  ;;  %v1451_v35 = vmax.f32 %v1450_v1, %v1405_v22  ;;  %v1411_v36 = vmax.f32 %v1132_v24, 0.0  ;;  %v1413_v37 = vmax.f32 %v1205_v23, 0.0 }
 0x358   : > { %v1438_v21 = vmax.f32 %v1437_v2, %v1404_v30  ;;  %v1464_v38 = vmax.f32 %v1463_v3, %v1406_v31  ;;  %v1412_v39 = vmax.f32 %v1134_v32, 0.0  ;;  %v1414_v40 = vmax.f32 %v1207_v33, 0.0 }
 0x359   : > { %v1426_v41 = vmax.f32 %v1425_v34, %v1411_v36  ;;  %v1452_v25 = vmax.f32 %v1451_v35, %v1413_v37  ;;  %v2533_v55 = vsub.s32 %v1538_v13, %v2464_v19 }
 0x35a   : > { %v1439_v42 = vmax.f32 %v1438_v21, %v1412_v39  ;;  %v1465_v43 = vmax.f32 %v1464_v38, %v1414_v40  ;;  %v1243_v44 = vpop.f32.mrb[24].mxu0  ;;  %v1316_v45 = vpop.f32.mrb[24].mxu1 }
 0x35b   : > { %v1427_v27 = vrot.slane %v1426_v41, 4  ;;  %v1453_v46 = vrot.slane %v1452_v25, 4  ;;  %v1244_v28 = vadd.f32 %v1243_v44, %v2513_v6  ;;  %v1317_v47 = vadd.f32 %v1316_v45, %v2518_v11  ;;  %v1245_v48 = vpop.f32.mrb[25].mxu0  ;;  %v1318_v49 = vpop.f32.mrb[25].mxu1 }
 0x35c   : > { %v1440_v50 = vrot.slane %v1439_v42, 4  ;;  %v1466_v51 = vrot.slane %v1465_v43, 4  ;;  %v1246_v52 = vadd.f32 %v1245_v48, %v2521_v14  ;;  %v1319_v53 = vadd.f32 %v1318_v49, %v2526_v12  ;;  %v1247_v54 = vpop.f32.mrb[26].mxu0  ;;  %v1320_v19 = vpop.f32.mrb[26].mxu1 }
 0x35d   : > { %v1428_v56 = vmax.f32 %v1426_v41, %v1427_v27  ;;  %v1454_v57 = vmax.f32 %v1452_v25, %v1453_v46  ;;  %v1359_v58 = vmax.f32 %v1244_v28, 0.0  ;;  %v1361_v59 = vmax.f32 %v1317_v47, 0.0  ;;  %v1249_v60 = vpop.f32.mrb[27].mxu0  ;;  %v1322_v61 = vpop.f32.mrb[27].mxu1 }
 0x35e   : > { %v1441_v62 = vmax.f32 %v1439_v42, %v1440_v50  ;;  %v1467_v63 = vmax.f32 %v1465_v43, %v1466_v51  ;;  %v1360_v0 = vmax.f32 %v1246_v52, 0.0  ;;  %v1362_v1 = vmax.f32 %v1319_v53, 0.0 }
 0x35f   : > { %v1429_v2 = vrot.slane %v1428_v56, 2  ;;  %v1455_v3 = vrot.slane %v1454_v57, 2  ;;  %v1248_v4 = vadd.f32 %v1247_v54, %v2513_v6  ;;  %v1321_v5 = vadd.f32 %v1320_v19, %v2518_v11 }
 0x360   : > { %v1442_v7 = vrot.slane %v1441_v62, 2  ;;  %v1468_v8 = vrot.slane %v1467_v63, 2  ;;  %v1250_v9 = vadd.f32 %v1249_v60, %v2521_v14  ;;  %v1323_v10 = vadd.f32 %v1322_v61, %v2526_v12 }
 0x361   : > { %v1430_v15 = vmax.f32 %v1428_v56, %v1429_v2  ;;  %v1456_v16 = vmax.f32 %v1454_v57, %v1455_v3  ;;  %v1367_v17 = vmax.f32 %v1248_v4, 0.0  ;;  %v1369_v18 = vmax.f32 %v1321_v5, 0.0 }
 0x362   : > { %v1443_v13 = vmax.f32 %v1441_v62, %v1442_v7  ;;  %v1469_v20 = vmax.f32 %v1467_v63, %v1468_v8  ;;  %v1368_v22 = vmax.f32 %v1250_v9, 0.0  ;;  %v1370_v24 = vmax.f32 %v1323_v10, 0.0  ;;  %v1253_v23 = vpop.f32.mrb[28].mxu0  ;;  %v1326_v26 = vpop.f32.mrb[28].mxu1 }
 0x363   : > { %v1431_v29 = vrot.slane %v1430_v15, 1  ;;  %v1457_v30 = vrot.slane %v1456_v16, 1  ;;  %v1472_v31 = vmax.f32 %v1359_v58, %v1367_v17  ;;  %v1498_v32 = vmax.f32 %v1361_v59, %v1369_v18  ;;  %v1255_v33 = vpop.f32.mrb[29].mxu0  ;;  %v1328_v34 = vpop.f32.mrb[29].mxu1 }
 0x364   : > { %v1444_v35 = vrot.slane %v1443_v13, 1  ;;  %v1470_v36 = vrot.slane %v1469_v20, 1  ;;  %v1485_v37 = vmax.f32 %v1360_v0, %v1368_v22  ;;  %v1511_v21 = vmax.f32 %v1362_v1, %v1370_v24  ;;  %v1257_v38 = vpop.f32.mrb[30].mxu0  ;;  %v1330_v39 = vpop.f32.mrb[30].mxu1 }
 0x365   : > { %v1432_v40 = vmax.f32 %v1430_v15, %v1431_v29  ;;  %v1458_v41 = vmax.f32 %v1456_v16, %v1457_v30  ;;  %v1254_v25 = vadd.f32 %v1253_v23, %v2513_v6  ;;  %v1327_v42 = vadd.f32 %v1326_v26, %v2518_v11  ;;  %v1259_v43 = vpop.f32.mrb[31].mxu0  ;;  %v1332_v44 = vpop.f32.mrb[31].mxu1 }
 0x366   : > { %v1445_v45 = vmax.f32 %v1443_v13, %v1444_v35  ;;  %v1471_v27 = vmax.f32 %v1469_v20, %v1470_v36  ;;  %v1256_v46 = vadd.f32 %v1255_v33, %v2521_v14  ;;  %v1329_v28 = vadd.f32 %v1328_v34, %v2526_v12 }
 0x367   : > { %v1375_v47 = vmax.f32 %v1254_v25, 0.0  ;;  %v1377_v48 = vmax.f32 %v1327_v42, 0.0  ;;  %v1258_v49 = vadd.f32 %v1257_v38, %v2513_v6  ;;  %v1331_v50 = vadd.f32 %v1330_v39, %v2518_v11 }
 0x368   : > { %v1532_v51 = vcombine.low %v1432_v40, %v1445_v45  ;;  %v1533_v52 = vcombine.low %v1458_v41, %v1471_v27  ;;  %v1376_v53 = vmax.f32 %v1256_v46, 0.0  ;;  %v1378_v54 = vmax.f32 %v1329_v28, 0.0 }
 0x369   : > { %v1473_v19 = vmax.f32 %v1472_v31, %v1375_v47  ;;  %v1499_v56 = vmax.f32 %v1498_v32, %v1377_v48  ;;  %v1383_v57 = vmax.f32 %v1258_v49, 0.0  ;;  %v1385_v58 = vmax.f32 %v1331_v50, 0.0 }
 0x36a   : > { %v2550_v59 = vrot.slane %v1532_v51, %v2533_v55  ;;  %v2553_v60 = vrot.slane %v1533_v52, %v2533_v55  ;;  %v1486_v61 = vmax.f32 %v1485_v37, %v1376_v53  ;;  %v1512_v62 = vmax.f32 %v1511_v21, %v1378_v54  ;;  %v1263_v63 = vpop.f32.mrb[32].mxu0  ;;  %v1336_v0 = vpop.f32.mrb[32].mxu1 }
 0x36b   : > { %v1474_v1 = vmax.f32 %v1473_v19, %v1383_v57  ;;  %v1500_v2 = vmax.f32 %v1499_v56, %v1385_v58  ;;  %v1260_v3 = vadd.f32 %v1259_v43, %v2521_v14  ;;  %v1333_v4 = vadd.f32 %v1332_v44, %v2526_v12  ;;  %v1265_v5 = vpop.f32.mrb[33].mxu0  ;;  %v1338_v7 = vpop.f32.mrb[33].mxu1 }
 0x36c   : > { %v1564_v8 = vcombine.low %v2550_v59, %v2553_v60  ;;  %v1264_v9 = vadd.f32 %v1263_v63, %v2513_v6  ;;  %v1337_v10 = vadd.f32 %v1336_v0, %v2518_v11  ;;  %v1266_v15 = vadd.f32 %v1265_v5, %v2521_v14  ;;  %v1267_v16 = vpop.f32.mrb[34].mxu0  ;;  %v1340_v17 = vpop.f32.mrb[34].mxu1 }
 0x36d   : > { %v1384_v18 = vmax.f32 %v1260_v3, 0.0  ;;  %v1386_v13 = vmax.f32 %v1333_v4, 0.0  ;;  %v1339_v20 = vadd.f32 %v1338_v7, %v2526_v12  ;;  %v1268_v22 = vadd.f32 %v1267_v16, %v2513_v6  ;;  %v1269_v24 = vpop.f32.mrb[35].mxu0  ;;  %v1342_v23 = vpop.f32.mrb[35].mxu1 }
 0x36e   : > { %v1391_v26 = vmax.f32 %v1264_v9, 0.0  ;;  %v1393_v29 = vmax.f32 %v1337_v10, 0.0  ;;  %v1392_v30 = vmax.f32 %v1266_v15, 0.0  ;;  %v1341_v37 = vadd.f32 %v1340_v17, %v2518_v11 }
 0x36f   : > { %v1487_v31 = vmax.f32 %v1486_v61, %v1384_v18  ;;  %v1513_v32 = vmax.f32 %v1512_v62, %v1386_v13  ;;  %v1394_v33 = vmax.f32 %v1339_v20, 0.0  ;;  %v1399_v34 = vmax.f32 %v1268_v22, 0.0 }
 0x370   : > { %v1475_v35 = vmax.f32 %v1474_v1, %v1391_v26  ;;  %v1501_v36 = vmax.f32 %v1500_v2, %v1393_v29  ;;  %v1270_v21 = vadd.f32 %v1269_v24, %v2521_v14  ;;  %v1343_v40 = vadd.f32 %v1342_v23, %v2526_v12 }
 0x371   : > { %v1488_v38 = vmax.f32 %v1487_v31, %v1392_v30  ;;  %v1514_v39 = vmax.f32 %v1513_v32, %v1394_v33  ;;  %v1401_v25 = vmax.f32 %v1341_v37, 0.0 }
 0x372   : > { %v1476_v41 = vmax.f32 %v1475_v35, %v1399_v34  ;;  %v1400_v42 = vmax.f32 %v1270_v21, 0.0  ;;  %v1273_v43 = vpop.f32.mrb[36].mxu0  ;;  %v1346_v44 = vpop.f32.mrb[36].mxu1  ;;  %v1402_v45 = vmax.f32 %v1343_v40, 0.0 }
 0x373   : > { %v1274_v27 = vadd.f32 %v1273_v43, %v2513_v6  ;;  %v1347_v46 = vadd.f32 %v1346_v44, %v2518_v11  ;;  %v1275_v28 = vpop.f32.mrb[37].mxu0  ;;  %v1348_v47 = vpop.f32.mrb[37].mxu1  ;;  %v1502_v48 = vmax.f32 %v1501_v36, %v1401_v25 }
 0x374   : > { %v1489_v49 = vmax.f32 %v1488_v38, %v1400_v42  ;;  %v1276_v50 = vadd.f32 %v1275_v28, %v2521_v14  ;;  %v1349_v51 = vadd.f32 %v1348_v47, %v2526_v12  ;;  %v1277_v52 = vpop.f32.mrb[38].mxu0  ;;  %v1350_v53 = vpop.f32.mrb[38].mxu1  ;;  %v1515_v54 = vmax.f32 %v1514_v39, %v1402_v45 }
 0x375   : > { %v1407_v19 = vmax.f32 %v1274_v27, 0.0  ;;  %v1409_v56 = vmax.f32 %v1347_v46, 0.0  ;;  %v1278_v57 = vadd.f32 %v1277_v52, %v2513_v6  ;;  %v1279_v58 = vpop.f32.mrb[39].mxu0  ;;  %v1352_v61 = vpop.f32.mrb[39].mxu1  ;;  %v1351_v0 = vadd.f32 %v1350_v53, %v2518_v11 }
 0x376   : > { %v1408_v62 = vmax.f32 %v1276_v50, 0.0  ;;  %v1410_v63 = vmax.f32 %v1349_v51, 0.0  ;;  %v1280_v1 = vadd.f32 %v1279_v58, %v2521_v14  ;;  %v1353_v5 = vadd.f32 %v1352_v61, %v2526_v12 }
 0x377   : > { %v1477_v2 = vmax.f32 %v1476_v41, %v1407_v19  ;;  %v1503_v3 = vmax.f32 %v1502_v48, %v1409_v56  ;;  %v1415_v4 = vmax.f32 %v1278_v57, 0.0  ;;  %v1417_v10 = vmax.f32 %v1351_v0, 0.0 }
 0x378   : > { %v1490_v7 = vmax.f32 %v1489_v49, %v1408_v62  ;;  %v1516_v9 = vmax.f32 %v1515_v54, %v1410_v63  ;;  %v1416_v15 = vmax.f32 %v1280_v1, 0.0  ;;  %v1418_v17 = vmax.f32 %v1353_v5, 0.0 }
 0x379   : > { %v1478_v16 = vmax.f32 %v1477_v2, %v1415_v4  ;;  %v1504_v6 = vmax.f32 %v1503_v3, %v1417_v10  ;;  %v1572_v28 = vrot.slane %v1564_v8, %v2533_v55 }
 0x37a   : > { %v1491_v18 = vmax.f32 %v1490_v7, %v1416_v15  ;;  %v1517_v20 = vmax.f32 %v1516_v9, %v1418_v17 }
 0x37b   : > { %v1479_v13 = vrot.slane %v1478_v16, 4  ;;  %v1505_v22 = vrot.slane %v1504_v6, 4 }
 0x37c   : > { %v1492_v24 = vrot.slane %v1491_v18, 4  ;;  %v1518_v23 = vrot.slane %v1517_v20, 4 }
 0x37d   : > { %v1480_v11 = vmax.f32 %v1478_v16, %v1479_v13  ;;  %v1506_v14 = vmax.f32 %v1504_v6, %v1505_v22 }
 0x37e   : > { %v1493_v26 = vmax.f32 %v1491_v18, %v1492_v24  ;;  %v1519_v30 = vmax.f32 %v1517_v20, %v1518_v23 }
 0x37f   : > { %v1481_v29 = vrot.slane %v1480_v11, 2  ;;  %v1507_v31 = vrot.slane %v1506_v14, 2 }
 0x380   : > { %v1494_v12 = vrot.slane %v1493_v26, 2  ;;  %v1520_v33 = vrot.slane %v1519_v30, 2 }
 0x381   : > { %v1482_v32 = vmax.f32 %v1480_v11, %v1481_v29  ;;  %v1508_v34 = vmax.f32 %v1506_v14, %v1507_v31 }
 0x382   : > { %v1495_v35 = vmax.f32 %v1493_v26, %v1494_v12  ;;  %v1521_v37 = vmax.f32 %v1519_v30, %v1520_v33 }
 0x383   : > { %v1483_v36 = vrot.slane %v1482_v32, 1  ;;  %v1509_v21 = vrot.slane %v1508_v34, 1 }
 0x384   : > { %v1496_v38 = vrot.slane %v1495_v35, 1  ;;  %v1522_v40 = vrot.slane %v1521_v37, 1 }
 0x385   : > { %v1484_v39 = vmax.f32 %v1482_v32, %v1483_v36  ;;  %v1510_v41 = vmax.f32 %v1508_v34, %v1509_v21 }
 0x386   : > { %v1497_v25 = vmax.f32 %v1495_v35, %v1496_v38  ;;  %v1523_v42 = vmax.f32 %v1521_v37, %v1522_v40 }
 0x388   : > { %v1534_v43 = vcombine.low %v1484_v39, %v1497_v25  ;;  %v1535_v44 = vcombine.low %v1510_v41, %v1523_v42 }
 0x38a   : > { %v1556_v45 = vrot.slane %v1534_v43, %v2533_v55  ;;  %v1563_v27 = vrot.slane %v1535_v44, %v2533_v55 }
 0x38c   : > { %v1565_v46 = vcombine.low %v1556_v45, %v1563_v27 }
 0x38e   : > { %v1579_v47 = vrot.slane %v1565_v46, %v2533_v55 }
 0x390   : > { %v1580_v48 = vcombine.low %v1572_v28, %v1579_v47 }
 0x392   : > { %1583 = vst [vmem:[%s384_s28] sm:$0xff] %v1580_v48 }
 0x393 PF: > { %s21_s26 = sadd.s32 1, %s2155_s26   ;;  %s2614_s24 = smov %s2151_s25 }
 0x394   : > { %p18_p8 = scmp.ge.s32.totalorder %s21_s26, 4   ;;  %s2615_s25 = smov %s2617_s12 }
 0x396   :  { %20 = sbr.rel (!%p18_p8) target bundleno = 5 (0x5), region = 107 }
 0x39d   :  { %1603 = vsyncpa [#allocation3], 1 }
 0x39e   :  { %1605 = vsyncpa [#allocation3 + $0x1], 1 }
 0x39f   :  { %1606 = vsyncpa [#allocation5], 1 }
 0x3a0   :  { %1607 = vsyncpa [#allocation8], 1 }
 0x3a1   :  { %1608 = vsyncpa [#allocation11], 1 }

// kernel: pointnet_forward.8
= control target key start
LH: loop header
LB: loop body
LE: loop exit
PB: predicated region body
PF: predicated region fallthrough
CT: control target
= control target key end

     0   :  { %16 = vsyncpa [#allocation3], 0  ;;  %s3131_s0 = inlined_call_operand.vmem [shape: f32[2,64,3], index: 0, kind: input, shape index: {}]   ;;  %s3132_s1 = inlined_call_operand.vmem [shape: bf16[2,3,64], index: 1, kind: input, shape index: {}]   ;;  %s3133_s2 = inlined_call_operand.hbm [shape: f32[1,64], index: 2, kind: input, shape index: {}]   ;;  %s3134_s3 = inlined_call_operand.hbm [shape: bf16[64,64], index: 3, kind: input, shape index: {}]   ;;  %s3135_s4 = inlined_call_operand.hbm [shape: f32[1,64], index: 4, kind: input, shape index: {}]   ;;  %s3136_s5 = inlined_call_operand.hbm [shape: bf16[64,128], index: 5, kind: input, shape index: {}]   ;;  %s3137_s6 = inlined_call_operand.hbm [shape: f32[1,128], index: 6, kind: input, shape index: {}]   ;;  %s3138_s7 = inlined_call_operand.hbm [shape: bf16[128,1024], index: 7, kind: input, shape index: {}]   ;;  %s3139_s8 = inlined_call_operand.hbm [shape: f32[1,1024], index: 8, kind: input, shape index: {}]   ;;  %s3140_s9 = inlined_call_operand.vmem [shape: bf16[2,64,64], index: 9, kind: output, shape index: {0}]   ;;  %s3141_s10 = inlined_call_operand.vmem [shape: f32[2,1,1024], index: 10, kind: output, shape index: {1}]  }
   0x1   :  { %17 = vsyncpa [#allocation5], 0 }
   0x2   :  { %18 = vsyncpa [#allocation8], 0 }
   0x3   :  { %19 = vsyncpa [#allocation11], 0  ;;  %s2695_s13 = smov 0   ;;  %s2697_s14 = smov 0  }
   0x4   :  { %s2699_s15 = smov 0  }
   0x5 LB: > { %3146 = sst [smem:[#allocation17_spill]] %s2624_s15  ;;  %s2626_s16 = smov [#allocation4]   ;;  %s2624_s15 = sphi %s2699_s15, %s25_s15   ;;  %s2620_s14 = sphi %s2697_s14, %s3155_s14   ;;  %s2616_s13 = sphi %s2695_s13, %s3154_s13  }
   0x6   : > { %s320_s17 = sshll.u32 %s2626_s16, 4  ;;  %s2084_s18 = sadd.s32 4294967295, %s2624_s15   ;;  %s2717_s17 = int_to_ptr.vmem [resolvable:$true] %s320_s17 }
   0x7   : > { %p2086_p0 = scmp.ge.s32.totalorder %s2624_s15, 1  ;;  %p297_p1 = scmp.lt.s32.totalorder %s2624_s15, 3 }
   0x8   : > { %p2713_p2 = scmp.eq.s32.totalorder %s2084_s18, 0  ;;  %s2627_s21 = smov [#allocation7]  }
   0x9   : > { %p2719_p3 = pnand %p2086_p0, %p297_p1  ;;  %s344_s22 = sshll.u32 %s2627_s21, 4  ;;  %s2725_s22 = int_to_ptr.vmem [resolvable:$true] %s344_s22 }
   0xa   : > { %s3147_s19 = scalar_select %p2713_p2, 1, 0 }
   0xb   : > { %s3148_s20 = scalar_select %p2719_p3, 1, 0 }
   0xc   : > { %p2307_p4 = pneg %p2719_p3  ;;  %s2628_s24 = smov [#allocation10]  }
   0xd   : > { %s368_s25 = sshll.u32 %s2628_s24, 4  ;;  %s2390_s28 = scalar_lea.hbm %s3134_s3, 512  ;;  %s2733_s25 = int_to_ptr.vmem [resolvable:$true] %s368_s25 }
   0xe   : > { %p2729_p5 = pnand %p2713_p2, %p2307_p4  ;;  %p2391_p6 = scmp.ne.s32.totalorder %s3134_s3, %s2390_s28 }
   0xf   : > { %p2397_p10 = scmp.lt.u32.totalorder %s2390_s28, %s3134_s3 }
  0x10   : > { %p2743_p7 = pneg %p2729_p5 }
  0x12   : > { %p2393_p8 = pnand %p2743_p7, %p2391_p6 }
  0x14   : > { %p2394_p9 = pneg %p2393_p8 }
  0x16   : > { %p2399_p11 = pnand %p2397_p10, %p2394_p9 }
  0x18   : > { %2402 = shalt.err (!%p2399_p11)
}
  0x19   : > { %s2403_s18 = scalar_lea.vmem %s2717_s17, 512  ;;  %p2411_p1 = scmp.lt.s32.totalorder %s2717_s17, %s2717_s17 }
  0x1a   : > { %p2404_p12 = scmp.ne.s32.totalorder %s2717_s17, %s2403_s18  ;;  %p2412_p4 = scmp.lt.s32.totalorder %s2403_s18, %s2403_s18 }
  0x1c   : > { %p2406_p13 = pnand %p2404_p12, %p2743_p7  ;;  %p2413_p6 = por %p2412_p4, %p2411_p1 }
  0x1e   : > { %p2407_p0 = pneg %p2406_p13 }
  0x20   : > { %p2414_p8 = pnand %p2413_p6, %p2407_p0 }
  0x22   : > { %2417 = shalt.err (!%p2414_p8)
}
  0x23   : > { %s2629_s21 = smov 64   ;;  %s2630_s24 = smov 4  }
  0x24   : > { %2313 = dma.hbm_to_vmem [thread:$0]  (!%p2729_p5), %s3134_s3, 512, %s2717_s17, [#allocation5], %s2629_s21, %s2629_s21, %s2630_s24  }
  0x25   : > { %s2418_s30 = scalar_lea.hbm %s3136_s5, 512 }
  0x26   : > { %p2419_p9 = scmp.ne.s32.totalorder %s3136_s5, %s2418_s30  ;;  %p2425_p12 = scmp.lt.u32.totalorder %s2418_s30, %s3136_s5 }
  0x28   : > { %p2421_p10 = pnand %p2419_p9, %p2743_p7 }
  0x2a   : > { %p2422_p11 = pneg %p2421_p10 }
  0x2c   : > { %p2427_p13 = pnand %p2425_p12, %p2422_p11 }
  0x2e   : > { %2430 = shalt.err (!%p2427_p13)
}
  0x2f   : > { %s2431_s17 = scalar_lea.vmem %s2725_s22, 512  ;;  %p2439_p6 = scmp.lt.s32.totalorder %s2725_s22, %s2725_s22 }
  0x30   : > { %p2432_p0 = scmp.ne.s32.totalorder %s2725_s22, %s2431_s17  ;;  %p2440_p8 = scmp.lt.s32.totalorder %s2431_s17, %s2431_s17 }
  0x32   : > { %p2434_p1 = pnand %p2432_p0, %p2743_p7  ;;  %p2441_p9 = por %p2440_p8, %p2439_p6 }
  0x34   : > { %p2435_p4 = pneg %p2434_p1 }
  0x36   : > { %p2442_p10 = pnand %p2441_p9, %p2435_p4 }
  0x38   : > { %2445 = shalt.err (!%p2442_p10)
}
  0x39   : > { %2319 = dma.hbm_to_vmem [thread:$0]  (!%p2729_p5), %s3136_s5, 512, %s2725_s22, [#allocation8], %s2629_s21, %s2629_s21, %s2630_s24  }
  0x3a   : > { %s2446_s29 = scalar_lea.hbm %s3138_s7, 8192 }
  0x3b   : > { %p2447_p11 = scmp.ne.s32.totalorder %s3138_s7, %s2446_s29  ;;  %p2453_p0 = scmp.lt.u32.totalorder %s2446_s29, %s3138_s7 }
  0x3d   : > { %p2449_p12 = pnand %p2447_p11, %p2743_p7 }
  0x3f   : > { %p2450_p13 = pneg %p2449_p12 }
  0x41   : > { %p2455_p1 = pnand %p2453_p0, %p2450_p13 }
  0x43   : > { %2458 = shalt.err (!%p2455_p1)
}
  0x44   : > { %s2459_s22 = scalar_lea.vmem %s2733_s25, 8192  ;;  %p2467_p9 = scmp.lt.s32.totalorder %s2733_s25, %s2733_s25 }
  0x45   : > { %p2460_p4 = scmp.ne.s32.totalorder %s2733_s25, %s2459_s22  ;;  %p2468_p10 = scmp.lt.s32.totalorder %s2459_s22, %s2459_s22 }
  0x47   : > { %p2462_p6 = pnand %p2460_p4, %p2743_p7  ;;  %p2469_p11 = por %p2468_p10, %p2467_p9 }
  0x49   : > { %p2463_p8 = pneg %p2462_p6 }
  0x4b   : > { %p2470_p12 = pnand %p2469_p11, %p2463_p8 }
  0x4d   : > { %2473 = shalt.err (!%p2470_p12)
}
  0x4e   : > { %s2631_s21 = smov 512   ;;  %s2632_s24 = smov 32  }
  0x4f   : > { %2325 = dma.hbm_to_vmem [thread:$0]  (!%p2729_p5), %s3138_s7, 8192, %s2733_s25, [#allocation11], %s2631_s21, %s2631_s21, %s2632_s24  }
  0x50   : > { %s37_s26 = sadd.s32 1, %s2620_s14  ;;  %s2633_s27 = smov [#allocation2]  }
  0x51   : > { %p39_p13 = scmp.ge.s32.totalorder %s37_s26, 2  ;;  %s310_s28 = sshll.u32 %s2633_s27, 4  ;;  %s311_s28 = int_to_ptr.vmem [resolvable:$true] %s310_s28 }
  0x52   : > { %s2474_s12 = scalar_lea.hbm %s3133_s2, 16 }
  0x53   : > { %s3157_s26 = smov (%p39_p13, %s37_s26), 0  ;;  %p2475_p0 = scmp.ne.s32.totalorder %s3133_s2, %s2474_s12 }
  0x54   : > { %p2481_p6 = scmp.lt.u32.totalorder %s2474_s12, %s3133_s2 }
  0x55   : > { %p2477_p1 = pnand %p2475_p0, %p2743_p7 }
  0x57   : > { %p2478_p4 = pneg %p2477_p1 }
  0x59   : > { %p2483_p8 = pnand %p2481_p6, %p2478_p4 }
  0x5b   : > { %2486 = shalt.err (!%p2483_p8)
}
  0x5c   : > { %s2487_s21 = scalar_lea.vmem %s311_s28, 16  ;;  %s2494_s24 = scalar_lea.vmem %s311_s28, 32 }
  0x5d   : > { %p2488_p9 = scmp.ne.s32.totalorder %s311_s28, %s2487_s21  ;;  %p2495_p12 = scmp.lt.s32.totalorder %s311_s28, %s311_s28 }
  0x5e   : > { %p2496_p13 = scmp.lt.s32.totalorder %s2494_s24, %s2487_s21 }
  0x5f   : > { %p2490_p10 = pnand %p2488_p9, %p2743_p7 }
  0x60   : > { %p2497_p2 = por %p2496_p13, %p2495_p12 }
  0x61   : > { %p2491_p11 = pneg %p2490_p10 }
  0x63   : > { %p2498_p3 = pnand %p2497_p2, %p2491_p11 }
  0x65   : > { %2501 = shalt.err (!%p2498_p3)
}
  0x66   : > { %2310 = dma.hbm_to_vmem [thread:$0]  (!%p2729_p5), %s3133_s2, 16, %s311_s28, [#allocation3]  }
  0x67   : > { %s2634_s27 = smov [#allocation6]   ;;  %s2635_s30 = smov [#allocation9]  }
  0x68   : > { %s334_s29 = sshll.u32 %s2634_s27, 4  ;;  %s358_s12 = sshll.u32 %s2635_s30, 4  ;;  %s335_s29 = int_to_ptr.vmem [resolvable:$true] %s334_s29  ;;  %s359_s12 = int_to_ptr.vmem [resolvable:$true] %s358_s12 }
  0x69   : > { %s2502_s22 = scalar_lea.hbm %s3135_s4, 16 }
  0x6a   : > { %p2503_p2 = scmp.ne.s32.totalorder %s3135_s4, %s2502_s22  ;;  %p2509_p1 = scmp.lt.u32.totalorder %s2502_s22, %s3135_s4 }
  0x6c   : > { %p2505_p3 = pnand %p2503_p2, %p2743_p7 }
  0x6e   : > { %p2506_p0 = pneg %p2505_p3 }
  0x70   : > { %p2511_p4 = pnand %p2509_p1, %p2506_p0 }
  0x72   : > { %2514 = shalt.err (!%p2511_p4)
}
  0x73   : > { %s2515_s28 = scalar_lea.vmem %s335_s29, 16  ;;  %s2522_s15 = scalar_lea.vmem %s335_s29, 32 }
  0x74   : > { %p2516_p6 = scmp.ne.s32.totalorder %s335_s29, %s2515_s28  ;;  %p2523_p10 = scmp.lt.s32.totalorder %s335_s29, %s335_s29 }
  0x75   : > { %p2524_p11 = scmp.lt.s32.totalorder %s2522_s15, %s2515_s28 }
  0x76   : > { %p2518_p8 = pnand %p2516_p6, %p2743_p7 }
  0x77   : > { %p2525_p12 = por %p2524_p11, %p2523_p10 }
  0x78   : > { %p2519_p9 = pneg %p2518_p8 }
  0x7a   : > { %p2526_p13 = pnand %p2525_p12, %p2519_p9 }
  0x7c   : > { %2529 = shalt.err (!%p2526_p13)
}
  0x7d   : > { %2316 = dma.hbm_to_vmem [thread:$0]  (!%p2729_p5), %s3135_s4, 16, %s335_s29, [#allocation5]  }
  0x7e   : > { %s2530_s22 = scalar_lea.hbm %s3137_s6, 16 }
  0x7f   : > { %p2531_p2 = scmp.ne.s32.totalorder %s3137_s6, %s2530_s22  ;;  %p2537_p1 = scmp.lt.u32.totalorder %s2530_s22, %s3137_s6 }
  0x81   : > { %p2533_p3 = pnand %p2531_p2, %p2743_p7 }
  0x83   : > { %p2534_p0 = pneg %p2533_p3 }
  0x85   : > { %p2539_p4 = pnand %p2537_p1, %p2534_p0 }
  0x87   : > { %2542 = shalt.err (!%p2539_p4)
}
  0x88   : > { %s2543_s28 = scalar_lea.vmem %s359_s12, 16  ;;  %s2550_s29 = scalar_lea.vmem %s359_s12, 32 }
  0x89   : > { %p2544_p6 = scmp.ne.s32.totalorder %s359_s12, %s2543_s28  ;;  %p2551_p10 = scmp.lt.s32.totalorder %s359_s12, %s359_s12 }
  0x8a   : > { %p2552_p11 = scmp.lt.s32.totalorder %s2550_s29, %s2543_s28 }
  0x8b   : > { %p2546_p8 = pnand %p2544_p6, %p2743_p7 }
  0x8c   : > { %p2553_p12 = por %p2552_p11, %p2551_p10 }
  0x8d   : > { %p2547_p9 = pneg %p2546_p8 }
  0x8f   : > { %p2554_p13 = pnand %p2553_p12, %p2547_p9 }
  0x91   : > { %2557 = shalt.err (!%p2554_p13)
}
  0x92   : > { %2322 = dma.hbm_to_vmem [thread:$0]  (!%p2729_p5), %s3137_s6, 16, %s359_s12, [#allocation8]  }
  0x93   : > { %s2636_s30 = smov [#allocation12]   ;;  %s2558_s25 = scalar_lea.hbm %s3139_s8, 128 }
  0x94   : > { %s382_s16 = sshll.u32 %s2636_s30, 4  ;;  %p2559_p2 = scmp.ne.s32.totalorder %s3139_s8, %s2558_s25  ;;  %s383_s16 = int_to_ptr.vmem [resolvable:$true] %s382_s16 }
  0x95   : > { %p2565_p1 = scmp.lt.u32.totalorder %s2558_s25, %s3139_s8 }
  0x96   : > { %p2561_p3 = pnand %p2559_p2, %p2743_p7 }
  0x98   : > { %p2562_p0 = pneg %p2561_p3 }
  0x9a   : > { %p2567_p4 = pnand %p2565_p1, %p2562_p0 }
  0x9c   : > { %2570 = shalt.err (!%p2567_p4)
}
  0x9d   : > { %s2571_s12 = scalar_lea.vmem %s383_s16, 128  ;;  %p2579_p10 = scmp.lt.s32.totalorder %s383_s16, %s383_s16 }
  0x9e   : > { %p2572_p6 = scmp.ne.s32.totalorder %s383_s16, %s2571_s12  ;;  %p2580_p11 = scmp.lt.s32.totalorder %s2571_s12, %s2571_s12 }
  0xa0   : > { %p2574_p8 = pnand %p2572_p6, %p2743_p7  ;;  %p2581_p12 = por %p2580_p11, %p2579_p10 }
  0xa2   : > { %p2575_p9 = pneg %p2574_p8 }
  0xa4   : > { %p2582_p13 = pnand %p2581_p12, %p2575_p9 }
  0xa6   : > { %2585 = shalt.err (!%p2582_p13)
}
  0xa7   : > { %2328 = dma.hbm_to_vmem [thread:$0]  (!%p2729_p5), %s3139_s8, 128, %s383_s16, [#allocation11]  }
  0xa8   : > { %p3151_p2 = scmp.ne.s32.totalorder %s3148_s20, 0 }
  0xa9   : > { %p3152_p3 = scmp.ne.s32.totalorder (!%p3151_p2), %s3147_s19, 0 }
  0xaa   : > { %415 = sbr.rel (%p3151_p2) target bundleno = 1161 (0x489), region = 56 }
  0xb1   : > { %2599 = dma.done.wait (%p3152_p3), [#allocation3], 16  }
  0xb2   : > { %2601 = vsyncadd (%p3152_p3), [#allocation3], 4294967280 }
  0xb3   : > { %2603 = dma.done.wait (%p3152_p3), [#allocation5], 528  }
  0xb4   : > { %2605 = vsyncadd (%p3152_p3), [#allocation5], 4294966768 }
  0xb5   : > { %2607 = dma.done.wait (%p3152_p3), [#allocation8], 528  }
  0xb6   : > { %2609 = vsyncadd (%p3152_p3), [#allocation8], 4294966768 }
  0xb7   : > { %2611 = dma.done.wait (%p3152_p3), [#allocation11], 8320  }
  0xb8   : > { %2613 = vsyncadd (%p3152_p3), [#allocation11], 4294958976  ;;  %p494_p5 = scmp.lt.s32.totalorder %s2616_s13, 1  ;;  %vm560_vm0 = vcmask 1040384   ;;  %vm561_vm1 = vcmask 1041408   ;;  %v2637_v0 = vmov 65535  }
  0xb9   : > { %v562_v1 = vsel %vm560_vm0, 4294967295, %v2637_v0  ;;  %vm547_vm2 = vcmask 23552   ;;  %v2382_v13 = vld [vmem:[#allocation4] sm:$0xff]   ;;  %v2383_v15 = vld [vmem:[#allocation4 + $0x8] sm:$0xff]   ;;  %v2384_v19 = vld [vmem:[#allocation4 + $0x10] sm:$0xff]   ;;  %vm672_vm3 = vcmask 519168  }
  0xba   : > { %s3159_s13 = smov (!%p494_p5, %s2616_s13), 1  ;;  %v563_v2 = vsel %vm561_vm1, %v562_v1, 0  ;;  %2247 = vmatprep.subr.bf16.mxu1 %v2382_v13  ;;  %v2385_v20 = vld [vmem:[#allocation4 + $0x18] sm:$0xff]   ;;  %v2386_v21 = vld [vmem:[#allocation7] sm:$0xff]   ;;  %v2387_v22 = vld [vmem:[#allocation7 + $0x8] sm:$0xff]   ;;  %vm720_vm4 = vcmask 523264  }
  0xbb   : > { %s2105_s20 = sshll.u32 %s3159_s13, 1  ;;  %s2206_s30 = sshll.u32 %s3159_s13, 6  ;;  %2248 = vmatpush3.bf16.msra.mxu1 %v2382_v13  ;;  %v2109_v23 = vld [vmem:[#allocation2] ss:$0 sm:$0xff]  ;;  %v2388_v60 = vld [vmem:[#allocation7 + $0x10] sm:$0xff]   ;;  %v938_v62 = vld [vmem:[#allocation10] sm:$0xff] }
  0xbc   : > { %s506_s27 = scalar_lea.vmem %s3132_s1, %s2105_s20  ;;  %s501_s18 = scalar_lea.vmem %s3131_s0, %s2206_s30  ;;  %2249 = vmatprep.subr.bf16.mxu1 %v2383_v15  ;;  %v2389_v61 = vld [vmem:[#allocation7 + $0x18] sm:$0xff]   ;;  %v942_v63 = vld [vmem:[#allocation10 + $0x20] sm:$0xff]  ;;  %v2945_v0 = vld [vmem:[#allocation10 + $0x8] sm:$0xff] }
  0xbd   : > { %v535_v3 = vld [vmem:[%s506_s27] sm:$0x3]  ;;  %v528_v6 = vld [vmem:[%s501_s18 + $0x8] sm:$0xff]  ;;  %v529_v7 = vld [vmem:[%s501_s18 + $0x10] sm:$0xff]  ;;  %s2207_s22 = sshll.u32 %s3159_s13, 5  ;;  %v2140_v1 = vcombine.low %v938_v62, %v942_v63  ;;  %s2108_s17 = sshll.u32 %s3159_s13, 3 }
  0xbe   : > { %v565_v4 = vand.u32 %v563_v2, %v535_v3  ;;  %v527_v5 = vld [vmem:[%s501_s18] sm:$0xff]  ;;  %v530_v9 = vld [vmem:[%s501_s18 + $0x18] sm:$0xff]  ;;  %v532_v11 = vld [vmem:[%s501_s18 + $0x28] sm:$0xff]  ;;  %s2923_s24 = scalar_lea.vmem %s3140_s9, %s2207_s22  ;;  %v2141_v2 = vcombine.high %v938_v62, %v942_v63  ;;  %s520_s29 = scalar_lea.vmem %s3141_s10, %s2108_s17 }
  0xbf   : > { %v536_v8 = vpack.c.bf16 %v528_v6, %v527_v5  ;;  %v531_v10 = vld [vmem:[%s501_s18 + $0x20] sm:$0xff]  ;;  %v537_v12 = vpack.c.bf16 %v530_v9, %v529_v7  ;;  %v533_v16 = vld [vmem:[%s501_s18 + $0x30] sm:$0xff]  ;;  %v534_v17 = vld [vmem:[%s501_s18 + $0x38] sm:$0xff]  ;;  %2250 = vmatpush3.bf16.msra.mxu1 %v2383_v15 }
  0xc0   : > { %2237 = vmatprep.subr.bf16.mxu0 %v565_v4  ;;  %v538_v14 = vpack.c.bf16 %v532_v11, %v531_v10  ;;  %v539_v18 = vpack.c.bf16 %v534_v17, %v533_v16  ;;  %2251 = vmatprep.subr.bf16.mxu1 %v2384_v19  ;;  %v2947_v3 = vld [vmem:[#allocation10 + $0x28] sm:$0xff]  ;;  %v950_v5 = vld [vmem:[#allocation10 + $0x60] sm:$0xff] }
  0xc1   : > { %2238 = vmatpush3.bf16.msra.mxu0 %v565_v4  ;;  %2239 = vmatprep.mubr.msk.bf16.mxu0 %vm547_vm2, %v536_v8  ;;  %v946_v4 = vld [vmem:[#allocation10 + $0x40] sm:$0xff]  ;;  %v2142_v6 = vcombine.low %v2945_v0, %v2947_v3  ;;  %v2143_v7 = vcombine.high %v2945_v0, %v2947_v3 }
  0xc2   : > { %2263 = vmatprep.subr.bf16.mxu0 %v2386_v21  ;;  %v2149_v8 = vcombine.high %v946_v4, %v950_v5  ;;  %v954_v9 = vld [vmem:[#allocation10 + $0x80] sm:$0xff]  ;;  %v2148_v11 = vcombine.low %v946_v4, %v950_v5  ;;  %v971_v4 = vld [vmem:[#allocation10 + $0x108] sm:$0xff] }
  0xc3   : > { %2252 = vmatpush3.bf16.msra.mxu1 %v2384_v19  ;;  %v958_v10 = vld [vmem:[#allocation10 + $0xa0] sm:$0xff]  ;;  %v975_v5 = vld [vmem:[#allocation10 + $0x128] sm:$0xff] }
  0xc4   : > { %2240 = vmatmul.mubr.msk.bf16.vlgmr.msra.gmra.mrb[0].mxu0 %vm547_vm2, %v537_v12  ;;  %2253 = vmatprep.subr.bf16.mxu1 %v2385_v20  ;;  %v2157_v12 = vcombine.high %v954_v9, %v958_v10  ;;  %v962_v13 = vld [vmem:[#allocation10 + $0xc0] sm:$0xff]  ;;  %v2156_v15 = vcombine.low %v954_v9, %v958_v10  ;;  %v2175_v3 = vcombine.high %v971_v4, %v975_v5 }
  0xc5   : > { %2243 = vmatprep.mubr.msk.bf16.mxu0 %vm547_vm2, %v538_v14  ;;  %2264 = vmatpush3.bf16.msra.mxu0 %v2386_v21  ;;  %v966_v14 = vld [vmem:[#allocation10 + $0xe0] sm:$0xff] }
  0xc6   : > { %2265 = vmatprep.subr.bf16.mxu0 %v2387_v22  ;;  %v2165_v16 = vcombine.high %v962_v13, %v966_v14  ;;  %v970_v17 = vld [vmem:[#allocation10 + $0x100] sm:$0xff]  ;;  %v2164_v19 = vcombine.low %v962_v13, %v966_v14  ;;  %v987_v13 = vld [vmem:[#allocation10 + $0x188] sm:$0xff] }
  0xc7   : > { %2254 = vmatpush3.bf16.msra.mxu1 %v2385_v20  ;;  %v978_v21 = vld [vmem:[#allocation10 + $0x140] sm:$0xff] }
  0xc8   : > { %1364 = vmatprep.subr.bf16.mxu1 %v2141_v2 }
  0xc9   : > { %2266 = vmatpush3.bf16.msra.mxu0 %v2387_v22  ;;  %v982_v22 = vld [vmem:[#allocation10 + $0x160] sm:$0xff] }
  0xca   : > { %2267 = vmatprep.subr.bf16.mxu0 %v2388_v60 }
  0xcc   : > { %2244 = vmatmul.mubr.msk.bf16.gmra.mrb[4].mxu0 %vm547_vm2, %v539_v18  ;;  %v974_v18 = vld [vmem:[#allocation10 + $0x120] sm:$0xff] }
  0xcd   : > { %2268 = vmatpush3.bf16.msra.mxu0 %v2388_v60  ;;  %v2173_v20 = vcombine.high %v970_v17, %v974_v18  ;;  %v963_v60 = vld [vmem:[#allocation10 + $0xc8] sm:$0xff] }
  0xce   : > { %2269 = vmatprep.subr.bf16.mxu0 %v2389_v61 }
  0xd1   : > { %2270 = vmatpush3.bf16.msra.mxu0 %v2389_v61  ;;  %v967_v61 = vld [vmem:[#allocation10 + $0xe8] sm:$0xff] }
  0xd2   : > { %1437 = vmatprep.subr.bf16.mxu0 %v2143_v7  ;;  %v2167_v2 = vcombine.high %v963_v60, %v967_v61  ;;  %v2166_v0 = vcombine.low %v963_v60, %v967_v61  ;;  %v983_v7 = vld [vmem:[#allocation10 + $0x168] sm:$0xff]  ;;  %v960_v61 = vld [vmem:[#allocation10 + $0xb0] sm:$0xff] }
 0x197   : > { %v2241_v24 = vpop.f32.mrb[0].mxu0 }
 0x198   : > { %v610_v25 = vadd.f32 %v2241_v24, %v2109_v23  ;;  %v601_v26 = vpop.f32.mrb[1].mxu0  ;;  %v2181_v24 = vcombine.high %v978_v21, %v982_v22 }
 0x199   : > { %v602_v27 = vadd.f32 %v2109_v23, %v601_v26  ;;  %v2242_v28 = vpop.f32.mrb[2].mxu0  ;;  %v2122_v26 = vld [vmem:[#allocation6] ss:$0 sm:$0xff] }
 0x19a   : > { %v634_v29 = vmax.f32 %v610_v25, 0.0  ;;  %v613_v30 = vadd.f32 %v2242_v28, %v2109_v23  ;;  %v604_v31 = vpop.f32.mrb[3].mxu0  ;;  %v2180_v25 = vcombine.low %v978_v21, %v982_v22  ;;  %v995_v21 = vld [vmem:[#allocation10 + $0x1c8] sm:$0xff] }
 0x19b   : > { %v632_v32 = vmax.f32 %v602_v27, 0.0  ;;  %v605_v33 = vadd.f32 %v2109_v23, %v604_v31 }
 0x19c   : > { %v2210_v34 = vpack.c.bf16 %v634_v29, %v634_v29  ;;  %v635_v35 = vmax.f32 %v613_v30, 0.0 }
 0x19d   : > { %v2208_v36 = vpack.c.bf16 %v632_v32, %v632_v32  ;;  %v633_v37 = vmax.f32 %v605_v33, 0.0 }
 0x19e   : > { %675 = vst.msk [vmem:[%s2923_s24 + $0x8] sm:$0xf] %vm672_vm3, %v2210_v34  ;;  %v641_v38 = vpack.c.bf16 %v635_v35, %v634_v29  ;;  %v2211_v39 = vpack.c.bf16 %v635_v35, %v635_v35 }
 0x19f   : > { %673 = vst.msk [vmem:[%s2923_s24] sm:$0xf] %vm672_vm3, %v2208_v36  ;;  %v2209_v40 = vpack.c.bf16 %v633_v37, %v633_v37  ;;  %v2245_v41 = vpop.f32.mrb[4].mxu0  ;;  %v640_v42 = vpack.c.bf16 %v633_v37, %v632_v32 }
 0x1a0   : > { %676 = vst.msk [vmem:[%s2923_s24 + $0xc] sm:$0xf] %vm672_vm3, %v2211_v39  ;;  %v626_v43 = vadd.f32 %v2245_v41, %v2109_v23  ;;  %v617_v44 = vpop.f32.mrb[5].mxu0  ;;  %v947_v39 = vld [vmem:[#allocation10 + $0x48] sm:$0xff] }
 0x1a1   : > { %674 = vst.msk [vmem:[%s2923_s24 + $0x4] sm:$0xf] %vm672_vm3, %v2209_v40  ;;  %v618_v45 = vadd.f32 %v2109_v23, %v617_v44  ;;  %v2246_v46 = vpop.f32.mrb[6].mxu0  ;;  %2255 = vmatprep.mubr.msk.bf16.mxu1 %vm720_vm4, %v640_v42  ;;  %v951_v40 = vld [vmem:[#allocation10 + $0x68] sm:$0xff] }
 0x1a2   : > { %v638_v47 = vmax.f32 %v626_v43, 0.0  ;;  %v629_v48 = vadd.f32 %v2246_v46, %v2109_v23  ;;  %v620_v49 = vpop.f32.mrb[7].mxu0  ;;  %2256 = vmatmul.mubr.msk.bf16.vlgmr.msra.gmra.mrb[0].mxu1 %vm720_vm4, %v641_v38  ;;  %v2151_v46 = vcombine.high %v947_v39, %v951_v40 }
 0x1a3   : > { %v636_v50 = vmax.f32 %v618_v45, 0.0  ;;  %v621_v51 = vadd.f32 %v2109_v23, %v620_v49  ;;  %1365 = vmatpush1.bf16.msra.mxu1 %v2140_v1  ;;  %v2172_v23 = vcombine.low %v970_v17, %v974_v18  ;;  %v955_v49 = vld [vmem:[#allocation10 + $0x88] sm:$0xff] }
 0x1a4   : > { %v2214_v52 = vpack.c.bf16 %v638_v47, %v638_v47  ;;  %v639_v53 = vmax.f32 %v629_v48, 0.0  ;;  %1366 = vmatprep.subr.bf16.mxu1 %v2149_v8  ;;  %v2174_v8 = vcombine.low %v971_v4, %v975_v5 }
 0x1a5   : > { %v2212_v54 = vpack.c.bf16 %v636_v50, %v636_v50  ;;  %v637_v55 = vmax.f32 %v621_v51, 0.0 }
 0x1a6   : > { %679 = vst.msk [vmem:[%s2923_s24 + $0x18] sm:$0xf] %vm672_vm3, %v2214_v52  ;;  %v643_v56 = vpack.c.bf16 %v639_v53, %v638_v47  ;;  %v2215_v57 = vpack.c.bf16 %v639_v53, %v639_v53 }
 0x1a7   : > { %677 = vst.msk [vmem:[%s2923_s24 + $0x10] sm:$0xf] %vm672_vm3, %v2212_v54  ;;  %v642_v58 = vpack.c.bf16 %v637_v55, %v636_v50  ;;  %v2213_v59 = vpack.c.bf16 %v637_v55, %v637_v55  ;;  %1367 = vmatpush1.bf16.msra.mxu1 %v2148_v11  ;;  %v959_v50 = vld [vmem:[#allocation10 + $0xa8] sm:$0xff]  ;;  %v986_v11 = vld [vmem:[#allocation10 + $0x180] sm:$0xff] }
 0x1a8   : > { %680 = vst.msk [vmem:[%s2923_s24 + $0x1c] sm:$0xf] %vm672_vm3, %v2215_v57  ;;  %1368 = vmatprep.subr.bf16.mxu1 %v2157_v12  ;;  %v2158_v1 = vcombine.low %v955_v49, %v959_v50  ;;  %v990_v12 = vld [vmem:[#allocation10 + $0x1a0] sm:$0xff] }
 0x1a9   : > { %678 = vst.msk [vmem:[%s2923_s24 + $0x14] sm:$0xf] %vm672_vm3, %v2213_v59  ;;  %2259 = vmatprep.mubr.msk.bf16.mxu1 %vm720_vm4, %v642_v58  ;;  %v2159_v58 = vcombine.high %v955_v49, %v959_v50  ;;  %v2189_v14 = vcombine.high %v986_v11, %v990_v12  ;;  %v949_v49 = vld [vmem:[#allocation10 + $0x58] sm:$0xff] }
 0x1aa   : > { %2260 = vmatmul.mubr.msk.bf16.gmra.mrb[4].mxu1 %vm720_vm4, %v643_v56  ;;  %v2150_v56 = vcombine.low %v947_v39, %v951_v40  ;;  %v953_v50 = vld [vmem:[#allocation10 + $0x78] sm:$0xff] }
 0x1ab   : > { %1369 = vmatpush1.bf16.msra.mxu1 %v2156_v15  ;;  %v991_v15 = vld [vmem:[#allocation10 + $0x1a8] sm:$0xff] }
 0x1ac   : > { %1370 = vmatprep.subr.bf16.mxu1 %v2165_v16  ;;  %v2188_v16 = vcombine.low %v986_v11, %v990_v12  ;;  %v2190_v17 = vcombine.low %v987_v13, %v991_v15  ;;  %v2191_v18 = vcombine.high %v987_v13, %v991_v15  ;;  %v968_v12 = vld [vmem:[#allocation10 + $0xf0] sm:$0xff]  ;;  %v965_v13 = vld [vmem:[#allocation10 + $0xd8] sm:$0xff] }
 0x1af   : > { %1371 = vmatpush1.bf16.msra.mxu1 %v2164_v19  ;;  %v994_v19 = vld [vmem:[#allocation10 + $0x1c0] sm:$0xff] }
 0x1b0   : > { %1372 = vmatprep.subr.bf16.mxu1 %v2173_v20  ;;  %v998_v20 = vld [vmem:[#allocation10 + $0x1e0] sm:$0xff] }
 0x1b1   : > { %v2197_v22 = vcombine.high %v994_v19, %v998_v20 }
 0x1b3   : > { %1373 = vmatpush1.bf16.msra.mxu1 %v2172_v23  ;;  %v999_v23 = vld [vmem:[#allocation10 + $0x1e8] sm:$0xff] }
 0x1b4   : > { %1374 = vmatprep.subr.bf16.mxu1 %v2181_v24  ;;  %v2196_v24 = vcombine.low %v994_v19, %v998_v20 }
 0x1b7   : > { %1375 = vmatpush1.bf16.msra.mxu1 %v2180_v25  ;;  %v2198_v25 = vcombine.low %v995_v21, %v999_v23 }
 0x1b8   : > { %1376 = vmatprep.subr.bf16.mxu1 %v2189_v14  ;;  %v969_v14 = vld [vmem:[#allocation10 + $0xf8] sm:$0xff] }
 0x1bb   : > { %1377 = vmatpush1.bf16.msra.mxu1 %v2188_v16 }
 0x1bc   : > { %1378 = vmatprep.subr.bf16.mxu1 %v2197_v22  ;;  %v2171_v22 = vcombine.high %v965_v13, %v969_v14 }
 0x1bf   : > { %1379 = vmatpush1.bf16.msra.mxu1 %v2196_v24  ;;  %v976_v24 = vld [vmem:[#allocation10 + $0x130] sm:$0xff] }
 0x275   : > { %v2257_v27 = vpop.f32.mrb[0].mxu1 }
 0x276   : > { %v776_v28 = vadd.f32 %v2257_v27, %v2122_v26  ;;  %v767_v29 = vpop.f32.mrb[1].mxu1  ;;  %v940_v27 = vld [vmem:[#allocation10 + $0x10] sm:$0xff] }
 0x277   : > { %v768_v30 = vadd.f32 %v2122_v26, %v767_v29  ;;  %v2258_v31 = vpop.f32.mrb[2].mxu1  ;;  %v941_v29 = vld [vmem:[#allocation10 + $0x18] sm:$0xff] }
 0x278   : > { %v779_v32 = vadd.f32 %v2258_v31, %v2122_v26  ;;  %v770_v33 = vpop.f32.mrb[3].mxu1  ;;  %v800_v35 = vmax.f32 %v776_v28, 0.0  ;;  %v944_v28 = vld [vmem:[#allocation10 + $0x30] sm:$0xff]  ;;  %v945_v31 = vld [vmem:[#allocation10 + $0x38] sm:$0xff] }
 0x279   : > { %v771_v34 = vadd.f32 %v2122_v26, %v770_v33  ;;  %v798_v37 = vmax.f32 %v768_v30, 0.0  ;;  %v2145_v30 = vcombine.high %v940_v27, %v944_v28  ;;  %v2144_v33 = vcombine.low %v940_v27, %v944_v28 }
 0x27a   : > { %v801_v36 = vmax.f32 %v779_v32, 0.0  ;;  %v2638_v32 = vmov 0   ;;  %v2170_v28 = vcombine.low %v965_v13, %v969_v14 }
 0x27b   : > { %v799_v38 = vmax.f32 %v771_v34, 0.0  ;;  %1396 = vmatprep.mubr.bf16.mxu1 %v2638_v32  ;;  %v2146_v34 = vcombine.low %v941_v29, %v945_v31  ;;  %1510 = vmatprep.subr.bf16.mxu1 %v2145_v30 }
 0x27c   : > { %v807_v41 = vpack.c.bf16 %v801_v36, %v800_v35  ;;  %v2147_v35 = vcombine.high %v941_v29, %v945_v31  ;;  %v2131_v36 = vld [vmem:[#allocation9] ss:$0 sm:$0xff]  ;;  %v980_v31 = vld [vmem:[#allocation10 + $0x150] sm:$0xff] }
 0x27d   : > { %v806_v42 = vpack.c.bf16 %v799_v38, %v798_v37  ;;  %v2261_v43 = vpop.f32.mrb[4].mxu1 }
 0x27e   : > { %v792_v44 = vadd.f32 %v2261_v43, %v2122_v26  ;;  %v783_v45 = vpop.f32.mrb[5].mxu1 }
 0x27f   : > { %v784_v47 = vadd.f32 %v2122_v26, %v783_v45  ;;  %v2262_v48 = vpop.f32.mrb[6].mxu1  ;;  %2271 = vmatprep.mubr.msk.bf16.mxu0 %vm720_vm4, %v806_v42  ;;  %v948_v45 = vld [vmem:[#allocation10 + $0x50] sm:$0xff] }
 0x280   : > { %v804_v51 = vmax.f32 %v792_v44, 0.0  ;;  %v795_v52 = vadd.f32 %v2262_v48, %v2122_v26  ;;  %v786_v53 = vpop.f32.mrb[7].mxu1  ;;  %2272 = vmatmul.mubr.msk.bf16.vlgmr.msra.gmra.mrb[8].mxu0 %vm720_vm4, %v807_v41  ;;  %v952_v48 = vld [vmem:[#allocation10 + $0x70] sm:$0xff] }
 0x281   : > { %v802_v54 = vmax.f32 %v784_v47, 0.0  ;;  %v787_v55 = vadd.f32 %v2122_v26, %v786_v53  ;;  %1438 = vmatpush1.bf16.msra.mxu0 %v2142_v6  ;;  %v979_v6 = vld [vmem:[#allocation10 + $0x148] sm:$0xff]  ;;  %v2199_v26 = vcombine.high %v995_v21, %v999_v23  ;;  %v972_v23 = vld [vmem:[#allocation10 + $0x110] sm:$0xff] }
 0x282   : > { %v805_v57 = vmax.f32 %v795_v52, 0.0  ;;  %1439 = vmatprep.subr.bf16.mxu0 %v2151_v46  ;;  %v2183_v9 = vcombine.high %v979_v6, %v983_v7  ;;  %v2182_v10 = vcombine.low %v979_v6, %v983_v7  ;;  %v2177_v29 = vcombine.high %v972_v23, %v976_v24 }
 0x283   : > { %v803_v59 = vmax.f32 %v787_v55, 0.0 }
 0x284   : > { %v809_v62 = vpack.c.bf16 %v805_v57, %v804_v51  ;;  %v2155_v57 = vcombine.high %v949_v49, %v953_v50 }
 0x285   : > { %v808_v63 = vpack.c.bf16 %v803_v59, %v802_v54  ;;  %1440 = vmatpush1.bf16.msra.mxu0 %v2150_v56  ;;  %v2153_v56 = vcombine.high %v948_v45, %v952_v48 }
 0x286   : > { %1441 = vmatprep.subr.bf16.mxu0 %v2159_v58  ;;  %v956_v58 = vld [vmem:[#allocation10 + $0x90] sm:$0xff] }
 0x287   : > { %2275 = vmatprep.mubr.msk.bf16.mxu0 %vm720_vm4, %v808_v63  ;;  %v961_v63 = vld [vmem:[#allocation10 + $0xb8] sm:$0xff]  ;;  %v2161_v7 = vcombine.high %v956_v58, %v960_v61 }
 0x288   : > { %2276 = vmatmul.mubr.msk.bf16.gmra.mrb[12].mxu0 %vm720_vm4, %v809_v62  ;;  %v957_v62 = vld [vmem:[#allocation10 + $0x98] sm:$0xff] }
 0x289   : > { %1442 = vmatpush1.bf16.msra.mxu0 %v2158_v1  ;;  %1469 = vmatprep.mubr.bf16.mxu0 %v2638_v32  ;;  %v2162_v19 = vcombine.low %v957_v62, %v961_v63 }
 0x28a   : > { %1443 = vmatprep.subr.bf16.mxu0 %v2167_v2 }
 0x28d   : > { %1444 = vmatpush1.bf16.msra.mxu0 %v2166_v0  ;;  %v2152_v0 = vcombine.low %v948_v45, %v952_v48  ;;  %v996_v48 = vld [vmem:[#allocation10 + $0x1d0] sm:$0xff] }
 0x28e   : > { %1445 = vmatprep.subr.bf16.mxu0 %v2175_v3  ;;  %v2154_v3 = vcombine.low %v949_v49, %v953_v50  ;;  %v1000_v49 = vld [vmem:[#allocation10 + $0x1f0] sm:$0xff]  ;;  %v997_v50 = vld [vmem:[#allocation10 + $0x1d8] sm:$0xff] }
 0x291   : > { %1446 = vmatpush1.bf16.msra.mxu0 %v2174_v8  ;;  %v2163_v8 = vcombine.high %v957_v62, %v961_v63  ;;  %v3004_v62 = vld [vmem:[#allocation12] sm:$0xff] }
 0x292   : > { %1447 = vmatprep.subr.bf16.mxu0 %v2183_v9  ;;  %v964_v9 = vld [vmem:[#allocation10 + $0xd0] sm:$0xff] }
 0x293   : > { %v2169_v21 = vcombine.high %v964_v9, %v968_v12  ;;  %v2168_v27 = vcombine.low %v964_v9, %v968_v12 }
 0x295   : > { %1448 = vmatpush1.bf16.msra.mxu0 %v2182_v10 }
 0x296   : > { %1449 = vmatprep.subr.bf16.mxu0 %v2191_v18  ;;  %v2160_v18 = vcombine.low %v956_v58, %v960_v61  ;;  %v2200_v58 = vcombine.low %v996_v48, %v1000_v49 }
 0x299   : > { %1450 = vmatpush1.bf16.msra.mxu0 %v2190_v17 }
 0x29a   : > { %1451 = vmatprep.subr.bf16.mxu0 %v2199_v26  ;;  %v977_v26 = vld [vmem:[#allocation10 + $0x138] sm:$0xff] }
 0x29d   : > { %1452 = vmatpush1.bf16.msra.mxu0 %v2198_v25  ;;  %v973_v25 = vld [vmem:[#allocation10 + $0x118] sm:$0xff] }
 0x29e   : > { %1583 = vmatprep.subr.bf16.mxu0 %v2147_v35  ;;  %v2179_v30 = vcombine.high %v973_v25, %v977_v26  ;;  %v985_v35 = vld [vmem:[#allocation10 + $0x178] sm:$0xff] }
 0x353   : > { %v2273_v37 = vpop.f32.mrb[8].mxu0 }
 0x354   : > { %v904_v38 = vadd.f32 %v2273_v37, %v2131_v36  ;;  %v895_v39 = vpop.f32.mrb[9].mxu0  ;;  %v2178_v37 = vcombine.low %v973_v25, %v977_v26 }
 0x355   : > { %v896_v40 = vadd.f32 %v2131_v36, %v895_v39  ;;  %v2274_v41 = vpop.f32.mrb[10].mxu0 }
 0x356   : > { %v907_v42 = vadd.f32 %v2274_v41, %v2131_v36  ;;  %v898_v43 = vpop.f32.mrb[11].mxu0  ;;  %v928_v46 = vmax.f32 %v904_v38, 0.0  ;;  %v992_v41 = vld [vmem:[#allocation10 + $0x1b0] sm:$0xff] }
 0x357   : > { %v899_v44 = vadd.f32 %v2131_v36, %v898_v43  ;;  %v926_v51 = vmax.f32 %v896_v40, 0.0  ;;  %v988_v40 = vld [vmem:[#allocation10 + $0x190] sm:$0xff]  ;;  %v993_v43 = vld [vmem:[#allocation10 + $0x1b8] sm:$0xff] }
 0x358   : > { %v929_v47 = vmax.f32 %v907_v42, 0.0  ;;  %v989_v42 = vld [vmem:[#allocation10 + $0x198] sm:$0xff] }
 0x359   : > { %v927_v52 = vmax.f32 %v899_v44, 0.0 }
 0x35a   : > { %v2962_v53 = vpack.c.bf16 %v929_v47, %v928_v46  ;;  %v2193_v46 = vcombine.high %v988_v40, %v992_v41  ;;  %v2195_v47 = vcombine.high %v989_v42, %v993_v43 }
 0x35b   : > { %v2964_v54 = vpack.c.bf16 %v927_v52, %v926_v51  ;;  %v2277_v55 = vpop.f32.mrb[12].mxu0  ;;  %v1001_v51 = vld [vmem:[#allocation10 + $0x1f8] sm:$0xff]  ;;  %v2192_v52 = vcombine.low %v988_v40, %v992_v41 }
 0x35c   : > { %v920_v59 = vadd.f32 %v2277_v55, %v2131_v36  ;;  %v911_v60 = vpop.f32.mrb[13].mxu0  ;;  %v2194_v55 = vcombine.low %v989_v42, %v993_v43 }
 0x35d   : > { %v912_v1 = vadd.f32 %v2131_v36, %v911_v60  ;;  %v2278_v2 = vpop.f32.mrb[14].mxu0  ;;  %1397 = vmatmul.mubr.bf16.vlgmr.msra.gmra.mrb[8].mxu1 %v2964_v54  ;;  %1470 = vmatmul.mubr.bf16.vlgmr.msra.gmra.mrb[16].mxu0 %v2964_v54 }
 0x35e   : > { %v923_v4 = vadd.f32 %v2278_v2, %v2131_v36  ;;  %1511 = vmatpush1.bf16.msra.mxu1 %v2144_v33  ;;  %1584 = vmatpush1.bf16.msra.mxu0 %v2146_v34  ;;  %v914_v5 = vpop.f32.mrb[15].mxu0  ;;  %v932_v10 = vmax.f32 %v920_v59, 0.0  ;;  %v984_v33 = vld [vmem:[#allocation10 + $0x170] sm:$0xff]  ;;  %v981_v34 = vld [vmem:[#allocation10 + $0x158] sm:$0xff]  ;;  %v2202_v59 = vcombine.low %v997_v50, %v1001_v51 }
 0x35f   : > { %v915_v6 = vadd.f32 %v2131_v36, %v914_v5  ;;  %1512 = vmatprep.subr.bf16.mxu1 %v2153_v56  ;;  %1585 = vmatprep.subr.bf16.mxu0 %v2155_v57  ;;  %v930_v15 = vmax.f32 %v912_v1, 0.0  ;;  %v2176_v36 = vcombine.low %v972_v23, %v976_v24  ;;  %v2185_v38 = vcombine.high %v980_v31, %v984_v33 }
 0x360   : > { %v933_v11 = vmax.f32 %v923_v4, 0.0  ;;  %1406 = vmatprep.mubr.bf16.mxu1 %v2638_v32  ;;  %1479 = vmatprep.mubr.bf16.mxu0 %v2638_v32  ;;  %v2187_v39 = vcombine.high %v981_v34, %v985_v35  ;;  %v2184_v44 = vcombine.low %v980_v31, %v984_v33  ;;  %v2186_v45 = vcombine.low %v981_v34, %v985_v35 }
 0x361   : > { %v931_v16 = vmax.f32 %v915_v6, 0.0  ;;  %v2201_v56 = vcombine.high %v996_v48, %v1000_v49  ;;  %v2203_v57 = vcombine.high %v997_v50, %v1001_v51 }
 0x362   : > { %v2970_v17 = vpack.c.bf16 %v933_v11, %v932_v10  ;;  %1513 = vmatpush1.bf16.msra.mxu1 %v2152_v0  ;;  %1586 = vmatpush1.bf16.msra.mxu0 %v2154_v3 }
 0x363   : > { %v2972_v20 = vpack.c.bf16 %v931_v16, %v930_v15  ;;  %1514 = vmatprep.subr.bf16.mxu1 %v2161_v7  ;;  %1587 = vmatprep.subr.bf16.mxu0 %v2163_v8 }
 0x365   : > { %1407 = vmatmul.mubr.bf16.gmra.mrb[12].mxu1 %v2962_v53  ;;  %1480 = vmatmul.mubr.bf16.gmra.mrb[20].mxu0 %v2962_v53 }
 0x366   : > { %1515 = vmatpush1.bf16.msra.mxu1 %v2160_v18  ;;  %1588 = vmatpush1.bf16.msra.mxu0 %v2162_v19 }
 0x367   : > { %1516 = vmatprep.subr.bf16.mxu1 %v2169_v21  ;;  %1589 = vmatprep.subr.bf16.mxu0 %v2171_v22 }
 0x368   : > { %1416 = vmatprep.mubr.bf16.mxu1 %v2638_v32  ;;  %1489 = vmatprep.mubr.bf16.mxu0 %v2638_v32 }
 0x36a   : > { %1517 = vmatpush1.bf16.msra.mxu1 %v2168_v27  ;;  %1590 = vmatpush1.bf16.msra.mxu0 %v2170_v28 }
 0x36b   : > { %1518 = vmatprep.subr.bf16.mxu1 %v2177_v29  ;;  %1591 = vmatprep.subr.bf16.mxu0 %v2179_v30 }
 0x36d   : > { %1417 = vmatmul.mubr.bf16.gmra.mrb[16].mxu1 %v2972_v20  ;;  %1490 = vmatmul.mubr.bf16.gmra.mrb[24].mxu0 %v2972_v20 }
 0x36e   : > { %1519 = vmatpush1.bf16.msra.mxu1 %v2176_v36  ;;  %1592 = vmatpush1.bf16.msra.mxu0 %v2178_v37 }
 0x36f   : > { %1520 = vmatprep.subr.bf16.mxu1 %v2185_v38  ;;  %1593 = vmatprep.subr.bf16.mxu0 %v2187_v39 }
 0x370   : > { %1426 = vmatprep.mubr.bf16.mxu1 %v2638_v32  ;;  %1499 = vmatprep.mubr.bf16.mxu0 %v2638_v32 }
 0x372   : > { %1521 = vmatpush1.bf16.msra.mxu1 %v2184_v44  ;;  %1594 = vmatpush1.bf16.msra.mxu0 %v2186_v45 }
 0x373   : > { %1522 = vmatprep.subr.bf16.mxu1 %v2193_v46  ;;  %1595 = vmatprep.subr.bf16.mxu0 %v2195_v47 }
 0x375   : > { %1427 = vmatmul.mubr.bf16.gmra.mrb[20].mxu1 %v2970_v17  ;;  %1500 = vmatmul.mubr.bf16.gmra.mrb[28].mxu0 %v2970_v17 }
 0x376   : > { %1523 = vmatpush1.bf16.msra.mxu1 %v2192_v52  ;;  %1596 = vmatpush1.bf16.msra.mxu0 %v2194_v55 }
 0x377   : > { %1524 = vmatprep.subr.bf16.mxu1 %v2201_v56  ;;  %1597 = vmatprep.subr.bf16.mxu0 %v2203_v57 }
 0x378   : > { %1542 = vmatprep.mubr.bf16.mxu1 %v2638_v32  ;;  %1615 = vmatprep.mubr.bf16.mxu0 %v2638_v32 }
 0x37a   : > { %1525 = vmatpush1.bf16.msra.mxu1 %v2200_v58  ;;  %1598 = vmatpush1.bf16.msra.mxu0 %v2202_v59 }
 0x37d   : > { %1543 = vmatmul.mubr.bf16.vlgmr.msra.gmra.mrb[24].mxu1 %v2964_v54  ;;  %1616 = vmatmul.mubr.bf16.vlgmr.msra.gmra.mrb[32].mxu0 %v2964_v54  ;;  %v1004_v54 = vlaneseq }
 0x37e   : > { %1552 = vmatprep.mubr.bf16.mxu1 %v2638_v32  ;;  %1625 = vmatprep.mubr.bf16.mxu0 %v2638_v32 }
 0x37f   : > { %v3000_v60 = vshrl.u32 %v1004_v54, 7 }
 0x381   : > { %v1014_v61 = vsub.s32 2, %v3000_v60  ;;  %v1010_v63 = vsub.s32 1, %v3000_v60  ;;  %v1018_v1 = vsub.s32 3, %v3000_v60 }
 0x383   : > { %v3015_v4 = vrot.slane %v3004_v62, %v1010_v63  ;;  %v3018_v5 = vrot.slane %v3004_v62, %v1018_v1 }
 0x385   : > { %1553 = vmatmul.mubr.bf16.gmra.mrb[28].mxu1 %v2962_v53  ;;  %1626 = vmatmul.mubr.bf16.gmra.mrb[36].mxu0 %v2962_v53  ;;  %v1006_v53 = vsub.s32 0, %v3000_v60 }
 0x386   : > { %1562 = vmatprep.mubr.bf16.mxu1 %v2638_v32  ;;  %1635 = vmatprep.mubr.bf16.mxu0 %v2638_v32 }
 0x387   : > { %v3009_v2 = vrot.slane %v3004_v62, %v1006_v53 }
 0x38d   : > { %1563 = vmatmul.mubr.bf16.gmra.mrb[32].mxu1 %v2972_v20  ;;  %1636 = vmatmul.mubr.bf16.gmra.mrb[40].mxu0 %v2972_v20 }
 0x38e   : > { %1572 = vmatprep.mubr.bf16.mxu1 %v2638_v32  ;;  %1645 = vmatprep.mubr.bf16.mxu0 %v2638_v32  ;;  %v3012_v32 = vrot.slane %v3004_v62, %v1014_v61 }
 0x395   : > { %1573 = vmatmul.mubr.bf16.gmra.mrb[36].mxu1 %v2970_v17  ;;  %1646 = vmatmul.mubr.bf16.gmra.mrb[44].mxu0 %v2970_v17 }
 0x430   : > { %v1398_v0 = vpop.f32.mrb[8].mxu1  ;;  %v1471_v3 = vpop.f32.mrb[16].mxu0 }
 0x431   : > { %v1399_v6 = vadd.f32 %v1398_v0, %v3009_v2  ;;  %v1472_v7 = vadd.f32 %v1471_v3, %v3012_v32  ;;  %v1400_v8 = vpop.f32.mrb[9].mxu1  ;;  %v1473_v9 = vpop.f32.mrb[17].mxu0 }
 0x432   : > { %v1401_v10 = vadd.f32 %v1400_v8, %v3015_v4  ;;  %v1474_v11 = vadd.f32 %v1473_v9, %v3018_v5  ;;  %v1402_v12 = vpop.f32.mrb[10].mxu1  ;;  %v1475_v13 = vpop.f32.mrb[18].mxu0  ;;  %v1022_v8 = vsub.s32 4, %v3000_v60 }
 0x433   : > { %v1403_v14 = vadd.f32 %v1402_v12, %v3009_v2  ;;  %v1476_v15 = vadd.f32 %v1475_v13, %v3012_v32  ;;  %v1404_v16 = vpop.f32.mrb[11].mxu1  ;;  %v1477_v17 = vpop.f32.mrb[19].mxu0  ;;  %v1656_v20 = vmax.f32 %v1399_v6, 0.0  ;;  %v1658_v21 = vmax.f32 %v1472_v7, 0.0 }
 0x434   : > { %v1405_v18 = vadd.f32 %v1404_v16, %v3015_v4  ;;  %v1478_v19 = vadd.f32 %v1477_v17, %v3018_v5  ;;  %v1657_v24 = vmax.f32 %v1401_v10, 0.0  ;;  %v1659_v25 = vmax.f32 %v1474_v11, 0.0 }
 0x435   : > { %v1664_v22 = vmax.f32 %v1403_v14, 0.0  ;;  %v1666_v23 = vmax.f32 %v1476_v15, 0.0  ;;  %v1030_v13 = vsub.s32 6, %v3000_v60  ;;  %v1026_v14 = vsub.s32 5, %v3000_v60 }
 0x436   : > { %v1665_v26 = vmax.f32 %v1405_v18, 0.0  ;;  %v1667_v27 = vmax.f32 %v1478_v19, 0.0  ;;  %v2639_v19 = vmov 1966171168  }
 0x437   : > { %v1721_v28 = vmax.f32 %v1656_v20, %v1664_v22  ;;  %v1747_v29 = vmax.f32 %v1658_v21, %v1666_v23  ;;  %v1838_v20 = vunpack.c.l.s4 %v2639_v19  ;;  %v1034_v21 = vsub.s32 7, %v3000_v60 }
 0x438   : > { %v1734_v30 = vmax.f32 %v1657_v24, %v1665_v26  ;;  %v1760_v31 = vmax.f32 %v1659_v25, %v1667_v27  ;;  %v1408_v33 = vpop.f32.mrb[12].mxu1  ;;  %v1481_v34 = vpop.f32.mrb[20].mxu0 }
 0x439   : > { %v1409_v35 = vadd.f32 %v1408_v33, %v3009_v2  ;;  %v1482_v36 = vadd.f32 %v1481_v34, %v3012_v32  ;;  %v1410_v37 = vpop.f32.mrb[13].mxu1  ;;  %v1483_v38 = vpop.f32.mrb[21].mxu0 }
 0x43a   : > { %v1411_v39 = vadd.f32 %v1410_v37, %v3015_v4  ;;  %v1484_v40 = vadd.f32 %v1483_v38, %v3018_v5  ;;  %v1412_v41 = vpop.f32.mrb[14].mxu1  ;;  %v1485_v42 = vpop.f32.mrb[22].mxu0 }
 0x43b   : > { %v1672_v43 = vmax.f32 %v1409_v35, 0.0  ;;  %v1674_v44 = vmax.f32 %v1482_v36, 0.0  ;;  %v1413_v45 = vadd.f32 %v1412_v41, %v3009_v2  ;;  %v1486_v46 = vadd.f32 %v1485_v42, %v3012_v32  ;;  %v1414_v47 = vpop.f32.mrb[15].mxu1  ;;  %v1487_v48 = vpop.f32.mrb[23].mxu0 }
 0x43c   : > { %v1673_v49 = vmax.f32 %v1411_v39, 0.0  ;;  %v1675_v50 = vmax.f32 %v1484_v40, 0.0  ;;  %v1415_v51 = vadd.f32 %v1414_v47, %v3015_v4  ;;  %v1488_v52 = vadd.f32 %v1487_v48, %v3018_v5 }
 0x43d   : > { %v1722_v55 = vmax.f32 %v1721_v28, %v1672_v43  ;;  %v1748_v56 = vmax.f32 %v1747_v29, %v1674_v44  ;;  %v1680_v57 = vmax.f32 %v1413_v45, 0.0  ;;  %v1682_v58 = vmax.f32 %v1486_v46, 0.0 }
 0x43e   : > { %v1735_v59 = vmax.f32 %v1734_v30, %v1673_v49  ;;  %v1761_v54 = vmax.f32 %v1760_v31, %v1675_v50  ;;  %v1681_v53 = vmax.f32 %v1415_v51, 0.0  ;;  %v1683_v61 = vmax.f32 %v1488_v52, 0.0 }
 0x43f   : > { %v1723_v63 = vmax.f32 %v1722_v55, %v1680_v57  ;;  %v1749_v1 = vmax.f32 %v1748_v56, %v1682_v58  ;;  %v3049_v47 = vrot.slane %v3004_v62, %v1022_v8  ;;  %v3054_v52 = vrot.slane %v3004_v62, %v1030_v13 }
 0x440   : > { %v1736_v0 = vmax.f32 %v1735_v59, %v1681_v53  ;;  %v1762_v3 = vmax.f32 %v1761_v54, %v1683_v61  ;;  %v1418_v6 = vpop.f32.mrb[16].mxu1  ;;  %v1491_v7 = vpop.f32.mrb[24].mxu0  ;;  %v3057_v55 = vrot.slane %v3004_v62, %v1026_v14  ;;  %v1839_v54 = vunpack.c.0.s8 %v1838_v20 }
 0x441   : > { %v1419_v9 = vadd.f32 %v1418_v6, %v3009_v2  ;;  %v1492_v10 = vadd.f32 %v1491_v7, %v3012_v32  ;;  %v1420_v11 = vpop.f32.mrb[17].mxu1  ;;  %v1493_v12 = vpop.f32.mrb[25].mxu0  ;;  %v3062_v53 = vrot.slane %v3004_v62, %v1034_v21 }
 0x442   : > { %v1421_v15 = vadd.f32 %v1420_v11, %v3015_v4  ;;  %v1494_v16 = vadd.f32 %v1493_v12, %v3018_v5  ;;  %v1422_v17 = vpop.f32.mrb[18].mxu1  ;;  %v1495_v18 = vpop.f32.mrb[26].mxu0 }
 0x443   : > { %v1688_v22 = vmax.f32 %v1419_v9, 0.0  ;;  %v1690_v23 = vmax.f32 %v1492_v10, 0.0  ;;  %v1423_v24 = vadd.f32 %v1422_v17, %v3009_v2  ;;  %v1496_v25 = vadd.f32 %v1495_v18, %v3012_v32  ;;  %v1424_v26 = vpop.f32.mrb[19].mxu1  ;;  %v1497_v27 = vpop.f32.mrb[27].mxu0 }
 0x444   : > { %v1689_v28 = vmax.f32 %v1421_v15, 0.0  ;;  %v1691_v29 = vmax.f32 %v1494_v16, 0.0  ;;  %v1425_v30 = vadd.f32 %v1424_v26, %v3015_v4  ;;  %v1498_v31 = vadd.f32 %v1497_v27, %v3018_v5 }
 0x445   : > { %v1724_v33 = vmax.f32 %v1723_v63, %v1688_v22  ;;  %v1750_v34 = vmax.f32 %v1749_v1, %v1690_v23  ;;  %v1696_v35 = vmax.f32 %v1423_v24, 0.0  ;;  %v1698_v36 = vmax.f32 %v1496_v25, 0.0 }
 0x446   : > { %v1737_v37 = vmax.f32 %v1736_v0, %v1689_v28  ;;  %v1763_v38 = vmax.f32 %v1762_v3, %v1691_v29  ;;  %v1697_v39 = vmax.f32 %v1425_v30, 0.0  ;;  %v1699_v40 = vmax.f32 %v1498_v31, 0.0 }
 0x447   : > { %v1725_v41 = vmax.f32 %v1724_v33, %v1696_v35  ;;  %v1751_v42 = vmax.f32 %v1750_v34, %v1698_v36 }
 0x448   : > { %v1738_v43 = vmax.f32 %v1737_v37, %v1697_v39  ;;  %v1764_v44 = vmax.f32 %v1763_v38, %v1699_v40  ;;  %v1428_v45 = vpop.f32.mrb[20].mxu1  ;;  %v1501_v46 = vpop.f32.mrb[28].mxu0 }
 0x449   : > { %v1429_v48 = vadd.f32 %v1428_v45, %v3009_v2  ;;  %v1502_v49 = vadd.f32 %v1501_v46, %v3012_v32  ;;  %v1430_v50 = vpop.f32.mrb[21].mxu1  ;;  %v1503_v51 = vpop.f32.mrb[29].mxu0 }
 0x44a   : > { %v1431_v56 = vadd.f32 %v1430_v50, %v3015_v4  ;;  %v1504_v57 = vadd.f32 %v1503_v51, %v3018_v5  ;;  %v1432_v58 = vpop.f32.mrb[22].mxu1  ;;  %v1505_v59 = vpop.f32.mrb[30].mxu0 }
 0x44b   : > { %v1704_v61 = vmax.f32 %v1429_v48, 0.0  ;;  %v1706_v63 = vmax.f32 %v1502_v49, 0.0  ;;  %v1433_v1 = vadd.f32 %v1432_v58, %v3009_v2  ;;  %v1506_v0 = vadd.f32 %v1505_v59, %v3012_v32  ;;  %v1434_v3 = vpop.f32.mrb[23].mxu1  ;;  %v1507_v6 = vpop.f32.mrb[31].mxu0 }
 0x44c   : > { %v1705_v7 = vmax.f32 %v1431_v56, 0.0  ;;  %v1707_v8 = vmax.f32 %v1504_v57, 0.0  ;;  %v1435_v9 = vadd.f32 %v1434_v3, %v3015_v4  ;;  %v1508_v10 = vadd.f32 %v1507_v6, %v3018_v5 }
 0x44d   : > { %v1726_v11 = vmax.f32 %v1725_v41, %v1704_v61  ;;  %v1752_v12 = vmax.f32 %v1751_v42, %v1706_v63  ;;  %v1712_v13 = vmax.f32 %v1433_v1, 0.0  ;;  %v1714_v14 = vmax.f32 %v1506_v0, 0.0 }
 0x44e   : > { %v1739_v62 = vmax.f32 %v1738_v43, %v1705_v7  ;;  %v1765_v15 = vmax.f32 %v1764_v44, %v1707_v8  ;;  %v1713_v16 = vmax.f32 %v1435_v9, 0.0  ;;  %v1715_v17 = vmax.f32 %v1508_v10, 0.0 }
 0x44f   : > { %v1727_v18 = vmax.f32 %v1726_v11, %v1712_v13  ;;  %v1753_v2 = vmax.f32 %v1752_v12, %v1714_v14  ;;  %v3069_v32 = vsub.s32 %v1839_v54, %v3000_v60 }
 0x450   : > { %v1740_v19 = vmax.f32 %v1739_v62, %v1713_v16  ;;  %v1766_v20 = vmax.f32 %v1765_v15, %v1715_v17  ;;  %v1544_v21 = vpop.f32.mrb[24].mxu1  ;;  %v1617_v22 = vpop.f32.mrb[32].mxu0 }
 0x451   : > { %v1728_v4 = vrot.slane %v1727_v18, 4  ;;  %v1754_v23 = vrot.slane %v1753_v2, 4  ;;  %v1545_v5 = vadd.f32 %v1544_v21, %v3049_v47  ;;  %v1618_v24 = vadd.f32 %v1617_v22, %v3054_v52  ;;  %v1546_v25 = vpop.f32.mrb[25].mxu1  ;;  %v1619_v26 = vpop.f32.mrb[33].mxu0 }
 0x452   : > { %v1741_v27 = vrot.slane %v1740_v19, 4  ;;  %v1767_v28 = vrot.slane %v1766_v20, 4  ;;  %v1547_v29 = vadd.f32 %v1546_v25, %v3057_v55  ;;  %v1620_v30 = vadd.f32 %v1619_v26, %v3062_v53  ;;  %v1548_v31 = vpop.f32.mrb[26].mxu1  ;;  %v1621_v60 = vpop.f32.mrb[34].mxu0 }
 0x453   : > { %v1729_v33 = vmax.f32 %v1727_v18, %v1728_v4  ;;  %v1755_v34 = vmax.f32 %v1753_v2, %v1754_v23  ;;  %v1660_v35 = vmax.f32 %v1545_v5, 0.0  ;;  %v1662_v36 = vmax.f32 %v1618_v24, 0.0  ;;  %v1550_v37 = vpop.f32.mrb[27].mxu1  ;;  %v1623_v38 = vpop.f32.mrb[35].mxu0 }
 0x454   : > { %v1742_v39 = vmax.f32 %v1740_v19, %v1741_v27  ;;  %v1768_v40 = vmax.f32 %v1766_v20, %v1767_v28  ;;  %v1661_v41 = vmax.f32 %v1547_v29, 0.0  ;;  %v1663_v42 = vmax.f32 %v1620_v30, 0.0 }
 0x455   : > { %v1730_v43 = vrot.slane %v1729_v33, 2  ;;  %v1756_v44 = vrot.slane %v1755_v34, 2  ;;  %v1549_v45 = vadd.f32 %v1548_v31, %v3049_v47  ;;  %v1622_v46 = vadd.f32 %v1621_v60, %v3054_v52 }
 0x456   : > { %v1743_v48 = vrot.slane %v1742_v39, 2  ;;  %v1769_v49 = vrot.slane %v1768_v40, 2  ;;  %v1551_v50 = vadd.f32 %v1550_v37, %v3057_v55  ;;  %v1624_v51 = vadd.f32 %v1623_v38, %v3062_v53 }
 0x457   : > { %v1731_v56 = vmax.f32 %v1729_v33, %v1730_v43  ;;  %v1757_v57 = vmax.f32 %v1755_v34, %v1756_v44  ;;  %v1668_v58 = vmax.f32 %v1549_v45, 0.0  ;;  %v1670_v59 = vmax.f32 %v1622_v46, 0.0 }
 0x458   : > { %v1744_v54 = vmax.f32 %v1742_v39, %v1743_v48  ;;  %v1770_v61 = vmax.f32 %v1768_v40, %v1769_v49  ;;  %v1669_v63 = vmax.f32 %v1551_v50, 0.0  ;;  %v1671_v1 = vmax.f32 %v1624_v51, 0.0  ;;  %v1554_v0 = vpop.f32.mrb[28].mxu1  ;;  %v1627_v3 = vpop.f32.mrb[36].mxu0 }
 0x459   : > { %v1732_v6 = vrot.slane %v1731_v56, 1  ;;  %v1758_v7 = vrot.slane %v1757_v57, 1  ;;  %v1773_v8 = vmax.f32 %v1660_v35, %v1668_v58  ;;  %v1799_v9 = vmax.f32 %v1662_v36, %v1670_v59  ;;  %v1556_v10 = vpop.f32.mrb[29].mxu1  ;;  %v1629_v11 = vpop.f32.mrb[37].mxu0 }
 0x45a   : > { %v1745_v12 = vrot.slane %v1744_v54, 1  ;;  %v1771_v13 = vrot.slane %v1770_v61, 1  ;;  %v1786_v14 = vmax.f32 %v1661_v41, %v1669_v63  ;;  %v1812_v62 = vmax.f32 %v1663_v42, %v1671_v1  ;;  %v1558_v15 = vpop.f32.mrb[30].mxu1  ;;  %v1631_v16 = vpop.f32.mrb[38].mxu0 }
 0x45b   : > { %v1733_v17 = vmax.f32 %v1731_v56, %v1732_v6  ;;  %v1759_v18 = vmax.f32 %v1757_v57, %v1758_v7  ;;  %v1555_v2 = vadd.f32 %v1554_v0, %v3049_v47  ;;  %v1628_v19 = vadd.f32 %v1627_v3, %v3054_v52  ;;  %v1560_v20 = vpop.f32.mrb[31].mxu1  ;;  %v1633_v21 = vpop.f32.mrb[39].mxu0 }
 0x45c   : > { %v1746_v22 = vmax.f32 %v1744_v54, %v1745_v12  ;;  %v1772_v4 = vmax.f32 %v1770_v61, %v1771_v13  ;;  %v1557_v23 = vadd.f32 %v1556_v10, %v3057_v55  ;;  %v1630_v5 = vadd.f32 %v1629_v11, %v3062_v53 }
 0x45d   : > { %v1676_v24 = vmax.f32 %v1555_v2, 0.0  ;;  %v1678_v25 = vmax.f32 %v1628_v19, 0.0  ;;  %v1559_v26 = vadd.f32 %v1558_v15, %v3049_v47  ;;  %v1632_v27 = vadd.f32 %v1631_v16, %v3054_v52 }
 0x45e   : > { %v1833_v28 = vcombine.low %v1733_v17, %v1746_v22  ;;  %v1834_v29 = vcombine.low %v1759_v18, %v1772_v4  ;;  %v1677_v30 = vmax.f32 %v1557_v23, 0.0  ;;  %v1679_v31 = vmax.f32 %v1630_v5, 0.0 }
 0x45f   : > { %v1774_v60 = vmax.f32 %v1773_v8, %v1676_v24  ;;  %v1800_v33 = vmax.f32 %v1799_v9, %v1678_v25  ;;  %v1684_v34 = vmax.f32 %v1559_v26, 0.0  ;;  %v1686_v35 = vmax.f32 %v1632_v27, 0.0 }
 0x460   : > { %v3086_v36 = vrot.slane %v1833_v28, %v3069_v32  ;;  %v3089_v37 = vrot.slane %v1834_v29, %v3069_v32  ;;  %v1787_v38 = vmax.f32 %v1786_v14, %v1677_v30  ;;  %v1813_v39 = vmax.f32 %v1812_v62, %v1679_v31  ;;  %v1564_v40 = vpop.f32.mrb[32].mxu1  ;;  %v1637_v41 = vpop.f32.mrb[40].mxu0 }
 0x461   : > { %v1775_v42 = vmax.f32 %v1774_v60, %v1684_v34  ;;  %v1801_v43 = vmax.f32 %v1800_v33, %v1686_v35  ;;  %v1561_v44 = vadd.f32 %v1560_v20, %v3057_v55  ;;  %v1634_v45 = vadd.f32 %v1633_v21, %v3062_v53  ;;  %v1566_v46 = vpop.f32.mrb[33].mxu1  ;;  %v1639_v48 = vpop.f32.mrb[41].mxu0 }
 0x462   : > { %v1865_v49 = vcombine.low %v3086_v36, %v3089_v37  ;;  %v1565_v50 = vadd.f32 %v1564_v40, %v3049_v47  ;;  %v1638_v51 = vadd.f32 %v1637_v41, %v3054_v52  ;;  %v1567_v56 = vadd.f32 %v1566_v46, %v3057_v55  ;;  %v1568_v57 = vpop.f32.mrb[34].mxu1  ;;  %v1641_v58 = vpop.f32.mrb[42].mxu0 }
 0x463   : > { %v1685_v59 = vmax.f32 %v1561_v44, 0.0  ;;  %v1687_v54 = vmax.f32 %v1634_v45, 0.0  ;;  %v1640_v61 = vadd.f32 %v1639_v48, %v3062_v53  ;;  %v1569_v63 = vadd.f32 %v1568_v57, %v3049_v47  ;;  %v1570_v1 = vpop.f32.mrb[35].mxu1  ;;  %v1643_v0 = vpop.f32.mrb[43].mxu0 }
 0x464   : > { %v1692_v3 = vmax.f32 %v1565_v50, 0.0  ;;  %v1694_v6 = vmax.f32 %v1638_v51, 0.0  ;;  %v1693_v7 = vmax.f32 %v1567_v56, 0.0  ;;  %v1642_v14 = vadd.f32 %v1641_v58, %v3054_v52 }
 0x465   : > { %v1788_v8 = vmax.f32 %v1787_v38, %v1685_v59  ;;  %v1814_v9 = vmax.f32 %v1813_v39, %v1687_v54  ;;  %v1695_v10 = vmax.f32 %v1640_v61, 0.0  ;;  %v1700_v11 = vmax.f32 %v1569_v63, 0.0 }
 0x466   : > { %v1776_v12 = vmax.f32 %v1775_v42, %v1692_v3  ;;  %v1802_v13 = vmax.f32 %v1801_v43, %v1694_v6  ;;  %v1571_v62 = vadd.f32 %v1570_v1, %v3057_v55  ;;  %v1644_v17 = vadd.f32 %v1643_v0, %v3062_v53 }
 0x467   : > { %v1789_v15 = vmax.f32 %v1788_v8, %v1693_v7  ;;  %v1815_v16 = vmax.f32 %v1814_v9, %v1695_v10  ;;  %v1702_v2 = vmax.f32 %v1642_v14, 0.0 }
 0x468   : > { %v1777_v18 = vmax.f32 %v1776_v12, %v1700_v11  ;;  %v1701_v19 = vmax.f32 %v1571_v62, 0.0  ;;  %v1574_v20 = vpop.f32.mrb[36].mxu1  ;;  %v1647_v21 = vpop.f32.mrb[44].mxu0  ;;  %v1703_v22 = vmax.f32 %v1644_v17, 0.0 }
 0x469   : > { %v1575_v4 = vadd.f32 %v1574_v20, %v3049_v47  ;;  %v1648_v23 = vadd.f32 %v1647_v21, %v3054_v52  ;;  %v1576_v5 = vpop.f32.mrb[37].mxu1  ;;  %v1649_v24 = vpop.f32.mrb[45].mxu0  ;;  %v1803_v25 = vmax.f32 %v1802_v13, %v1702_v2 }
 0x46a   : > { %v1790_v26 = vmax.f32 %v1789_v15, %v1701_v19  ;;  %v1577_v27 = vadd.f32 %v1576_v5, %v3057_v55  ;;  %v1650_v28 = vadd.f32 %v1649_v24, %v3062_v53  ;;  %v1578_v29 = vpop.f32.mrb[38].mxu1  ;;  %v1651_v30 = vpop.f32.mrb[46].mxu0  ;;  %v1816_v31 = vmax.f32 %v1815_v16, %v1703_v22 }
 0x46b   : > { %v1708_v60 = vmax.f32 %v1575_v4, 0.0  ;;  %v1710_v33 = vmax.f32 %v1648_v23, 0.0  ;;  %v1579_v34 = vadd.f32 %v1578_v29, %v3049_v47  ;;  %v1580_v35 = vpop.f32.mrb[39].mxu1  ;;  %v1653_v38 = vpop.f32.mrb[47].mxu0  ;;  %v1652_v41 = vadd.f32 %v1651_v30, %v3054_v52 }
 0x46c   : > { %v1709_v39 = vmax.f32 %v1577_v27, 0.0  ;;  %v1711_v40 = vmax.f32 %v1650_v28, 0.0  ;;  %v1581_v42 = vadd.f32 %v1580_v35, %v3057_v55  ;;  %v1654_v46 = vadd.f32 %v1653_v38, %v3062_v53 }
 0x46d   : > { %v1778_v43 = vmax.f32 %v1777_v18, %v1708_v60  ;;  %v1804_v44 = vmax.f32 %v1803_v25, %v1710_v33  ;;  %v1716_v45 = vmax.f32 %v1579_v34, 0.0  ;;  %v1718_v51 = vmax.f32 %v1652_v41, 0.0 }
 0x46e   : > { %v1791_v48 = vmax.f32 %v1790_v26, %v1709_v39  ;;  %v1817_v50 = vmax.f32 %v1816_v31, %v1711_v40  ;;  %v1717_v56 = vmax.f32 %v1581_v42, 0.0  ;;  %v1719_v58 = vmax.f32 %v1654_v46, 0.0 }
 0x46f   : > { %v1779_v57 = vmax.f32 %v1778_v43, %v1716_v45  ;;  %v1805_v47 = vmax.f32 %v1804_v44, %v1718_v51  ;;  %v1873_v5 = vrot.slane %v1865_v49, %v3069_v32 }
 0x470   : > { %v1792_v59 = vmax.f32 %v1791_v48, %v1717_v56  ;;  %v1818_v61 = vmax.f32 %v1817_v50, %v1719_v58 }
 0x471   : > { %v1780_v54 = vrot.slane %v1779_v57, 4  ;;  %v1806_v63 = vrot.slane %v1805_v47, 4 }
 0x472   : > { %v1793_v1 = vrot.slane %v1792_v59, 4  ;;  %v1819_v0 = vrot.slane %v1818_v61, 4 }
 0x473   : > { %v1781_v52 = vmax.f32 %v1779_v57, %v1780_v54  ;;  %v1807_v55 = vmax.f32 %v1805_v47, %v1806_v63 }
 0x474   : > { %v1794_v3 = vmax.f32 %v1792_v59, %v1793_v1  ;;  %v1820_v7 = vmax.f32 %v1818_v61, %v1819_v0 }
 0x475   : > { %v1782_v6 = vrot.slane %v1781_v52, 2  ;;  %v1808_v8 = vrot.slane %v1807_v55, 2 }
 0x476   : > { %v1795_v53 = vrot.slane %v1794_v3, 2  ;;  %v1821_v10 = vrot.slane %v1820_v7, 2 }
 0x477   : > { %v1783_v9 = vmax.f32 %v1781_v52, %v1782_v6  ;;  %v1809_v11 = vmax.f32 %v1807_v55, %v1808_v8 }
 0x478   : > { %v1796_v12 = vmax.f32 %v1794_v3, %v1795_v53  ;;  %v1822_v14 = vmax.f32 %v1820_v7, %v1821_v10 }
 0x479   : > { %v1784_v13 = vrot.slane %v1783_v9, 1  ;;  %v1810_v62 = vrot.slane %v1809_v11, 1 }
 0x47a   : > { %v1797_v15 = vrot.slane %v1796_v12, 1  ;;  %v1823_v17 = vrot.slane %v1822_v14, 1 }
 0x47b   : > { %v1785_v16 = vmax.f32 %v1783_v9, %v1784_v13  ;;  %v1811_v18 = vmax.f32 %v1809_v11, %v1810_v62 }
 0x47c   : > { %v1798_v2 = vmax.f32 %v1796_v12, %v1797_v15  ;;  %v1824_v19 = vmax.f32 %v1822_v14, %v1823_v17 }
 0x47e   : > { %v1835_v20 = vcombine.low %v1785_v16, %v1798_v2  ;;  %v1836_v21 = vcombine.low %v1811_v18, %v1824_v19 }
 0x480   : > { %v1857_v22 = vrot.slane %v1835_v20, %v3069_v32  ;;  %v1864_v4 = vrot.slane %v1836_v21, %v3069_v32 }
 0x482   : > { %v1866_v23 = vcombine.low %v1857_v22, %v1864_v4 }
 0x484   : > { %v1880_v24 = vrot.slane %v1866_v23, %v3069_v32 }
 0x486   : > { %v1881_v25 = vcombine.low %v1873_v5, %v1880_v24 }
 0x488   : > { %1884 = vst [vmem:[%s520_s29] sm:$0xff] %v1881_v25 }
 0x489 PF: > { %s3153_s15 = sld [smem:[#allocation17_spill]]  ;;  %s3154_s13 = smov %s2620_s14 }
 0x48a   : > { %s3155_s14 = smov %s3157_s26 }
 0x48f   : > { %s25_s15 = sadd.s32 1, %s3153_s15  }
 0x490   : > { %p22_p7 = scmp.ge.s32.totalorder %s25_s15, 4  }
 0x492   :  { %24 = sbr.rel (!%p22_p7) target bundleno = 5 (0x5), region = 134 }
 0x499   :  { %1929 = vsyncpa [#allocation3], 1 }
 0x49a   :  { %1931 = vsyncpa [#allocation3 + $0x1], 1 }
 0x49b   :  { %1932 = vsyncpa [#allocation5], 1 }
 0x49c   :  { %1933 = vsyncpa [#allocation8], 1 }
 0x49d   :  { %1934 = vsyncpa [#allocation11], 1 }

// kernel: pointnet_forward.7
= control target key start
LH: loop header
LB: loop body
LE: loop exit
PB: predicated region body
PF: predicated region fallthrough
CT: control target
= control target key end

     0   :  { %12 = vsyncpa [#allocation3], 0  ;;  %s3913_s0 = inlined_call_operand.vmem [shape: f32[8,1024], index: 0, kind: input, shape index: {}]   ;;  %s3914_s1 = inlined_call_operand.hbm [shape: bf16[1024,512], index: 1, kind: input, shape index: {}]   ;;  %s3915_s2 = inlined_call_operand.hbm [shape: f32[1,512], index: 2, kind: input, shape index: {}]   ;;  %s3916_s3 = inlined_call_operand.hbm [shape: bf16[512,256], index: 3, kind: input, shape index: {}]   ;;  %s3917_s4 = inlined_call_operand.hbm [shape: f32[1,256], index: 4, kind: input, shape index: {}]   ;;  %s3918_s5 = inlined_call_operand.vmem [shape: bf16[256,9], index: 5, kind: input, shape index: {}]   ;;  %s3919_s6 = inlined_call_operand.hbm [shape: f32[1,9], index: 6, kind: input, shape index: {}]   ;;  %s3920_s7 = inlined_call_operand.vmem [shape: f32[8,9], index: 7, kind: output, shape index: {}]  }
   0x1   :  { %13 = vsyncpa [#allocation5], 0 }
   0x2   :  { %14 = vsyncpa [#allocation8], 0  ;;  %s3677_s24 = smov [#allocation4]   ;;  %s3678_s26 = smov [#allocation7]  }
   0x3   :  { %s35_s25 = sshll.u32 %s3677_s24, 4  ;;  %s57_s27 = sshll.u32 %s3678_s26, 4  ;;  %s36_s25 = int_to_ptr.vmem [resolvable:$true] %s35_s25  ;;  %s58_s27 = int_to_ptr.vmem [resolvable:$true] %s57_s27 }
   0x4   :  { %s3561_s30 = scalar_lea.hbm %s3915_s2, 64 }
   0x5   :  { %p3562_p0 = scmp.ne.s32.totalorder %s3915_s2, %s3561_s30  ;;  %p3565_p1 = scmp.lt.u32.totalorder %s3561_s30, %s3915_s2 }
   0x7   :  { %p3567_p2 = pnand %p3565_p1, %p3562_p0 }
   0x9   :  { %3570 = shalt.err (!%p3567_p2)
}
   0xa   :  { %s3571_s12 = scalar_lea.vmem %s36_s25, 64  ;;  %p3576_p4 = scmp.lt.s32.totalorder %s36_s25, %s36_s25 }
   0xb   :  { %p3572_p3 = scmp.ne.s32.totalorder %s36_s25, %s3571_s12  ;;  %p3577_p5 = scmp.lt.s32.totalorder %s3571_s12, %s3571_s12 }
   0xd   :  { %p3578_p6 = por %p3577_p5, %p3576_p4 }
   0xf   :  { %p3579_p7 = pnand %p3578_p6, %p3572_p3 }
  0x11   :  { %3582 = shalt.err (!%p3579_p7)
}
  0x12   :  { %38 = dma.hbm_to_vmem [thread:$0]  %s3915_s2, 64, %s36_s25, [#allocation5]  }
  0x13   :  { %s3583_s17 = scalar_lea.hbm %s3917_s4, 32 }
  0x14   :  { %p3584_p8 = scmp.ne.s32.totalorder %s3917_s4, %s3583_s17  ;;  %p3587_p9 = scmp.lt.u32.totalorder %s3583_s17, %s3917_s4 }
  0x16   :  { %p3589_p10 = pnand %p3587_p9, %p3584_p8 }
  0x18   :  { %3592 = shalt.err (!%p3589_p10)
}
  0x19   :  { %s3593_s22 = scalar_lea.vmem %s58_s27, 32  ;;  %p3598_p12 = scmp.lt.s32.totalorder %s58_s27, %s58_s27 }
  0x1a   :  { %p3594_p11 = scmp.ne.s32.totalorder %s58_s27, %s3593_s22  ;;  %p3599_p13 = scmp.lt.s32.totalorder %s3593_s22, %s3593_s22 }
  0x1c   :  { %p3600_p0 = por %p3599_p13, %p3598_p12 }
  0x1e   :  { %p3601_p1 = pnand %p3600_p0, %p3594_p11 }
  0x20   :  { %3604 = shalt.err (!%p3601_p1)
}
  0x21   :  { %60 = dma.hbm_to_vmem [thread:$0]  %s3917_s4, 32, %s58_s27, [#allocation8]  }
  0x22   :  { %s3679_s24 = smov [#allocation2]   ;;  %s3605_s29 = scalar_lea.hbm %s3914_s1, 32768 }
  0x23   :  { %s22_s25 = sshll.u32 %s3679_s24, 4  ;;  %p3606_p2 = scmp.ne.s32.totalorder %s3914_s1, %s3605_s29  ;;  %s23_s25 = int_to_ptr.vmem [resolvable:$true] %s22_s25 }
  0x24   :  { %p3609_p3 = scmp.lt.u32.totalorder %s3605_s29, %s3914_s1 }
  0x26   :  { %p3611_p4 = pnand %p3609_p3, %p3606_p2 }
  0x28   :  { %3614 = shalt.err (!%p3611_p4)
}
  0x29   :  { %s3615_s11 = scalar_lea.vmem %s23_s25, 32768  ;;  %p3620_p6 = scmp.lt.s32.totalorder %s23_s25, %s23_s25 }
  0x2a   :  { %p3616_p5 = scmp.ne.s32.totalorder %s23_s25, %s3615_s11  ;;  %p3621_p7 = scmp.lt.s32.totalorder %s3615_s11, %s3615_s11 }
  0x2c   :  { %p3622_p8 = por %p3621_p7, %p3620_p6 }
  0x2e   :  { %p3623_p9 = pnand %p3622_p8, %p3616_p5 }
  0x30   :  { %3626 = shalt.err (!%p3623_p9)
}
  0x31   :  { %s3680_s4 = smov 256   ;;  %s3681_s27 = smov 16  }
  0x32   :  { %28 = dma.hbm_to_vmem [thread:$0]  %s3914_s1, 32768, %s23_s25, [#allocation3], %s3680_s4, %s3680_s4, %s3681_s27  }
  0x33   :  { %s3682_s14 = smov [#allocation6]   ;;  %s3627_s18 = scalar_lea.hbm %s3916_s3, 8192 }
  0x34   :  { %s44_s15 = sshll.u32 %s3682_s14, 4  ;;  %p3628_p10 = scmp.ne.s32.totalorder %s3916_s3, %s3627_s18  ;;  %s45_s15 = int_to_ptr.vmem [resolvable:$true] %s44_s15 }
  0x35   :  { %p3631_p11 = scmp.lt.u32.totalorder %s3627_s18, %s3916_s3 }
  0x37   :  { %p3633_p12 = pnand %p3631_p11, %p3628_p10 }
  0x39   :  { %3636 = shalt.err (!%p3633_p12)
}
  0x3a   :  { %s3637_s2 = scalar_lea.vmem %s45_s15, 8192  ;;  %p3642_p0 = scmp.lt.s32.totalorder %s45_s15, %s45_s15 }
  0x3b   :  { %p3638_p13 = scmp.ne.s32.totalorder %s45_s15, %s3637_s2  ;;  %p3643_p1 = scmp.lt.s32.totalorder %s3637_s2, %s3637_s2 }
  0x3d   :  { %p3644_p2 = por %p3643_p1, %p3642_p0 }
  0x3f   :  { %p3645_p3 = pnand %p3644_p2, %p3638_p13 }
  0x41   :  { %3648 = shalt.err (!%p3645_p3)
}
  0x42   :  { %s3683_s1 = smov 128   ;;  %s3684_s23 = smov 8  }
  0x43   :  { %50 = dma.hbm_to_vmem [thread:$0]  %s3916_s3, 8192, %s45_s15, [#allocation5], %s3683_s1, %s3683_s1, %s3684_s23  }
  0x44   :  { %s3685_s26 = smov [#allocation9]   ;;  %s3649_s8 = scalar_lea.hbm %s3919_s6, 16 }
  0x45   :  { %s69_s28 = sshll.u32 %s3685_s26, 4  ;;  %p3650_p4 = scmp.ne.s32.totalorder %s3919_s6, %s3649_s8  ;;  %s70_s28 = int_to_ptr.vmem [resolvable:$true] %s69_s28 }
  0x46   :  { %p3653_p5 = scmp.lt.u32.totalorder %s3649_s8, %s3919_s6 }
  0x48   :  { %p3655_p6 = pnand %p3653_p5, %p3650_p4 }
  0x4a   :  { %3658 = shalt.err (!%p3655_p6)
}
  0x4b   :  { %s3659_s27 = scalar_lea.vmem %s70_s28, 16  ;;  %s3663_s3 = scalar_lea.vmem %s70_s28, 32 }
  0x4c   :  { %p3660_p7 = scmp.ne.s32.totalorder %s70_s28, %s3659_s27  ;;  %p3664_p8 = scmp.lt.s32.totalorder %s70_s28, %s70_s28 }
  0x4d   :  { %p3665_p9 = scmp.lt.s32.totalorder %s3663_s3, %s3659_s27 }
  0x4f   :  { %p3666_p10 = por %p3665_p9, %p3664_p8 }
  0x51   :  { %p3667_p11 = pnand %p3666_p10, %p3660_p7 }
  0x53   :  { %3670 = shalt.err (!%p3667_p11)
}
  0x54   :  { %72 = dma.hbm_to_vmem [thread:$0]  %s3919_s6, 16, %s70_s28, [#allocation8]  }
  0x55   :  { %3671 = dma.done.wait [#allocation3], 32768  }
  0x56   :  { %3672 = vsyncadd [#allocation3], 4294934528 }
  0x57   :  { %3673 = dma.done.wait [#allocation5], 8256  }
  0x58   :  { %3674 = vsyncadd [#allocation5], 4294959040 }
  0x59   :  { %3675 = dma.done.wait [#allocation8], 48  }
  0x5a   :  { %3676 = vsyncadd [#allocation8], 4294967248  ;;  %v3065_v0 = vld [vmem:[#allocation2 + $0x4] ss:$16 sps:$4 sm:$0xff]   ;;  %v3069_v2 = vld [vmem:[#allocation2] ss:$16 sps:$4 sm:$0xff]  }
  0x5b   :  { %v3067_v1 = vld [vmem:[#allocation2 + $0x204] ss:$16 sps:$4 sm:$0xff]   ;;  %1663 = vmatprep.subr.bf16.mxu1 %v3065_v0  ;;  %v3070_v3 = vld [vmem:[#allocation2 + $0x200] ss:$16 sps:$4 sm:$0xff]   ;;  %v90_v46 = vld [vmem:[%s3913_s0 + $0x8] sm:$0xff]  ;;  %vm2656_vm0 = vcmask 72704  }
  0x5c   :  { %1704 = vmatprep.subr.bf16.mxu0 %v3067_v1  ;;  %v3071_v4 = vld [vmem:[#allocation2 + $0x24] ss:$16 sps:$4 sm:$0xff]   ;;  %1664 = vmatpush1.bf16.msra.mxu1 %v3069_v2  ;;  %v3075_v6 = vld [vmem:[#allocation2 + $0x20] ss:$16 sps:$4 sm:$0xff]   ;;  %v3789_v48 = vpack.c.bf16 %v90_v46, %v90_v46  ;;  %v92_v49 = vld [vmem:[%s3913_s0 + $0x18] sm:$0xff] }
  0x5d   :  { %1705 = vmatpush1.bf16.msra.mxu0 %v3070_v3  ;;  %v3073_v5 = vld [vmem:[#allocation2 + $0x224] ss:$16 sps:$4 sm:$0xff]   ;;  %1665 = vmatprep.subr.bf16.mxu1 %v3071_v4  ;;  %v3076_v7 = vld [vmem:[#allocation2 + $0x220] ss:$16 sps:$4 sm:$0xff]   ;;  %v3794_v52 = vpack.c.bf16 %v92_v49, %v92_v49  ;;  %v3218_v49 = vld [vmem:[#allocation2 + $0x128] ss:$16 sps:$4 sm:$0xff]  }
  0x5e   :  { %1706 = vmatprep.subr.bf16.mxu0 %v3073_v5  ;;  %v3077_v8 = vld [vmem:[#allocation2 + $0x44] ss:$16 sps:$4 sm:$0xff]   ;;  %v3081_v10 = vld [vmem:[#allocation2 + $0x40] ss:$16 sps:$4 sm:$0xff]   ;;  %1695 = vmatprep.mubr.bf16.mxu1 %v3789_v48 }
  0x5f   :  { %v3079_v9 = vld [vmem:[#allocation2 + $0x244] ss:$16 sps:$4 sm:$0xff]   ;;  %v3082_v11 = vld [vmem:[#allocation2 + $0x240] ss:$16 sps:$4 sm:$0xff]   ;;  %1736 = vmatprep.mubr.bf16.mxu0 %v3794_v52 }
  0x60   :  { %1666 = vmatpush1.bf16.msra.mxu1 %v3075_v6  ;;  %v3083_v12 = vld [vmem:[#allocation2 + $0x64] ss:$16 sps:$4 sm:$0xff]   ;;  %v3087_v14 = vld [vmem:[#allocation2 + $0x60] ss:$16 sps:$4 sm:$0xff]  }
  0x61   :  { %1707 = vmatpush1.bf16.msra.mxu0 %v3076_v7  ;;  %1667 = vmatprep.subr.bf16.mxu1 %v3077_v8  ;;  %v3085_v13 = vld [vmem:[#allocation2 + $0x264] ss:$16 sps:$4 sm:$0xff]   ;;  %v3088_v15 = vld [vmem:[#allocation2 + $0x260] ss:$16 sps:$4 sm:$0xff]   ;;  %v3166_v7 = vld [vmem:[#allocation2 + $0xc] ss:$16 sps:$4 sm:$0xff]  }
  0x62   :  { %1708 = vmatprep.subr.bf16.mxu0 %v3079_v9  ;;  %v3089_v16 = vld [vmem:[#allocation2 + $0x84] ss:$16 sps:$4 sm:$0xff]   ;;  %v3093_v18 = vld [vmem:[#allocation2 + $0x80] ss:$16 sps:$4 sm:$0xff]  }
  0x63   :  { %v3091_v17 = vld [vmem:[#allocation2 + $0x284] ss:$16 sps:$4 sm:$0xff]   ;;  %v3094_v19 = vld [vmem:[#allocation2 + $0x280] ss:$16 sps:$4 sm:$0xff]  }
  0x64   :  { %1668 = vmatpush1.bf16.msra.mxu1 %v3081_v10  ;;  %v3095_v20 = vld [vmem:[#allocation2 + $0xa4] ss:$16 sps:$4 sm:$0xff]   ;;  %v3099_v22 = vld [vmem:[#allocation2 + $0xa0] ss:$16 sps:$4 sm:$0xff]   ;;  %v3164_v10 = vld [vmem:[#allocation2 + $0x8] ss:$16 sps:$4 sm:$0xff]  }
  0x65   :  { %1709 = vmatpush1.bf16.msra.mxu0 %v3082_v11  ;;  %1669 = vmatprep.subr.bf16.mxu1 %v3083_v12  ;;  %v3097_v21 = vld [vmem:[#allocation2 + $0x2a4] ss:$16 sps:$4 sm:$0xff]   ;;  %v3100_v23 = vld [vmem:[#allocation2 + $0x2a0] ss:$16 sps:$4 sm:$0xff]  }
  0x66   :  { %1710 = vmatprep.subr.bf16.mxu0 %v3085_v13  ;;  %v3101_v24 = vld [vmem:[#allocation2 + $0xc4] ss:$16 sps:$4 sm:$0xff]   ;;  %v3105_v26 = vld [vmem:[#allocation2 + $0xc0] ss:$16 sps:$4 sm:$0xff]   ;;  %v3172_v13 = vld [vmem:[#allocation2 + $0x2c] ss:$16 sps:$4 sm:$0xff]  }
  0x67   :  { %v3103_v25 = vld [vmem:[#allocation2 + $0x2c4] ss:$16 sps:$4 sm:$0xff]   ;;  %v3106_v27 = vld [vmem:[#allocation2 + $0x2c0] ss:$16 sps:$4 sm:$0xff]  }
  0x68   :  { %1670 = vmatpush1.bf16.msra.mxu1 %v3087_v14  ;;  %v3107_v28 = vld [vmem:[#allocation2 + $0xe4] ss:$16 sps:$4 sm:$0xff]   ;;  %v3111_v30 = vld [vmem:[#allocation2 + $0xe0] ss:$16 sps:$4 sm:$0xff]  }
  0x69   :  { %1711 = vmatpush1.bf16.msra.mxu0 %v3088_v15  ;;  %1671 = vmatprep.subr.bf16.mxu1 %v3089_v16  ;;  %v3109_v29 = vld [vmem:[#allocation2 + $0x2e4] ss:$16 sps:$4 sm:$0xff]   ;;  %v3112_v31 = vld [vmem:[#allocation2 + $0x2e0] ss:$16 sps:$4 sm:$0xff]   ;;  %v3170_v15 = vld [vmem:[#allocation2 + $0x28] ss:$16 sps:$4 sm:$0xff]  }
  0x6a   :  { %1712 = vmatprep.subr.bf16.mxu0 %v3091_v17  ;;  %v3113_v32 = vld [vmem:[#allocation2 + $0x104] ss:$16 sps:$4 sm:$0xff]   ;;  %v3117_v34 = vld [vmem:[#allocation2 + $0x100] ss:$16 sps:$4 sm:$0xff]   ;;  %v3178_v17 = vld [vmem:[#allocation2 + $0x4c] ss:$16 sps:$4 sm:$0xff]  }
  0x6b   :  { %v3115_v33 = vld [vmem:[#allocation2 + $0x304] ss:$16 sps:$4 sm:$0xff]   ;;  %v3118_v35 = vld [vmem:[#allocation2 + $0x300] ss:$16 sps:$4 sm:$0xff]  }
  0x6c   :  { %1672 = vmatpush1.bf16.msra.mxu1 %v3093_v18  ;;  %v3119_v36 = vld [vmem:[#allocation2 + $0x124] ss:$16 sps:$4 sm:$0xff]   ;;  %v3123_v38 = vld [vmem:[#allocation2 + $0x120] ss:$16 sps:$4 sm:$0xff]  }
  0x6d   :  { %1713 = vmatpush1.bf16.msra.mxu0 %v3094_v19  ;;  %1673 = vmatprep.subr.bf16.mxu1 %v3095_v20  ;;  %v3121_v37 = vld [vmem:[#allocation2 + $0x324] ss:$16 sps:$4 sm:$0xff]   ;;  %v3124_v39 = vld [vmem:[#allocation2 + $0x320] ss:$16 sps:$4 sm:$0xff]   ;;  %v3176_v19 = vld [vmem:[#allocation2 + $0x48] ss:$16 sps:$4 sm:$0xff]  }
  0x6e   :  { %1714 = vmatprep.subr.bf16.mxu0 %v3097_v21  ;;  %v3125_v40 = vld [vmem:[#allocation2 + $0x144] ss:$16 sps:$4 sm:$0xff]   ;;  %v3129_v42 = vld [vmem:[#allocation2 + $0x140] ss:$16 sps:$4 sm:$0xff]   ;;  %v3184_v21 = vld [vmem:[#allocation2 + $0x6c] ss:$16 sps:$4 sm:$0xff]  }
  0x6f   :  { %v3127_v41 = vld [vmem:[#allocation2 + $0x344] ss:$16 sps:$4 sm:$0xff]   ;;  %v3130_v43 = vld [vmem:[#allocation2 + $0x340] ss:$16 sps:$4 sm:$0xff]  }
  0x70   :  { %1674 = vmatpush1.bf16.msra.mxu1 %v3099_v22  ;;  %v3131_v44 = vld [vmem:[#allocation2 + $0x164] ss:$16 sps:$4 sm:$0xff]   ;;  %v3135_v47 = vld [vmem:[#allocation2 + $0x160] ss:$16 sps:$4 sm:$0xff]  }
  0x71   :  { %1715 = vmatpush1.bf16.msra.mxu0 %v3100_v23  ;;  %1675 = vmatprep.subr.bf16.mxu1 %v3101_v24  ;;  %v3133_v45 = vld [vmem:[#allocation2 + $0x364] ss:$16 sps:$4 sm:$0xff]   ;;  %v3136_v50 = vld [vmem:[#allocation2 + $0x360] ss:$16 sps:$4 sm:$0xff]   ;;  %v3182_v23 = vld [vmem:[#allocation2 + $0x68] ss:$16 sps:$4 sm:$0xff]  }
  0x72   :  { %1716 = vmatprep.subr.bf16.mxu0 %v3103_v25  ;;  %v3137_v51 = vld [vmem:[#allocation2 + $0x184] ss:$16 sps:$4 sm:$0xff]   ;;  %v3141_v54 = vld [vmem:[#allocation2 + $0x180] ss:$16 sps:$4 sm:$0xff]   ;;  %v3190_v25 = vld [vmem:[#allocation2 + $0x8c] ss:$16 sps:$4 sm:$0xff]  }
  0x73   :  { %v3139_v53 = vld [vmem:[#allocation2 + $0x384] ss:$16 sps:$4 sm:$0xff]   ;;  %v3142_v55 = vld [vmem:[#allocation2 + $0x380] ss:$16 sps:$4 sm:$0xff]  }
  0x74   :  { %1676 = vmatpush1.bf16.msra.mxu1 %v3105_v26  ;;  %v3143_v56 = vld [vmem:[#allocation2 + $0x1a4] ss:$16 sps:$4 sm:$0xff]   ;;  %v3147_v58 = vld [vmem:[#allocation2 + $0x1a0] ss:$16 sps:$4 sm:$0xff]  }
  0x75   :  { %1717 = vmatpush1.bf16.msra.mxu0 %v3106_v27  ;;  %1677 = vmatprep.subr.bf16.mxu1 %v3107_v28  ;;  %v3145_v57 = vld [vmem:[#allocation2 + $0x3a4] ss:$16 sps:$4 sm:$0xff]   ;;  %v3148_v59 = vld [vmem:[#allocation2 + $0x3a0] ss:$16 sps:$4 sm:$0xff]   ;;  %v3188_v27 = vld [vmem:[#allocation2 + $0x88] ss:$16 sps:$4 sm:$0xff]  }
  0x76   :  { %1718 = vmatprep.subr.bf16.mxu0 %v3109_v29  ;;  %v3149_v60 = vld [vmem:[#allocation2 + $0x1c4] ss:$16 sps:$4 sm:$0xff]   ;;  %v3153_v62 = vld [vmem:[#allocation2 + $0x1c0] ss:$16 sps:$4 sm:$0xff]   ;;  %v3196_v29 = vld [vmem:[#allocation2 + $0xac] ss:$16 sps:$4 sm:$0xff]  }
  0x77   :  { %v3151_v61 = vld [vmem:[#allocation2 + $0x3c4] ss:$16 sps:$4 sm:$0xff]   ;;  %v3154_v63 = vld [vmem:[#allocation2 + $0x3c0] ss:$16 sps:$4 sm:$0xff]  }
  0x78   :  { %1678 = vmatpush1.bf16.msra.mxu1 %v3111_v30  ;;  %v3155_v0 = vld [vmem:[#allocation2 + $0x1e4] ss:$16 sps:$4 sm:$0xff]   ;;  %v3159_v2 = vld [vmem:[#allocation2 + $0x1e0] ss:$16 sps:$4 sm:$0xff]  }
  0x79   :  { %1719 = vmatpush1.bf16.msra.mxu0 %v3112_v31  ;;  %1679 = vmatprep.subr.bf16.mxu1 %v3113_v32  ;;  %v3157_v1 = vld [vmem:[#allocation2 + $0x3e4] ss:$16 sps:$4 sm:$0xff]   ;;  %v3160_v3 = vld [vmem:[#allocation2 + $0x3e0] ss:$16 sps:$4 sm:$0xff]   ;;  %v3194_v31 = vld [vmem:[#allocation2 + $0xa8] ss:$16 sps:$4 sm:$0xff]  }
  0x7a   :  { %1720 = vmatprep.subr.bf16.mxu0 %v3115_v33  ;;  %v89_v4 = vld [vmem:[%s3913_s0] sm:$0xff]  ;;  %v91_v6 = vld [vmem:[%s3913_s0 + $0x10] sm:$0xff]  ;;  %v3202_v33 = vld [vmem:[#allocation2 + $0xcc] ss:$16 sps:$4 sm:$0xff]  }
  0x7b   :  { %v3163_v5 = vld [vmem:[#allocation2 + $0x404] ss:$16 sps:$4 sm:$0xff]   ;;  %v3804_v8 = vpack.c.bf16 %v89_v4, %v89_v4  ;;  %v3161_v9 = vld [vmem:[#allocation2 + $0x400] ss:$16 sps:$4 sm:$0xff]   ;;  %v3806_v11 = vpack.c.bf16 %v91_v6, %v91_v6  ;;  %v3250_v4 = vld [vmem:[#allocation2 + $0x1cc] ss:$16 sps:$4 sm:$0xff]  }
  0x7c   :  { %1680 = vmatpush1.bf16.msra.mxu1 %v3117_v34  ;;  %v3169_v12 = vld [vmem:[#allocation2 + $0x424] ss:$16 sps:$4 sm:$0xff]   ;;  %v3167_v14 = vld [vmem:[#allocation2 + $0x420] ss:$16 sps:$4 sm:$0xff]   ;;  %v94_v34 = vld [vmem:[%s3913_s0 + $0x28] sm:$0xff] }
  0x7d   :  { %1721 = vmatpush1.bf16.msra.mxu0 %v3118_v35  ;;  %1681 = vmatprep.subr.bf16.mxu1 %v3119_v36  ;;  %v3175_v16 = vld [vmem:[#allocation2 + $0x444] ss:$16 sps:$4 sm:$0xff]   ;;  %v3173_v18 = vld [vmem:[#allocation2 + $0x440] ss:$16 sps:$4 sm:$0xff]   ;;  %v3814_v36 = vpack.c.bf16 %v94_v34, %v94_v34  ;;  %v3248_v6 = vld [vmem:[#allocation2 + $0x1c8] ss:$16 sps:$4 sm:$0xff]  }
  0x7e   :  { %1722 = vmatprep.subr.bf16.mxu0 %v3121_v37  ;;  %v3181_v20 = vld [vmem:[#allocation2 + $0x464] ss:$16 sps:$4 sm:$0xff]   ;;  %v3179_v22 = vld [vmem:[#allocation2 + $0x460] ss:$16 sps:$4 sm:$0xff]   ;;  %v3200_v37 = vld [vmem:[#allocation2 + $0xc8] ss:$16 sps:$4 sm:$0xff]  }
  0x7f   :  { %v3187_v24 = vld [vmem:[#allocation2 + $0x484] ss:$16 sps:$4 sm:$0xff]   ;;  %v3185_v26 = vld [vmem:[#allocation2 + $0x480] ss:$16 sps:$4 sm:$0xff]  }
  0x80   :  { %1682 = vmatpush1.bf16.msra.mxu1 %v3123_v38  ;;  %v3193_v28 = vld [vmem:[#allocation2 + $0x4a4] ss:$16 sps:$4 sm:$0xff]   ;;  %v3191_v30 = vld [vmem:[#allocation2 + $0x4a0] ss:$16 sps:$4 sm:$0xff]  }
  0x81   :  { %1723 = vmatpush1.bf16.msra.mxu0 %v3124_v39  ;;  %1683 = vmatprep.subr.bf16.mxu1 %v3125_v40  ;;  %v3199_v32 = vld [vmem:[#allocation2 + $0x4c4] ss:$16 sps:$4 sm:$0xff]   ;;  %v3197_v35 = vld [vmem:[#allocation2 + $0x4c0] ss:$16 sps:$4 sm:$0xff]   ;;  %v3208_v39 = vld [vmem:[#allocation2 + $0xec] ss:$16 sps:$4 sm:$0xff]  }
  0x82   :  { %1724 = vmatprep.subr.bf16.mxu0 %v3127_v41  ;;  %v3205_v38 = vld [vmem:[#allocation2 + $0x4e4] ss:$16 sps:$4 sm:$0xff]   ;;  %v3203_v40 = vld [vmem:[#allocation2 + $0x4e0] ss:$16 sps:$4 sm:$0xff]   ;;  %v3206_v41 = vld [vmem:[#allocation2 + $0xe8] ss:$16 sps:$4 sm:$0xff]  }
  0x83   :  { %v3217_v46 = vld [vmem:[#allocation2 + $0x524] ss:$16 sps:$4 sm:$0xff]   ;;  %v3281_v34 = vld [vmem:[#allocation2 + $0x680] ss:$16 sps:$4 sm:$0xff]  }
  0x84   :  { %1684 = vmatpush1.bf16.msra.mxu1 %v3129_v42  ;;  %v3211_v42 = vld [vmem:[#allocation2 + $0x504] ss:$16 sps:$4 sm:$0xff]  }
  0x85   :  { %1725 = vmatpush1.bf16.msra.mxu0 %v3130_v43  ;;  %1685 = vmatprep.subr.bf16.mxu1 %v3131_v44  ;;  %v3214_v43 = vld [vmem:[#allocation2 + $0x10c] ss:$16 sps:$4 sm:$0xff]   ;;  %v3209_v44 = vld [vmem:[#allocation2 + $0x500] ss:$16 sps:$4 sm:$0xff]  }
  0x86   :  { %1726 = vmatprep.subr.bf16.mxu0 %v3133_v45  ;;  %v3212_v45 = vld [vmem:[#allocation2 + $0x108] ss:$16 sps:$4 sm:$0xff]  }
  0x88   :  { %1686 = vmatpush1.bf16.msra.mxu1 %v3135_v47  ;;  %v3220_v47 = vld [vmem:[#allocation2 + $0x12c] ss:$16 sps:$4 sm:$0xff]  }
  0x89   :  { %1727 = vmatpush1.bf16.msra.mxu0 %v3136_v50  ;;  %1687 = vmatprep.subr.bf16.mxu1 %v3137_v51  ;;  %v3223_v50 = vld [vmem:[#allocation2 + $0x544] ss:$16 sps:$4 sm:$0xff]   ;;  %v3226_v51 = vld [vmem:[#allocation2 + $0x14c] ss:$16 sps:$4 sm:$0xff]  }
  0x8a   :  { %1728 = vmatprep.subr.bf16.mxu0 %v3139_v53  ;;  %v3221_v53 = vld [vmem:[#allocation2 + $0x540] ss:$16 sps:$4 sm:$0xff]  }
  0x8c   :  { %1688 = vmatpush1.bf16.msra.mxu1 %v3141_v54  ;;  %v3224_v54 = vld [vmem:[#allocation2 + $0x148] ss:$16 sps:$4 sm:$0xff]  }
  0x8d   :  { %1729 = vmatpush1.bf16.msra.mxu0 %v3142_v55  ;;  %1689 = vmatprep.subr.bf16.mxu1 %v3143_v56  ;;  %v3229_v55 = vld [vmem:[#allocation2 + $0x564] ss:$16 sps:$4 sm:$0xff]   ;;  %v3232_v56 = vld [vmem:[#allocation2 + $0x16c] ss:$16 sps:$4 sm:$0xff]  }
  0x8e   :  { %1730 = vmatprep.subr.bf16.mxu0 %v3145_v57  ;;  %v3227_v57 = vld [vmem:[#allocation2 + $0x560] ss:$16 sps:$4 sm:$0xff]  }
  0x90   :  { %1690 = vmatpush1.bf16.msra.mxu1 %v3147_v58  ;;  %v3230_v58 = vld [vmem:[#allocation2 + $0x168] ss:$16 sps:$4 sm:$0xff]  }
  0x91   :  { %1731 = vmatpush1.bf16.msra.mxu0 %v3148_v59  ;;  %1691 = vmatprep.subr.bf16.mxu1 %v3149_v60  ;;  %v3235_v59 = vld [vmem:[#allocation2 + $0x584] ss:$16 sps:$4 sm:$0xff]   ;;  %v3238_v60 = vld [vmem:[#allocation2 + $0x18c] ss:$16 sps:$4 sm:$0xff]  }
  0x92   :  { %1732 = vmatprep.subr.bf16.mxu0 %v3151_v61  ;;  %v3233_v61 = vld [vmem:[#allocation2 + $0x580] ss:$16 sps:$4 sm:$0xff]  }
  0x94   :  { %1692 = vmatpush1.bf16.msra.mxu1 %v3153_v62  ;;  %v3236_v62 = vld [vmem:[#allocation2 + $0x188] ss:$16 sps:$4 sm:$0xff]  }
  0x95   :  { %1733 = vmatpush1.bf16.msra.mxu0 %v3154_v63  ;;  %1693 = vmatprep.subr.bf16.mxu1 %v3155_v0  ;;  %v3241_v63 = vld [vmem:[#allocation2 + $0x5a4] ss:$16 sps:$4 sm:$0xff]   ;;  %v3244_v0 = vld [vmem:[#allocation2 + $0x1ac] ss:$16 sps:$4 sm:$0xff]  }
  0x96   :  { %1734 = vmatprep.subr.bf16.mxu0 %v3157_v1  ;;  %v3239_v1 = vld [vmem:[#allocation2 + $0x5a0] ss:$16 sps:$4 sm:$0xff]  }
  0x98   :  { %1694 = vmatpush1.bf16.msra.mxu1 %v3159_v2  ;;  %v3242_v2 = vld [vmem:[#allocation2 + $0x1a8] ss:$16 sps:$4 sm:$0xff]  }
  0x99   :  { %1735 = vmatpush1.bf16.msra.mxu0 %v3160_v3  ;;  %1827 = vmatprep.subr.bf16.mxu1 %v3166_v7  ;;  %v3247_v3 = vld [vmem:[#allocation2 + $0x5c4] ss:$16 sps:$4 sm:$0xff]  }
  0x9a   :  { %1745 = vmatprep.subr.bf16.mxu0 %v3163_v5  ;;  %v3245_v5 = vld [vmem:[#allocation2 + $0x5c0] ss:$16 sps:$4 sm:$0xff]   ;;  %v3253_v7 = vld [vmem:[#allocation2 + $0x5e4] ss:$16 sps:$4 sm:$0xff]  }
  0x9b   :  { %1696 = vmatmul.mubr.bf16.vlgmr.msra.gmra.mrb[0].mxu1 %v3804_v8 }
  0x9c   :  { %1737 = vmatmul.mubr.bf16.vlgmr.msra.gmra.mrb[0].mxu0 %v3806_v11  ;;  %1828 = vmatpush1.bf16.msra.mxu1 %v3164_v10  ;;  %v3251_v10 = vld [vmem:[#allocation2 + $0x5e0] ss:$16 sps:$4 sm:$0xff]  }
  0x9d   :  { %1746 = vmatpush1.bf16.msra.mxu0 %v3161_v9  ;;  %1829 = vmatprep.subr.bf16.mxu1 %v3172_v13  ;;  %v3256_v9 = vld [vmem:[#allocation2 + $0x1ec] ss:$16 sps:$4 sm:$0xff]   ;;  %v93_v13 = vld [vmem:[%s3913_s0 + $0x20] sm:$0xff] }
  0x9e   :  { %1747 = vmatprep.subr.bf16.mxu0 %v3169_v12  ;;  %1859 = vmatprep.mubr.bf16.mxu1 %v3789_v48  ;;  %v3215_v48 = vld [vmem:[#allocation2 + $0x520] ss:$16 sps:$4 sm:$0xff]   ;;  %v3254_v12 = vld [vmem:[#allocation2 + $0x1e8] ss:$16 sps:$4 sm:$0xff]  }
  0x9f   :  { %1777 = vmatprep.mubr.bf16.mxu0 %v3814_v36 }
  0xa0   :  { %1830 = vmatpush1.bf16.msra.mxu1 %v3170_v15  ;;  %v3262_v15 = vld [vmem:[#allocation2 + $0x20c] ss:$16 sps:$4 sm:$0xff]  }
  0xa1   :  { %1748 = vmatpush1.bf16.msra.mxu0 %v3167_v14  ;;  %1831 = vmatprep.subr.bf16.mxu1 %v3178_v17  ;;  %v3259_v14 = vld [vmem:[#allocation2 + $0x604] ss:$16 sps:$4 sm:$0xff]   ;;  %v3257_v17 = vld [vmem:[#allocation2 + $0x600] ss:$16 sps:$4 sm:$0xff]  }
  0xa2   :  { %1749 = vmatprep.subr.bf16.mxu0 %v3175_v16  ;;  %v3820_v16 = vpack.c.bf16 %v93_v13, %v93_v13  ;;  %v3341_v13 = vld [vmem:[#allocation2 + $0x7c0] ss:$16 sps:$4 sm:$0xff]  }
  0xa4   :  { %1832 = vmatpush1.bf16.msra.mxu1 %v3176_v19  ;;  %v3265_v19 = vld [vmem:[#allocation2 + $0x624] ss:$16 sps:$4 sm:$0xff]  }
  0xa5   :  { %1750 = vmatpush1.bf16.msra.mxu0 %v3173_v18  ;;  %1833 = vmatprep.subr.bf16.mxu1 %v3184_v21  ;;  %v3260_v18 = vld [vmem:[#allocation2 + $0x208] ss:$16 sps:$4 sm:$0xff]  }
  0xa6   :  { %1751 = vmatprep.subr.bf16.mxu0 %v3181_v20  ;;  %v3268_v20 = vld [vmem:[#allocation2 + $0x22c] ss:$16 sps:$4 sm:$0xff]  }
  0xa7   :  { %v96_v21 = vld [vmem:[%s3913_s0 + $0x38] sm:$0xff] }
  0xa8   :  { %1834 = vmatpush1.bf16.msra.mxu1 %v3182_v23  ;;  %v3266_v23 = vld [vmem:[#allocation2 + $0x228] ss:$16 sps:$4 sm:$0xff]  }
  0xa9   :  { %1752 = vmatpush1.bf16.msra.mxu0 %v3179_v22  ;;  %1835 = vmatprep.subr.bf16.mxu1 %v3190_v25  ;;  %v3263_v22 = vld [vmem:[#allocation2 + $0x620] ss:$16 sps:$4 sm:$0xff]   ;;  %v3271_v25 = vld [vmem:[#allocation2 + $0x644] ss:$16 sps:$4 sm:$0xff]  }
  0xaa   :  { %1753 = vmatprep.subr.bf16.mxu0 %v3187_v24  ;;  %v3827_v24 = vpack.c.bf16 %v96_v21, %v96_v21  ;;  %v3355_v21 = vld [vmem:[#allocation2 + $0x40c] ss:$16 sps:$4 sm:$0xff]  }
  0xac   :  { %1836 = vmatpush1.bf16.msra.mxu1 %v3188_v27  ;;  %v3269_v27 = vld [vmem:[#allocation2 + $0x640] ss:$16 sps:$4 sm:$0xff]  }
  0xad   :  { %1754 = vmatpush1.bf16.msra.mxu0 %v3185_v26  ;;  %1837 = vmatprep.subr.bf16.mxu1 %v3196_v29  ;;  %v3274_v26 = vld [vmem:[#allocation2 + $0x24c] ss:$16 sps:$4 sm:$0xff]   ;;  %v3277_v29 = vld [vmem:[#allocation2 + $0x664] ss:$16 sps:$4 sm:$0xff]  }
  0xae   :  { %1755 = vmatprep.subr.bf16.mxu0 %v3193_v28  ;;  %v3272_v28 = vld [vmem:[#allocation2 + $0x248] ss:$16 sps:$4 sm:$0xff]  }
  0xb0   :  { %1838 = vmatpush1.bf16.msra.mxu1 %v3194_v31  ;;  %v3278_v31 = vld [vmem:[#allocation2 + $0x268] ss:$16 sps:$4 sm:$0xff]  }
  0xb1   :  { %1756 = vmatpush1.bf16.msra.mxu0 %v3191_v30  ;;  %1839 = vmatprep.subr.bf16.mxu1 %v3202_v33  ;;  %v3275_v30 = vld [vmem:[#allocation2 + $0x660] ss:$16 sps:$4 sm:$0xff]   ;;  %v3286_v33 = vld [vmem:[#allocation2 + $0x28c] ss:$16 sps:$4 sm:$0xff]  }
  0xb2   :  { %1757 = vmatprep.subr.bf16.mxu0 %v3199_v32  ;;  %v3283_v32 = vld [vmem:[#allocation2 + $0x684] ss:$16 sps:$4 sm:$0xff]  }
  0xb4   :  { %1840 = vmatpush1.bf16.msra.mxu1 %v3200_v37  ;;  %v3292_v37 = vld [vmem:[#allocation2 + $0x2ac] ss:$16 sps:$4 sm:$0xff]  }
  0xb5   :  { %1758 = vmatpush1.bf16.msra.mxu0 %v3197_v35  ;;  %1841 = vmatprep.subr.bf16.mxu1 %v3208_v39  ;;  %v3284_v35 = vld [vmem:[#allocation2 + $0x288] ss:$16 sps:$4 sm:$0xff]  }
  0xb6   :  { %1759 = vmatprep.subr.bf16.mxu0 %v3205_v38  ;;  %v3287_v38 = vld [vmem:[#allocation2 + $0x6a0] ss:$16 sps:$4 sm:$0xff]   ;;  %v3290_v39 = vld [vmem:[#allocation2 + $0x2a8] ss:$16 sps:$4 sm:$0xff]  }
  0xb8   :  { %1842 = vmatpush1.bf16.msra.mxu1 %v3206_v41  ;;  %v3298_v41 = vld [vmem:[#allocation2 + $0x2cc] ss:$16 sps:$4 sm:$0xff]  }
  0xb9   :  { %1760 = vmatpush1.bf16.msra.mxu0 %v3203_v40  ;;  %1843 = vmatprep.subr.bf16.mxu1 %v3214_v43  ;;  %v3295_v40 = vld [vmem:[#allocation2 + $0x6c4] ss:$16 sps:$4 sm:$0xff]   ;;  %v3296_v43 = vld [vmem:[#allocation2 + $0x2c8] ss:$16 sps:$4 sm:$0xff]  }
  0xba   :  { %1761 = vmatprep.subr.bf16.mxu0 %v3211_v42  ;;  %v3293_v42 = vld [vmem:[#allocation2 + $0x6c0] ss:$16 sps:$4 sm:$0xff]  }
  0xbc   :  { %1844 = vmatpush1.bf16.msra.mxu1 %v3212_v45  ;;  %v3304_v45 = vld [vmem:[#allocation2 + $0x2ec] ss:$16 sps:$4 sm:$0xff]  }
  0xbd   :  { %1762 = vmatpush1.bf16.msra.mxu0 %v3209_v44  ;;  %1845 = vmatprep.subr.bf16.mxu1 %v3220_v47  ;;  %v3301_v44 = vld [vmem:[#allocation2 + $0x6e4] ss:$16 sps:$4 sm:$0xff]   ;;  %v3302_v47 = vld [vmem:[#allocation2 + $0x2e8] ss:$16 sps:$4 sm:$0xff]  }
  0xbe   :  { %1763 = vmatprep.subr.bf16.mxu0 %v3217_v46  ;;  %v3299_v46 = vld [vmem:[#allocation2 + $0x6e0] ss:$16 sps:$4 sm:$0xff]  }
  0xc0   :  { %1846 = vmatpush1.bf16.msra.mxu1 %v3218_v49  ;;  %v3310_v49 = vld [vmem:[#allocation2 + $0x30c] ss:$16 sps:$4 sm:$0xff]  }
  0xc1   :  { %1764 = vmatpush1.bf16.msra.mxu0 %v3215_v48  ;;  %1847 = vmatprep.subr.bf16.mxu1 %v3226_v51  ;;  %v3307_v48 = vld [vmem:[#allocation2 + $0x704] ss:$16 sps:$4 sm:$0xff]   ;;  %v3308_v51 = vld [vmem:[#allocation2 + $0x308] ss:$16 sps:$4 sm:$0xff]  }
  0xc2   :  { %1765 = vmatprep.subr.bf16.mxu0 %v3223_v50  ;;  %v3305_v50 = vld [vmem:[#allocation2 + $0x700] ss:$16 sps:$4 sm:$0xff]  }
  0xc4   :  { %1848 = vmatpush1.bf16.msra.mxu1 %v3224_v54  ;;  %v3316_v54 = vld [vmem:[#allocation2 + $0x32c] ss:$16 sps:$4 sm:$0xff]  }
  0xc5   :  { %1766 = vmatpush1.bf16.msra.mxu0 %v3221_v53  ;;  %1849 = vmatprep.subr.bf16.mxu1 %v3232_v56  ;;  %v3313_v53 = vld [vmem:[#allocation2 + $0x724] ss:$16 sps:$4 sm:$0xff]   ;;  %v3314_v56 = vld [vmem:[#allocation2 + $0x328] ss:$16 sps:$4 sm:$0xff]  }
  0xc6   :  { %1767 = vmatprep.subr.bf16.mxu0 %v3229_v55  ;;  %v3311_v55 = vld [vmem:[#allocation2 + $0x720] ss:$16 sps:$4 sm:$0xff]  }
  0xc8   :  { %1850 = vmatpush1.bf16.msra.mxu1 %v3230_v58  ;;  %v3322_v58 = vld [vmem:[#allocation2 + $0x34c] ss:$16 sps:$4 sm:$0xff]  }
  0xc9   :  { %1768 = vmatpush1.bf16.msra.mxu0 %v3227_v57  ;;  %1851 = vmatprep.subr.bf16.mxu1 %v3238_v60  ;;  %v3319_v57 = vld [vmem:[#allocation2 + $0x744] ss:$16 sps:$4 sm:$0xff]   ;;  %v3320_v60 = vld [vmem:[#allocation2 + $0x348] ss:$16 sps:$4 sm:$0xff]  }
  0xca   :  { %1769 = vmatprep.subr.bf16.mxu0 %v3235_v59  ;;  %v3317_v59 = vld [vmem:[#allocation2 + $0x740] ss:$16 sps:$4 sm:$0xff]  }
  0xcc   :  { %1852 = vmatpush1.bf16.msra.mxu1 %v3236_v62  ;;  %v3328_v62 = vld [vmem:[#allocation2 + $0x36c] ss:$16 sps:$4 sm:$0xff]  }
  0xcd   :  { %1770 = vmatpush1.bf16.msra.mxu0 %v3233_v61  ;;  %1853 = vmatprep.subr.bf16.mxu1 %v3244_v0  ;;  %v3325_v61 = vld [vmem:[#allocation2 + $0x764] ss:$16 sps:$4 sm:$0xff]   ;;  %v3326_v0 = vld [vmem:[#allocation2 + $0x368] ss:$16 sps:$4 sm:$0xff]  }
  0xce   :  { %1771 = vmatprep.subr.bf16.mxu0 %v3241_v63  ;;  %v3323_v63 = vld [vmem:[#allocation2 + $0x760] ss:$16 sps:$4 sm:$0xff]  }
  0xd0   :  { %1854 = vmatpush1.bf16.msra.mxu1 %v3242_v2  ;;  %v3334_v2 = vld [vmem:[#allocation2 + $0x38c] ss:$16 sps:$4 sm:$0xff]  }
  0xd1   :  { %1772 = vmatpush1.bf16.msra.mxu0 %v3239_v1  ;;  %1855 = vmatprep.subr.bf16.mxu1 %v3250_v4  ;;  %v3331_v1 = vld [vmem:[#allocation2 + $0x784] ss:$16 sps:$4 sm:$0xff]   ;;  %v3332_v4 = vld [vmem:[#allocation2 + $0x388] ss:$16 sps:$4 sm:$0xff]  }
  0xd2   :  { %1773 = vmatprep.subr.bf16.mxu0 %v3247_v3  ;;  %v3329_v3 = vld [vmem:[#allocation2 + $0x780] ss:$16 sps:$4 sm:$0xff]  }
  0xd4   :  { %1856 = vmatpush1.bf16.msra.mxu1 %v3248_v6  ;;  %v3340_v6 = vld [vmem:[#allocation2 + $0x3ac] ss:$16 sps:$4 sm:$0xff]  }
  0xd5   :  { %1774 = vmatpush1.bf16.msra.mxu0 %v3245_v5  ;;  %1857 = vmatprep.subr.bf16.mxu1 %v3256_v9  ;;  %v3337_v5 = vld [vmem:[#allocation2 + $0x7a4] ss:$16 sps:$4 sm:$0xff]   ;;  %v3338_v9 = vld [vmem:[#allocation2 + $0x3a8] ss:$16 sps:$4 sm:$0xff]  }
  0xd6   :  { %1775 = vmatprep.subr.bf16.mxu0 %v3253_v7  ;;  %v3335_v7 = vld [vmem:[#allocation2 + $0x7a0] ss:$16 sps:$4 sm:$0xff]  }
  0xd8   :  { %1858 = vmatpush1.bf16.msra.mxu1 %v3254_v12  ;;  %v3346_v12 = vld [vmem:[#allocation2 + $0x3cc] ss:$16 sps:$4 sm:$0xff]  }
  0xd9   :  { %1776 = vmatpush1.bf16.msra.mxu0 %v3251_v10  ;;  %1868 = vmatprep.subr.bf16.mxu1 %v3262_v15  ;;  %v3343_v10 = vld [vmem:[#allocation2 + $0x7c4] ss:$16 sps:$4 sm:$0xff]  }
  0xda   :  { %1786 = vmatprep.subr.bf16.mxu0 %v3259_v14  ;;  %v3344_v14 = vld [vmem:[#allocation2 + $0x3c8] ss:$16 sps:$4 sm:$0xff]   ;;  %v3349_v15 = vld [vmem:[#allocation2 + $0x7e4] ss:$16 sps:$4 sm:$0xff]  }
  0xdb   :  { %1860 = vmatmul.mubr.bf16.vlgmr.msra.gmra.mrb[4].mxu1 %v3804_v8  ;;  %v3280_v8 = vld [vmem:[#allocation2 + $0x26c] ss:$16 sps:$4 sm:$0xff]  }
  0xdc   :  { %1778 = vmatmul.mubr.bf16.vlgmr.msra.gmra.mrb[0].mxu0 %v3820_v16  ;;  %1869 = vmatpush1.bf16.msra.mxu1 %v3260_v18  ;;  %v3347_v18 = vld [vmem:[#allocation2 + $0x7e0] ss:$16 sps:$4 sm:$0xff]  }
  0xdd   :  { %1787 = vmatpush1.bf16.msra.mxu0 %v3257_v17  ;;  %1870 = vmatprep.subr.bf16.mxu1 %v3268_v20  ;;  %v3352_v17 = vld [vmem:[#allocation2 + $0x3ec] ss:$16 sps:$4 sm:$0xff]   ;;  %v95_v20 = vld [vmem:[%s3913_s0 + $0x30] sm:$0xff] }
  0xde   :  { %1788 = vmatprep.subr.bf16.mxu0 %v3265_v19  ;;  %1818 = vmatprep.mubr.bf16.mxu0 %v3827_v24  ;;  %v3350_v19 = vld [vmem:[#allocation2 + $0x3e8] ss:$16 sps:$4 sm:$0xff]  }
  0xdf   :  { %1900 = vmatprep.mubr.bf16.mxu1 %v3794_v52  ;;  %v3289_v52 = vld [vmem:[#allocation2 + $0x6a4] ss:$16 sps:$4 sm:$0xff]  }
  0xe0   :  { %1871 = vmatpush1.bf16.msra.mxu1 %v3266_v23  ;;  %v3834_v23 = vpack.c.bf16 %v95_v20, %v95_v20  ;;  %v3403_v20 = vld [vmem:[#allocation2 + $0x60c] ss:$16 sps:$4 sm:$0xff]  }
  0xe1   :  { %1789 = vmatpush1.bf16.msra.mxu0 %v3263_v22  ;;  %1872 = vmatprep.subr.bf16.mxu1 %v3274_v26  ;;  %v3353_v22 = vld [vmem:[#allocation2 + $0x408] ss:$16 sps:$4 sm:$0xff]   ;;  %v3449_v26 = vld [vmem:[#allocation6] ss:$8 sps:$4 sm:$0xff]  }
  0xe2   :  { %1790 = vmatprep.subr.bf16.mxu0 %v3271_v25  ;;  %v3358_v25 = vld [vmem:[#allocation2 + $0x42c] ss:$16 sps:$4 sm:$0xff]  }
  0xe4   :  { %1873 = vmatpush1.bf16.msra.mxu1 %v3272_v28  ;;  %v3356_v28 = vld [vmem:[#allocation2 + $0x428] ss:$16 sps:$4 sm:$0xff]  }
  0xe5   :  { %1791 = vmatpush1.bf16.msra.mxu0 %v3269_v27  ;;  %1874 = vmatprep.subr.bf16.mxu1 %v3280_v8  ;;  %v3451_v27 = vld [vmem:[#allocation6 + $0x4] ss:$8 sps:$4 sm:$0xff]   ;;  %v3361_v8 = vld [vmem:[#allocation2 + $0x44c] ss:$16 sps:$4 sm:$0xff]  }
  0xe6   :  { %1792 = vmatprep.subr.bf16.mxu0 %v3277_v29  ;;  %v3454_v29 = vld [vmem:[#allocation6 + $0x14] ss:$8 sps:$4 sm:$0xff]  }
  0xe8   :  { %1875 = vmatpush1.bf16.msra.mxu1 %v3278_v31  ;;  %v3457_v31 = vld [vmem:[#allocation6 + $0x24] ss:$8 sps:$4 sm:$0xff]  }
  0xe9   :  { %1793 = vmatpush1.bf16.msra.mxu0 %v3275_v30  ;;  %1876 = vmatprep.subr.bf16.mxu1 %v3286_v33  ;;  %v3452_v30 = vld [vmem:[#allocation6 + $0x10] ss:$8 sps:$4 sm:$0xff]  }
  0xea   :  { %1794 = vmatprep.subr.bf16.mxu0 %v3283_v32  ;;  %v3359_v32 = vld [vmem:[#allocation2 + $0x448] ss:$16 sps:$4 sm:$0xff]   ;;  %v3364_v33 = vld [vmem:[#allocation2 + $0x46c] ss:$16 sps:$4 sm:$0xff]  }
  0xec   :  { %1877 = vmatpush1.bf16.msra.mxu1 %v3284_v35  ;;  %v3367_v35 = vld [vmem:[#allocation2 + $0x48c] ss:$16 sps:$4 sm:$0xff]  }
  0xed   :  { %1795 = vmatpush1.bf16.msra.mxu0 %v3281_v34  ;;  %1878 = vmatprep.subr.bf16.mxu1 %v3292_v37  ;;  %v3362_v34 = vld [vmem:[#allocation2 + $0x468] ss:$16 sps:$4 sm:$0xff]  }
  0xee   :  { %1796 = vmatprep.subr.bf16.mxu0 %v3289_v52  ;;  %v3460_v52 = vld [vmem:[#allocation6 + $0x34] ss:$8 sps:$4 sm:$0xff]   ;;  %v3463_v37 = vld [vmem:[#allocation6 + $0x44] ss:$8 sps:$4 sm:$0xff]  }
  0xf0   :  { %1879 = vmatpush1.bf16.msra.mxu1 %v3290_v39  ;;  %v3370_v39 = vld [vmem:[#allocation2 + $0x4ac] ss:$16 sps:$4 sm:$0xff]  }
  0xf1   :  { %1797 = vmatpush1.bf16.msra.mxu0 %v3287_v38  ;;  %1880 = vmatprep.subr.bf16.mxu1 %v3298_v41  ;;  %v3365_v38 = vld [vmem:[#allocation2 + $0x488] ss:$16 sps:$4 sm:$0xff]  }
  0xf2   :  { %1798 = vmatprep.subr.bf16.mxu0 %v3295_v40  ;;  %v3461_v40 = vld [vmem:[#allocation6 + $0x40] ss:$8 sps:$4 sm:$0xff]   ;;  %v3466_v41 = vld [vmem:[#allocation6 + $0x54] ss:$8 sps:$4 sm:$0xff]  }
  0xf4   :  { %1881 = vmatpush1.bf16.msra.mxu1 %v3296_v43  ;;  %v3373_v43 = vld [vmem:[#allocation2 + $0x4cc] ss:$16 sps:$4 sm:$0xff]  }
  0xf5   :  { %1799 = vmatpush1.bf16.msra.mxu0 %v3293_v42  ;;  %1882 = vmatprep.subr.bf16.mxu1 %v3304_v45  ;;  %v3368_v42 = vld [vmem:[#allocation2 + $0x4a8] ss:$16 sps:$4 sm:$0xff]  }
  0xf6   :  { %1800 = vmatprep.subr.bf16.mxu0 %v3301_v44  ;;  %v3464_v44 = vld [vmem:[#allocation6 + $0x50] ss:$8 sps:$4 sm:$0xff]   ;;  %v3469_v45 = vld [vmem:[#allocation6 + $0x64] ss:$8 sps:$4 sm:$0xff]  }
  0xf8   :  { %1883 = vmatpush1.bf16.msra.mxu1 %v3302_v47  ;;  %v3376_v47 = vld [vmem:[#allocation2 + $0x4ec] ss:$16 sps:$4 sm:$0xff]  }
  0xf9   :  { %1801 = vmatpush1.bf16.msra.mxu0 %v3299_v46  ;;  %1884 = vmatprep.subr.bf16.mxu1 %v3310_v49  ;;  %v3371_v46 = vld [vmem:[#allocation2 + $0x4c8] ss:$16 sps:$4 sm:$0xff]  }
  0xfa   :  { %1802 = vmatprep.subr.bf16.mxu0 %v3307_v48  ;;  %v3467_v48 = vld [vmem:[#allocation6 + $0x60] ss:$8 sps:$4 sm:$0xff]   ;;  %v3472_v49 = vld [vmem:[#allocation6 + $0x74] ss:$8 sps:$4 sm:$0xff]  }
  0xfc   :  { %1885 = vmatpush1.bf16.msra.mxu1 %v3308_v51  ;;  %v3379_v51 = vld [vmem:[#allocation2 + $0x50c] ss:$16 sps:$4 sm:$0xff]  }
  0xfd   :  { %1803 = vmatpush1.bf16.msra.mxu0 %v3305_v50  ;;  %1886 = vmatprep.subr.bf16.mxu1 %v3316_v54  ;;  %v3374_v50 = vld [vmem:[#allocation2 + $0x4e8] ss:$16 sps:$4 sm:$0xff]  }
  0xfe   :  { %1804 = vmatprep.subr.bf16.mxu0 %v3313_v53  ;;  %v3470_v53 = vld [vmem:[#allocation6 + $0x70] ss:$8 sps:$4 sm:$0xff]   ;;  %v3475_v54 = vld [vmem:[#allocation6 + $0x84] ss:$8 sps:$4 sm:$0xff]  }
 0x100   :  { %1887 = vmatpush1.bf16.msra.mxu1 %v3314_v56  ;;  %v3382_v56 = vld [vmem:[#allocation2 + $0x52c] ss:$16 sps:$4 sm:$0xff]  }
 0x101   :  { %1805 = vmatpush1.bf16.msra.mxu0 %v3311_v55  ;;  %1888 = vmatprep.subr.bf16.mxu1 %v3322_v58  ;;  %v3377_v55 = vld [vmem:[#allocation2 + $0x508] ss:$16 sps:$4 sm:$0xff]  }
 0x102   :  { %1806 = vmatprep.subr.bf16.mxu0 %v3319_v57  ;;  %v3473_v57 = vld [vmem:[#allocation6 + $0x80] ss:$8 sps:$4 sm:$0xff]   ;;  %v3478_v58 = vld [vmem:[#allocation6 + $0x94] ss:$8 sps:$4 sm:$0xff]  }
 0x104   :  { %1889 = vmatpush1.bf16.msra.mxu1 %v3320_v60  ;;  %v3385_v60 = vld [vmem:[#allocation2 + $0x54c] ss:$16 sps:$4 sm:$0xff]  }
 0x105   :  { %1807 = vmatpush1.bf16.msra.mxu0 %v3317_v59  ;;  %1890 = vmatprep.subr.bf16.mxu1 %v3328_v62  ;;  %v3380_v59 = vld [vmem:[#allocation2 + $0x528] ss:$16 sps:$4 sm:$0xff]  }
 0x106   :  { %1808 = vmatprep.subr.bf16.mxu0 %v3325_v61  ;;  %v3476_v61 = vld [vmem:[#allocation6 + $0x90] ss:$8 sps:$4 sm:$0xff]   ;;  %v3481_v62 = vld [vmem:[#allocation6 + $0xa4] ss:$8 sps:$4 sm:$0xff]  }
 0x108   :  { %1891 = vmatpush1.bf16.msra.mxu1 %v3326_v0  ;;  %v3388_v0 = vld [vmem:[#allocation2 + $0x56c] ss:$16 sps:$4 sm:$0xff]  }
 0x109   :  { %1809 = vmatpush1.bf16.msra.mxu0 %v3323_v63  ;;  %1892 = vmatprep.subr.bf16.mxu1 %v3334_v2  ;;  %v3383_v63 = vld [vmem:[#allocation2 + $0x548] ss:$16 sps:$4 sm:$0xff]  }
 0x10a   :  { %1810 = vmatprep.subr.bf16.mxu0 %v3331_v1  ;;  %v3479_v1 = vld [vmem:[#allocation6 + $0xa0] ss:$8 sps:$4 sm:$0xff]   ;;  %v3484_v2 = vld [vmem:[#allocation6 + $0xb4] ss:$8 sps:$4 sm:$0xff]  }
 0x10c   :  { %1893 = vmatpush1.bf16.msra.mxu1 %v3332_v4  ;;  %v3391_v4 = vld [vmem:[#allocation2 + $0x58c] ss:$16 sps:$4 sm:$0xff]  }
 0x10d   :  { %1811 = vmatpush1.bf16.msra.mxu0 %v3329_v3  ;;  %1894 = vmatprep.subr.bf16.mxu1 %v3340_v6  ;;  %v3386_v3 = vld [vmem:[#allocation2 + $0x568] ss:$16 sps:$4 sm:$0xff]  }
 0x10e   :  { %1812 = vmatprep.subr.bf16.mxu0 %v3337_v5  ;;  %v3482_v5 = vld [vmem:[#allocation6 + $0xb0] ss:$8 sps:$4 sm:$0xff]   ;;  %v3487_v6 = vld [vmem:[#allocation6 + $0xc4] ss:$8 sps:$4 sm:$0xff]  }
 0x110   :  { %1895 = vmatpush1.bf16.msra.mxu1 %v3338_v9  ;;  %v3394_v9 = vld [vmem:[#allocation2 + $0x5ac] ss:$16 sps:$4 sm:$0xff]  }
 0x111   :  { %1813 = vmatpush1.bf16.msra.mxu0 %v3335_v7  ;;  %1896 = vmatprep.subr.bf16.mxu1 %v3346_v12  ;;  %v3389_v7 = vld [vmem:[#allocation2 + $0x588] ss:$16 sps:$4 sm:$0xff]  }
 0x112   :  { %1814 = vmatprep.subr.bf16.mxu0 %v3343_v10  ;;  %v3485_v10 = vld [vmem:[#allocation6 + $0xc0] ss:$8 sps:$4 sm:$0xff]   ;;  %v3490_v12 = vld [vmem:[#allocation6 + $0xd4] ss:$8 sps:$4 sm:$0xff]  }
 0x114   :  { %1897 = vmatpush1.bf16.msra.mxu1 %v3344_v14  ;;  %v3397_v14 = vld [vmem:[#allocation2 + $0x5cc] ss:$16 sps:$4 sm:$0xff]  }
 0x115   :  { %1815 = vmatpush1.bf16.msra.mxu0 %v3341_v13  ;;  %1898 = vmatprep.subr.bf16.mxu1 %v3352_v17  ;;  %v3392_v13 = vld [vmem:[#allocation2 + $0x5a8] ss:$16 sps:$4 sm:$0xff]  }
 0x116   :  { %1816 = vmatprep.subr.bf16.mxu0 %v3349_v15  ;;  %v3488_v15 = vld [vmem:[#allocation6 + $0xd0] ss:$8 sps:$4 sm:$0xff]   ;;  %v3395_v17 = vld [vmem:[#allocation2 + $0x5c8] ss:$16 sps:$4 sm:$0xff]  }
 0x118   :  { %1899 = vmatpush1.bf16.msra.mxu1 %v3350_v19  ;;  %v3398_v19 = vld [vmem:[#allocation2 + $0x5e8] ss:$16 sps:$4 sm:$0xff]  }
 0x119   :  { %1817 = vmatpush1.bf16.msra.mxu0 %v3347_v18  ;;  %1909 = vmatprep.subr.bf16.mxu1 %v3355_v21  ;;  %v3400_v18 = vld [vmem:[#allocation2 + $0x5ec] ss:$16 sps:$4 sm:$0xff]   ;;  %v3401_v21 = vld [vmem:[#allocation2 + $0x608] ss:$16 sps:$4 sm:$0xff]  }
 0x11a   :  { %2395 = vmatprep.subr.bf16.mxu0 %v3451_v27  ;;  %v3407_v27 = vld [vmem:[#allocation2 + $0x648] ss:$16 sps:$4 sm:$0xff]  }
 0x11b   :  { %1901 = vmatmul.mubr.bf16.vlgmr.msra.gmra.mrb[4].mxu1 %v3806_v11  ;;  %v3455_v11 = vld [vmem:[#allocation6 + $0x20] ss:$8 sps:$4 sm:$0xff]  }
 0x11c   :  { %1819 = vmatmul.mubr.bf16.vlgmr.msra.gmra.mrb[0].mxu0 %v3834_v23  ;;  %1910 = vmatpush1.bf16.msra.mxu1 %v3353_v22  ;;  %v3406_v22 = vld [vmem:[#allocation2 + $0x62c] ss:$16 sps:$4 sm:$0xff]  }
 0x11d   :  { %1941 = vmatprep.mubr.bf16.mxu1 %v3814_v36  ;;  %1911 = vmatprep.subr.bf16.mxu1 %v3358_v25  ;;  %v3458_v36 = vld [vmem:[#allocation6 + $0x30] ss:$8 sps:$4 sm:$0xff]   ;;  %v3404_v25 = vld [vmem:[#allocation2 + $0x628] ss:$16 sps:$4 sm:$0xff]  }
 0x11e   :  { %2396 = vmatpush1.bf16.msra.mxu0 %v3449_v26  ;;  %v3409_v26 = vld [vmem:[#allocation2 + $0x64c] ss:$16 sps:$4 sm:$0xff]  }
 0x11f   :  { %2397 = vmatprep.subr.bf16.mxu0 %v3454_v29  ;;  %v3410_v29 = vld [vmem:[#allocation2 + $0x668] ss:$16 sps:$4 sm:$0xff]  }
 0x120   :  { %1912 = vmatpush1.bf16.msra.mxu1 %v3356_v28  ;;  %v3412_v28 = vld [vmem:[#allocation2 + $0x66c] ss:$16 sps:$4 sm:$0xff]  }
 0x121   :  { %1913 = vmatprep.subr.bf16.mxu1 %v3361_v8  ;;  %v3415_v8 = vld [vmem:[#allocation2 + $0x68c] ss:$16 sps:$4 sm:$0xff]  }
 0x122   :  { %2398 = vmatpush1.bf16.msra.mxu0 %v3452_v30  ;;  %v3413_v30 = vld [vmem:[#allocation2 + $0x688] ss:$16 sps:$4 sm:$0xff]  }
 0x123   :  { %2399 = vmatprep.subr.bf16.mxu0 %v3457_v31  ;;  %v3418_v31 = vld [vmem:[#allocation2 + $0x6ac] ss:$16 sps:$4 sm:$0xff]  }
 0x124   :  { %1914 = vmatpush1.bf16.msra.mxu1 %v3359_v32  ;;  %v3421_v32 = vld [vmem:[#allocation2 + $0x6cc] ss:$16 sps:$4 sm:$0xff]  }
 0x125   :  { %1915 = vmatprep.subr.bf16.mxu1 %v3364_v33  ;;  %v3493_v33 = vld [vmem:[#allocation6 + $0xe4] ss:$8 sps:$4 sm:$0xff]  }
 0x126   :  { %2400 = vmatpush1.bf16.msra.mxu0 %v3455_v11  ;;  %v3491_v11 = vld [vmem:[#allocation6 + $0xe0] ss:$8 sps:$4 sm:$0xff]  }
 0x127   :  { %2401 = vmatprep.subr.bf16.mxu0 %v3460_v52  ;;  %v3419_v52 = vld [vmem:[#allocation2 + $0x6c8] ss:$16 sps:$4 sm:$0xff]  }
 0x128   :  { %1916 = vmatpush1.bf16.msra.mxu1 %v3362_v34 }
 0x129   :  { %1917 = vmatprep.subr.bf16.mxu1 %v3367_v35 }
 0x12a   :  { %2402 = vmatpush1.bf16.msra.mxu0 %v3458_v36 }
 0x12b   :  { %2403 = vmatprep.subr.bf16.mxu0 %v3463_v37  ;;  %v3424_v37 = vld [vmem:[#allocation2 + $0x6ec] ss:$16 sps:$4 sm:$0xff]  }
 0x12c   :  { %1918 = vmatpush1.bf16.msra.mxu1 %v3365_v38  ;;  %v3496_v38 = vld [vmem:[#allocation6 + $0xf4] ss:$8 sps:$4 sm:$0xff]  }
 0x12d   :  { %1919 = vmatprep.subr.bf16.mxu1 %v3370_v39  ;;  %v3494_v39 = vld [vmem:[#allocation6 + $0xf0] ss:$8 sps:$4 sm:$0xff]  }
 0x12e   :  { %2404 = vmatpush1.bf16.msra.mxu0 %v3461_v40  ;;  %v3422_v40 = vld [vmem:[#allocation2 + $0x6e8] ss:$16 sps:$4 sm:$0xff]  }
 0x12f   :  { %2405 = vmatprep.subr.bf16.mxu0 %v3466_v41  ;;  %v3427_v41 = vld [vmem:[#allocation2 + $0x70c] ss:$16 sps:$4 sm:$0xff]  }
 0x130   :  { %1920 = vmatpush1.bf16.msra.mxu1 %v3368_v42  ;;  %v3499_v42 = vld [vmem:[#allocation6 + $0x104] ss:$8 sps:$4 sm:$0xff]  }
 0x131   :  { %1921 = vmatprep.subr.bf16.mxu1 %v3373_v43  ;;  %v3425_v43 = vld [vmem:[#allocation2 + $0x708] ss:$16 sps:$4 sm:$0xff]  }
 0x132   :  { %2406 = vmatpush1.bf16.msra.mxu0 %v3464_v44  ;;  %v3430_v44 = vld [vmem:[#allocation2 + $0x72c] ss:$16 sps:$4 sm:$0xff]  }
 0x133   :  { %2407 = vmatprep.subr.bf16.mxu0 %v3469_v45  ;;  %v3428_v45 = vld [vmem:[#allocation2 + $0x728] ss:$16 sps:$4 sm:$0xff]  }
 0x134   :  { %1922 = vmatpush1.bf16.msra.mxu1 %v3371_v46  ;;  %v3433_v46 = vld [vmem:[#allocation2 + $0x74c] ss:$16 sps:$4 sm:$0xff]  }
 0x135   :  { %1923 = vmatprep.subr.bf16.mxu1 %v3376_v47  ;;  %v3431_v47 = vld [vmem:[#allocation2 + $0x748] ss:$16 sps:$4 sm:$0xff]  }
 0x136   :  { %2408 = vmatpush1.bf16.msra.mxu0 %v3467_v48  ;;  %v3436_v48 = vld [vmem:[#allocation2 + $0x76c] ss:$16 sps:$4 sm:$0xff]  }
 0x137   :  { %2409 = vmatprep.subr.bf16.mxu0 %v3472_v49  ;;  %v3434_v49 = vld [vmem:[#allocation2 + $0x768] ss:$16 sps:$4 sm:$0xff]  }
 0x138   :  { %1924 = vmatpush1.bf16.msra.mxu1 %v3374_v50  ;;  %v3439_v50 = vld [vmem:[#allocation2 + $0x78c] ss:$16 sps:$4 sm:$0xff]  }
 0x139   :  { %1925 = vmatprep.subr.bf16.mxu1 %v3379_v51  ;;  %v3437_v51 = vld [vmem:[#allocation2 + $0x788] ss:$16 sps:$4 sm:$0xff]  }
 0x13a   :  { %2410 = vmatpush1.bf16.msra.mxu0 %v3470_v53  ;;  %v3442_v53 = vld [vmem:[#allocation2 + $0x7ac] ss:$16 sps:$4 sm:$0xff]  }
 0x13b   :  { %2411 = vmatprep.subr.bf16.mxu0 %v3475_v54  ;;  %v3440_v54 = vld [vmem:[#allocation2 + $0x7a8] ss:$16 sps:$4 sm:$0xff]  }
 0x13c   :  { %1926 = vmatpush1.bf16.msra.mxu1 %v3377_v55  ;;  %v3445_v55 = vld [vmem:[#allocation2 + $0x7cc] ss:$16 sps:$4 sm:$0xff]  }
 0x13d   :  { %1927 = vmatprep.subr.bf16.mxu1 %v3382_v56  ;;  %v3443_v56 = vld [vmem:[#allocation2 + $0x7c8] ss:$16 sps:$4 sm:$0xff]  }
 0x13e   :  { %2412 = vmatpush1.bf16.msra.mxu0 %v3473_v57  ;;  %v3448_v57 = vld [vmem:[#allocation2 + $0x7ec] ss:$16 sps:$4 sm:$0xff]  }
 0x13f   :  { %2413 = vmatprep.subr.bf16.mxu0 %v3478_v58  ;;  %v3446_v58 = vld [vmem:[#allocation2 + $0x7e8] ss:$16 sps:$4 sm:$0xff]  }
 0x140   :  { %1928 = vmatpush1.bf16.msra.mxu1 %v3380_v59  ;;  %v363_v59 = vlaneseq }
 0x141   :  { %1929 = vmatprep.subr.bf16.mxu1 %v3385_v60 }
 0x142   :  { %2414 = vmatpush1.bf16.msra.mxu0 %v3476_v61  ;;  %v3842_v60 = vshrl.u32 %v363_v59, 7 }
 0x143   :  { %2415 = vmatprep.subr.bf16.mxu0 %v3481_v62  ;;  %v3845_v62 = vld [vmem:[#allocation4] sm:$0xf] }
 0x144   :  { %1930 = vmatpush1.bf16.msra.mxu1 %v3383_v63  ;;  %v365_v61 = vsub.s32 0, %v3842_v60  ;;  %v369_v63 = vsub.s32 1, %v3842_v60 }
 0x145   :  { %1931 = vmatprep.subr.bf16.mxu1 %v3388_v0 }
 0x146   :  { %2416 = vmatpush1.bf16.msra.mxu0 %v3479_v1  ;;  %v366_v0 = vrot.slane %v3845_v62, %v365_v61  ;;  %v370_v1 = vrot.slane %v3845_v62, %v369_v63 }
 0x147   :  { %2417 = vmatprep.subr.bf16.mxu0 %v3484_v2 }
 0x148   :  { %1932 = vmatpush1.bf16.msra.mxu1 %v3386_v3 }
 0x149   :  { %1933 = vmatprep.subr.bf16.mxu1 %v3391_v4 }
 0x14a   :  { %2418 = vmatpush1.bf16.msra.mxu0 %v3482_v5 }
 0x14b   :  { %2419 = vmatprep.subr.bf16.mxu0 %v3487_v6 }
 0x14c   :  { %1934 = vmatpush1.bf16.msra.mxu1 %v3389_v7 }
 0x14d   :  { %1935 = vmatprep.subr.bf16.mxu1 %v3394_v9 }
 0x14e   :  { %2420 = vmatpush1.bf16.msra.mxu0 %v3485_v10 }
 0x14f   :  { %2421 = vmatprep.subr.bf16.mxu0 %v3490_v12 }
 0x150   :  { %1936 = vmatpush1.bf16.msra.mxu1 %v3392_v13 }
 0x151   :  { %1937 = vmatprep.subr.bf16.mxu1 %v3397_v14  ;;  %v3497_v14 = vld [vmem:[#allocation6 + $0x100] ss:$8 sps:$4 sm:$0xff]  }
 0x152   :  { %2422 = vmatpush1.bf16.msra.mxu0 %v3488_v15 }
 0x153   :  { %2423 = vmatprep.subr.bf16.mxu0 %v3493_v33  ;;  %v3509_v33 = vld [vmem:[#allocation6 + $0x140] ss:$8 sps:$4 sm:$0xff]  }
 0x154   :  { %1938 = vmatpush1.bf16.msra.mxu1 %v3395_v17  ;;  %v3502_v17 = vld [vmem:[#allocation6 + $0x114] ss:$8 sps:$4 sm:$0xff]  }
 0x155   :  { %1939 = vmatprep.subr.bf16.mxu1 %v3400_v18  ;;  %v3545_v18 = vld [vmem:[%s3918_s5 + $0x40] sm:$0xff]  }
 0x156   :  { %2424 = vmatpush1.bf16.msra.mxu0 %v3491_v11  ;;  %v3554_v11 = vld [vmem:[%s3918_s5 + $0x20] sm:$0xff]  }
 0x157   :  { %2425 = vmatprep.subr.bf16.mxu0 %v3496_v38  ;;  %v3520_v38 = vld [vmem:[#allocation6 + $0x174] ss:$8 sps:$4 sm:$0xff]  }
 0x158   :  { %1940 = vmatpush1.bf16.msra.mxu1 %v3398_v19  ;;  %v3546_v19 = vld [vmem:[%s3918_s5] sm:$0xff]  }
 0x159   :  { %1950 = vmatprep.subr.bf16.mxu1 %v3403_v20  ;;  %v3547_v20 = vld [vmem:[%s3918_s5 + $0x48] sm:$0xff]  }
 0x15a   :  { %2426 = vmatpush1.bf16.msra.mxu0 %v3494_v39  ;;  %v3518_v39 = vld [vmem:[#allocation6 + $0x170] ss:$8 sps:$4 sm:$0xff]  }
 0x15b   :  { %1942 = vmatmul.mubr.bf16.vlgmr.msra.gmra.mrb[4].mxu1 %v3820_v16  ;;  %v3416_v16 = vld [vmem:[#allocation2 + $0x6a8] ss:$16 sps:$4 sm:$0xff]   ;;  %2436 = vmatprep.subr.bf16.mxu0 %v3499_v42 }
 0x15c   :  { %1951 = vmatpush1.bf16.msra.mxu1 %v3401_v21  ;;  %1982 = vmatprep.mubr.bf16.mxu1 %v3827_v24  ;;  %v3500_v21 = vld [vmem:[#allocation6 + $0x110] ss:$8 sps:$4 sm:$0xff]   ;;  %v3526_v42 = vld [vmem:[#allocation6 + $0x194] ss:$8 sps:$4 sm:$0xff]  }
 0x15d   :  { %1952 = vmatprep.subr.bf16.mxu1 %v3406_v22  ;;  %v3505_v22 = vld [vmem:[#allocation6 + $0x124] ss:$8 sps:$4 sm:$0xff]  }
 0x160   :  { %1953 = vmatpush1.bf16.msra.mxu1 %v3404_v25  ;;  %v3548_v25 = vld [vmem:[%s3918_s5 + $0x8] sm:$0xff]  }
 0x161   :  { %1954 = vmatprep.subr.bf16.mxu1 %v3409_v26  ;;  %v3549_v26 = vld [vmem:[%s3918_s5 + $0x50] sm:$0xff]  }
 0x164   :  { %1955 = vmatpush1.bf16.msra.mxu1 %v3407_v27  ;;  %v3503_v27 = vld [vmem:[#allocation6 + $0x120] ss:$8 sps:$4 sm:$0xff]  }
 0x165   :  { %1956 = vmatprep.subr.bf16.mxu1 %v3412_v28  ;;  %v3508_v28 = vld [vmem:[#allocation6 + $0x134] ss:$8 sps:$4 sm:$0xff]  }
 0x168   :  { %1957 = vmatpush1.bf16.msra.mxu1 %v3410_v29  ;;  %v3550_v29 = vld [vmem:[%s3918_s5 + $0x10] sm:$0xff]  }
 0x169   :  { %1958 = vmatprep.subr.bf16.mxu1 %v3415_v8  ;;  %v3551_v8 = vld [vmem:[%s3918_s5 + $0x58] sm:$0xff]  }
 0x16c   :  { %1959 = vmatpush1.bf16.msra.mxu1 %v3413_v30  ;;  %v3506_v30 = vld [vmem:[#allocation6 + $0x130] ss:$8 sps:$4 sm:$0xff]  }
 0x16d   :  { %1960 = vmatprep.subr.bf16.mxu1 %v3418_v31  ;;  %v3511_v31 = vld [vmem:[#allocation6 + $0x144] ss:$8 sps:$4 sm:$0xff]  }
 0x16e   :  { %v1697_v24 = vpop.f32.mrb[0].mxu1 }
 0x16f   :  { %v1699_v34 = vpop.f32.mrb[1].mxu1  ;;  %v1698_v2 = vadd.f32 %v1697_v24, %v366_v0  ;;  %v3514_v24 = vld [vmem:[#allocation6 + $0x154] ss:$8 sps:$4 sm:$0xff]  }
 0x170   :  { %v1701_v35 = vpop.f32.mrb[2].mxu1  ;;  %1961 = vmatpush1.bf16.msra.mxu1 %v3416_v16  ;;  %v1700_v3 = vadd.f32 %v1699_v34, %v370_v1  ;;  %v3552_v16 = vld [vmem:[%s3918_s5 + $0x18] sm:$0xff]   ;;  %v3555_v34 = vld [vmem:[%s3918_s5 + $0x68] sm:$0xff]  }
 0x171   :  { %v1702_v36 = vpop.f32.mrb[3].mxu1  ;;  %1962 = vmatprep.subr.bf16.mxu1 %v3421_v32  ;;  %v3553_v32 = vld [vmem:[%s3918_s5 + $0x60] sm:$0xff]   ;;  %v3512_v35 = vld [vmem:[#allocation6 + $0x150] ss:$8 sps:$4 sm:$0xff]  }
 0x172   :  { %v3556_v36 = vld [vmem:[%s3918_s5 + $0x28] sm:$0xff]  }
 0x174   :  { %1963 = vmatpush1.bf16.msra.mxu1 %v3419_v52  ;;  %v3517_v52 = vld [vmem:[#allocation6 + $0x164] ss:$8 sps:$4 sm:$0xff]  }
 0x175   :  { %1964 = vmatprep.subr.bf16.mxu1 %v3424_v37  ;;  %v3515_v37 = vld [vmem:[#allocation6 + $0x160] ss:$8 sps:$4 sm:$0xff]  }
 0x178   :  { %1965 = vmatpush1.bf16.msra.mxu1 %v3422_v40  ;;  %v3523_v40 = vld [vmem:[#allocation6 + $0x184] ss:$8 sps:$4 sm:$0xff]  }
 0x179   :  { %1966 = vmatprep.subr.bf16.mxu1 %v3427_v41  ;;  %v3521_v41 = vld [vmem:[#allocation6 + $0x180] ss:$8 sps:$4 sm:$0xff]  }
 0x17c   :  { %1967 = vmatpush1.bf16.msra.mxu1 %v3425_v43  ;;  %v3524_v43 = vld [vmem:[#allocation6 + $0x190] ss:$8 sps:$4 sm:$0xff]  }
 0x17d   :  { %1968 = vmatprep.subr.bf16.mxu1 %v3430_v44  ;;  %v3529_v44 = vld [vmem:[#allocation6 + $0x1a4] ss:$8 sps:$4 sm:$0xff]  }
 0x180   :  { %1969 = vmatpush1.bf16.msra.mxu1 %v3428_v45  ;;  %v3527_v45 = vld [vmem:[#allocation6 + $0x1a0] ss:$8 sps:$4 sm:$0xff]  }
 0x181   :  { %1970 = vmatprep.subr.bf16.mxu1 %v3433_v46  ;;  %v3532_v46 = vld [vmem:[#allocation6 + $0x1b4] ss:$8 sps:$4 sm:$0xff]  }
 0x184   :  { %1971 = vmatpush1.bf16.msra.mxu1 %v3431_v47  ;;  %v3530_v47 = vld [vmem:[#allocation6 + $0x1b0] ss:$8 sps:$4 sm:$0xff]  }
 0x185   :  { %1972 = vmatprep.subr.bf16.mxu1 %v3436_v48  ;;  %v3535_v48 = vld [vmem:[#allocation6 + $0x1c4] ss:$8 sps:$4 sm:$0xff]  }
 0x188   :  { %1973 = vmatpush1.bf16.msra.mxu1 %v3434_v49  ;;  %v3533_v49 = vld [vmem:[#allocation6 + $0x1c0] ss:$8 sps:$4 sm:$0xff]  }
 0x189   :  { %1974 = vmatprep.subr.bf16.mxu1 %v3439_v50  ;;  %v3538_v50 = vld [vmem:[#allocation6 + $0x1d4] ss:$8 sps:$4 sm:$0xff]  }
 0x18c   :  { %1975 = vmatpush1.bf16.msra.mxu1 %v3437_v51  ;;  %v3536_v51 = vld [vmem:[#allocation6 + $0x1d0] ss:$8 sps:$4 sm:$0xff]  }
 0x18d   :  { %1976 = vmatprep.subr.bf16.mxu1 %v3442_v53  ;;  %v3541_v53 = vld [vmem:[#allocation6 + $0x1e4] ss:$8 sps:$4 sm:$0xff]  }
 0x190   :  { %1977 = vmatpush1.bf16.msra.mxu1 %v3440_v54  ;;  %v3539_v54 = vld [vmem:[#allocation6 + $0x1e0] ss:$8 sps:$4 sm:$0xff]  }
 0x191   :  { %1978 = vmatprep.subr.bf16.mxu1 %v3445_v55  ;;  %v3544_v55 = vld [vmem:[#allocation6 + $0x1f4] ss:$8 sps:$4 sm:$0xff]  }
 0x194   :  { %1979 = vmatpush1.bf16.msra.mxu1 %v3443_v56  ;;  %v3542_v56 = vld [vmem:[#allocation6 + $0x1f0] ss:$8 sps:$4 sm:$0xff]  }
 0x195   :  { %1980 = vmatprep.subr.bf16.mxu1 %v3448_v57  ;;  %v373_v57 = vsub.s32 2, %v3842_v60 }
 0x197   :  { %v374_v59 = vrot.slane %v3845_v62, %v373_v57 }
 0x198   :  { %1981 = vmatpush1.bf16.msra.mxu1 %v3446_v58  ;;  %v377_v58 = vsub.s32 3, %v3842_v60 }
 0x199   :  { %3002 = vmatprep.subr.bf16.mxu1 %v3545_v18 }
 0x19a   :  { %v378_v0 = vrot.slane %v3845_v62, %v377_v58  ;;  %v3558_v62 = vld [vmem:[%s3918_s5 + $0x30] sm:$0xff]  }
 0x19b   :  { %1983 = vmatmul.mubr.bf16.vlgmr.msra.gmra.mrb[4].mxu1 %v3834_v23 }
 0x19c   :  { %3003 = vmatpush3.bf16.msra.mxu1 %v3546_v19 }
 0x19d   :  { %3004 = vmatprep.subr.bf16.mxu1 %v3547_v20 }
 0x1a0   :  { %3005 = vmatpush3.bf16.msra.mxu1 %v3548_v25 }
 0x1a1   :  { %3006 = vmatprep.subr.bf16.mxu1 %v3549_v26 }
 0x1a4   :  { %3007 = vmatpush3.bf16.msra.mxu1 %v3550_v29 }
 0x1a5   :  { %3008 = vmatprep.subr.bf16.mxu1 %v3551_v8 }
 0x1a8   :  { %3009 = vmatpush3.bf16.msra.mxu1 %v3552_v16 }
 0x1a9   :  { %3010 = vmatprep.subr.bf16.mxu1 %v3553_v32 }
 0x1ac   :  { %3011 = vmatpush3.bf16.msra.mxu1 %v3554_v11 }
 0x1ad   :  { %3012 = vmatprep.subr.bf16.mxu1 %v3555_v34 }
 0x1b0   :  { %3013 = vmatpush3.bf16.msra.mxu1 %v3556_v36 }
 0x1ef   :  { %v1820_v23 = vpop.f32.mrb[0].mxu0 }
 0x1f0   :  { %v3025_v4 = vadd.f32 %v1820_v23, %v1698_v2  ;;  %v1822_v5 = vpop.f32.mrb[1].mxu0 }
 0x1f1   :  { %v3027_v6 = vadd.f32 %v1822_v5, %v1700_v3  ;;  %v1824_v7 = vpop.f32.mrb[2].mxu0 }
 0x1f2   :  { %v1991_v9 = vmax.f32 %v3025_v4, 0.0  ;;  %v1825_v10 = vpop.f32.mrb[3].mxu0 }
 0x1f3   :  { %v1992_v12 = vmax.f32 %v3027_v6, 0.0 }
 0x1f4   :  { %v2059_v15 = vpack.c.bf16 %v1991_v9, %v1991_v9 }
 0x1f5   :  { %v2060_v13 = vpack.c.bf16 %v1992_v12, %v1992_v12  ;;  %v3557_v12 = vld [vmem:[%s3918_s5 + $0x70] sm:$0xff]  }
 0x1f6   :  { %3014 = vmatprep.subr.bf16.mxu1 %v3557_v12 }
 0x1f7   :  { %2427 = vmatprep.mubr.bf16.mxu0 %v2060_v13  ;;  %3015 = vmatpush3.bf16.msra.mxu1 %v3558_v62  ;;  %v3559_v13 = vld [vmem:[%s3918_s5 + $0x78] sm:$0xff]  }
 0x1f8   :  { %2428 = vmatmul.mubr.bf16.vlgmr.msra.gmra.mrb[4].mxu0 %v2059_v15  ;;  %3016 = vmatprep.subr.bf16.mxu1 %v3559_v13  ;;  %v2063_v15 = vld [vmem:[#allocation7] sm:$0x3] }
 0x1f9   :  { %2437 = vmatpush1.bf16.msra.mxu0 %v3497_v14  ;;  %v3560_v14 = vld [vmem:[%s3918_s5 + $0x38] sm:$0xff]   ;;  %v2072_v18 = vrot.slane %v2063_v15, %v369_v63 }
 0x1fa   :  { %2438 = vmatprep.subr.bf16.mxu0 %v3502_v17  ;;  %v2068_v17 = vrot.slane %v2063_v15, %v365_v61 }
 0x1fb   :  { %3017 = vmatpush3.bf16.msra.mxu1 %v3560_v14 }
 0x1fd   :  { %2439 = vmatpush1.bf16.msra.mxu0 %v3500_v21 }
 0x1fe   :  { %2440 = vmatprep.subr.bf16.mxu0 %v3505_v22 }
 0x201   :  { %2441 = vmatpush1.bf16.msra.mxu0 %v3503_v27 }
 0x202   :  { %2442 = vmatprep.subr.bf16.mxu0 %v3508_v28 }
 0x205   :  { %2443 = vmatpush1.bf16.msra.mxu0 %v3506_v30 }
 0x206   :  { %2444 = vmatprep.subr.bf16.mxu0 %v3511_v31  ;;  %v2985_v31 = vld [vmem:[#allocation9] ss:$0 sm:$0xff] }
 0x209   :  { %2445 = vmatpush1.bf16.msra.mxu0 %v3509_v33 }
 0x20a   :  { %2446 = vmatprep.subr.bf16.mxu0 %v3514_v24 }
 0x20d   :  { %2447 = vmatpush1.bf16.msra.mxu0 %v3512_v35 }
 0x20e   :  { %2448 = vmatprep.subr.bf16.mxu0 %v3517_v52 }
 0x211   :  { %2449 = vmatpush1.bf16.msra.mxu0 %v3515_v37 }
 0x212   :  { %2450 = vmatprep.subr.bf16.mxu0 %v3520_v38 }
 0x215   :  { %2451 = vmatpush1.bf16.msra.mxu0 %v3518_v39 }
 0x216   :  { %2452 = vmatprep.subr.bf16.mxu0 %v3523_v40 }
 0x219   :  { %2453 = vmatpush1.bf16.msra.mxu0 %v3521_v41 }
 0x21a   :  { %2454 = vmatprep.subr.bf16.mxu0 %v3526_v42 }
 0x21d   :  { %2455 = vmatpush1.bf16.msra.mxu0 %v3524_v43 }
 0x21e   :  { %2456 = vmatprep.subr.bf16.mxu0 %v3529_v44 }
 0x221   :  { %2457 = vmatpush1.bf16.msra.mxu0 %v3527_v45 }
 0x222   :  { %2458 = vmatprep.subr.bf16.mxu0 %v3532_v46 }
 0x225   :  { %2459 = vmatpush1.bf16.msra.mxu0 %v3530_v47 }
 0x226   :  { %2460 = vmatprep.subr.bf16.mxu0 %v3535_v48 }
 0x229   :  { %2461 = vmatpush1.bf16.msra.mxu0 %v3533_v49 }
 0x22a   :  { %2462 = vmatprep.subr.bf16.mxu0 %v3538_v50 }
 0x22d   :  { %2463 = vmatpush1.bf16.msra.mxu0 %v3536_v51 }
 0x22e   :  { %2464 = vmatprep.subr.bf16.mxu0 %v3541_v53 }
 0x231   :  { %2465 = vmatpush1.bf16.msra.mxu0 %v3539_v54 }
 0x232   :  { %2466 = vmatprep.subr.bf16.mxu0 %v3544_v55 }
 0x235   :  { %2467 = vmatpush1.bf16.msra.mxu0 %v3542_v56 }
 0x26e   :  { %v1984_v1 = vpop.f32.mrb[4].mxu1 }
 0x26f   :  { %v3028_v2 = vadd.f32 %v1984_v1, %v374_v59  ;;  %v1986_v3 = vpop.f32.mrb[5].mxu1 }
 0x270   :  { %v3029_v23 = vadd.f32 %v1986_v3, %v378_v0  ;;  %v1988_v4 = vpop.f32.mrb[6].mxu1 }
 0x271   :  { %v1993_v5 = vmax.f32 %v3028_v2, 0.0  ;;  %v1989_v6 = vpop.f32.mrb[7].mxu1 }
 0x272   :  { %v1994_v7 = vmax.f32 %v3029_v23, 0.0 }
 0x273   :  { %v2061_v10 = vpack.c.bf16 %v1993_v5, %v1993_v5 }
 0x274   :  { %v2062_v9 = vpack.c.bf16 %v1994_v7, %v1994_v7 }
 0x276   :  { %2468 = vmatprep.mubr.bf16.mxu0 %v2062_v9 }
 0x277   :  { %2469 = vmatmul.mubr.bf16.vlgmr.msra.gmra.mrb[4].mxu0 %v2061_v10 }
 0x34a   :  { %v2470_v19 = vpop.f32.mrb[4].mxu0 }
 0x34b   :  { %v3030_v20 = vadd.f32 %v2470_v19, %v2068_v17  ;;  %v2472_v21 = vpop.f32.mrb[5].mxu0 }
 0x34c   :  { %v3031_v22 = vadd.f32 %v2472_v21, %v2072_v18  ;;  %v2474_v25 = vpop.f32.mrb[6].mxu0 }
 0x34d   :  { %v2477_v26 = vmax.f32 %v3030_v20, 0.0  ;;  %v2475_v27 = vpop.f32.mrb[7].mxu0 }
 0x34e   :  { %v2478_v28 = vmax.f32 %v3031_v22, 0.0 }
 0x34f   :  { %v2511_v8 = vpack.c.bf16 %v2477_v26, %v2477_v26 }
 0x350   :  { %v2512_v29 = vpack.c.bf16 %v2478_v28, %v2478_v28 }
 0x352   :  { %2648 = vmatprep.mubr.bf16.mxu1 %v2512_v29 }
 0x353   :  { %2649 = vmatmul.mubr.bf16.vlgmr.msra.gmra.mrb[8].mxu1 %v2511_v8 }
 0x426   :  { %v3018_v30 = vpop.f32.mrb[8].mxu1 }
 0x427   :  { %v3019_v16 = vpop.f32.mrb[9].mxu1 }
 0x428   :  { %v3020_v32 = vadd.f32 %v3019_v16, %v3018_v30  ;;  %v3021_v61 = vpop.f32.mrb[10].mxu1 }
 0x429   :  { %v3022_v60 = vpop.f32.mrb[11].mxu1 }
 0x42a   :  { %v2651_v63 = vadd.f32 %v3020_v32, %v2985_v31 }
 0x42c   :  { %2657 = vst.msk [vmem:[%s3920_s7] sm:$0xff] %vm2656_vm0, %v2651_v63 }
 0x42d   :  { %2662 = vsyncpa [#allocation3], 1 }
 0x42e   :  { %2663 = vsyncpa [#allocation5], 1 }
 0x42f   :  { %2664 = vsyncpa [#allocation8], 1 }

// kernel: pointnet_forward.10
= control target key start
LH: loop header
LB: loop body
LE: loop exit
PB: predicated region body
PF: predicated region fallthrough
CT: control target
= control target key end

     0   :  { %s1801_s24 = smov 0   ;;  %s1803_s25 = smov 0   ;;  %s2174_s0 = inlined_call_operand.vmem [shape: bf16[2,64,64], index: 0, kind: input, shape index: {}]   ;;  %s2175_s1 = inlined_call_operand.vmem [shape: bf16[2,64,128], index: 1, kind: input, shape index: {}]   ;;  %s2176_s2 = inlined_call_operand.vmem [shape: f32[1,128], index: 2, kind: input, shape index: {}]   ;;  %s2177_s3 = inlined_call_operand.vmem [shape: bf16[128,256], index: 3, kind: input, shape index: {}]   ;;  %s2178_s4 = inlined_call_operand.vmem [shape: f32[1,256], index: 4, kind: input, shape index: {}]   ;;  %s2179_s5 = inlined_call_operand.vmem [shape: bf16[256,512], index: 5, kind: input, shape index: {}]   ;;  %s2180_s6 = inlined_call_operand.vmem [shape: f32[1,512], index: 6, kind: input, shape index: {}]   ;;  %s2181_s7 = inlined_call_operand.vmem [shape: f32[2,1,512], index: 7, kind: output, shape index: {}]  }
   0x1   :  { %s1805_s26 = smov 0  }
   0x2 LB: > { %s29_s27 = sadd.s32 1, %s1752_s25  ;;  %p1452_p0 = scmp.ge.s32.totalorder %s1756_s26, 1  ;;  %s1756_s26 = sphi %s1805_s26, %s17_s26   ;;  %s1752_s25 = sphi %s1803_s25, %s2185_s25   ;;  %s1748_s24 = sphi %s1801_s24, %s2184_s24  }
   0x3   : > { %p31_p1 = scmp.ge.s32.totalorder %s29_s27, 2  ;;  %p266_p2 = scmp.lt.s32.totalorder %s1756_s26, 3 }
   0x5   : > { %s2187_s27 = smov (%p31_p1, %s29_s27), 0  ;;  %p267_p3 = pnand %p1452_p0, %p266_p2 }
   0x6   : > { %p307_p4 = scmp.lt.s32.totalorder (!%p267_p3), %s1748_s24, 1  ;;  %v1614_v0 = vld [vmem:[%s2177_s3 + $0x4] ss:$8 sps:$4 sm:$0xff] (!%p267_p3)   ;;  %v1616_v1 = vld [vmem:[%s2177_s3] ss:$8 sps:$4 sm:$0xff] (!%p267_p3)   ;;  %vm402_vm0 = vcmask (!%p267_p3), 523264  }
   0x7   : > { %270 = sbr.rel (%p267_p3) target bundleno = 745 (0x2e9), region = 48  ;;  %600 = vmatprep.subr.bf16.mxu1 (!%p267_p3), %v1614_v0  ;;  %v1617_v2 = vld [vmem:[%s2177_s3 + $0x14] ss:$8 sps:$4 sm:$0xff] (!%p267_p3)   ;;  %v1619_v3 = vld [vmem:[%s2177_s3 + $0x10] ss:$8 sps:$4 sm:$0xff] (!%p267_p3)   ;;  %v1758_v24 = vmov (!%p267_p3), 0  }
   0x8   : > { %601 = vmatpush1.bf16.msra.mxu1 (!%p267_p3), %v1616_v1  ;;  %v1620_v4 = vld [vmem:[%s2177_s3 + $0x24] ss:$8 sps:$4 sm:$0xff] (!%p267_p3)   ;;  %v1622_v5 = vld [vmem:[%s2177_s3 + $0x20] ss:$8 sps:$4 sm:$0xff] (!%p267_p3)   ;;  %v1623_v8 = vld [vmem:[%s2177_s3 + $0x34] ss:$8 sps:$4 sm:$0xff] (!%p267_p3)   ;;  %632 = vmatprep.mubr.bf16.mxu1 (!%p267_p3), %v1758_v24 }
   0x9   : > { %602 = vmatprep.subr.bf16.mxu1 (!%p267_p3), %v1617_v2  ;;  %v1625_v11 = vld [vmem:[%s2177_s3 + $0x30] ss:$8 sps:$4 sm:$0xff] (!%p267_p3)   ;;  %v1626_v13 = vld [vmem:[%s2177_s3 + $0x44] ss:$8 sps:$4 sm:$0xff] (!%p267_p3)   ;;  %v1628_v14 = vld [vmem:[%s2177_s3 + $0x40] ss:$8 sps:$4 sm:$0xff] (!%p267_p3)  }
   0xa   : > { %v1629_v15 = vld [vmem:[%s2177_s3 + $0x54] ss:$8 sps:$4 sm:$0xff] (!%p267_p3)   ;;  %v1631_v16 = vld [vmem:[%s2177_s3 + $0x50] ss:$8 sps:$4 sm:$0xff] (!%p267_p3)   ;;  %v1632_v20 = vld [vmem:[%s2177_s3 + $0x64] ss:$8 sps:$4 sm:$0xff] (!%p267_p3)  }
   0xb   : > { %v1634_v21 = vld [vmem:[%s2177_s3 + $0x60] ss:$8 sps:$4 sm:$0xff] (!%p267_p3)   ;;  %v1635_v22 = vld [vmem:[%s2177_s3 + $0x74] ss:$8 sps:$4 sm:$0xff] (!%p267_p3)   ;;  %v1637_v23 = vld [vmem:[%s2177_s3 + $0x70] ss:$8 sps:$4 sm:$0xff] (!%p267_p3)  }
   0xc   : > { %603 = vmatpush1.bf16.msra.mxu1 (!%p267_p3), %v1619_v3  ;;  %v1638_v25 = vld [vmem:[%s2179_s5] ss:$16 sps:$4 sm:$0xff] (!%p267_p3)   ;;  %v1640_v26 = vld [vmem:[%s2179_s5 + $0x4] ss:$16 sps:$4 sm:$0xff] (!%p267_p3)   ;;  %v1643_v27 = vld [vmem:[%s2179_s5 + $0xc] ss:$16 sps:$4 sm:$0xff] (!%p267_p3)  }
   0xd   : > { %604 = vmatprep.subr.bf16.mxu1 (!%p267_p3), %v1620_v4  ;;  %v1646_v28 = vld [vmem:[%s2179_s5 + $0x24] ss:$16 sps:$4 sm:$0xff] (!%p267_p3)   ;;  %v1644_v29 = vld [vmem:[%s2179_s5 + $0x20] ss:$16 sps:$4 sm:$0xff] (!%p267_p3)   ;;  %v1641_v4 = vld [vmem:[%s2179_s5 + $0x8] ss:$16 sps:$4 sm:$0xff] (!%p267_p3)  }
   0xe   : > { %s2189_s24 = smov (!%p307_p4, %s1748_s24), 1  ;;  %v1652_v30 = vld [vmem:[%s2179_s5 + $0x44] ss:$16 sps:$4 sm:$0xff]   ;;  %v1650_v31 = vld [vmem:[%s2179_s5 + $0x40] ss:$16 sps:$4 sm:$0xff]  }
   0xf   : > { %s1553_s13 = sshll.u32 %s2189_s24, 5  ;;  %v1658_v32 = vld [vmem:[%s2179_s5 + $0x64] ss:$16 sps:$4 sm:$0xff]   ;;  %v1656_v33 = vld [vmem:[%s2179_s5 + $0x60] ss:$16 sps:$4 sm:$0xff]   ;;  %s1457_s29 = sshll.u32 %s2189_s24, 2 }
  0x10   : > { %s320_s18 = scalar_lea.vmem %s2175_s1, %s1553_s13  ;;  %s1846_s23 = scalar_lea.vmem %s2174_s0, %s1553_s13  ;;  %605 = vmatpush1.bf16.msra.mxu1 %v1622_v5  ;;  %v1664_v34 = vld [vmem:[%s2179_s5 + $0x84] ss:$16 sps:$4 sm:$0xff]   ;;  %v1662_v35 = vld [vmem:[%s2179_s5 + $0x80] ss:$16 sps:$4 sm:$0xff]  }
  0x11   : > { %v1606_v6 = vld [vmem:[%s320_s18] sm:$0xff]   ;;  %v1607_v7 = vld [vmem:[%s320_s18 + $0x8] sm:$0xff]   ;;  %v1608_v9 = vld [vmem:[%s320_s18 + $0x10] sm:$0xff]   ;;  %606 = vmatprep.subr.bf16.mxu1 %v1623_v8  ;;  %s2101_s8 = scalar_lea.vmem %s2181_s7, %s1457_s29 }
  0x12   : > { %1563 = vmatprep.subr.bf16.mxu0 %v1606_v6  ;;  %v1610_v10 = vld [vmem:[%s1846_s23] sm:$0xff]   ;;  %v1609_v12 = vld [vmem:[%s320_s18 + $0x18] sm:$0xff]   ;;  %v1611_v17 = vld [vmem:[%s1846_s23 + $0x8] sm:$0xff]  }
  0x13   : > { %1564 = vmatpush3.bf16.msra.mxu0 %v1606_v6  ;;  %1571 = vmatprep.mubr.msk.bf16.mxu0 %vm402_vm0, %v1610_v10  ;;  %v1612_v18 = vld [vmem:[%s1846_s23 + $0x10] sm:$0xff]   ;;  %v1613_v19 = vld [vmem:[%s1846_s23 + $0x18] sm:$0xff]   ;;  %v1458_v54 = vld [vmem:[%s2176_s2] ss:$0 sm:$0xff] }
  0x14   : > { %1565 = vmatprep.subr.bf16.mxu0 %v1607_v7  ;;  %607 = vmatpush1.bf16.msra.mxu1 %v1625_v11  ;;  %v1670_v36 = vld [vmem:[%s2179_s5 + $0xa4] ss:$16 sps:$4 sm:$0xff]   ;;  %v1668_v37 = vld [vmem:[%s2179_s5 + $0xa0] ss:$16 sps:$4 sm:$0xff]  }
  0x15   : > { %608 = vmatprep.subr.bf16.mxu1 %v1626_v13  ;;  %v1676_v38 = vld [vmem:[%s2179_s5 + $0xc4] ss:$16 sps:$4 sm:$0xff]   ;;  %v1674_v39 = vld [vmem:[%s2179_s5 + $0xc0] ss:$16 sps:$4 sm:$0xff]  }
  0x16   : > { %v1682_v40 = vld [vmem:[%s2179_s5 + $0xe4] ss:$16 sps:$4 sm:$0xff]   ;;  %v1680_v41 = vld [vmem:[%s2179_s5 + $0xe0] ss:$16 sps:$4 sm:$0xff]  }
  0x17   : > { %1566 = vmatpush3.bf16.msra.mxu0 %v1607_v7  ;;  %v1688_v42 = vld [vmem:[%s2179_s5 + $0x104] ss:$16 sps:$4 sm:$0xff]   ;;  %v1686_v43 = vld [vmem:[%s2179_s5 + $0x100] ss:$16 sps:$4 sm:$0xff]   ;;  %v1649_v7 = vld [vmem:[%s2179_s5 + $0x2c] ss:$16 sps:$4 sm:$0xff]  }
  0x18   : > { %1567 = vmatprep.subr.bf16.mxu0 %v1608_v9  ;;  %609 = vmatpush1.bf16.msra.mxu1 %v1628_v14  ;;  %v1694_v44 = vld [vmem:[%s2179_s5 + $0x124] ss:$16 sps:$4 sm:$0xff]   ;;  %v1692_v45 = vld [vmem:[%s2179_s5 + $0x120] ss:$16 sps:$4 sm:$0xff]  }
  0x19   : > { %610 = vmatprep.subr.bf16.mxu1 %v1629_v15  ;;  %v1700_v46 = vld [vmem:[%s2179_s5 + $0x144] ss:$16 sps:$4 sm:$0xff]   ;;  %v1698_v47 = vld [vmem:[%s2179_s5 + $0x140] ss:$16 sps:$4 sm:$0xff]   ;;  %v1647_v15 = vld [vmem:[%s2179_s5 + $0x28] ss:$16 sps:$4 sm:$0xff]  }
  0x1a   : > { %v1706_v48 = vld [vmem:[%s2179_s5 + $0x164] ss:$16 sps:$4 sm:$0xff]   ;;  %v1704_v49 = vld [vmem:[%s2179_s5 + $0x160] ss:$16 sps:$4 sm:$0xff]  }
  0x1b   : > { %1568 = vmatpush3.bf16.msra.mxu0 %v1608_v9  ;;  %v1712_v50 = vld [vmem:[%s2179_s5 + $0x184] ss:$16 sps:$4 sm:$0xff]   ;;  %v1710_v51 = vld [vmem:[%s2179_s5 + $0x180] ss:$16 sps:$4 sm:$0xff]  }
  0x1c   : > { %1569 = vmatprep.subr.bf16.mxu0 %v1609_v12  ;;  %611 = vmatpush1.bf16.msra.mxu1 %v1631_v16  ;;  %v1718_v52 = vld [vmem:[%s2179_s5 + $0x1a4] ss:$16 sps:$4 sm:$0xff]   ;;  %v1716_v53 = vld [vmem:[%s2179_s5 + $0x1a0] ss:$16 sps:$4 sm:$0xff]  }
  0x1d   : > { %612 = vmatprep.subr.bf16.mxu1 %v1632_v20 }
  0x1f   : > { %1570 = vmatpush3.bf16.msra.mxu0 %v1609_v12 }
  0x20   : > { %613 = vmatpush1.bf16.msra.mxu1 %v1634_v21  ;;  %1103 = vmatprep.subr.bf16.mxu0 %v1640_v26  ;;  %v1659_v26 = vld [vmem:[%s2179_s5 + $0x68] ss:$16 sps:$4 sm:$0xff]  }
  0x21   : > { %614 = vmatprep.subr.bf16.mxu1 %v1635_v22  ;;  %v1653_v22 = vld [vmem:[%s2179_s5 + $0x48] ss:$16 sps:$4 sm:$0xff]  }
  0x22   : > { %1572 = vmatmul.mubr.msk.bf16.vlgmr.msra.gmra.mrb[0].mxu0 %vm402_vm0, %v1611_v17 }
  0x23   : > { %1575 = vmatprep.mubr.msk.bf16.mxu0 %vm402_vm0, %v1612_v18  ;;  %1104 = vmatpush1.bf16.msra.mxu0 %v1638_v25  ;;  %v1655_v18 = vld [vmem:[%s2179_s5 + $0x4c] ss:$16 sps:$4 sm:$0xff]  }
  0x24   : > { %615 = vmatpush1.bf16.msra.mxu1 %v1637_v23  ;;  %1105 = vmatprep.subr.bf16.mxu0 %v1646_v28  ;;  %v1661_v25 = vld [vmem:[%s2179_s5 + $0x6c] ss:$16 sps:$4 sm:$0xff]   ;;  %v1665_v28 = vld [vmem:[%s2179_s5 + $0x88] ss:$16 sps:$4 sm:$0xff]  }
  0x25   : > { %1176 = vmatprep.subr.bf16.mxu1 %v1643_v27  ;;  %v1667_v27 = vld [vmem:[%s2179_s5 + $0x8c] ss:$16 sps:$4 sm:$0xff]  }
  0x27   : > { %1106 = vmatpush1.bf16.msra.mxu0 %v1644_v29  ;;  %v1673_v29 = vld [vmem:[%s2179_s5 + $0xac] ss:$16 sps:$4 sm:$0xff]  }
  0x28   : > { %1107 = vmatprep.subr.bf16.mxu0 %v1652_v30  ;;  %v1671_v30 = vld [vmem:[%s2179_s5 + $0xa8] ss:$16 sps:$4 sm:$0xff]  }
  0x2a   : > { %1576 = vmatmul.mubr.msk.bf16.gmra.mrb[4].mxu0 %vm402_vm0, %v1613_v19 }
  0x2b   : > { %1108 = vmatpush1.bf16.msra.mxu0 %v1650_v31  ;;  %v1679_v31 = vld [vmem:[%s2179_s5 + $0xcc] ss:$16 sps:$4 sm:$0xff]  }
  0x2c   : > { %1109 = vmatprep.subr.bf16.mxu0 %v1658_v32  ;;  %v1677_v32 = vld [vmem:[%s2179_s5 + $0xc8] ss:$16 sps:$4 sm:$0xff]  }
  0x2f   : > { %1110 = vmatpush1.bf16.msra.mxu0 %v1656_v33  ;;  %v1683_v33 = vld [vmem:[%s2179_s5 + $0xe8] ss:$16 sps:$4 sm:$0xff]  }
  0x30   : > { %1111 = vmatprep.subr.bf16.mxu0 %v1664_v34  ;;  %v1691_v34 = vld [vmem:[%s2179_s5 + $0x10c] ss:$16 sps:$4 sm:$0xff]  }
  0x33   : > { %1112 = vmatpush1.bf16.msra.mxu0 %v1662_v35  ;;  %v1689_v35 = vld [vmem:[%s2179_s5 + $0x108] ss:$16 sps:$4 sm:$0xff]  }
  0x34   : > { %1113 = vmatprep.subr.bf16.mxu0 %v1670_v36  ;;  %v1697_v36 = vld [vmem:[%s2179_s5 + $0x12c] ss:$16 sps:$4 sm:$0xff]  }
  0x37   : > { %1114 = vmatpush1.bf16.msra.mxu0 %v1668_v37  ;;  %v1695_v37 = vld [vmem:[%s2179_s5 + $0x128] ss:$16 sps:$4 sm:$0xff]  }
  0x38   : > { %1115 = vmatprep.subr.bf16.mxu0 %v1676_v38  ;;  %v1703_v38 = vld [vmem:[%s2179_s5 + $0x14c] ss:$16 sps:$4 sm:$0xff]  }
  0x3b   : > { %1116 = vmatpush1.bf16.msra.mxu0 %v1674_v39  ;;  %v1701_v39 = vld [vmem:[%s2179_s5 + $0x148] ss:$16 sps:$4 sm:$0xff]  }
  0x3c   : > { %1117 = vmatprep.subr.bf16.mxu0 %v1682_v40  ;;  %v1709_v40 = vld [vmem:[%s2179_s5 + $0x16c] ss:$16 sps:$4 sm:$0xff]  }
  0x3f   : > { %1118 = vmatpush1.bf16.msra.mxu0 %v1680_v41  ;;  %v1707_v41 = vld [vmem:[%s2179_s5 + $0x168] ss:$16 sps:$4 sm:$0xff]  }
  0x40   : > { %1119 = vmatprep.subr.bf16.mxu0 %v1688_v42  ;;  %v1715_v42 = vld [vmem:[%s2179_s5 + $0x18c] ss:$16 sps:$4 sm:$0xff]  }
  0x43   : > { %1120 = vmatpush1.bf16.msra.mxu0 %v1686_v43  ;;  %v1713_v43 = vld [vmem:[%s2179_s5 + $0x188] ss:$16 sps:$4 sm:$0xff]  }
  0x44   : > { %1121 = vmatprep.subr.bf16.mxu0 %v1694_v44  ;;  %v1721_v44 = vld [vmem:[%s2179_s5 + $0x1ac] ss:$16 sps:$4 sm:$0xff]  }
  0x47   : > { %1122 = vmatpush1.bf16.msra.mxu0 %v1692_v45  ;;  %v1719_v45 = vld [vmem:[%s2179_s5 + $0x1a8] ss:$16 sps:$4 sm:$0xff]  }
  0x48   : > { %1123 = vmatprep.subr.bf16.mxu0 %v1700_v46  ;;  %v1724_v46 = vld [vmem:[%s2179_s5 + $0x1c4] ss:$16 sps:$4 sm:$0xff]  }
  0x4b   : > { %1124 = vmatpush1.bf16.msra.mxu0 %v1698_v47  ;;  %v1727_v47 = vld [vmem:[%s2179_s5 + $0x1cc] ss:$16 sps:$4 sm:$0xff]  }
  0x4c   : > { %1125 = vmatprep.subr.bf16.mxu0 %v1706_v48  ;;  %v1722_v48 = vld [vmem:[%s2179_s5 + $0x1c0] ss:$16 sps:$4 sm:$0xff]  }
  0x4f   : > { %1126 = vmatpush1.bf16.msra.mxu0 %v1704_v49  ;;  %v1725_v49 = vld [vmem:[%s2179_s5 + $0x1c8] ss:$16 sps:$4 sm:$0xff]  }
  0x50   : > { %1127 = vmatprep.subr.bf16.mxu0 %v1712_v50  ;;  %v1730_v50 = vld [vmem:[%s2179_s5 + $0x1e4] ss:$16 sps:$4 sm:$0xff]  }
  0x53   : > { %1128 = vmatpush1.bf16.msra.mxu0 %v1710_v51  ;;  %v1733_v51 = vld [vmem:[%s2179_s5 + $0x1ec] ss:$16 sps:$4 sm:$0xff]  }
  0x54   : > { %1129 = vmatprep.subr.bf16.mxu0 %v1718_v52  ;;  %v1728_v52 = vld [vmem:[%s2179_s5 + $0x1e0] ss:$16 sps:$4 sm:$0xff]  }
  0x57   : > { %1130 = vmatpush1.bf16.msra.mxu0 %v1716_v53  ;;  %v1731_v53 = vld [vmem:[%s2179_s5 + $0x1e8] ss:$16 sps:$4 sm:$0xff]  }
  0x58   : > { %1131 = vmatprep.subr.bf16.mxu0 %v1724_v46 }
  0x5b   : > { %1132 = vmatpush1.bf16.msra.mxu0 %v1722_v48 }
  0x5c   : > { %1133 = vmatprep.subr.bf16.mxu0 %v1730_v50 }
  0x5f   : > { %1134 = vmatpush1.bf16.msra.mxu0 %v1728_v52 }
  0xf5   : > { %v1573_v55 = vpop.f32.mrb[0].mxu0 }
  0xf6   : > { %v458_v56 = vadd.f32 %v1573_v55, %v1458_v54  ;;  %v449_v57 = vpop.f32.mrb[1].mxu0 }
  0xf7   : > { %v450_v58 = vadd.f32 %v1458_v54, %v449_v57  ;;  %v1574_v59 = vpop.f32.mrb[2].mxu0  ;;  %v508_v57 = vld [vmem:[%s2178_s4] sm:$0x3] }
  0xf8   : > { %v461_v60 = vadd.f32 %v1574_v59, %v1458_v54  ;;  %v452_v61 = vpop.f32.mrb[3].mxu0  ;;  %v482_v63 = vmax.f32 %v458_v56, 0.0 }
  0xf9   : > { %v453_v62 = vadd.f32 %v1458_v54, %v452_v61  ;;  %v480_v1 = vmax.f32 %v450_v58, 0.0 }
  0xfa   : > { %v483_v0 = vmax.f32 %v461_v60, 0.0 }
  0xfb   : > { %v481_v2 = vmax.f32 %v453_v62, 0.0 }
  0xfc   : > { %v489_v3 = vpack.c.bf16 %v483_v0, %v482_v63 }
  0xfd   : > { %v488_v5 = vpack.c.bf16 %v481_v2, %v480_v1  ;;  %v1577_v6 = vpop.f32.mrb[4].mxu0 }
  0xfe   : > { %v474_v8 = vadd.f32 %v1577_v6, %v1458_v54  ;;  %v465_v9 = vpop.f32.mrb[5].mxu0 }
  0xff   : > { %633 = vmatmul.mubr.bf16.vlgmr.msra.gmra.mrb[0].mxu1 %v488_v5  ;;  %v466_v10 = vadd.f32 %v1458_v54, %v465_v9  ;;  %v1578_v11 = vpop.f32.mrb[6].mxu0 }
 0x100   : > { %v486_v12 = vmax.f32 %v474_v8, 0.0  ;;  %v477_v13 = vadd.f32 %v1578_v11, %v1458_v54  ;;  %v468_v14 = vpop.f32.mrb[7].mxu0  ;;  %642 = vmatprep.mubr.bf16.mxu1 %v1758_v24  ;;  %1177 = vmatpush1.bf16.msra.mxu1 %v1641_v4 }
 0x101   : > { %v484_v16 = vmax.f32 %v466_v10, 0.0  ;;  %v469_v17 = vadd.f32 %v1458_v54, %v468_v14  ;;  %1178 = vmatprep.subr.bf16.mxu1 %v1649_v7  ;;  %v330_v54 = vlaneseq }
 0x102   : > { %v487_v19 = vmax.f32 %v477_v13, 0.0 }
 0x103   : > { %v485_v20 = vmax.f32 %v469_v17, 0.0  ;;  %v2086_v55 = vshrl.u32 %v330_v54, 7  ;;  %vm2104_vm1 = vcmp.lt.s32.totalorder %v330_v54, 512 }
 0x104   : > { %v491_v21 = vpack.c.bf16 %v487_v19, %v486_v12  ;;  %1179 = vmatpush1.bf16.msra.mxu1 %v1647_v15 }
 0x105   : > { %v490_v23 = vpack.c.bf16 %v485_v20, %v484_v16  ;;  %1180 = vmatprep.subr.bf16.mxu1 %v1655_v18  ;;  %v512_v56 = vsub.s32 0, %v2086_v55  ;;  %v516_v58 = vsub.s32 1, %v2086_v55 }
 0x107   : > { %643 = vmatmul.mubr.bf16.gmra.mrb[4].mxu1 %v489_v3  ;;  %v513_v59 = vrot.slane %v508_v57, %v512_v56  ;;  %v517_v60 = vrot.slane %v508_v57, %v516_v58  ;;  %v1759_v57 = vmov -inf  }
 0x108   : > { %652 = vmatprep.mubr.bf16.mxu1 %v1758_v24  ;;  %1181 = vmatpush1.bf16.msra.mxu1 %v1653_v22  ;;  %334 = vst.msk [vmem:[%s2101_s8] sm:$0xf] %vm2104_vm1, %v1759_v57 }
 0x109   : > { %1182 = vmatprep.subr.bf16.mxu1 %v1661_v25 }
 0x10c   : > { %1183 = vmatpush1.bf16.msra.mxu1 %v1659_v26 }
 0x10d   : > { %1184 = vmatprep.subr.bf16.mxu1 %v1667_v27 }
 0x10f   : > { %653 = vmatmul.mubr.bf16.gmra.mrb[8].mxu1 %v490_v23 }
 0x110   : > { %662 = vmatprep.mubr.bf16.mxu1 %v1758_v24  ;;  %1185 = vmatpush1.bf16.msra.mxu1 %v1665_v28  ;;  %v1685_v24 = vld [vmem:[%s2179_s5 + $0xec] ss:$16 sps:$4 sm:$0xff]  }
 0x111   : > { %1186 = vmatprep.subr.bf16.mxu1 %v1673_v29 }
 0x114   : > { %1187 = vmatpush1.bf16.msra.mxu1 %v1671_v30 }
 0x115   : > { %1188 = vmatprep.subr.bf16.mxu1 %v1679_v31 }
 0x117   : > { %663 = vmatmul.mubr.bf16.gmra.mrb[12].mxu1 %v491_v21 }
 0x118   : > { %1189 = vmatpush1.bf16.msra.mxu1 %v1677_v32 }
 0x119   : > { %1190 = vmatprep.subr.bf16.mxu1 %v1685_v24 }
 0x11c   : > { %1191 = vmatpush1.bf16.msra.mxu1 %v1683_v33 }
 0x11d   : > { %1192 = vmatprep.subr.bf16.mxu1 %v1691_v34 }
 0x120   : > { %1193 = vmatpush1.bf16.msra.mxu1 %v1689_v35 }
 0x121   : > { %1194 = vmatprep.subr.bf16.mxu1 %v1697_v36 }
 0x124   : > { %1195 = vmatpush1.bf16.msra.mxu1 %v1695_v37 }
 0x125   : > { %1196 = vmatprep.subr.bf16.mxu1 %v1703_v38 }
 0x128   : > { %1197 = vmatpush1.bf16.msra.mxu1 %v1701_v39 }
 0x129   : > { %1198 = vmatprep.subr.bf16.mxu1 %v1709_v40 }
 0x12c   : > { %1199 = vmatpush1.bf16.msra.mxu1 %v1707_v41 }
 0x12d   : > { %1200 = vmatprep.subr.bf16.mxu1 %v1715_v42 }
 0x130   : > { %1201 = vmatpush1.bf16.msra.mxu1 %v1713_v43 }
 0x131   : > { %1202 = vmatprep.subr.bf16.mxu1 %v1721_v44 }
 0x134   : > { %1203 = vmatpush1.bf16.msra.mxu1 %v1719_v45 }
 0x135   : > { %1204 = vmatprep.subr.bf16.mxu1 %v1727_v47 }
 0x138   : > { %1205 = vmatpush1.bf16.msra.mxu1 %v1725_v49 }
 0x139   : > { %1206 = vmatprep.subr.bf16.mxu1 %v1733_v51 }
 0x13c   : > { %1207 = vmatpush1.bf16.msra.mxu1 %v1731_v53 }
 0x1d2   : > { %v634_v61 = vpop.f32.mrb[0].mxu1 }
 0x1d3   : > { %v635_v62 = vadd.f32 %v634_v61, %v513_v59  ;;  %v636_v63 = vpop.f32.mrb[1].mxu1  ;;  %v777_v61 = vsub.s32 3, %v2086_v55 }
 0x1d4   : > { %v637_v0 = vadd.f32 %v636_v63, %v517_v60  ;;  %v638_v1 = vpop.f32.mrb[2].mxu1 }
 0x1d5   : > { %v639_v2 = vadd.f32 %v638_v1, %v513_v59  ;;  %v640_v3 = vpop.f32.mrb[3].mxu1  ;;  %v673_v5 = vmax.f32 %v635_v62, 0.0 }
 0x1d6   : > { %v641_v4 = vadd.f32 %v640_v3, %v517_v60  ;;  %v674_v7 = vmax.f32 %v637_v0, 0.0 }
 0x1d7   : > { %v675_v6 = vmax.f32 %v639_v2, 0.0 }
 0x1d8   : > { %v676_v8 = vmax.f32 %v641_v4, 0.0 }
 0x1d9   : > { %v689_v9 = vpack.c.bf16 %v675_v6, %v673_v5 }
 0x1da   : > { %v690_v10 = vpack.c.bf16 %v676_v8, %v674_v7  ;;  %v644_v11 = vpop.f32.mrb[4].mxu1 }
 0x1db   : > { %v645_v12 = vadd.f32 %v644_v11, %v513_v59  ;;  %v646_v13 = vpop.f32.mrb[5].mxu1 }
 0x1dc   : > { %v647_v14 = vadd.f32 %v646_v13, %v517_v60  ;;  %v648_v15 = vpop.f32.mrb[6].mxu1  ;;  %1135 = vmatprep.mubr.bf16.mxu0 %v690_v10  ;;  %1208 = vmatprep.mubr.bf16.mxu1 %v690_v10 }
 0x1dd   : > { %v649_v16 = vadd.f32 %v648_v15, %v513_v59  ;;  %v650_v17 = vpop.f32.mrb[7].mxu1  ;;  %1136 = vmatmul.mubr.bf16.vlgmr.msra.gmra.mrb[8].mxu0 %v689_v9  ;;  %1209 = vmatmul.mubr.bf16.vlgmr.msra.gmra.mrb[16].mxu1 %v689_v9  ;;  %v677_v19 = vmax.f32 %v645_v12, 0.0 }
 0x1de   : > { %v651_v18 = vadd.f32 %v650_v17, %v517_v60  ;;  %v678_v21 = vmax.f32 %v647_v14, 0.0 }
 0x1df   : > { %v679_v20 = vmax.f32 %v649_v16, 0.0 }
 0x1e0   : > { %v680_v22 = vmax.f32 %v651_v18, 0.0 }
 0x1e1   : > { %v691_v23 = vpack.c.bf16 %v679_v20, %v677_v19 }
 0x1e2   : > { %v692_v25 = vpack.c.bf16 %v680_v22, %v678_v21  ;;  %v654_v26 = vpop.f32.mrb[8].mxu1 }
 0x1e3   : > { %v655_v27 = vadd.f32 %v654_v26, %v513_v59  ;;  %v656_v28 = vpop.f32.mrb[9].mxu1 }
 0x1e4   : > { %v657_v29 = vadd.f32 %v656_v28, %v517_v60  ;;  %v658_v30 = vpop.f32.mrb[10].mxu1  ;;  %1145 = vmatprep.mubr.bf16.mxu0 %v692_v25  ;;  %1218 = vmatprep.mubr.bf16.mxu1 %v692_v25 }
 0x1e5   : > { %v659_v31 = vadd.f32 %v658_v30, %v513_v59  ;;  %v660_v32 = vpop.f32.mrb[11].mxu1  ;;  %1146 = vmatmul.mubr.bf16.gmra.mrb[12].mxu0 %v691_v23  ;;  %1219 = vmatmul.mubr.bf16.gmra.mrb[20].mxu1 %v691_v23  ;;  %v681_v33 = vmax.f32 %v655_v27, 0.0 }
 0x1e6   : > { %v661_v24 = vadd.f32 %v660_v32, %v517_v60  ;;  %v682_v35 = vmax.f32 %v657_v29, 0.0 }
 0x1e7   : > { %v683_v34 = vmax.f32 %v659_v31, 0.0 }
 0x1e8   : > { %v684_v36 = vmax.f32 %v661_v24, 0.0 }
 0x1e9   : > { %v693_v37 = vpack.c.bf16 %v683_v34, %v681_v33 }
 0x1ea   : > { %v694_v38 = vpack.c.bf16 %v684_v36, %v682_v35  ;;  %v664_v39 = vpop.f32.mrb[12].mxu1 }
 0x1eb   : > { %v665_v40 = vadd.f32 %v664_v39, %v513_v59  ;;  %v666_v41 = vpop.f32.mrb[13].mxu1 }
 0x1ec   : > { %v667_v42 = vadd.f32 %v666_v41, %v517_v60  ;;  %v668_v43 = vpop.f32.mrb[14].mxu1  ;;  %1155 = vmatprep.mubr.bf16.mxu0 %v694_v38  ;;  %1228 = vmatprep.mubr.bf16.mxu1 %v694_v38 }
 0x1ed   : > { %v669_v44 = vadd.f32 %v668_v43, %v513_v59  ;;  %v670_v45 = vpop.f32.mrb[15].mxu1  ;;  %1156 = vmatmul.mubr.bf16.gmra.mrb[16].mxu0 %v693_v37  ;;  %1229 = vmatmul.mubr.bf16.gmra.mrb[24].mxu1 %v693_v37  ;;  %v685_v47 = vmax.f32 %v665_v40, 0.0  ;;  %v773_v59 = vsub.s32 2, %v2086_v55 }
 0x1ee   : > { %v671_v46 = vadd.f32 %v670_v45, %v517_v60  ;;  %v686_v49 = vmax.f32 %v667_v42, 0.0  ;;  %v761_v60 = vld [vmem:[%s2180_s6] sm:$0xf] }
 0x1ef   : > { %v687_v48 = vmax.f32 %v669_v44, 0.0  ;;  %v2118_v62 = vrot.slane %v761_v60, %v512_v56  ;;  %v2120_v54 = vrot.slane %v761_v60, %v773_v59  ;;  %v2124_v63 = vrot.slane %v761_v60, %v516_v58 }
 0x1f0   : > { %v688_v50 = vmax.f32 %v671_v46, 0.0  ;;  %v2126_v0 = vrot.slane %v761_v60, %v777_v61 }
 0x1f1   : > { %v695_v51 = vpack.c.bf16 %v687_v48, %v685_v47 }
 0x1f2   : > { %v696_v52 = vpack.c.bf16 %v688_v50, %v686_v49 }
 0x1f4   : > { %1165 = vmatprep.mubr.bf16.mxu0 %v696_v52  ;;  %1238 = vmatprep.mubr.bf16.mxu1 %v696_v52 }
 0x1f5   : > { %1166 = vmatmul.mubr.bf16.gmra.mrb[20].mxu0 %v695_v51  ;;  %1239 = vmatmul.mubr.bf16.gmra.mrb[28].mxu1 %v695_v51 }
 0x2b0   : > { %v1137_v1 = vpop.f32.mrb[8].mxu0  ;;  %v1210_v2 = vpop.f32.mrb[16].mxu1 }
 0x2b1   : > { %v1138_v3 = vadd.f32 %v1137_v1, %v2118_v62  ;;  %v1211_v4 = vadd.f32 %v1210_v2, %v2120_v54  ;;  %v1139_v5 = vpop.f32.mrb[9].mxu0  ;;  %v1212_v6 = vpop.f32.mrb[17].mxu1 }
 0x2b2   : > { %v1140_v7 = vadd.f32 %v1139_v5, %v2124_v63  ;;  %v1213_v56 = vadd.f32 %v1212_v6, %v2126_v0  ;;  %v1141_v8 = vpop.f32.mrb[10].mxu0  ;;  %v1214_v9 = vpop.f32.mrb[18].mxu1 }
 0x2b3   : > { %v1142_v10 = vadd.f32 %v1141_v8, %v2118_v62  ;;  %v1215_v58 = vadd.f32 %v1214_v9, %v2120_v54  ;;  %v1143_v11 = vpop.f32.mrb[11].mxu0  ;;  %v1216_v12 = vpop.f32.mrb[19].mxu1  ;;  %v1249_v15 = vmax.f32 %v1138_v3, 0.0  ;;  %v1251_v16 = vmax.f32 %v1211_v4, 0.0 }
 0x2b4   : > { %v1144_v13 = vadd.f32 %v1143_v11, %v2124_v63  ;;  %v1217_v14 = vadd.f32 %v1216_v12, %v2126_v0  ;;  %v1250_v19 = vmax.f32 %v1140_v7, 0.0  ;;  %v1252_v20 = vmax.f32 %v1213_v56, 0.0 }
 0x2b5   : > { %v1253_v17 = vmax.f32 %v1142_v10, 0.0  ;;  %v1255_v18 = vmax.f32 %v1215_v58, 0.0 }
 0x2b6   : > { %v1254_v21 = vmax.f32 %v1144_v13, 0.0  ;;  %v1256_v22 = vmax.f32 %v1217_v14, 0.0 }
 0x2b7   : > { %v1282_v23 = vmax.f32 %v1249_v15, %v1253_v17  ;;  %v1308_v25 = vmax.f32 %v1251_v16, %v1255_v18 }
 0x2b8   : > { %v1295_v26 = vmax.f32 %v1250_v19, %v1254_v21  ;;  %v1321_v27 = vmax.f32 %v1252_v20, %v1256_v22  ;;  %v1147_v28 = vpop.f32.mrb[12].mxu0  ;;  %v1220_v29 = vpop.f32.mrb[20].mxu1 }
 0x2b9   : > { %v1148_v30 = vadd.f32 %v1147_v28, %v2118_v62  ;;  %v1221_v31 = vadd.f32 %v1220_v29, %v2120_v54  ;;  %v1149_v32 = vpop.f32.mrb[13].mxu0  ;;  %v1222_v24 = vpop.f32.mrb[21].mxu1 }
 0x2ba   : > { %v1150_v33 = vadd.f32 %v1149_v32, %v2124_v63  ;;  %v1223_v34 = vadd.f32 %v1222_v24, %v2126_v0  ;;  %v1151_v35 = vpop.f32.mrb[14].mxu0  ;;  %v1224_v36 = vpop.f32.mrb[22].mxu1 }
 0x2bb   : > { %v1257_v37 = vmax.f32 %v1148_v30, 0.0  ;;  %v1259_v38 = vmax.f32 %v1221_v31, 0.0  ;;  %v1152_v39 = vadd.f32 %v1151_v35, %v2118_v62  ;;  %v1225_v40 = vadd.f32 %v1224_v36, %v2120_v54  ;;  %v1153_v41 = vpop.f32.mrb[15].mxu0  ;;  %v1226_v42 = vpop.f32.mrb[23].mxu1 }
 0x2bc   : > { %v1258_v43 = vmax.f32 %v1150_v33, 0.0  ;;  %v1260_v44 = vmax.f32 %v1223_v34, 0.0  ;;  %v1154_v45 = vadd.f32 %v1153_v41, %v2124_v63  ;;  %v1227_v46 = vadd.f32 %v1226_v42, %v2126_v0 }
 0x2bd   : > { %v1283_v47 = vmax.f32 %v1282_v23, %v1257_v37  ;;  %v1309_v48 = vmax.f32 %v1308_v25, %v1259_v38  ;;  %v1261_v49 = vmax.f32 %v1152_v39, 0.0  ;;  %v1263_v50 = vmax.f32 %v1225_v40, 0.0 }
 0x2be   : > { %v1296_v51 = vmax.f32 %v1295_v26, %v1258_v43  ;;  %v1322_v52 = vmax.f32 %v1321_v27, %v1260_v44  ;;  %v1262_v57 = vmax.f32 %v1154_v45, 0.0  ;;  %v1264_v59 = vmax.f32 %v1227_v46, 0.0 }
 0x2bf   : > { %v1284_v60 = vmax.f32 %v1283_v47, %v1261_v49  ;;  %v1310_v61 = vmax.f32 %v1309_v48, %v1263_v50 }
 0x2c0   : > { %v1297_v1 = vmax.f32 %v1296_v51, %v1262_v57  ;;  %v1323_v2 = vmax.f32 %v1322_v52, %v1264_v59  ;;  %v1157_v3 = vpop.f32.mrb[16].mxu0  ;;  %v1230_v4 = vpop.f32.mrb[24].mxu1 }
 0x2c1   : > { %v1158_v5 = vadd.f32 %v1157_v3, %v2118_v62  ;;  %v1231_v6 = vadd.f32 %v1230_v4, %v2120_v54  ;;  %v1159_v7 = vpop.f32.mrb[17].mxu0  ;;  %v1232_v56 = vpop.f32.mrb[25].mxu1 }
 0x2c2   : > { %v1160_v8 = vadd.f32 %v1159_v7, %v2124_v63  ;;  %v1233_v9 = vadd.f32 %v1232_v56, %v2126_v0  ;;  %v1161_v10 = vpop.f32.mrb[18].mxu0  ;;  %v1234_v58 = vpop.f32.mrb[26].mxu1 }
 0x2c3   : > { %v1265_v11 = vmax.f32 %v1158_v5, 0.0  ;;  %v1267_v12 = vmax.f32 %v1231_v6, 0.0  ;;  %v1162_v13 = vadd.f32 %v1161_v10, %v2118_v62  ;;  %v1235_v14 = vadd.f32 %v1234_v58, %v2120_v54  ;;  %v1163_v15 = vpop.f32.mrb[19].mxu0  ;;  %v1236_v16 = vpop.f32.mrb[27].mxu1 }
 0x2c4   : > { %v1266_v17 = vmax.f32 %v1160_v8, 0.0  ;;  %v1268_v18 = vmax.f32 %v1233_v9, 0.0  ;;  %v1164_v19 = vadd.f32 %v1163_v15, %v2124_v63  ;;  %v1237_v20 = vadd.f32 %v1236_v16, %v2126_v0 }
 0x2c5   : > { %v1285_v21 = vmax.f32 %v1284_v60, %v1265_v11  ;;  %v1311_v22 = vmax.f32 %v1310_v61, %v1267_v12  ;;  %v1269_v23 = vmax.f32 %v1162_v13, 0.0  ;;  %v1271_v25 = vmax.f32 %v1235_v14, 0.0 }
 0x2c6   : > { %v1298_v26 = vmax.f32 %v1297_v1, %v1266_v17  ;;  %v1324_v27 = vmax.f32 %v1323_v2, %v1268_v18  ;;  %v1270_v28 = vmax.f32 %v1164_v19, 0.0  ;;  %v1272_v29 = vmax.f32 %v1237_v20, 0.0 }
 0x2c7   : > { %v1286_v30 = vmax.f32 %v1285_v21, %v1269_v23  ;;  %v1312_v31 = vmax.f32 %v1311_v22, %v1271_v25 }
 0x2c8   : > { %v1299_v32 = vmax.f32 %v1298_v26, %v1270_v28  ;;  %v1325_v24 = vmax.f32 %v1324_v27, %v1272_v29  ;;  %v1167_v33 = vpop.f32.mrb[20].mxu0  ;;  %v1240_v34 = vpop.f32.mrb[28].mxu1 }
 0x2c9   : > { %v1168_v35 = vadd.f32 %v1167_v33, %v2118_v62  ;;  %v1241_v36 = vadd.f32 %v1240_v34, %v2120_v54  ;;  %v1169_v37 = vpop.f32.mrb[21].mxu0  ;;  %v1242_v38 = vpop.f32.mrb[29].mxu1 }
 0x2ca   : > { %v1170_v39 = vadd.f32 %v1169_v37, %v2124_v63  ;;  %v1243_v40 = vadd.f32 %v1242_v38, %v2126_v0  ;;  %v1171_v41 = vpop.f32.mrb[22].mxu0  ;;  %v1244_v42 = vpop.f32.mrb[30].mxu1 }
 0x2cb   : > { %v1273_v43 = vmax.f32 %v1168_v35, 0.0  ;;  %v1275_v44 = vmax.f32 %v1241_v36, 0.0  ;;  %v1172_v45 = vadd.f32 %v1171_v41, %v2118_v62  ;;  %v1245_v46 = vadd.f32 %v1244_v42, %v2120_v54  ;;  %v1173_v47 = vpop.f32.mrb[23].mxu0  ;;  %v1246_v48 = vpop.f32.mrb[31].mxu1  ;;  %v1281_v36 = vld [vmem:[%s2101_s8] sm:$0xf] }
 0x2cc   : > { %v1274_v49 = vmax.f32 %v1170_v39, 0.0  ;;  %v1276_v50 = vmax.f32 %v1243_v40, 0.0  ;;  %v1174_v51 = vadd.f32 %v1173_v47, %v2124_v63  ;;  %v1247_v52 = vadd.f32 %v1246_v48, %v2126_v0 }
 0x2cd   : > { %v1287_v57 = vmax.f32 %v1286_v30, %v1273_v43  ;;  %v1313_v59 = vmax.f32 %v1312_v31, %v1275_v44  ;;  %v1277_v60 = vmax.f32 %v1172_v45, 0.0  ;;  %v1279_v61 = vmax.f32 %v1245_v46, 0.0 }
 0x2ce   : > { %v1300_v1 = vmax.f32 %v1299_v32, %v1274_v49  ;;  %v1326_v2 = vmax.f32 %v1325_v24, %v1276_v50  ;;  %v1278_v3 = vmax.f32 %v1174_v51, 0.0  ;;  %v1280_v4 = vmax.f32 %v1247_v52, 0.0 }
 0x2cf   : > { %v1288_v5 = vmax.f32 %v1287_v57, %v1277_v60  ;;  %v1314_v62 = vmax.f32 %v1313_v59, %v1279_v61  ;;  %v1760_v0 = vmov 1966171168  }
 0x2d0   : > { %v1301_v6 = vmax.f32 %v1300_v1, %v1278_v3  ;;  %v1327_v54 = vmax.f32 %v1326_v2, %v1280_v4  ;;  %v1341_v11 = vunpack.c.l.s4 %v1760_v0 }
 0x2d1   : > { %v1289_v7 = vrot.slane %v1288_v5, 4  ;;  %v1315_v56 = vrot.slane %v1314_v62, 4 }
 0x2d2   : > { %v1302_v8 = vrot.slane %v1301_v6, 4  ;;  %v1328_v9 = vrot.slane %v1327_v54, 4  ;;  %v1342_v20 = vunpack.c.0.s8 %v1341_v11 }
 0x2d3   : > { %v1290_v10 = vmax.f32 %v1288_v5, %v1289_v7  ;;  %v1316_v63 = vmax.f32 %v1314_v62, %v1315_v56 }
 0x2d4   : > { %v1303_v58 = vmax.f32 %v1301_v6, %v1302_v8  ;;  %v1329_v12 = vmax.f32 %v1327_v54, %v1328_v9  ;;  %v1345_v30 = vsub.s32 %v1342_v20, %v2086_v55 }
 0x2d5   : > { %v1291_v13 = vrot.slane %v1290_v10, 2  ;;  %v1317_v14 = vrot.slane %v1316_v63, 2 }
 0x2d6   : > { %v1304_v15 = vrot.slane %v1303_v58, 2  ;;  %v1330_v16 = vrot.slane %v1329_v12, 2 }
 0x2d7   : > { %v1292_v17 = vmax.f32 %v1290_v10, %v1291_v13  ;;  %v1318_v18 = vmax.f32 %v1316_v63, %v1317_v14 }
 0x2d8   : > { %v1305_v19 = vmax.f32 %v1303_v58, %v1304_v15  ;;  %v1331_v21 = vmax.f32 %v1329_v12, %v1330_v16 }
 0x2d9   : > { %v1293_v22 = vrot.slane %v1292_v17, 1  ;;  %v1319_v23 = vrot.slane %v1318_v18, 1 }
 0x2da   : > { %v1306_v25 = vrot.slane %v1305_v19, 1  ;;  %v1332_v26 = vrot.slane %v1331_v21, 1 }
 0x2db   : > { %v1294_v27 = vmax.f32 %v1292_v17, %v1293_v22  ;;  %v1320_v28 = vmax.f32 %v1318_v18, %v1319_v23 }
 0x2dc   : > { %v1307_v29 = vmax.f32 %v1305_v19, %v1306_v25  ;;  %v1333_v31 = vmax.f32 %v1331_v21, %v1332_v26 }
 0x2de   : > { %v1338_v32 = vcombine.low %v1294_v27, %v1307_v29  ;;  %v1339_v24 = vcombine.low %v1320_v28, %v1333_v31 }
 0x2e0   : > { %v1346_v33 = vrot.slane %v1338_v32, %v1345_v30  ;;  %v1353_v34 = vrot.slane %v1339_v24, %v1345_v30 }
 0x2e2   : > { %v1354_v35 = vcombine.low %v1346_v33, %v1353_v34 }
 0x2e4   : > { %v1361_v37 = vrot.slane %v1354_v35, %v1345_v30 }
 0x2e6   : > { %v1363_v38 = vmax.f32 %v1281_v36, %v1361_v37 }
 0x2e8   : > { %1368 = vst.msk [vmem:[%s2101_s8] sm:$0xf] %vm2104_vm1, %v1363_v38 }
 0x2e9 PF: > { %s17_s26 = sadd.s32 1, %s1756_s26   ;;  %s2184_s24 = smov %s1752_s25 }
 0x2ea   : > { %p14_p5 = scmp.ge.s32.totalorder %s17_s26, 4   ;;  %s2185_s25 = smov %s2187_s27 }
 0x2ec   :  { %16 = sbr.rel (!%p14_p5) target bundleno = 2 (0x2), region = 85 }

// kernel: pointnet_forward.11
= control target key start
LH: loop header
LB: loop body
LE: loop exit
PB: predicated region body
PF: predicated region fallthrough
CT: control target
= control target key end

     0   :  { %vm1654_vm0 = vcmask 80896   ;;  %s2950_s1 = inlined_call_operand.vmem [shape: bf16[512,512], index: 1, kind: input, shape index: {}]   ;;  %s2951_s0 = inlined_call_operand.vmem [shape: f32[8,512], index: 0, kind: input, shape index: {}]   ;;  %s2952_s3 = inlined_call_operand.vmem [shape: bf16[512,256], index: 3, kind: input, shape index: {}]   ;;  %s2953_s2 = inlined_call_operand.vmem [shape: f32[1,512], index: 2, kind: input, shape index: {}]   ;;  %s2954_s5 = inlined_call_operand.vmem [shape: bf16[256,10], index: 5, kind: input, shape index: {}]   ;;  %s2955_s4 = inlined_call_operand.vmem [shape: f32[1,256], index: 4, kind: input, shape index: {}]   ;;  %s2956_s6 = inlined_call_operand.vmem [shape: f32[1,10], index: 6, kind: input, shape index: {}]   ;;  %s2957_s7 = inlined_call_operand.vmem [shape: f32[8,10], index: 7, kind: output, shape index: {}]  }
   0x1   :  { %v1919_v0 = vld [vmem:[%s2950_s1 + $0x4] ss:$16 sps:$4 sm:$0xff]   ;;  %v1921_v1 = vld [vmem:[%s2950_s1] ss:$16 sps:$4 sm:$0xff]   ;;  %v28_v46 = vld [vmem:[%s2951_s0 + $0x8] sm:$0xff] }
   0x2   :  { %825 = vmatprep.subr.bf16.mxu1 %v1919_v0  ;;  %v1922_v2 = vld [vmem:[%s2950_s1 + $0x204] ss:$16 sps:$4 sm:$0xff]   ;;  %v1924_v3 = vld [vmem:[%s2950_s1 + $0x200] ss:$16 sps:$4 sm:$0xff]   ;;  %v160_v48 = vpack.c.bf16 %v28_v46, %v28_v46  ;;  %v30_v50 = vld [vmem:[%s2951_s0 + $0x18] sm:$0xff] }
   0x3   :  { %826 = vmatpush1.bf16.msra.mxu1 %v1921_v1  ;;  %v1925_v4 = vld [vmem:[%s2950_s1 + $0x24] ss:$16 sps:$4 sm:$0xff]   ;;  %v1927_v5 = vld [vmem:[%s2950_s1 + $0x20] ss:$16 sps:$4 sm:$0xff]   ;;  %866 = vmatprep.subr.bf16.mxu0 %v1922_v2  ;;  %v2420_v52 = vpack.c.bf16 %v30_v50, %v30_v50 }
   0x4   :  { %v1928_v6 = vld [vmem:[%s2950_s1 + $0x224] ss:$16 sps:$4 sm:$0xff]   ;;  %867 = vmatpush1.bf16.msra.mxu0 %v1924_v3  ;;  %827 = vmatprep.subr.bf16.mxu1 %v1925_v4  ;;  %v1930_v7 = vld [vmem:[%s2950_s1 + $0x220] ss:$16 sps:$4 sm:$0xff]  }
   0x5   :  { %868 = vmatprep.subr.bf16.mxu0 %v1928_v6  ;;  %v1931_v8 = vld [vmem:[%s2950_s1 + $0x44] ss:$16 sps:$4 sm:$0xff]   ;;  %v1933_v9 = vld [vmem:[%s2950_s1 + $0x40] ss:$16 sps:$4 sm:$0xff]   ;;  %857 = vmatprep.mubr.bf16.mxu1 %v160_v48 }
   0x6   :  { %v1934_v10 = vld [vmem:[%s2950_s1 + $0x244] ss:$16 sps:$4 sm:$0xff]   ;;  %v1936_v12 = vld [vmem:[%s2950_s1 + $0x240] ss:$16 sps:$4 sm:$0xff]   ;;  %898 = vmatprep.mubr.bf16.mxu0 %v2420_v52 }
   0x7   :  { %828 = vmatpush1.bf16.msra.mxu1 %v1927_v5  ;;  %v1937_v11 = vld [vmem:[%s2950_s1 + $0x64] ss:$16 sps:$4 sm:$0xff]   ;;  %v1939_v14 = vld [vmem:[%s2950_s1 + $0x60] ss:$16 sps:$4 sm:$0xff]   ;;  %v2017_v5 = vld [vmem:[%s2950_s1 + $0xc] ss:$16 sps:$4 sm:$0xff]  }
   0x8   :  { %829 = vmatprep.subr.bf16.mxu1 %v1931_v8  ;;  %869 = vmatpush1.bf16.msra.mxu0 %v1930_v7  ;;  %v1940_v13 = vld [vmem:[%s2950_s1 + $0x264] ss:$16 sps:$4 sm:$0xff]   ;;  %v1942_v16 = vld [vmem:[%s2950_s1 + $0x260] ss:$16 sps:$4 sm:$0xff]   ;;  %v2015_v8 = vld [vmem:[%s2950_s1 + $0x8] ss:$16 sps:$4 sm:$0xff]  }
   0x9   :  { %870 = vmatprep.subr.bf16.mxu0 %v1934_v10  ;;  %v1943_v15 = vld [vmem:[%s2950_s1 + $0x84] ss:$16 sps:$4 sm:$0xff]   ;;  %v1945_v18 = vld [vmem:[%s2950_s1 + $0x80] ss:$16 sps:$4 sm:$0xff]   ;;  %v2020_v10 = vld [vmem:[%s2950_s1 + $0x2c] ss:$16 sps:$4 sm:$0xff]  }
   0xa   :  { %v1946_v17 = vld [vmem:[%s2950_s1 + $0x284] ss:$16 sps:$4 sm:$0xff]   ;;  %v1948_v20 = vld [vmem:[%s2950_s1 + $0x280] ss:$16 sps:$4 sm:$0xff]  }
   0xb   :  { %830 = vmatpush1.bf16.msra.mxu1 %v1933_v9  ;;  %v1949_v19 = vld [vmem:[%s2950_s1 + $0xa4] ss:$16 sps:$4 sm:$0xff]   ;;  %v1951_v22 = vld [vmem:[%s2950_s1 + $0xa0] ss:$16 sps:$4 sm:$0xff]  }
   0xc   :  { %831 = vmatprep.subr.bf16.mxu1 %v1937_v11  ;;  %871 = vmatpush1.bf16.msra.mxu0 %v1936_v12  ;;  %v1952_v21 = vld [vmem:[%s2950_s1 + $0x2a4] ss:$16 sps:$4 sm:$0xff]   ;;  %v1954_v24 = vld [vmem:[%s2950_s1 + $0x2a0] ss:$16 sps:$4 sm:$0xff]   ;;  %v2018_v11 = vld [vmem:[%s2950_s1 + $0x28] ss:$16 sps:$4 sm:$0xff]  }
   0xd   :  { %872 = vmatprep.subr.bf16.mxu0 %v1940_v13  ;;  %v1955_v23 = vld [vmem:[%s2950_s1 + $0xc4] ss:$16 sps:$4 sm:$0xff]   ;;  %v1957_v26 = vld [vmem:[%s2950_s1 + $0xc0] ss:$16 sps:$4 sm:$0xff]   ;;  %v2023_v12 = vld [vmem:[%s2950_s1 + $0x4c] ss:$16 sps:$4 sm:$0xff]  }
   0xe   :  { %v1958_v25 = vld [vmem:[%s2950_s1 + $0x2c4] ss:$16 sps:$4 sm:$0xff]   ;;  %v1960_v28 = vld [vmem:[%s2950_s1 + $0x2c0] ss:$16 sps:$4 sm:$0xff]   ;;  %v2021_v13 = vld [vmem:[%s2950_s1 + $0x48] ss:$16 sps:$4 sm:$0xff]  }
   0xf   :  { %832 = vmatpush1.bf16.msra.mxu1 %v1939_v14  ;;  %v1961_v27 = vld [vmem:[%s2950_s1 + $0xe4] ss:$16 sps:$4 sm:$0xff]   ;;  %v1963_v30 = vld [vmem:[%s2950_s1 + $0xe0] ss:$16 sps:$4 sm:$0xff]   ;;  %v2026_v14 = vld [vmem:[%s2950_s1 + $0x6c] ss:$16 sps:$4 sm:$0xff]  }
  0x10   :  { %833 = vmatprep.subr.bf16.mxu1 %v1943_v15  ;;  %873 = vmatpush1.bf16.msra.mxu0 %v1942_v16  ;;  %v1964_v29 = vld [vmem:[%s2950_s1 + $0x2e4] ss:$16 sps:$4 sm:$0xff]   ;;  %v1966_v32 = vld [vmem:[%s2950_s1 + $0x2e0] ss:$16 sps:$4 sm:$0xff]   ;;  %v2024_v15 = vld [vmem:[%s2950_s1 + $0x68] ss:$16 sps:$4 sm:$0xff]  }
  0x11   :  { %874 = vmatprep.subr.bf16.mxu0 %v1946_v17  ;;  %v1967_v31 = vld [vmem:[%s2950_s1 + $0x104] ss:$16 sps:$4 sm:$0xff]   ;;  %v1969_v34 = vld [vmem:[%s2950_s1 + $0x100] ss:$16 sps:$4 sm:$0xff]   ;;  %v2029_v16 = vld [vmem:[%s2950_s1 + $0x8c] ss:$16 sps:$4 sm:$0xff]  }
  0x12   :  { %v1970_v33 = vld [vmem:[%s2950_s1 + $0x304] ss:$16 sps:$4 sm:$0xff]   ;;  %v1972_v36 = vld [vmem:[%s2950_s1 + $0x300] ss:$16 sps:$4 sm:$0xff]   ;;  %v2027_v17 = vld [vmem:[%s2950_s1 + $0x88] ss:$16 sps:$4 sm:$0xff]  }
  0x13   :  { %834 = vmatpush1.bf16.msra.mxu1 %v1945_v18  ;;  %v1973_v35 = vld [vmem:[%s2950_s1 + $0x124] ss:$16 sps:$4 sm:$0xff]   ;;  %v1975_v38 = vld [vmem:[%s2950_s1 + $0x120] ss:$16 sps:$4 sm:$0xff]   ;;  %v2032_v18 = vld [vmem:[%s2950_s1 + $0xac] ss:$16 sps:$4 sm:$0xff]  }
  0x14   :  { %835 = vmatprep.subr.bf16.mxu1 %v1949_v19  ;;  %875 = vmatpush1.bf16.msra.mxu0 %v1948_v20  ;;  %v1976_v37 = vld [vmem:[%s2950_s1 + $0x324] ss:$16 sps:$4 sm:$0xff]   ;;  %v1978_v40 = vld [vmem:[%s2950_s1 + $0x320] ss:$16 sps:$4 sm:$0xff]   ;;  %v2030_v19 = vld [vmem:[%s2950_s1 + $0xa8] ss:$16 sps:$4 sm:$0xff]  }
  0x15   :  { %876 = vmatprep.subr.bf16.mxu0 %v1952_v21  ;;  %v1979_v39 = vld [vmem:[%s2950_s1 + $0x144] ss:$16 sps:$4 sm:$0xff]   ;;  %v1981_v42 = vld [vmem:[%s2950_s1 + $0x140] ss:$16 sps:$4 sm:$0xff]   ;;  %v2035_v20 = vld [vmem:[%s2950_s1 + $0xcc] ss:$16 sps:$4 sm:$0xff]  }
  0x16   :  { %v1982_v41 = vld [vmem:[%s2950_s1 + $0x344] ss:$16 sps:$4 sm:$0xff]   ;;  %v1984_v44 = vld [vmem:[%s2950_s1 + $0x340] ss:$16 sps:$4 sm:$0xff]   ;;  %v2033_v21 = vld [vmem:[%s2950_s1 + $0xc8] ss:$16 sps:$4 sm:$0xff]  }
  0x17   :  { %836 = vmatpush1.bf16.msra.mxu1 %v1951_v22  ;;  %v1985_v43 = vld [vmem:[%s2950_s1 + $0x164] ss:$16 sps:$4 sm:$0xff]   ;;  %v1987_v47 = vld [vmem:[%s2950_s1 + $0x160] ss:$16 sps:$4 sm:$0xff]  }
  0x18   :  { %837 = vmatprep.subr.bf16.mxu1 %v1955_v23  ;;  %877 = vmatpush1.bf16.msra.mxu0 %v1954_v24  ;;  %v1988_v45 = vld [vmem:[%s2950_s1 + $0x364] ss:$16 sps:$4 sm:$0xff]   ;;  %v1990_v51 = vld [vmem:[%s2950_s1 + $0x360] ss:$16 sps:$4 sm:$0xff]   ;;  %v2038_v24 = vld [vmem:[%s2950_s1 + $0xec] ss:$16 sps:$4 sm:$0xff]  }
  0x19   :  { %878 = vmatprep.subr.bf16.mxu0 %v1958_v25  ;;  %v1991_v49 = vld [vmem:[%s2950_s1 + $0x184] ss:$16 sps:$4 sm:$0xff]   ;;  %v1993_v54 = vld [vmem:[%s2950_s1 + $0x180] ss:$16 sps:$4 sm:$0xff]  }
  0x1a   :  { %v1994_v53 = vld [vmem:[%s2950_s1 + $0x384] ss:$16 sps:$4 sm:$0xff]   ;;  %v1996_v56 = vld [vmem:[%s2950_s1 + $0x380] ss:$16 sps:$4 sm:$0xff]  }
  0x1b   :  { %838 = vmatpush1.bf16.msra.mxu1 %v1957_v26  ;;  %v1997_v55 = vld [vmem:[%s2950_s1 + $0x1a4] ss:$16 sps:$4 sm:$0xff]   ;;  %v1999_v58 = vld [vmem:[%s2950_s1 + $0x1a0] ss:$16 sps:$4 sm:$0xff]  }
  0x1c   :  { %839 = vmatprep.subr.bf16.mxu1 %v1961_v27  ;;  %879 = vmatpush1.bf16.msra.mxu0 %v1960_v28  ;;  %v2000_v57 = vld [vmem:[%s2950_s1 + $0x3a4] ss:$16 sps:$4 sm:$0xff]   ;;  %v2002_v60 = vld [vmem:[%s2950_s1 + $0x3a0] ss:$16 sps:$4 sm:$0xff]   ;;  %v2036_v27 = vld [vmem:[%s2950_s1 + $0xe8] ss:$16 sps:$4 sm:$0xff]  }
  0x1d   :  { %880 = vmatprep.subr.bf16.mxu0 %v1964_v29  ;;  %v2003_v59 = vld [vmem:[%s2950_s1 + $0x1c4] ss:$16 sps:$4 sm:$0xff]   ;;  %v2005_v62 = vld [vmem:[%s2950_s1 + $0x1c0] ss:$16 sps:$4 sm:$0xff]   ;;  %v2041_v29 = vld [vmem:[%s2950_s1 + $0x10c] ss:$16 sps:$4 sm:$0xff]  }
  0x1e   :  { %v2006_v61 = vld [vmem:[%s2950_s1 + $0x3c4] ss:$16 sps:$4 sm:$0xff]   ;;  %v2008_v0 = vld [vmem:[%s2950_s1 + $0x3c0] ss:$16 sps:$4 sm:$0xff]  }
  0x1f   :  { %840 = vmatpush1.bf16.msra.mxu1 %v1963_v30  ;;  %v2009_v63 = vld [vmem:[%s2950_s1 + $0x1e4] ss:$16 sps:$4 sm:$0xff]   ;;  %v2011_v1 = vld [vmem:[%s2950_s1 + $0x1e0] ss:$16 sps:$4 sm:$0xff]  }
  0x20   :  { %841 = vmatprep.subr.bf16.mxu1 %v1967_v31  ;;  %881 = vmatpush1.bf16.msra.mxu0 %v1966_v32  ;;  %v2012_v2 = vld [vmem:[%s2950_s1 + $0x3e4] ss:$16 sps:$4 sm:$0xff]   ;;  %v2014_v3 = vld [vmem:[%s2950_s1 + $0x3e0] ss:$16 sps:$4 sm:$0xff]   ;;  %v2039_v31 = vld [vmem:[%s2950_s1 + $0x108] ss:$16 sps:$4 sm:$0xff]  }
  0x21   :  { %882 = vmatprep.subr.bf16.mxu0 %v1970_v33  ;;  %v27_v4 = vld [vmem:[%s2951_s0] sm:$0xff]  ;;  %v29_v6 = vld [vmem:[%s2951_s0 + $0x10] sm:$0xff]  ;;  %v2044_v33 = vld [vmem:[%s2950_s1 + $0x12c] ss:$16 sps:$4 sm:$0xff]  }
  0x22   :  { %v2477_v7 = vpack.c.bf16 %v27_v4, %v27_v4  ;;  %v2482_v9 = vpack.c.bf16 %v29_v6, %v29_v6  ;;  %v2111_v22 = vld [vmem:[%s2952_s3] ss:$8 sps:$4 sm:$0xff]   ;;  %v2113_v23 = vld [vmem:[%s2952_s3 + $0x4] ss:$8 sps:$4 sm:$0xff]   ;;  %v2116_v25 = vld [vmem:[%s2952_s3 + $0x14] ss:$8 sps:$4 sm:$0xff]  }
  0x23   :  { %842 = vmatpush1.bf16.msra.mxu1 %v1969_v34  ;;  %v2114_v26 = vld [vmem:[%s2952_s3 + $0x10] ss:$8 sps:$4 sm:$0xff]   ;;  %v2119_v28 = vld [vmem:[%s2952_s3 + $0x24] ss:$8 sps:$4 sm:$0xff]   ;;  %v2117_v30 = vld [vmem:[%s2952_s3 + $0x20] ss:$8 sps:$4 sm:$0xff]  }
  0x24   :  { %843 = vmatprep.subr.bf16.mxu1 %v1973_v35  ;;  %883 = vmatpush1.bf16.msra.mxu0 %v1972_v36  ;;  %v2122_v32 = vld [vmem:[%s2952_s3 + $0x34] ss:$8 sps:$4 sm:$0xff]   ;;  %v2120_v34 = vld [vmem:[%s2952_s3 + $0x30] ss:$8 sps:$4 sm:$0xff]   ;;  %v2125_v36 = vld [vmem:[%s2952_s3 + $0x44] ss:$8 sps:$4 sm:$0xff]  }
  0x25   :  { %884 = vmatprep.subr.bf16.mxu0 %v1976_v37  ;;  %v2042_v35 = vld [vmem:[%s2950_s1 + $0x128] ss:$16 sps:$4 sm:$0xff]   ;;  %v2047_v37 = vld [vmem:[%s2950_s1 + $0x14c] ss:$16 sps:$4 sm:$0xff]  }
  0x26   :  { %v2129_v46 = vld [vmem:[%s2952_s3 + $0x60] ss:$8 sps:$4 sm:$0xff]   ;;  %v2132_v50 = vld [vmem:[%s2952_s3 + $0x70] ss:$8 sps:$4 sm:$0xff]   ;;  %v2071_v6 = vld [vmem:[%s2950_s1 + $0x24c] ss:$16 sps:$4 sm:$0xff]  }
  0x27   :  { %844 = vmatpush1.bf16.msra.mxu1 %v1975_v38  ;;  %v2123_v38 = vld [vmem:[%s2952_s3 + $0x40] ss:$8 sps:$4 sm:$0xff]  }
  0x28   :  { %845 = vmatprep.subr.bf16.mxu1 %v1979_v39  ;;  %885 = vmatpush1.bf16.msra.mxu0 %v1978_v40  ;;  %v2045_v39 = vld [vmem:[%s2950_s1 + $0x148] ss:$16 sps:$4 sm:$0xff]   ;;  %v2128_v40 = vld [vmem:[%s2952_s3 + $0x54] ss:$8 sps:$4 sm:$0xff]  }
  0x29   :  { %886 = vmatprep.subr.bf16.mxu0 %v1982_v41  ;;  %v2050_v41 = vld [vmem:[%s2950_s1 + $0x16c] ss:$16 sps:$4 sm:$0xff]   ;;  %v2066_v4 = vld [vmem:[%s2950_s1 + $0x228] ss:$16 sps:$4 sm:$0xff]  }
  0x2b   :  { %846 = vmatpush1.bf16.msra.mxu1 %v1981_v42  ;;  %v2048_v42 = vld [vmem:[%s2950_s1 + $0x168] ss:$16 sps:$4 sm:$0xff]  }
  0x2c   :  { %847 = vmatprep.subr.bf16.mxu1 %v1985_v43  ;;  %887 = vmatpush1.bf16.msra.mxu0 %v1984_v44  ;;  %v2126_v43 = vld [vmem:[%s2952_s3 + $0x50] ss:$8 sps:$4 sm:$0xff]   ;;  %v2131_v44 = vld [vmem:[%s2952_s3 + $0x64] ss:$8 sps:$4 sm:$0xff]  }
  0x2d   :  { %888 = vmatprep.subr.bf16.mxu0 %v1988_v45  ;;  %v2053_v45 = vld [vmem:[%s2950_s1 + $0x18c] ss:$16 sps:$4 sm:$0xff]  }
  0x2f   :  { %848 = vmatpush1.bf16.msra.mxu1 %v1987_v47  ;;  %v2051_v47 = vld [vmem:[%s2950_s1 + $0x188] ss:$16 sps:$4 sm:$0xff]  }
  0x30   :  { %849 = vmatprep.subr.bf16.mxu1 %v1991_v49  ;;  %889 = vmatpush1.bf16.msra.mxu0 %v1990_v51  ;;  %v2056_v49 = vld [vmem:[%s2950_s1 + $0x1ac] ss:$16 sps:$4 sm:$0xff]   ;;  %v2054_v51 = vld [vmem:[%s2950_s1 + $0x1a8] ss:$16 sps:$4 sm:$0xff]  }
  0x31   :  { %890 = vmatprep.subr.bf16.mxu0 %v1994_v53  ;;  %v2137_v53 = vld [vmem:[%s2952_s3 + $0x84] ss:$8 sps:$4 sm:$0xff]  }
  0x33   :  { %850 = vmatpush1.bf16.msra.mxu1 %v1993_v54  ;;  %v2059_v54 = vld [vmem:[%s2950_s1 + $0x1cc] ss:$16 sps:$4 sm:$0xff]  }
  0x34   :  { %851 = vmatprep.subr.bf16.mxu1 %v1997_v55  ;;  %891 = vmatpush1.bf16.msra.mxu0 %v1996_v56  ;;  %v2135_v55 = vld [vmem:[%s2952_s3 + $0x80] ss:$8 sps:$4 sm:$0xff]  }
  0x35   :  { %892 = vmatprep.subr.bf16.mxu0 %v2000_v57  ;;  %v2057_v56 = vld [vmem:[%s2950_s1 + $0x1c8] ss:$16 sps:$4 sm:$0xff]   ;;  %v2140_v57 = vld [vmem:[%s2952_s3 + $0x94] ss:$8 sps:$4 sm:$0xff]  }
  0x37   :  { %852 = vmatpush1.bf16.msra.mxu1 %v1999_v58  ;;  %v2062_v58 = vld [vmem:[%s2950_s1 + $0x1ec] ss:$16 sps:$4 sm:$0xff]  }
  0x38   :  { %853 = vmatprep.subr.bf16.mxu1 %v2003_v59  ;;  %893 = vmatpush1.bf16.msra.mxu0 %v2002_v60  ;;  %v2138_v59 = vld [vmem:[%s2952_s3 + $0x90] ss:$8 sps:$4 sm:$0xff]  }
  0x39   :  { %894 = vmatprep.subr.bf16.mxu0 %v2006_v61  ;;  %v2060_v60 = vld [vmem:[%s2950_s1 + $0x1e8] ss:$16 sps:$4 sm:$0xff]   ;;  %v2143_v61 = vld [vmem:[%s2952_s3 + $0xa4] ss:$8 sps:$4 sm:$0xff]  }
  0x3b   :  { %854 = vmatpush1.bf16.msra.mxu1 %v2005_v62  ;;  %v2065_v62 = vld [vmem:[%s2950_s1 + $0x20c] ss:$16 sps:$4 sm:$0xff]  }
  0x3c   :  { %855 = vmatprep.subr.bf16.mxu1 %v2009_v63  ;;  %895 = vmatpush1.bf16.msra.mxu0 %v2008_v0  ;;  %v2141_v63 = vld [vmem:[%s2952_s3 + $0xa0] ss:$8 sps:$4 sm:$0xff]  }
  0x3d   :  { %896 = vmatprep.subr.bf16.mxu0 %v2012_v2  ;;  %v2063_v0 = vld [vmem:[%s2950_s1 + $0x208] ss:$16 sps:$4 sm:$0xff]   ;;  %v2146_v2 = vld [vmem:[%s2952_s3 + $0xb4] ss:$8 sps:$4 sm:$0xff]  }
  0x3f   :  { %856 = vmatpush1.bf16.msra.mxu1 %v2011_v1  ;;  %v2068_v1 = vld [vmem:[%s2950_s1 + $0x22c] ss:$16 sps:$4 sm:$0xff]  }
  0x40   :  { %907 = vmatprep.subr.bf16.mxu1 %v2017_v5  ;;  %897 = vmatpush1.bf16.msra.mxu0 %v2014_v3  ;;  %v2144_v3 = vld [vmem:[%s2952_s3 + $0xb0] ss:$8 sps:$4 sm:$0xff]   ;;  %v2149_v5 = vld [vmem:[%s2952_s3 + $0xc4] ss:$8 sps:$4 sm:$0xff]  }
  0x41   :  { %1393 = vmatprep.subr.bf16.mxu0 %v2113_v23  ;;  %v2084_v23 = vld [vmem:[%s2950_s1 + $0x2e8] ss:$16 sps:$4 sm:$0xff]  }
  0x42   :  { %858 = vmatmul.mubr.bf16.vlgmr.msra.gmra.mrb[0].mxu1 %v2477_v7 }
  0x43   :  { %908 = vmatpush1.bf16.msra.mxu1 %v2015_v8  ;;  %939 = vmatprep.mubr.bf16.mxu1 %v160_v48  ;;  %v2134_v48 = vld [vmem:[%s2952_s3 + $0x74] ss:$8 sps:$4 sm:$0xff]  }
  0x44   :  { %899 = vmatmul.mubr.bf16.vlgmr.msra.gmra.mrb[0].mxu0 %v2482_v9  ;;  %909 = vmatprep.subr.bf16.mxu1 %v2020_v10  ;;  %v2152_v8 = vld [vmem:[%s2952_s3 + $0xd4] ss:$8 sps:$4 sm:$0xff]  }
  0x45   :  { %1394 = vmatpush1.bf16.msra.mxu0 %v2111_v22  ;;  %v2074_v10 = vld [vmem:[%s2950_s1 + $0x26c] ss:$16 sps:$4 sm:$0xff]  }
  0x46   :  { %1395 = vmatprep.subr.bf16.mxu0 %v2116_v25  ;;  %v2158_v22 = vld [vmem:[%s2952_s3 + $0xf4] ss:$8 sps:$4 sm:$0xff]  }
  0x47   :  { %910 = vmatpush1.bf16.msra.mxu1 %v2018_v11  ;;  %v2150_v11 = vld [vmem:[%s2952_s3 + $0xd0] ss:$8 sps:$4 sm:$0xff]   ;;  %v2089_v25 = vld [vmem:[%s2950_s1 + $0x30c] ss:$16 sps:$4 sm:$0xff]  }
  0x48   :  { %911 = vmatprep.subr.bf16.mxu1 %v2023_v12  ;;  %v2072_v12 = vld [vmem:[%s2950_s1 + $0x268] ss:$16 sps:$4 sm:$0xff]  }
  0x49   :  { %1396 = vmatpush1.bf16.msra.mxu0 %v2114_v26  ;;  %v2087_v26 = vld [vmem:[%s2950_s1 + $0x308] ss:$16 sps:$4 sm:$0xff]  }
  0x4a   :  { %1397 = vmatprep.subr.bf16.mxu0 %v2119_v28  ;;  %v2161_v28 = vld [vmem:[%s2952_s3 + $0x104] ss:$8 sps:$4 sm:$0xff]  }
  0x4b   :  { %912 = vmatpush1.bf16.msra.mxu1 %v2021_v13  ;;  %v2077_v13 = vld [vmem:[%s2950_s1 + $0x28c] ss:$16 sps:$4 sm:$0xff]  }
  0x4c   :  { %913 = vmatprep.subr.bf16.mxu1 %v2026_v14  ;;  %v2075_v14 = vld [vmem:[%s2950_s1 + $0x288] ss:$16 sps:$4 sm:$0xff]  }
  0x4d   :  { %1398 = vmatpush1.bf16.msra.mxu0 %v2117_v30  ;;  %v2095_v30 = vld [vmem:[%s2950_s1 + $0x34c] ss:$16 sps:$4 sm:$0xff]  }
  0x4e   :  { %1399 = vmatprep.subr.bf16.mxu0 %v2122_v32  ;;  %v2098_v32 = vld [vmem:[%s2950_s1 + $0x36c] ss:$16 sps:$4 sm:$0xff]  }
  0x4f   :  { %914 = vmatpush1.bf16.msra.mxu1 %v2024_v15  ;;  %v2080_v15 = vld [vmem:[%s2950_s1 + $0x2ac] ss:$16 sps:$4 sm:$0xff]  }
  0x50   :  { %915 = vmatprep.subr.bf16.mxu1 %v2029_v16  ;;  %v2078_v16 = vld [vmem:[%s2950_s1 + $0x2a8] ss:$16 sps:$4 sm:$0xff]  }
  0x51   :  { %1400 = vmatpush1.bf16.msra.mxu0 %v2120_v34  ;;  %v2101_v34 = vld [vmem:[%s2950_s1 + $0x38c] ss:$16 sps:$4 sm:$0xff]  }
  0x52   :  { %1401 = vmatprep.subr.bf16.mxu0 %v2125_v36  ;;  %v2104_v36 = vld [vmem:[%s2950_s1 + $0x3ac] ss:$16 sps:$4 sm:$0xff]  }
  0x53   :  { %916 = vmatpush1.bf16.msra.mxu1 %v2027_v17  ;;  %v2083_v17 = vld [vmem:[%s2950_s1 + $0x2cc] ss:$16 sps:$4 sm:$0xff]  }
  0x54   :  { %917 = vmatprep.subr.bf16.mxu1 %v2032_v18  ;;  %v2155_v18 = vld [vmem:[%s2952_s3 + $0xe4] ss:$8 sps:$4 sm:$0xff]  }
  0x55   :  { %1402 = vmatpush1.bf16.msra.mxu0 %v2123_v38  ;;  %v2107_v38 = vld [vmem:[%s2950_s1 + $0x3cc] ss:$16 sps:$4 sm:$0xff]  }
  0x56   :  { %1403 = vmatprep.subr.bf16.mxu0 %v2128_v40  ;;  %v2110_v40 = vld [vmem:[%s2950_s1 + $0x3ec] ss:$16 sps:$4 sm:$0xff]  }
  0x57   :  { %918 = vmatpush1.bf16.msra.mxu1 %v2030_v19  ;;  %v2081_v19 = vld [vmem:[%s2950_s1 + $0x2c8] ss:$16 sps:$4 sm:$0xff]  }
  0x58   :  { %919 = vmatprep.subr.bf16.mxu1 %v2035_v20  ;;  %v2153_v20 = vld [vmem:[%s2952_s3 + $0xe0] ss:$8 sps:$4 sm:$0xff]  }
  0x59   :  { %1404 = vmatpush1.bf16.msra.mxu0 %v2126_v43 }
  0x5a   :  { %1405 = vmatprep.subr.bf16.mxu0 %v2131_v44 }
  0x5b   :  { %920 = vmatpush1.bf16.msra.mxu1 %v2033_v21  ;;  %v2086_v21 = vld [vmem:[%s2950_s1 + $0x2ec] ss:$16 sps:$4 sm:$0xff]  }
  0x5c   :  { %921 = vmatprep.subr.bf16.mxu1 %v2038_v24  ;;  %v2156_v24 = vld [vmem:[%s2952_s3 + $0xf0] ss:$8 sps:$4 sm:$0xff]  }
  0x5d   :  { %1406 = vmatpush1.bf16.msra.mxu0 %v2129_v46 }
  0x5e   :  { %1407 = vmatprep.subr.bf16.mxu0 %v2134_v48 }
  0x5f   :  { %922 = vmatpush1.bf16.msra.mxu1 %v2036_v27  ;;  %v2092_v27 = vld [vmem:[%s2950_s1 + $0x32c] ss:$16 sps:$4 sm:$0xff]  }
  0x60   :  { %923 = vmatprep.subr.bf16.mxu1 %v2041_v29  ;;  %v2090_v29 = vld [vmem:[%s2950_s1 + $0x328] ss:$16 sps:$4 sm:$0xff]  }
  0x61   :  { %1408 = vmatpush1.bf16.msra.mxu0 %v2132_v50 }
  0x62   :  { %1409 = vmatprep.subr.bf16.mxu0 %v2137_v53 }
  0x63   :  { %924 = vmatpush1.bf16.msra.mxu1 %v2039_v31  ;;  %v2093_v31 = vld [vmem:[%s2950_s1 + $0x348] ss:$16 sps:$4 sm:$0xff]  }
  0x64   :  { %925 = vmatprep.subr.bf16.mxu1 %v2044_v33  ;;  %v2096_v33 = vld [vmem:[%s2950_s1 + $0x368] ss:$16 sps:$4 sm:$0xff]  }
  0x65   :  { %1410 = vmatpush1.bf16.msra.mxu0 %v2135_v55 }
  0x66   :  { %1411 = vmatprep.subr.bf16.mxu0 %v2140_v57 }
  0x67   :  { %926 = vmatpush1.bf16.msra.mxu1 %v2042_v35  ;;  %v2099_v35 = vld [vmem:[%s2950_s1 + $0x388] ss:$16 sps:$4 sm:$0xff]  }
  0x68   :  { %927 = vmatprep.subr.bf16.mxu1 %v2047_v37  ;;  %v2102_v37 = vld [vmem:[%s2950_s1 + $0x3a8] ss:$16 sps:$4 sm:$0xff]  }
  0x69   :  { %1412 = vmatpush1.bf16.msra.mxu0 %v2138_v59 }
  0x6a   :  { %1413 = vmatprep.subr.bf16.mxu0 %v2143_v61 }
  0x6b   :  { %928 = vmatpush1.bf16.msra.mxu1 %v2045_v39  ;;  %v2105_v39 = vld [vmem:[%s2950_s1 + $0x3c8] ss:$16 sps:$4 sm:$0xff]  }
  0x6c   :  { %929 = vmatprep.subr.bf16.mxu1 %v2050_v41  ;;  %v2108_v41 = vld [vmem:[%s2950_s1 + $0x3e8] ss:$16 sps:$4 sm:$0xff]  }
  0x6d   :  { %1414 = vmatpush1.bf16.msra.mxu0 %v2141_v63 }
  0x6e   :  { %1415 = vmatprep.subr.bf16.mxu0 %v2146_v2  ;;  %v2164_v2 = vld [vmem:[%s2952_s3 + $0x114] ss:$8 sps:$4 sm:$0xff]  }
  0x6f   :  { %930 = vmatpush1.bf16.msra.mxu1 %v2048_v42  ;;  %v165_v42 = vlaneseq }
  0x70   :  { %931 = vmatprep.subr.bf16.mxu1 %v2053_v45  ;;  %v2780_v45 = vld [vmem:[%s2953_s2] sm:$0xf] }
  0x71   :  { %1416 = vmatpush1.bf16.msra.mxu0 %v2144_v3  ;;  %v2774_v43 = vshrl.u32 %v165_v42, 7  ;;  %v2162_v3 = vld [vmem:[%s2952_s3 + $0x110] ss:$8 sps:$4 sm:$0xff]   ;;  %v2206_v42 = vld [vmem:[%s2952_s3 + $0x1f4] ss:$8 sps:$4 sm:$0xff]  }
  0x72   :  { %1417 = vmatprep.subr.bf16.mxu0 %v2149_v5  ;;  %v2167_v5 = vld [vmem:[%s2952_s3 + $0x124] ss:$8 sps:$4 sm:$0xff]  }
  0x73   :  { %932 = vmatpush1.bf16.msra.mxu1 %v2051_v47  ;;  %v167_v44 = vsub.s32 0, %v2774_v43  ;;  %v171_v46 = vsub.s32 1, %v2774_v43 }
  0x74   :  { %933 = vmatprep.subr.bf16.mxu1 %v2056_v49 }
  0x75   :  { %v168_v47 = vrot.slane %v2780_v45, %v167_v44 }
  0x77   :  { %934 = vmatpush1.bf16.msra.mxu1 %v2054_v51 }
  0x78   :  { %935 = vmatprep.subr.bf16.mxu1 %v2059_v54 }
  0x7b   :  { %936 = vmatpush1.bf16.msra.mxu1 %v2057_v56 }
  0x7c   :  { %937 = vmatprep.subr.bf16.mxu1 %v2062_v58 }
  0x7f   :  { %938 = vmatpush1.bf16.msra.mxu1 %v2060_v60 }
  0x80   :  { %948 = vmatprep.subr.bf16.mxu1 %v2065_v62 }
  0x82   :  { %940 = vmatmul.mubr.bf16.vlgmr.msra.gmra.mrb[4].mxu1 %v2477_v7  ;;  %v2147_v7 = vld [vmem:[%s2952_s3 + $0xc0] ss:$8 sps:$4 sm:$0xff]  }
  0x83   :  { %949 = vmatpush1.bf16.msra.mxu1 %v2063_v0  ;;  %980 = vmatprep.mubr.bf16.mxu1 %v2420_v52  ;;  %v2069_v52 = vld [vmem:[%s2950_s1 + $0x248] ss:$16 sps:$4 sm:$0xff]  }
  0x84   :  { %950 = vmatprep.subr.bf16.mxu1 %v2068_v1  ;;  %1418 = vmatpush1.bf16.msra.mxu0 %v2147_v7  ;;  %v2159_v1 = vld [vmem:[%s2952_s3 + $0x100] ss:$8 sps:$4 sm:$0xff]  }
  0x85   :  { %1419 = vmatprep.subr.bf16.mxu0 %v2152_v8  ;;  %v2209_v7 = vld [vmem:[%s2954_s5 + $0x48] sm:$0xff]   ;;  %v2211_v8 = vld [vmem:[%s2954_s5 + $0x50] sm:$0xff]  }
  0x87   :  { %951 = vmatpush1.bf16.msra.mxu1 %v2066_v4  ;;  %v2207_v4 = vld [vmem:[%s2954_s5 + $0x40] sm:$0xff]  }
  0x88   :  { %952 = vmatprep.subr.bf16.mxu1 %v2071_v6  ;;  %1420 = vmatpush1.bf16.msra.mxu0 %v2150_v11  ;;  %v2208_v6 = vld [vmem:[%s2954_s5] sm:$0xff]   ;;  %v2170_v11 = vld [vmem:[%s2952_s3 + $0x134] ss:$8 sps:$4 sm:$0xff]  }
  0x89   :  { %1421 = vmatprep.subr.bf16.mxu0 %v2155_v18  ;;  %v2215_v18 = vld [vmem:[%s2954_s5 + $0x60] sm:$0xff]  }
  0x8b   :  { %953 = vmatpush1.bf16.msra.mxu1 %v2069_v52  ;;  %v2210_v52 = vld [vmem:[%s2954_s5 + $0x8] sm:$0xff]  }
  0x8c   :  { %954 = vmatprep.subr.bf16.mxu1 %v2074_v10  ;;  %1422 = vmatpush1.bf16.msra.mxu0 %v2153_v20  ;;  %v2165_v10 = vld [vmem:[%s2952_s3 + $0x120] ss:$8 sps:$4 sm:$0xff]  }
  0x8d   :  { %1423 = vmatprep.subr.bf16.mxu0 %v2158_v22  ;;  %v2216_v20 = vld [vmem:[%s2954_s5 + $0x20] sm:$0xff]   ;;  %v2174_v22 = vld [vmem:[%s2952_s3 + $0x150] ss:$8 sps:$4 sm:$0xff]  }
  0x8f   :  { %955 = vmatpush1.bf16.msra.mxu1 %v2072_v12  ;;  %v2212_v12 = vld [vmem:[%s2954_s5 + $0x10] sm:$0xff]  }
  0x90   :  { %956 = vmatprep.subr.bf16.mxu1 %v2077_v13  ;;  %1424 = vmatpush1.bf16.msra.mxu0 %v2156_v24  ;;  %v2213_v13 = vld [vmem:[%s2954_s5 + $0x58] sm:$0xff]   ;;  %v2218_v24 = vld [vmem:[%s2954_s5 + $0x28] sm:$0xff]  }
  0x91   :  { %1434 = vmatprep.subr.bf16.mxu0 %v2161_v28  ;;  %v2185_v28 = vld [vmem:[%s2952_s3 + $0x184] ss:$8 sps:$4 sm:$0xff]  }
  0x93   :  { %957 = vmatpush1.bf16.msra.mxu1 %v2075_v14  ;;  %v2168_v14 = vld [vmem:[%s2952_s3 + $0x130] ss:$8 sps:$4 sm:$0xff]  }
  0x94   :  { %958 = vmatprep.subr.bf16.mxu1 %v2080_v15  ;;  %v2173_v15 = vld [vmem:[%s2952_s3 + $0x144] ss:$8 sps:$4 sm:$0xff]  }
  0x97   :  { %959 = vmatpush1.bf16.msra.mxu1 %v2078_v16  ;;  %v2214_v16 = vld [vmem:[%s2954_s5 + $0x18] sm:$0xff]  }
  0x98   :  { %960 = vmatprep.subr.bf16.mxu1 %v2083_v17  ;;  %v2171_v17 = vld [vmem:[%s2952_s3 + $0x140] ss:$8 sps:$4 sm:$0xff]  }
  0x9b   :  { %961 = vmatpush1.bf16.msra.mxu1 %v2081_v19  ;;  %v2176_v19 = vld [vmem:[%s2952_s3 + $0x154] ss:$8 sps:$4 sm:$0xff]  }
  0x9c   :  { %962 = vmatprep.subr.bf16.mxu1 %v2086_v21  ;;  %v2217_v21 = vld [vmem:[%s2954_s5 + $0x68] sm:$0xff]  }
  0x9f   :  { %963 = vmatpush1.bf16.msra.mxu1 %v2084_v23  ;;  %v2179_v23 = vld [vmem:[%s2952_s3 + $0x164] ss:$8 sps:$4 sm:$0xff]  }
  0xa0   :  { %964 = vmatprep.subr.bf16.mxu1 %v2089_v25  ;;  %v2177_v25 = vld [vmem:[%s2952_s3 + $0x160] ss:$8 sps:$4 sm:$0xff]  }
  0xa3   :  { %965 = vmatpush1.bf16.msra.mxu1 %v2087_v26  ;;  %v2182_v26 = vld [vmem:[%s2952_s3 + $0x174] ss:$8 sps:$4 sm:$0xff]  }
  0xa4   :  { %966 = vmatprep.subr.bf16.mxu1 %v2092_v27  ;;  %v2180_v27 = vld [vmem:[%s2952_s3 + $0x170] ss:$8 sps:$4 sm:$0xff]  }
  0xa7   :  { %967 = vmatpush1.bf16.msra.mxu1 %v2090_v29  ;;  %v2183_v29 = vld [vmem:[%s2952_s3 + $0x180] ss:$8 sps:$4 sm:$0xff]  }
  0xa8   :  { %968 = vmatprep.subr.bf16.mxu1 %v2095_v30  ;;  %v2188_v30 = vld [vmem:[%s2952_s3 + $0x194] ss:$8 sps:$4 sm:$0xff]  }
  0xab   :  { %969 = vmatpush1.bf16.msra.mxu1 %v2093_v31  ;;  %v2186_v31 = vld [vmem:[%s2952_s3 + $0x190] ss:$8 sps:$4 sm:$0xff]  }
  0xac   :  { %970 = vmatprep.subr.bf16.mxu1 %v2098_v32  ;;  %v2191_v32 = vld [vmem:[%s2952_s3 + $0x1a4] ss:$8 sps:$4 sm:$0xff]  }
  0xaf   :  { %971 = vmatpush1.bf16.msra.mxu1 %v2096_v33  ;;  %v2189_v33 = vld [vmem:[%s2952_s3 + $0x1a0] ss:$8 sps:$4 sm:$0xff]  }
  0xb0   :  { %972 = vmatprep.subr.bf16.mxu1 %v2101_v34  ;;  %v2194_v34 = vld [vmem:[%s2952_s3 + $0x1b4] ss:$8 sps:$4 sm:$0xff]  }
  0xb3   :  { %973 = vmatpush1.bf16.msra.mxu1 %v2099_v35  ;;  %v2192_v35 = vld [vmem:[%s2952_s3 + $0x1b0] ss:$8 sps:$4 sm:$0xff]  }
  0xb4   :  { %974 = vmatprep.subr.bf16.mxu1 %v2104_v36  ;;  %v2197_v36 = vld [vmem:[%s2952_s3 + $0x1c4] ss:$8 sps:$4 sm:$0xff]  }
  0xb7   :  { %975 = vmatpush1.bf16.msra.mxu1 %v2102_v37  ;;  %v2195_v37 = vld [vmem:[%s2952_s3 + $0x1c0] ss:$8 sps:$4 sm:$0xff]  }
  0xb8   :  { %976 = vmatprep.subr.bf16.mxu1 %v2107_v38  ;;  %v2200_v38 = vld [vmem:[%s2952_s3 + $0x1d4] ss:$8 sps:$4 sm:$0xff]  }
  0xbb   :  { %977 = vmatpush1.bf16.msra.mxu1 %v2105_v39  ;;  %v2198_v39 = vld [vmem:[%s2952_s3 + $0x1d0] ss:$8 sps:$4 sm:$0xff]  }
  0xbc   :  { %978 = vmatprep.subr.bf16.mxu1 %v2110_v40  ;;  %v2203_v40 = vld [vmem:[%s2952_s3 + $0x1e4] ss:$8 sps:$4 sm:$0xff]  }
  0xbf   :  { %979 = vmatpush1.bf16.msra.mxu1 %v2108_v41  ;;  %v2201_v41 = vld [vmem:[%s2952_s3 + $0x1e0] ss:$8 sps:$4 sm:$0xff]  }
  0xc0   :  { %1881 = vmatprep.subr.bf16.mxu1 %v2207_v4 }
  0xc2   :  { %981 = vmatmul.mubr.bf16.vlgmr.msra.gmra.mrb[4].mxu1 %v2482_v9  ;;  %v172_v9 = vrot.slane %v2780_v45, %v171_v46 }
  0xc3   :  { %1882 = vmatpush3.bf16.msra.mxu1 %v2208_v6 }
  0xc4   :  { %1883 = vmatprep.subr.bf16.mxu1 %v2209_v7 }
  0xc7   :  { %1884 = vmatpush3.bf16.msra.mxu1 %v2210_v52 }
  0xc8   :  { %1885 = vmatprep.subr.bf16.mxu1 %v2211_v8 }
  0xcb   :  { %1886 = vmatpush3.bf16.msra.mxu1 %v2212_v12 }
  0xcc   :  { %1887 = vmatprep.subr.bf16.mxu1 %v2213_v13 }
  0xcf   :  { %1888 = vmatpush3.bf16.msra.mxu1 %v2214_v16 }
  0xd0   :  { %1889 = vmatprep.subr.bf16.mxu1 %v2215_v18 }
  0xd3   :  { %1890 = vmatpush3.bf16.msra.mxu1 %v2216_v20 }
  0xd4   :  { %1891 = vmatprep.subr.bf16.mxu1 %v2217_v21 }
  0xd7   :  { %1892 = vmatpush3.bf16.msra.mxu1 %v2218_v24 }
 0x115   :  { %v859_v48 = vpop.f32.mrb[0].mxu1 }
 0x116   :  { %v860_v49 = vadd.f32 %v859_v48, %v168_v47  ;;  %v861_v50 = vpop.f32.mrb[1].mxu1  ;;  %v2204_v47 = vld [vmem:[%s2952_s3 + $0x1f0] ss:$8 sps:$4 sm:$0xff]   ;;  %v179_v48 = vsub.s32 3, %v2774_v43 }
 0x117   :  { %v862_v51 = vadd.f32 %v861_v50, %v172_v9  ;;  %v863_v53 = vpop.f32.mrb[2].mxu1  ;;  %v900_v54 = vpop.f32.mrb[0].mxu0  ;;  %v175_v9 = vsub.s32 2, %v2774_v43 }
 0x118   :  { %v901_v55 = vadd.f32 %v900_v54, %v860_v49  ;;  %v864_v56 = vpop.f32.mrb[3].mxu1  ;;  %v902_v57 = vpop.f32.mrb[1].mxu0  ;;  %v180_v50 = vrot.slane %v2780_v45, %v179_v48 }
 0x119   :  { %v903_v58 = vadd.f32 %v902_v57, %v862_v51  ;;  %v904_v59 = vpop.f32.mrb[2].mxu0  ;;  %v176_v49 = vrot.slane %v2780_v45, %v175_v9  ;;  %v2220_v45 = vld [vmem:[%s2954_s5 + $0x30] sm:$0xff]  }
 0x11a   :  { %v989_v60 = vmax.f32 %v901_v55, 0.0  ;;  %v905_v61 = vpop.f32.mrb[3].mxu0 }
 0x11b   :  { %v990_v62 = vmax.f32 %v903_v58, 0.0 }
 0x11c   :  { %v1057_v63 = vpack.c.bf16 %v989_v60, %v989_v60 }
 0x11d   :  { %v1058_v0 = vpack.c.bf16 %v990_v62, %v990_v62  ;;  %v2219_v62 = vld [vmem:[%s2954_s5 + $0x70] sm:$0xff]  }
 0x11e   :  { %1893 = vmatprep.subr.bf16.mxu1 %v2219_v62 }
 0x11f   :  { %1425 = vmatprep.mubr.bf16.mxu0 %v1058_v0  ;;  %1894 = vmatpush3.bf16.msra.mxu1 %v2220_v45  ;;  %v2222_v0 = vld [vmem:[%s2954_s5 + $0x38] sm:$0xff]  }
 0x120   :  { %1426 = vmatmul.mubr.bf16.vlgmr.msra.gmra.mrb[4].mxu0 %v1057_v63  ;;  %v2221_v63 = vld [vmem:[%s2954_s5 + $0x78] sm:$0xff]  }
 0x121   :  { %1435 = vmatpush1.bf16.msra.mxu0 %v2159_v1  ;;  %1895 = vmatprep.subr.bf16.mxu1 %v2221_v63  ;;  %v1061_v1 = vld [vmem:[%s2955_s4] sm:$0x3] }
 0x122   :  { %1436 = vmatprep.subr.bf16.mxu0 %v2164_v2  ;;  %v1066_v2 = vrot.slane %v1061_v1, %v167_v44  ;;  %v1864_v44 = vld [vmem:[%s2956_s6] ss:$0 sm:$0xff] }
 0x123   :  { %1896 = vmatpush3.bf16.msra.mxu1 %v2222_v0 }
 0x125   :  { %1437 = vmatpush1.bf16.msra.mxu0 %v2162_v3  ;;  %v1070_v3 = vrot.slane %v1061_v1, %v171_v46 }
 0x126   :  { %1438 = vmatprep.subr.bf16.mxu0 %v2167_v5 }
 0x129   :  { %1439 = vmatpush1.bf16.msra.mxu0 %v2165_v10 }
 0x12a   :  { %1440 = vmatprep.subr.bf16.mxu0 %v2170_v11 }
 0x12d   :  { %1441 = vmatpush1.bf16.msra.mxu0 %v2168_v14 }
 0x12e   :  { %1442 = vmatprep.subr.bf16.mxu0 %v2173_v15 }
 0x131   :  { %1443 = vmatpush1.bf16.msra.mxu0 %v2171_v17 }
 0x132   :  { %1444 = vmatprep.subr.bf16.mxu0 %v2176_v19 }
 0x135   :  { %1445 = vmatpush1.bf16.msra.mxu0 %v2174_v22 }
 0x136   :  { %1446 = vmatprep.subr.bf16.mxu0 %v2179_v23 }
 0x139   :  { %1447 = vmatpush1.bf16.msra.mxu0 %v2177_v25 }
 0x13a   :  { %1448 = vmatprep.subr.bf16.mxu0 %v2182_v26 }
 0x13d   :  { %1449 = vmatpush1.bf16.msra.mxu0 %v2180_v27 }
 0x13e   :  { %1450 = vmatprep.subr.bf16.mxu0 %v2185_v28 }
 0x141   :  { %1451 = vmatpush1.bf16.msra.mxu0 %v2183_v29 }
 0x142   :  { %1452 = vmatprep.subr.bf16.mxu0 %v2188_v30 }
 0x145   :  { %1453 = vmatpush1.bf16.msra.mxu0 %v2186_v31 }
 0x146   :  { %1454 = vmatprep.subr.bf16.mxu0 %v2191_v32 }
 0x149   :  { %1455 = vmatpush1.bf16.msra.mxu0 %v2189_v33 }
 0x14a   :  { %1456 = vmatprep.subr.bf16.mxu0 %v2194_v34 }
 0x14d   :  { %1457 = vmatpush1.bf16.msra.mxu0 %v2192_v35 }
 0x14e   :  { %1458 = vmatprep.subr.bf16.mxu0 %v2197_v36 }
 0x151   :  { %1459 = vmatpush1.bf16.msra.mxu0 %v2195_v37 }
 0x152   :  { %1460 = vmatprep.subr.bf16.mxu0 %v2200_v38 }
 0x155   :  { %1461 = vmatpush1.bf16.msra.mxu0 %v2198_v39 }
 0x156   :  { %1462 = vmatprep.subr.bf16.mxu0 %v2203_v40 }
 0x159   :  { %1463 = vmatpush1.bf16.msra.mxu0 %v2201_v41 }
 0x15a   :  { %1464 = vmatprep.subr.bf16.mxu0 %v2206_v42 }
 0x15d   :  { %1465 = vmatpush1.bf16.msra.mxu0 %v2204_v47 }
 0x195   :  { %v982_v51 = vpop.f32.mrb[4].mxu1 }
 0x196   :  { %v1907_v53 = vadd.f32 %v982_v51, %v176_v49  ;;  %v984_v54 = vpop.f32.mrb[5].mxu1 }
 0x197   :  { %v1908_v55 = vadd.f32 %v984_v54, %v180_v50  ;;  %v986_v56 = vpop.f32.mrb[6].mxu1 }
 0x198   :  { %v991_v57 = vmax.f32 %v1907_v53, 0.0  ;;  %v987_v58 = vpop.f32.mrb[7].mxu1 }
 0x199   :  { %v992_v59 = vmax.f32 %v1908_v55, 0.0 }
 0x19a   :  { %v1059_v61 = vpack.c.bf16 %v991_v57, %v991_v57 }
 0x19b   :  { %v1060_v60 = vpack.c.bf16 %v992_v59, %v992_v59 }
 0x19d   :  { %1466 = vmatprep.mubr.bf16.mxu0 %v1060_v60 }
 0x19e   :  { %1467 = vmatmul.mubr.bf16.vlgmr.msra.gmra.mrb[4].mxu0 %v1059_v61 }
 0x271   :  { %v1468_v4 = vpop.f32.mrb[4].mxu0 }
 0x272   :  { %v1909_v5 = vadd.f32 %v1468_v4, %v1066_v2  ;;  %v1470_v6 = vpop.f32.mrb[5].mxu0 }
 0x273   :  { %v1910_v7 = vadd.f32 %v1470_v6, %v1070_v3  ;;  %v1472_v52 = vpop.f32.mrb[6].mxu0 }
 0x274   :  { %v1475_v8 = vmax.f32 %v1909_v5, 0.0  ;;  %v1473_v10 = vpop.f32.mrb[7].mxu0 }
 0x275   :  { %v1476_v11 = vmax.f32 %v1910_v7, 0.0 }
 0x276   :  { %v1509_v13 = vpack.c.bf16 %v1475_v8, %v1475_v8 }
 0x277   :  { %v1510_v12 = vpack.c.bf16 %v1476_v11, %v1476_v11 }
 0x279   :  { %1646 = vmatprep.mubr.bf16.mxu1 %v1510_v12 }
 0x27a   :  { %1647 = vmatmul.mubr.bf16.vlgmr.msra.gmra.mrb[8].mxu1 %v1509_v13 }
 0x34d   :  { %v1897_v14 = vpop.f32.mrb[8].mxu1 }
 0x34e   :  { %v1898_v15 = vpop.f32.mrb[9].mxu1 }
 0x34f   :  { %v1899_v43 = vadd.f32 %v1898_v15, %v1897_v14  ;;  %v1900_v46 = vpop.f32.mrb[10].mxu1 }
 0x350   :  { %v1901_v16 = vpop.f32.mrb[11].mxu1 }
 0x351   :  { %v1649_v17 = vadd.f32 %v1899_v43, %v1864_v44 }
 0x353   :  { %v1655_v18 = vsel %vm1654_vm0, %v1649_v17, -inf }
 0x354   :  { %1656 = vmax.xlane.f32.xlu0 %v1655_v18 }
 0x3e1   :  { %v1657_v19 = vpop.xlane.xlu0 %1656 }
 0x3e2   :  { %v1658_v20 = vsub.f32 %v1649_v17, %v1657_v19 }
 0x3e4   :  { %v1659_v21 = vmul.f32 1.442695, %v1658_v20 }
 0x3e6   :  { %2223 = vpow2.f32 %v1659_v21 }
 0x3f0   :  { %v2224_v22 = vpop.eup %2223 }
 0x3f1   :  { %v1661_v23 = vsel %vm1654_vm0, %v2224_v22, 0.0 }
 0x3f2   :  { %1662 = vadd.xlane.f32.xlu0 %v1661_v23 }
 0x47f   :  { %v1663_v24 = vpop.xlane.xlu0 %1662 }
 0x480   :  { %2225 = vlog2.f32 %v1663_v24 }
 0x48a   :  { %v2226_v25 = vpop.eup %2225 }
 0x48b   :  { %v1665_v26 = vmul.f32 0.6931472, %v2226_v25 }
 0x48d   :  { %v1666_v27 = vsub.f32 %v1658_v20, %v1665_v26 }
 0x48f   :  { %1667 = vst.msk [vmem:[%s2957_s7] sm:$0xff] %vm1654_vm0, %v1666_v27 }

// kernel: pointnet_forward.9
= control target key start
LH: loop header
LB: loop body
LE: loop exit
PB: predicated region body
PF: predicated region fallthrough
CT: control target
= control target key end

     0   :  { %12 = vsyncpa [#allocation3], 0  ;;  %s7739_s24 = smov [#allocation2]   ;;  %s9800_s0 = inlined_call_operand.vmem [shape: f32[8,1024], index: 0, kind: input, shape index: {}]   ;;  %s9801_s1 = inlined_call_operand.hbm [shape: bf16[1024,512], index: 1, kind: input, shape index: {}]   ;;  %s9802_s2 = inlined_call_operand.vmem [shape: f32[1,512], index: 2, kind: input, shape index: {}]   ;;  %s9803_s3 = inlined_call_operand.vmem [shape: bf16[512,256], index: 3, kind: input, shape index: {}]   ;;  %s9804_s4 = inlined_call_operand.vmem [shape: f32[1,256], index: 4, kind: input, shape index: {}]   ;;  %s9805_s5 = inlined_call_operand.vmem [shape: bf16[256,4096], index: 5, kind: input, shape index: {}]   ;;  %s9806_s6 = inlined_call_operand.vmem [shape: f32[1,4096], index: 6, kind: input, shape index: {}]   ;;  %s9807_s7 = inlined_call_operand.vmem [shape: f32[8,4096], index: 7, kind: output, shape index: {}]  }
   0x1   :  { %s20_s25 = sshll.u32 %s7739_s24, 4  ;;  %s7715_s28 = scalar_lea.hbm %s9801_s1, 32768  ;;  %s21_s25 = int_to_ptr.vmem [resolvable:$true] %s20_s25 }
   0x2   :  { %p7716_p0 = scmp.ne.s32.totalorder %s9801_s1, %s7715_s28  ;;  %p7719_p1 = scmp.lt.u32.totalorder %s7715_s28, %s9801_s1 }
   0x4   :  { %p7721_p2 = pnand %p7719_p1, %p7716_p0 }
   0x6   :  { %7724 = shalt.err (!%p7721_p2)
}
   0x7   :  { %s7725_s10 = scalar_lea.vmem %s21_s25, 32768  ;;  %p7730_p4 = scmp.lt.s32.totalorder %s21_s25, %s21_s25 }
   0x8   :  { %p7726_p3 = scmp.ne.s32.totalorder %s21_s25, %s7725_s10  ;;  %p7731_p5 = scmp.lt.s32.totalorder %s7725_s10, %s7725_s10 }
   0xa   :  { %p7732_p6 = por %p7731_p5, %p7730_p4 }
   0xc   :  { %p7733_p7 = pnand %p7732_p6, %p7726_p3 }
   0xe   :  { %7736 = shalt.err (!%p7733_p7)
}
   0xf   :  { %s7740_s11 = smov 256   ;;  %s7741_s12 = smov 16  }
  0x10   :  { %26 = dma.hbm_to_vmem [thread:$0]  %s9801_s1, 32768, %s21_s25, [#allocation3], %s7740_s11, %s7740_s11, %s7741_s12  }
  0x11   :  { %7737 = dma.done.wait [#allocation3], 32768  }
  0x12   :  { %7738 = vsyncadd [#allocation3], 4294934528  ;;  %v7234_v0 = vld [vmem:[#allocation2 + $0x4] ss:$16 sps:$4 sm:$0xff]   ;;  %v7236_v1 = vld [vmem:[#allocation2 + $0xc] ss:$16 sps:$4 sm:$0xff]  }
  0x13   :  { %1614 = vmatprep.subr.bf16.mxu0 %v7234_v0  ;;  %v7238_v2 = vld [vmem:[#allocation2] ss:$16 sps:$4 sm:$0xff]   ;;  %v7239_v3 = vld [vmem:[#allocation2 + $0x8] ss:$16 sps:$4 sm:$0xff]   ;;  %1778 = vmatprep.subr.bf16.mxu1 %v7236_v1  ;;  %v7240_v4 = vld [vmem:[#allocation2 + $0x24] ss:$16 sps:$4 sm:$0xff]  }
  0x14   :  { %1615 = vmatpush1.bf16.msra.mxu0 %v7238_v2  ;;  %1779 = vmatpush1.bf16.msra.mxu1 %v7239_v3  ;;  %v7242_v5 = vld [vmem:[#allocation2 + $0x2c] ss:$16 sps:$4 sm:$0xff]   ;;  %v7244_v6 = vld [vmem:[#allocation2 + $0x20] ss:$16 sps:$4 sm:$0xff]   ;;  %v7245_v7 = vld [vmem:[#allocation2 + $0x28] ss:$16 sps:$4 sm:$0xff]  }
  0x15   :  { %1616 = vmatprep.subr.bf16.mxu0 %v7240_v4  ;;  %1780 = vmatprep.subr.bf16.mxu1 %v7242_v5  ;;  %v7246_v8 = vld [vmem:[#allocation2 + $0x44] ss:$16 sps:$4 sm:$0xff]   ;;  %v7248_v9 = vld [vmem:[#allocation2 + $0x4c] ss:$16 sps:$4 sm:$0xff]   ;;  %v7250_v10 = vld [vmem:[#allocation2 + $0x40] ss:$16 sps:$4 sm:$0xff]  }
  0x16   :  { %v7251_v11 = vld [vmem:[#allocation2 + $0x48] ss:$16 sps:$4 sm:$0xff]   ;;  %v7252_v12 = vld [vmem:[#allocation2 + $0x64] ss:$16 sps:$4 sm:$0xff]   ;;  %v7254_v13 = vld [vmem:[#allocation2 + $0x6c] ss:$16 sps:$4 sm:$0xff]  }
  0x17   :  { %v7256_v14 = vld [vmem:[#allocation2 + $0x60] ss:$16 sps:$4 sm:$0xff]   ;;  %v7257_v15 = vld [vmem:[#allocation2 + $0x68] ss:$16 sps:$4 sm:$0xff]   ;;  %v7258_v16 = vld [vmem:[#allocation2 + $0x84] ss:$16 sps:$4 sm:$0xff]  }
  0x18   :  { %1617 = vmatpush1.bf16.msra.mxu0 %v7244_v6  ;;  %1781 = vmatpush1.bf16.msra.mxu1 %v7245_v7  ;;  %v7260_v17 = vld [vmem:[#allocation2 + $0x8c] ss:$16 sps:$4 sm:$0xff]   ;;  %v7262_v18 = vld [vmem:[#allocation2 + $0x80] ss:$16 sps:$4 sm:$0xff]   ;;  %v7263_v19 = vld [vmem:[#allocation2 + $0x88] ss:$16 sps:$4 sm:$0xff]  }
  0x19   :  { %1618 = vmatprep.subr.bf16.mxu0 %v7246_v8  ;;  %1782 = vmatprep.subr.bf16.mxu1 %v7248_v9  ;;  %v7264_v20 = vld [vmem:[#allocation2 + $0xa4] ss:$16 sps:$4 sm:$0xff]   ;;  %v7266_v21 = vld [vmem:[#allocation2 + $0xac] ss:$16 sps:$4 sm:$0xff]   ;;  %v7268_v22 = vld [vmem:[#allocation2 + $0xa0] ss:$16 sps:$4 sm:$0xff]  }
  0x1a   :  { %v7269_v23 = vld [vmem:[#allocation2 + $0xa8] ss:$16 sps:$4 sm:$0xff]   ;;  %v7270_v24 = vld [vmem:[#allocation2 + $0xc4] ss:$16 sps:$4 sm:$0xff]   ;;  %v7272_v25 = vld [vmem:[#allocation2 + $0xcc] ss:$16 sps:$4 sm:$0xff]  }
  0x1b   :  { %v7274_v26 = vld [vmem:[#allocation2 + $0xc0] ss:$16 sps:$4 sm:$0xff]   ;;  %v7275_v27 = vld [vmem:[#allocation2 + $0xc8] ss:$16 sps:$4 sm:$0xff]   ;;  %v7276_v28 = vld [vmem:[#allocation2 + $0xe4] ss:$16 sps:$4 sm:$0xff]  }
  0x1c   :  { %1619 = vmatpush1.bf16.msra.mxu0 %v7250_v10  ;;  %1783 = vmatpush1.bf16.msra.mxu1 %v7251_v11  ;;  %v7278_v29 = vld [vmem:[#allocation2 + $0xec] ss:$16 sps:$4 sm:$0xff]   ;;  %v7280_v30 = vld [vmem:[#allocation2 + $0xe0] ss:$16 sps:$4 sm:$0xff]   ;;  %v7281_v31 = vld [vmem:[#allocation2 + $0xe8] ss:$16 sps:$4 sm:$0xff]  }
  0x1d   :  { %1620 = vmatprep.subr.bf16.mxu0 %v7252_v12  ;;  %1784 = vmatprep.subr.bf16.mxu1 %v7254_v13  ;;  %v7282_v32 = vld [vmem:[#allocation2 + $0x104] ss:$16 sps:$4 sm:$0xff]   ;;  %v7284_v33 = vld [vmem:[#allocation2 + $0x10c] ss:$16 sps:$4 sm:$0xff]   ;;  %v7286_v34 = vld [vmem:[#allocation2 + $0x100] ss:$16 sps:$4 sm:$0xff]  }
  0x1e   :  { %v7287_v35 = vld [vmem:[#allocation2 + $0x108] ss:$16 sps:$4 sm:$0xff]   ;;  %v7288_v36 = vld [vmem:[#allocation2 + $0x124] ss:$16 sps:$4 sm:$0xff]   ;;  %v7290_v37 = vld [vmem:[#allocation2 + $0x12c] ss:$16 sps:$4 sm:$0xff]  }
  0x1f   :  { %v7292_v38 = vld [vmem:[#allocation2 + $0x120] ss:$16 sps:$4 sm:$0xff]   ;;  %v7293_v39 = vld [vmem:[#allocation2 + $0x128] ss:$16 sps:$4 sm:$0xff]   ;;  %v7294_v40 = vld [vmem:[#allocation2 + $0x144] ss:$16 sps:$4 sm:$0xff]  }
  0x20   :  { %1621 = vmatpush1.bf16.msra.mxu0 %v7256_v14  ;;  %1785 = vmatpush1.bf16.msra.mxu1 %v7257_v15  ;;  %v7296_v41 = vld [vmem:[#allocation2 + $0x14c] ss:$16 sps:$4 sm:$0xff]   ;;  %v7298_v42 = vld [vmem:[#allocation2 + $0x140] ss:$16 sps:$4 sm:$0xff]   ;;  %v7299_v43 = vld [vmem:[#allocation2 + $0x148] ss:$16 sps:$4 sm:$0xff]  }
  0x21   :  { %1622 = vmatprep.subr.bf16.mxu0 %v7258_v16  ;;  %1786 = vmatprep.subr.bf16.mxu1 %v7260_v17  ;;  %v7300_v44 = vld [vmem:[#allocation2 + $0x164] ss:$16 sps:$4 sm:$0xff]   ;;  %v7302_v45 = vld [vmem:[#allocation2 + $0x16c] ss:$16 sps:$4 sm:$0xff]   ;;  %v7304_v47 = vld [vmem:[#allocation2 + $0x160] ss:$16 sps:$4 sm:$0xff]  }
  0x22   :  { %v41_v46 = vld [vmem:[%s9800_s0 + $0x8] sm:$0xff]  ;;  %v7306_v50 = vld [vmem:[#allocation2 + $0x184] ss:$16 sps:$4 sm:$0xff]   ;;  %v7310_v52 = vld [vmem:[#allocation2 + $0x180] ss:$16 sps:$4 sm:$0xff]  }
  0x23   :  { %v305_v48 = vpack.c.bf16 %v41_v46, %v41_v46  ;;  %v7305_v49 = vld [vmem:[#allocation2 + $0x168] ss:$16 sps:$4 sm:$0xff]   ;;  %v7308_v51 = vld [vmem:[#allocation2 + $0x18c] ss:$16 sps:$4 sm:$0xff]   ;;  %v7312_v54 = vld [vmem:[#allocation2 + $0x1a4] ss:$16 sps:$4 sm:$0xff]  }
  0x24   :  { %1623 = vmatpush1.bf16.msra.mxu0 %v7262_v18  ;;  %1787 = vmatpush1.bf16.msra.mxu1 %v7263_v19  ;;  %v7311_v53 = vld [vmem:[#allocation2 + $0x188] ss:$16 sps:$4 sm:$0xff]   ;;  %v7314_v55 = vld [vmem:[#allocation2 + $0x1ac] ss:$16 sps:$4 sm:$0xff]   ;;  %v7316_v56 = vld [vmem:[#allocation2 + $0x1a0] ss:$16 sps:$4 sm:$0xff]  }
  0x25   :  { %1624 = vmatprep.subr.bf16.mxu0 %v7264_v20  ;;  %1788 = vmatprep.subr.bf16.mxu1 %v7266_v21  ;;  %v7317_v57 = vld [vmem:[#allocation2 + $0x1a8] ss:$16 sps:$4 sm:$0xff]   ;;  %v7318_v58 = vld [vmem:[#allocation2 + $0x1c4] ss:$16 sps:$4 sm:$0xff]   ;;  %v7320_v59 = vld [vmem:[#allocation2 + $0x1cc] ss:$16 sps:$4 sm:$0xff]  }
  0x26   :  { %1646 = vmatprep.mubr.bf16.mxu0 %v305_v48  ;;  %1810 = vmatprep.mubr.bf16.mxu1 %v305_v48  ;;  %v7322_v60 = vld [vmem:[#allocation2 + $0x1c0] ss:$16 sps:$4 sm:$0xff]   ;;  %v7323_v61 = vld [vmem:[#allocation2 + $0x1c8] ss:$16 sps:$4 sm:$0xff]   ;;  %v7324_v62 = vld [vmem:[#allocation2 + $0x1e4] ss:$16 sps:$4 sm:$0xff]  }
  0x27   :  { %v7326_v63 = vld [vmem:[#allocation2 + $0x1ec] ss:$16 sps:$4 sm:$0xff]   ;;  %v7328_v0 = vld [vmem:[#allocation2 + $0x1e0] ss:$16 sps:$4 sm:$0xff]   ;;  %v7329_v1 = vld [vmem:[#allocation2 + $0x1e8] ss:$16 sps:$4 sm:$0xff]  }
  0x28   :  { %1625 = vmatpush1.bf16.msra.mxu0 %v7268_v22  ;;  %1789 = vmatpush1.bf16.msra.mxu1 %v7269_v23  ;;  %v40_v2 = vld [vmem:[%s9800_s0] sm:$0xff]  ;;  %v7335_v4 = vld [vmem:[#allocation2 + $0x20c] ss:$16 sps:$4 sm:$0xff]   ;;  %v7333_v7 = vld [vmem:[#allocation2 + $0x208] ss:$16 sps:$4 sm:$0xff]  }
  0x29   :  { %1626 = vmatprep.subr.bf16.mxu0 %v7270_v24  ;;  %1790 = vmatprep.subr.bf16.mxu1 %v7272_v25  ;;  %v7332_v3 = vld [vmem:[#allocation2 + $0x204] ss:$16 sps:$4 sm:$0xff]   ;;  %v304_v5 = vpack.c.bf16 %v40_v2, %v40_v2  ;;  %v7330_v6 = vld [vmem:[#allocation2 + $0x200] ss:$16 sps:$4 sm:$0xff]   ;;  %v7341_v9 = vld [vmem:[#allocation2 + $0x22c] ss:$16 sps:$4 sm:$0xff]  }
  0x2a   :  { %v7338_v8 = vld [vmem:[#allocation2 + $0x224] ss:$16 sps:$4 sm:$0xff]   ;;  %v7336_v10 = vld [vmem:[#allocation2 + $0x220] ss:$16 sps:$4 sm:$0xff]   ;;  %v7339_v11 = vld [vmem:[#allocation2 + $0x228] ss:$16 sps:$4 sm:$0xff]  }
  0x2b   :  { %v7344_v12 = vld [vmem:[#allocation2 + $0x244] ss:$16 sps:$4 sm:$0xff]   ;;  %v7347_v13 = vld [vmem:[#allocation2 + $0x24c] ss:$16 sps:$4 sm:$0xff]   ;;  %v7342_v14 = vld [vmem:[#allocation2 + $0x240] ss:$16 sps:$4 sm:$0xff]  }
  0x2c   :  { %1627 = vmatpush1.bf16.msra.mxu0 %v7274_v26  ;;  %1791 = vmatpush1.bf16.msra.mxu1 %v7275_v27  ;;  %v7345_v15 = vld [vmem:[#allocation2 + $0x248] ss:$16 sps:$4 sm:$0xff]   ;;  %v7350_v16 = vld [vmem:[#allocation2 + $0x264] ss:$16 sps:$4 sm:$0xff]   ;;  %v7353_v17 = vld [vmem:[#allocation2 + $0x26c] ss:$16 sps:$4 sm:$0xff]  }
  0x2d   :  { %1628 = vmatprep.subr.bf16.mxu0 %v7276_v28  ;;  %1792 = vmatprep.subr.bf16.mxu1 %v7278_v29  ;;  %v7348_v18 = vld [vmem:[#allocation2 + $0x260] ss:$16 sps:$4 sm:$0xff]   ;;  %v7351_v19 = vld [vmem:[#allocation2 + $0x268] ss:$16 sps:$4 sm:$0xff]   ;;  %v7356_v20 = vld [vmem:[#allocation2 + $0x284] ss:$16 sps:$4 sm:$0xff]  }
  0x2e   :  { %v7359_v21 = vld [vmem:[#allocation2 + $0x28c] ss:$16 sps:$4 sm:$0xff]   ;;  %v7354_v22 = vld [vmem:[#allocation2 + $0x280] ss:$16 sps:$4 sm:$0xff]   ;;  %v7357_v23 = vld [vmem:[#allocation2 + $0x288] ss:$16 sps:$4 sm:$0xff]  }
  0x2f   :  { %v7362_v24 = vld [vmem:[#allocation2 + $0x2a4] ss:$16 sps:$4 sm:$0xff]   ;;  %v7365_v25 = vld [vmem:[#allocation2 + $0x2ac] ss:$16 sps:$4 sm:$0xff]   ;;  %v7360_v26 = vld [vmem:[#allocation2 + $0x2a0] ss:$16 sps:$4 sm:$0xff]  }
  0x30   :  { %1629 = vmatpush1.bf16.msra.mxu0 %v7280_v30  ;;  %1793 = vmatpush1.bf16.msra.mxu1 %v7281_v31  ;;  %v7363_v27 = vld [vmem:[#allocation2 + $0x2a8] ss:$16 sps:$4 sm:$0xff]   ;;  %v7368_v28 = vld [vmem:[#allocation2 + $0x2c4] ss:$16 sps:$4 sm:$0xff]   ;;  %v7371_v29 = vld [vmem:[#allocation2 + $0x2cc] ss:$16 sps:$4 sm:$0xff]  }
  0x31   :  { %1630 = vmatprep.subr.bf16.mxu0 %v7282_v32  ;;  %1794 = vmatprep.subr.bf16.mxu1 %v7284_v33  ;;  %v43_v30 = vld [vmem:[%s9800_s0 + $0x18] sm:$0xff]  ;;  %v7366_v31 = vld [vmem:[#allocation2 + $0x2c0] ss:$16 sps:$4 sm:$0xff]   ;;  %v7392_v46 = vld [vmem:[#allocation2 + $0x344] ss:$16 sps:$4 sm:$0xff]  }
  0x32   :  { %v307_v32 = vpack.c.bf16 %v43_v30, %v43_v30  ;;  %v7369_v33 = vld [vmem:[#allocation2 + $0x2c8] ss:$16 sps:$4 sm:$0xff]   ;;  %v7390_v48 = vld [vmem:[#allocation2 + $0x340] ss:$16 sps:$4 sm:$0xff]   ;;  %v7422_v2 = vld [vmem:[#allocation2 + $0x3e4] ss:$16 sps:$4 sm:$0xff]  }
  0x33   :  { %v7458_v30 = vld [vmem:[#allocation2 + $0x4a4] ss:$16 sps:$4 sm:$0xff]  }
  0x34   :  { %1631 = vmatpush1.bf16.msra.mxu0 %v7286_v34  ;;  %1795 = vmatpush1.bf16.msra.mxu1 %v7287_v35  ;;  %v7374_v34 = vld [vmem:[#allocation2 + $0x2e4] ss:$16 sps:$4 sm:$0xff]   ;;  %v7377_v35 = vld [vmem:[#allocation2 + $0x2ec] ss:$16 sps:$4 sm:$0xff]  }
  0x35   :  { %1632 = vmatprep.subr.bf16.mxu0 %v7288_v36  ;;  %1796 = vmatprep.subr.bf16.mxu1 %v7290_v37  ;;  %v7372_v36 = vld [vmem:[#allocation2 + $0x2e0] ss:$16 sps:$4 sm:$0xff]   ;;  %v7375_v37 = vld [vmem:[#allocation2 + $0x2e8] ss:$16 sps:$4 sm:$0xff]  }
  0x38   :  { %1633 = vmatpush1.bf16.msra.mxu0 %v7292_v38  ;;  %1797 = vmatpush1.bf16.msra.mxu1 %v7293_v39  ;;  %v7380_v38 = vld [vmem:[#allocation2 + $0x304] ss:$16 sps:$4 sm:$0xff]   ;;  %v7383_v39 = vld [vmem:[#allocation2 + $0x30c] ss:$16 sps:$4 sm:$0xff]  }
  0x39   :  { %1634 = vmatprep.subr.bf16.mxu0 %v7294_v40  ;;  %1798 = vmatprep.subr.bf16.mxu1 %v7296_v41  ;;  %v7378_v40 = vld [vmem:[#allocation2 + $0x300] ss:$16 sps:$4 sm:$0xff]   ;;  %v7381_v41 = vld [vmem:[#allocation2 + $0x308] ss:$16 sps:$4 sm:$0xff]  }
  0x3c   :  { %1635 = vmatpush1.bf16.msra.mxu0 %v7298_v42  ;;  %1799 = vmatpush1.bf16.msra.mxu1 %v7299_v43  ;;  %v7386_v42 = vld [vmem:[#allocation2 + $0x324] ss:$16 sps:$4 sm:$0xff]   ;;  %v7389_v43 = vld [vmem:[#allocation2 + $0x32c] ss:$16 sps:$4 sm:$0xff]  }
  0x3d   :  { %1636 = vmatprep.subr.bf16.mxu0 %v7300_v44  ;;  %1800 = vmatprep.subr.bf16.mxu1 %v7302_v45  ;;  %v7384_v44 = vld [vmem:[#allocation2 + $0x320] ss:$16 sps:$4 sm:$0xff]   ;;  %v7387_v45 = vld [vmem:[#allocation2 + $0x328] ss:$16 sps:$4 sm:$0xff]  }
  0x40   :  { %1637 = vmatpush1.bf16.msra.mxu0 %v7304_v47  ;;  %1801 = vmatpush1.bf16.msra.mxu1 %v7305_v49  ;;  %v7395_v47 = vld [vmem:[#allocation2 + $0x34c] ss:$16 sps:$4 sm:$0xff]   ;;  %v7393_v49 = vld [vmem:[#allocation2 + $0x348] ss:$16 sps:$4 sm:$0xff]  }
  0x41   :  { %1638 = vmatprep.subr.bf16.mxu0 %v7306_v50  ;;  %1802 = vmatprep.subr.bf16.mxu1 %v7308_v51  ;;  %v7398_v50 = vld [vmem:[#allocation2 + $0x364] ss:$16 sps:$4 sm:$0xff]   ;;  %v7401_v51 = vld [vmem:[#allocation2 + $0x36c] ss:$16 sps:$4 sm:$0xff]  }
  0x44   :  { %1639 = vmatpush1.bf16.msra.mxu0 %v7310_v52  ;;  %1803 = vmatpush1.bf16.msra.mxu1 %v7311_v53  ;;  %v7396_v52 = vld [vmem:[#allocation2 + $0x360] ss:$16 sps:$4 sm:$0xff]   ;;  %v7399_v53 = vld [vmem:[#allocation2 + $0x368] ss:$16 sps:$4 sm:$0xff]  }
  0x45   :  { %1640 = vmatprep.subr.bf16.mxu0 %v7312_v54  ;;  %1804 = vmatprep.subr.bf16.mxu1 %v7314_v55  ;;  %v7404_v54 = vld [vmem:[#allocation2 + $0x384] ss:$16 sps:$4 sm:$0xff]   ;;  %v7407_v55 = vld [vmem:[#allocation2 + $0x38c] ss:$16 sps:$4 sm:$0xff]  }
  0x48   :  { %1641 = vmatpush1.bf16.msra.mxu0 %v7316_v56  ;;  %1805 = vmatpush1.bf16.msra.mxu1 %v7317_v57  ;;  %v7402_v56 = vld [vmem:[#allocation2 + $0x380] ss:$16 sps:$4 sm:$0xff]   ;;  %v7405_v57 = vld [vmem:[#allocation2 + $0x388] ss:$16 sps:$4 sm:$0xff]  }
  0x49   :  { %1642 = vmatprep.subr.bf16.mxu0 %v7318_v58  ;;  %1806 = vmatprep.subr.bf16.mxu1 %v7320_v59  ;;  %v7410_v58 = vld [vmem:[#allocation2 + $0x3a4] ss:$16 sps:$4 sm:$0xff]   ;;  %v7413_v59 = vld [vmem:[#allocation2 + $0x3ac] ss:$16 sps:$4 sm:$0xff]  }
  0x4c   :  { %1643 = vmatpush1.bf16.msra.mxu0 %v7322_v60  ;;  %1807 = vmatpush1.bf16.msra.mxu1 %v7323_v61  ;;  %v7408_v60 = vld [vmem:[#allocation2 + $0x3a0] ss:$16 sps:$4 sm:$0xff]   ;;  %v7411_v61 = vld [vmem:[#allocation2 + $0x3a8] ss:$16 sps:$4 sm:$0xff]  }
  0x4d   :  { %1644 = vmatprep.subr.bf16.mxu0 %v7324_v62  ;;  %1808 = vmatprep.subr.bf16.mxu1 %v7326_v63  ;;  %v7416_v62 = vld [vmem:[#allocation2 + $0x3c4] ss:$16 sps:$4 sm:$0xff]   ;;  %v7419_v63 = vld [vmem:[#allocation2 + $0x3cc] ss:$16 sps:$4 sm:$0xff]  }
  0x50   :  { %1645 = vmatpush1.bf16.msra.mxu0 %v7328_v0  ;;  %1809 = vmatpush1.bf16.msra.mxu1 %v7329_v1  ;;  %v7414_v0 = vld [vmem:[#allocation2 + $0x3c0] ss:$16 sps:$4 sm:$0xff]   ;;  %v7417_v1 = vld [vmem:[#allocation2 + $0x3c8] ss:$16 sps:$4 sm:$0xff]  }
  0x51   :  { %1655 = vmatprep.subr.bf16.mxu0 %v7332_v3  ;;  %1819 = vmatprep.subr.bf16.mxu1 %v7335_v4  ;;  %v7425_v3 = vld [vmem:[#allocation2 + $0x3ec] ss:$16 sps:$4 sm:$0xff]   ;;  %v7420_v4 = vld [vmem:[#allocation2 + $0x3e0] ss:$16 sps:$4 sm:$0xff]  }
  0x53   :  { %1647 = vmatmul.mubr.bf16.vlgmr.msra.gmra.mrb[0].mxu0 %v304_v5  ;;  %1811 = vmatmul.mubr.bf16.vlgmr.msra.gmra.mrb[0].mxu1 %v304_v5  ;;  %v7423_v5 = vld [vmem:[#allocation2 + $0x3e8] ss:$16 sps:$4 sm:$0xff]  }
  0x54   :  { %1656 = vmatpush1.bf16.msra.mxu0 %v7330_v6  ;;  %1820 = vmatpush1.bf16.msra.mxu1 %v7333_v7  ;;  %v7428_v6 = vld [vmem:[#allocation2 + $0x404] ss:$16 sps:$4 sm:$0xff]  }
  0x55   :  { %1657 = vmatprep.subr.bf16.mxu0 %v7338_v8  ;;  %1821 = vmatprep.subr.bf16.mxu1 %v7341_v9  ;;  %v42_v7 = vld [vmem:[%s9800_s0 + $0x10] sm:$0xff]  ;;  %v7431_v8 = vld [vmem:[#allocation2 + $0x40c] ss:$16 sps:$4 sm:$0xff]  }
  0x56   :  { %1687 = vmatprep.mubr.bf16.mxu0 %v307_v32  ;;  %1851 = vmatprep.mubr.bf16.mxu1 %v307_v32  ;;  %v7426_v9 = vld [vmem:[#allocation2 + $0x400] ss:$16 sps:$4 sm:$0xff]  }
  0x57   :  { %v7456_v32 = vld [vmem:[#allocation2 + $0x4a0] ss:$16 sps:$4 sm:$0xff]  }
  0x58   :  { %1658 = vmatpush1.bf16.msra.mxu0 %v7336_v10  ;;  %1822 = vmatpush1.bf16.msra.mxu1 %v7339_v11  ;;  %v7429_v10 = vld [vmem:[#allocation2 + $0x408] ss:$16 sps:$4 sm:$0xff]   ;;  %v306_v11 = vpack.c.bf16 %v42_v7, %v42_v7  ;;  %v7521_v7 = vld [vmem:[#allocation2 + $0x5ec] ss:$16 sps:$4 sm:$0xff]  }
  0x59   :  { %1659 = vmatprep.subr.bf16.mxu0 %v7344_v12  ;;  %1823 = vmatprep.subr.bf16.mxu1 %v7347_v13  ;;  %v7434_v12 = vld [vmem:[#allocation2 + $0x424] ss:$16 sps:$4 sm:$0xff]   ;;  %v7437_v13 = vld [vmem:[#allocation2 + $0x42c] ss:$16 sps:$4 sm:$0xff]  }
  0x5c   :  { %1660 = vmatpush1.bf16.msra.mxu0 %v7342_v14  ;;  %1824 = vmatpush1.bf16.msra.mxu1 %v7345_v15  ;;  %v45_v14 = vld [vmem:[%s9800_s0 + $0x28] sm:$0xff] }
  0x5d   :  { %1661 = vmatprep.subr.bf16.mxu0 %v7350_v16  ;;  %1825 = vmatprep.subr.bf16.mxu1 %v7353_v17  ;;  %v309_v15 = vpack.c.bf16 %v45_v14, %v45_v14  ;;  %v7432_v16 = vld [vmem:[#allocation2 + $0x420] ss:$16 sps:$4 sm:$0xff]   ;;  %v7435_v17 = vld [vmem:[#allocation2 + $0x428] ss:$16 sps:$4 sm:$0xff]  }
  0x5e   :  { %v7525_v14 = vld [vmem:[#allocation2 + $0x608] ss:$16 sps:$4 sm:$0xff]  }
  0x60   :  { %1662 = vmatpush1.bf16.msra.mxu0 %v7348_v18  ;;  %1826 = vmatpush1.bf16.msra.mxu1 %v7351_v19  ;;  %v7440_v18 = vld [vmem:[#allocation2 + $0x444] ss:$16 sps:$4 sm:$0xff]   ;;  %v7443_v19 = vld [vmem:[#allocation2 + $0x44c] ss:$16 sps:$4 sm:$0xff]  }
  0x61   :  { %1663 = vmatprep.subr.bf16.mxu0 %v7356_v20  ;;  %1827 = vmatprep.subr.bf16.mxu1 %v7359_v21  ;;  %v7438_v20 = vld [vmem:[#allocation2 + $0x440] ss:$16 sps:$4 sm:$0xff]   ;;  %v7441_v21 = vld [vmem:[#allocation2 + $0x448] ss:$16 sps:$4 sm:$0xff]  }
  0x64   :  { %1664 = vmatpush1.bf16.msra.mxu0 %v7354_v22  ;;  %1828 = vmatpush1.bf16.msra.mxu1 %v7357_v23  ;;  %v7446_v22 = vld [vmem:[#allocation2 + $0x464] ss:$16 sps:$4 sm:$0xff]   ;;  %v7449_v23 = vld [vmem:[#allocation2 + $0x46c] ss:$16 sps:$4 sm:$0xff]  }
  0x65   :  { %1665 = vmatprep.subr.bf16.mxu0 %v7362_v24  ;;  %1829 = vmatprep.subr.bf16.mxu1 %v7365_v25  ;;  %v7444_v24 = vld [vmem:[#allocation2 + $0x460] ss:$16 sps:$4 sm:$0xff]   ;;  %v7447_v25 = vld [vmem:[#allocation2 + $0x468] ss:$16 sps:$4 sm:$0xff]  }
  0x68   :  { %1666 = vmatpush1.bf16.msra.mxu0 %v7360_v26  ;;  %1830 = vmatpush1.bf16.msra.mxu1 %v7363_v27  ;;  %v7452_v26 = vld [vmem:[#allocation2 + $0x484] ss:$16 sps:$4 sm:$0xff]   ;;  %v7455_v27 = vld [vmem:[#allocation2 + $0x48c] ss:$16 sps:$4 sm:$0xff]  }
  0x69   :  { %1667 = vmatprep.subr.bf16.mxu0 %v7368_v28  ;;  %1831 = vmatprep.subr.bf16.mxu1 %v7371_v29  ;;  %v7450_v28 = vld [vmem:[#allocation2 + $0x480] ss:$16 sps:$4 sm:$0xff]   ;;  %v7453_v29 = vld [vmem:[#allocation2 + $0x488] ss:$16 sps:$4 sm:$0xff]  }
  0x6c   :  { %1668 = vmatpush1.bf16.msra.mxu0 %v7366_v31  ;;  %1832 = vmatpush1.bf16.msra.mxu1 %v7369_v33  ;;  %v7461_v31 = vld [vmem:[#allocation2 + $0x4ac] ss:$16 sps:$4 sm:$0xff]   ;;  %v7459_v33 = vld [vmem:[#allocation2 + $0x4a8] ss:$16 sps:$4 sm:$0xff]  }
  0x6d   :  { %1669 = vmatprep.subr.bf16.mxu0 %v7374_v34  ;;  %1833 = vmatprep.subr.bf16.mxu1 %v7377_v35  ;;  %v7464_v34 = vld [vmem:[#allocation2 + $0x4c4] ss:$16 sps:$4 sm:$0xff]   ;;  %v7467_v35 = vld [vmem:[#allocation2 + $0x4cc] ss:$16 sps:$4 sm:$0xff]  }
  0x70   :  { %1670 = vmatpush1.bf16.msra.mxu0 %v7372_v36  ;;  %1834 = vmatpush1.bf16.msra.mxu1 %v7375_v37  ;;  %v7462_v36 = vld [vmem:[#allocation2 + $0x4c0] ss:$16 sps:$4 sm:$0xff]   ;;  %v7465_v37 = vld [vmem:[#allocation2 + $0x4c8] ss:$16 sps:$4 sm:$0xff]  }
  0x71   :  { %1671 = vmatprep.subr.bf16.mxu0 %v7380_v38  ;;  %1835 = vmatprep.subr.bf16.mxu1 %v7383_v39  ;;  %v7470_v38 = vld [vmem:[#allocation2 + $0x4e4] ss:$16 sps:$4 sm:$0xff]   ;;  %v7473_v39 = vld [vmem:[#allocation2 + $0x4ec] ss:$16 sps:$4 sm:$0xff]  }
  0x74   :  { %1672 = vmatpush1.bf16.msra.mxu0 %v7378_v40  ;;  %1836 = vmatpush1.bf16.msra.mxu1 %v7381_v41  ;;  %v7468_v40 = vld [vmem:[#allocation2 + $0x4e0] ss:$16 sps:$4 sm:$0xff]   ;;  %v7471_v41 = vld [vmem:[#allocation2 + $0x4e8] ss:$16 sps:$4 sm:$0xff]  }
  0x75   :  { %1673 = vmatprep.subr.bf16.mxu0 %v7386_v42  ;;  %1837 = vmatprep.subr.bf16.mxu1 %v7389_v43  ;;  %v7476_v42 = vld [vmem:[#allocation2 + $0x504] ss:$16 sps:$4 sm:$0xff]   ;;  %v7479_v43 = vld [vmem:[#allocation2 + $0x50c] ss:$16 sps:$4 sm:$0xff]  }
  0x78   :  { %1674 = vmatpush1.bf16.msra.mxu0 %v7384_v44  ;;  %1838 = vmatpush1.bf16.msra.mxu1 %v7387_v45  ;;  %v7474_v44 = vld [vmem:[#allocation2 + $0x500] ss:$16 sps:$4 sm:$0xff]   ;;  %v7477_v45 = vld [vmem:[#allocation2 + $0x508] ss:$16 sps:$4 sm:$0xff]  }
  0x79   :  { %1675 = vmatprep.subr.bf16.mxu0 %v7392_v46  ;;  %1839 = vmatprep.subr.bf16.mxu1 %v7395_v47  ;;  %v7482_v46 = vld [vmem:[#allocation2 + $0x524] ss:$16 sps:$4 sm:$0xff]   ;;  %v7485_v47 = vld [vmem:[#allocation2 + $0x52c] ss:$16 sps:$4 sm:$0xff]  }
  0x7c   :  { %1676 = vmatpush1.bf16.msra.mxu0 %v7390_v48  ;;  %1840 = vmatpush1.bf16.msra.mxu1 %v7393_v49  ;;  %v7480_v48 = vld [vmem:[#allocation2 + $0x520] ss:$16 sps:$4 sm:$0xff]   ;;  %v7483_v49 = vld [vmem:[#allocation2 + $0x528] ss:$16 sps:$4 sm:$0xff]  }
  0x7d   :  { %1677 = vmatprep.subr.bf16.mxu0 %v7398_v50  ;;  %1841 = vmatprep.subr.bf16.mxu1 %v7401_v51  ;;  %v7488_v50 = vld [vmem:[#allocation2 + $0x544] ss:$16 sps:$4 sm:$0xff]   ;;  %v7491_v51 = vld [vmem:[#allocation2 + $0x54c] ss:$16 sps:$4 sm:$0xff]  }
  0x80   :  { %1678 = vmatpush1.bf16.msra.mxu0 %v7396_v52  ;;  %1842 = vmatpush1.bf16.msra.mxu1 %v7399_v53  ;;  %v7486_v52 = vld [vmem:[#allocation2 + $0x540] ss:$16 sps:$4 sm:$0xff]   ;;  %v7489_v53 = vld [vmem:[#allocation2 + $0x548] ss:$16 sps:$4 sm:$0xff]  }
  0x81   :  { %1679 = vmatprep.subr.bf16.mxu0 %v7404_v54  ;;  %1843 = vmatprep.subr.bf16.mxu1 %v7407_v55  ;;  %v7494_v54 = vld [vmem:[#allocation2 + $0x564] ss:$16 sps:$4 sm:$0xff]   ;;  %v7497_v55 = vld [vmem:[#allocation2 + $0x56c] ss:$16 sps:$4 sm:$0xff]  }
  0x84   :  { %1680 = vmatpush1.bf16.msra.mxu0 %v7402_v56  ;;  %1844 = vmatpush1.bf16.msra.mxu1 %v7405_v57  ;;  %v7492_v56 = vld [vmem:[#allocation2 + $0x560] ss:$16 sps:$4 sm:$0xff]   ;;  %v7495_v57 = vld [vmem:[#allocation2 + $0x568] ss:$16 sps:$4 sm:$0xff]  }
  0x85   :  { %1681 = vmatprep.subr.bf16.mxu0 %v7410_v58  ;;  %1845 = vmatprep.subr.bf16.mxu1 %v7413_v59  ;;  %v7500_v58 = vld [vmem:[#allocation2 + $0x584] ss:$16 sps:$4 sm:$0xff]   ;;  %v7503_v59 = vld [vmem:[#allocation2 + $0x58c] ss:$16 sps:$4 sm:$0xff]  }
  0x88   :  { %1682 = vmatpush1.bf16.msra.mxu0 %v7408_v60  ;;  %1846 = vmatpush1.bf16.msra.mxu1 %v7411_v61  ;;  %v7498_v60 = vld [vmem:[#allocation2 + $0x580] ss:$16 sps:$4 sm:$0xff]   ;;  %v7501_v61 = vld [vmem:[#allocation2 + $0x588] ss:$16 sps:$4 sm:$0xff]  }
  0x89   :  { %1683 = vmatprep.subr.bf16.mxu0 %v7416_v62  ;;  %1847 = vmatprep.subr.bf16.mxu1 %v7419_v63  ;;  %v7506_v62 = vld [vmem:[#allocation2 + $0x5a4] ss:$16 sps:$4 sm:$0xff]   ;;  %v7509_v63 = vld [vmem:[#allocation2 + $0x5ac] ss:$16 sps:$4 sm:$0xff]  }
  0x8c   :  { %1684 = vmatpush1.bf16.msra.mxu0 %v7414_v0  ;;  %1848 = vmatpush1.bf16.msra.mxu1 %v7417_v1  ;;  %v7504_v0 = vld [vmem:[#allocation2 + $0x5a0] ss:$16 sps:$4 sm:$0xff]   ;;  %v7507_v1 = vld [vmem:[#allocation2 + $0x5a8] ss:$16 sps:$4 sm:$0xff]  }
  0x8d   :  { %1685 = vmatprep.subr.bf16.mxu0 %v7422_v2  ;;  %1849 = vmatprep.subr.bf16.mxu1 %v7425_v3  ;;  %v7512_v2 = vld [vmem:[#allocation2 + $0x5c4] ss:$16 sps:$4 sm:$0xff]   ;;  %v7515_v3 = vld [vmem:[#allocation2 + $0x5cc] ss:$16 sps:$4 sm:$0xff]  }
  0x90   :  { %1686 = vmatpush1.bf16.msra.mxu0 %v7420_v4  ;;  %1850 = vmatpush1.bf16.msra.mxu1 %v7423_v5  ;;  %v7510_v4 = vld [vmem:[#allocation2 + $0x5c0] ss:$16 sps:$4 sm:$0xff]   ;;  %v7513_v5 = vld [vmem:[#allocation2 + $0x5c8] ss:$16 sps:$4 sm:$0xff]  }
  0x91   :  { %1696 = vmatprep.subr.bf16.mxu0 %v7428_v6  ;;  %1860 = vmatprep.subr.bf16.mxu1 %v7431_v8  ;;  %v7518_v6 = vld [vmem:[#allocation2 + $0x5e4] ss:$16 sps:$4 sm:$0xff]   ;;  %v7516_v8 = vld [vmem:[#allocation2 + $0x5e0] ss:$16 sps:$4 sm:$0xff]  }
  0x93   :  { %1688 = vmatmul.mubr.bf16.vlgmr.msra.gmra.mrb[0].mxu0 %v306_v11  ;;  %1852 = vmatmul.mubr.bf16.vlgmr.msra.gmra.mrb[0].mxu1 %v306_v11  ;;  %v44_v11 = vld [vmem:[%s9800_s0 + $0x20] sm:$0xff] }
  0x94   :  { %1697 = vmatpush1.bf16.msra.mxu0 %v7426_v9  ;;  %1861 = vmatpush1.bf16.msra.mxu1 %v7429_v10  ;;  %v7519_v9 = vld [vmem:[#allocation2 + $0x5e8] ss:$16 sps:$4 sm:$0xff]   ;;  %v7524_v10 = vld [vmem:[#allocation2 + $0x604] ss:$16 sps:$4 sm:$0xff]  }
  0x95   :  { %1698 = vmatprep.subr.bf16.mxu0 %v7434_v12  ;;  %1862 = vmatprep.subr.bf16.mxu1 %v7437_v13  ;;  %v7527_v12 = vld [vmem:[#allocation2 + $0x60c] ss:$16 sps:$4 sm:$0xff]   ;;  %v7522_v13 = vld [vmem:[#allocation2 + $0x600] ss:$16 sps:$4 sm:$0xff]  }
  0x96   :  { %1728 = vmatprep.mubr.bf16.mxu0 %v309_v15  ;;  %1892 = vmatprep.mubr.bf16.mxu1 %v309_v15  ;;  %v308_v15 = vpack.c.bf16 %v44_v11, %v44_v11  ;;  %v7617_v11 = vld [vmem:[#allocation2 + $0x7ec] ss:$16 sps:$4 sm:$0xff]  }
  0x98   :  { %1699 = vmatpush1.bf16.msra.mxu0 %v7432_v16  ;;  %1863 = vmatpush1.bf16.msra.mxu1 %v7435_v17  ;;  %v7530_v16 = vld [vmem:[#allocation2 + $0x624] ss:$16 sps:$4 sm:$0xff]   ;;  %v47_v17 = vld [vmem:[%s9800_s0 + $0x38] sm:$0xff] }
  0x99   :  { %1700 = vmatprep.subr.bf16.mxu0 %v7440_v18  ;;  %1864 = vmatprep.subr.bf16.mxu1 %v7443_v19  ;;  %v7533_v18 = vld [vmem:[#allocation2 + $0x62c] ss:$16 sps:$4 sm:$0xff]   ;;  %v7528_v19 = vld [vmem:[#allocation2 + $0x620] ss:$16 sps:$4 sm:$0xff]  }
  0x9c   :  { %1701 = vmatpush1.bf16.msra.mxu0 %v7438_v20  ;;  %1865 = vmatpush1.bf16.msra.mxu1 %v7441_v21  ;;  %v7531_v20 = vld [vmem:[#allocation2 + $0x628] ss:$16 sps:$4 sm:$0xff]   ;;  %v311_v21 = vpack.c.bf16 %v47_v17, %v47_v17 }
  0x9d   :  { %1702 = vmatprep.subr.bf16.mxu0 %v7446_v22  ;;  %1866 = vmatprep.subr.bf16.mxu1 %v7449_v23  ;;  %v7536_v22 = vld [vmem:[#allocation2 + $0x644] ss:$16 sps:$4 sm:$0xff]   ;;  %v7539_v23 = vld [vmem:[#allocation2 + $0x64c] ss:$16 sps:$4 sm:$0xff]   ;;  %v7618_v17 = vld [vmem:[%s9803_s3] ss:$8 sps:$4 sm:$0xff]  }
  0xa0   :  { %1703 = vmatpush1.bf16.msra.mxu0 %v7444_v24  ;;  %1867 = vmatpush1.bf16.msra.mxu1 %v7447_v25  ;;  %v7534_v24 = vld [vmem:[#allocation2 + $0x640] ss:$16 sps:$4 sm:$0xff]   ;;  %v7537_v25 = vld [vmem:[#allocation2 + $0x648] ss:$16 sps:$4 sm:$0xff]  }
  0xa1   :  { %1704 = vmatprep.subr.bf16.mxu0 %v7452_v26  ;;  %1868 = vmatprep.subr.bf16.mxu1 %v7455_v27  ;;  %v7542_v26 = vld [vmem:[#allocation2 + $0x664] ss:$16 sps:$4 sm:$0xff]   ;;  %v7545_v27 = vld [vmem:[#allocation2 + $0x66c] ss:$16 sps:$4 sm:$0xff]  }
  0xa4   :  { %1705 = vmatpush1.bf16.msra.mxu0 %v7450_v28  ;;  %1869 = vmatpush1.bf16.msra.mxu1 %v7453_v29  ;;  %v7540_v28 = vld [vmem:[#allocation2 + $0x660] ss:$16 sps:$4 sm:$0xff]   ;;  %v7543_v29 = vld [vmem:[#allocation2 + $0x668] ss:$16 sps:$4 sm:$0xff]  }
  0xa5   :  { %1706 = vmatprep.subr.bf16.mxu0 %v7458_v30  ;;  %1870 = vmatprep.subr.bf16.mxu1 %v7461_v31  ;;  %v7548_v30 = vld [vmem:[#allocation2 + $0x684] ss:$16 sps:$4 sm:$0xff]   ;;  %v7551_v31 = vld [vmem:[#allocation2 + $0x68c] ss:$16 sps:$4 sm:$0xff]  }
  0xa8   :  { %1707 = vmatpush1.bf16.msra.mxu0 %v7456_v32  ;;  %1871 = vmatpush1.bf16.msra.mxu1 %v7459_v33  ;;  %v7546_v32 = vld [vmem:[#allocation2 + $0x680] ss:$16 sps:$4 sm:$0xff]   ;;  %v7549_v33 = vld [vmem:[#allocation2 + $0x688] ss:$16 sps:$4 sm:$0xff]  }
  0xa9   :  { %1708 = vmatprep.subr.bf16.mxu0 %v7464_v34  ;;  %1872 = vmatprep.subr.bf16.mxu1 %v7467_v35  ;;  %v7554_v34 = vld [vmem:[#allocation2 + $0x6a4] ss:$16 sps:$4 sm:$0xff]   ;;  %v7557_v35 = vld [vmem:[#allocation2 + $0x6ac] ss:$16 sps:$4 sm:$0xff]  }
  0xac   :  { %1709 = vmatpush1.bf16.msra.mxu0 %v7462_v36  ;;  %1873 = vmatpush1.bf16.msra.mxu1 %v7465_v37  ;;  %v7552_v36 = vld [vmem:[#allocation2 + $0x6a0] ss:$16 sps:$4 sm:$0xff]   ;;  %v7555_v37 = vld [vmem:[#allocation2 + $0x6a8] ss:$16 sps:$4 sm:$0xff]  }
  0xad   :  { %1710 = vmatprep.subr.bf16.mxu0 %v7470_v38  ;;  %1874 = vmatprep.subr.bf16.mxu1 %v7473_v39  ;;  %v7560_v38 = vld [vmem:[#allocation2 + $0x6c4] ss:$16 sps:$4 sm:$0xff]   ;;  %v7563_v39 = vld [vmem:[#allocation2 + $0x6cc] ss:$16 sps:$4 sm:$0xff]  }
  0xb0   :  { %1711 = vmatpush1.bf16.msra.mxu0 %v7468_v40  ;;  %1875 = vmatpush1.bf16.msra.mxu1 %v7471_v41  ;;  %v7558_v40 = vld [vmem:[#allocation2 + $0x6c0] ss:$16 sps:$4 sm:$0xff]   ;;  %v7561_v41 = vld [vmem:[#allocation2 + $0x6c8] ss:$16 sps:$4 sm:$0xff]  }
  0xb1   :  { %1712 = vmatprep.subr.bf16.mxu0 %v7476_v42  ;;  %1876 = vmatprep.subr.bf16.mxu1 %v7479_v43  ;;  %v7566_v42 = vld [vmem:[#allocation2 + $0x6e4] ss:$16 sps:$4 sm:$0xff]   ;;  %v7569_v43 = vld [vmem:[#allocation2 + $0x6ec] ss:$16 sps:$4 sm:$0xff]  }
  0xb4   :  { %1713 = vmatpush1.bf16.msra.mxu0 %v7474_v44  ;;  %1877 = vmatpush1.bf16.msra.mxu1 %v7477_v45  ;;  %v7564_v44 = vld [vmem:[#allocation2 + $0x6e0] ss:$16 sps:$4 sm:$0xff]   ;;  %v7567_v45 = vld [vmem:[#allocation2 + $0x6e8] ss:$16 sps:$4 sm:$0xff]  }
  0xb5   :  { %1714 = vmatprep.subr.bf16.mxu0 %v7482_v46  ;;  %1878 = vmatprep.subr.bf16.mxu1 %v7485_v47  ;;  %v7572_v46 = vld [vmem:[#allocation2 + $0x704] ss:$16 sps:$4 sm:$0xff]   ;;  %v7575_v47 = vld [vmem:[#allocation2 + $0x70c] ss:$16 sps:$4 sm:$0xff]  }
  0xb8   :  { %1715 = vmatpush1.bf16.msra.mxu0 %v7480_v48  ;;  %1879 = vmatpush1.bf16.msra.mxu1 %v7483_v49  ;;  %v7570_v48 = vld [vmem:[#allocation2 + $0x700] ss:$16 sps:$4 sm:$0xff]   ;;  %v7573_v49 = vld [vmem:[#allocation2 + $0x708] ss:$16 sps:$4 sm:$0xff]  }
  0xb9   :  { %1716 = vmatprep.subr.bf16.mxu0 %v7488_v50  ;;  %1880 = vmatprep.subr.bf16.mxu1 %v7491_v51  ;;  %v7578_v50 = vld [vmem:[#allocation2 + $0x724] ss:$16 sps:$4 sm:$0xff]   ;;  %v7581_v51 = vld [vmem:[#allocation2 + $0x72c] ss:$16 sps:$4 sm:$0xff]  }
  0xbc   :  { %1717 = vmatpush1.bf16.msra.mxu0 %v7486_v52  ;;  %1881 = vmatpush1.bf16.msra.mxu1 %v7489_v53  ;;  %v7576_v52 = vld [vmem:[#allocation2 + $0x720] ss:$16 sps:$4 sm:$0xff]   ;;  %v7579_v53 = vld [vmem:[#allocation2 + $0x728] ss:$16 sps:$4 sm:$0xff]  }
  0xbd   :  { %1718 = vmatprep.subr.bf16.mxu0 %v7494_v54  ;;  %1882 = vmatprep.subr.bf16.mxu1 %v7497_v55  ;;  %v7584_v54 = vld [vmem:[#allocation2 + $0x744] ss:$16 sps:$4 sm:$0xff]   ;;  %v7587_v55 = vld [vmem:[#allocation2 + $0x74c] ss:$16 sps:$4 sm:$0xff]  }
  0xc0   :  { %1719 = vmatpush1.bf16.msra.mxu0 %v7492_v56  ;;  %1883 = vmatpush1.bf16.msra.mxu1 %v7495_v57  ;;  %v7582_v56 = vld [vmem:[#allocation2 + $0x740] ss:$16 sps:$4 sm:$0xff]   ;;  %v7585_v57 = vld [vmem:[#allocation2 + $0x748] ss:$16 sps:$4 sm:$0xff]  }
  0xc1   :  { %1720 = vmatprep.subr.bf16.mxu0 %v7500_v58  ;;  %1884 = vmatprep.subr.bf16.mxu1 %v7503_v59  ;;  %v7590_v58 = vld [vmem:[#allocation2 + $0x764] ss:$16 sps:$4 sm:$0xff]   ;;  %v7593_v59 = vld [vmem:[#allocation2 + $0x76c] ss:$16 sps:$4 sm:$0xff]  }
  0xc4   :  { %1721 = vmatpush1.bf16.msra.mxu0 %v7498_v60  ;;  %1885 = vmatpush1.bf16.msra.mxu1 %v7501_v61  ;;  %v7588_v60 = vld [vmem:[#allocation2 + $0x760] ss:$16 sps:$4 sm:$0xff]   ;;  %v7591_v61 = vld [vmem:[#allocation2 + $0x768] ss:$16 sps:$4 sm:$0xff]  }
  0xc5   :  { %1722 = vmatprep.subr.bf16.mxu0 %v7506_v62  ;;  %1886 = vmatprep.subr.bf16.mxu1 %v7509_v63  ;;  %v7596_v62 = vld [vmem:[#allocation2 + $0x784] ss:$16 sps:$4 sm:$0xff]   ;;  %v7599_v63 = vld [vmem:[#allocation2 + $0x78c] ss:$16 sps:$4 sm:$0xff]  }
  0xc8   :  { %1723 = vmatpush1.bf16.msra.mxu0 %v7504_v0  ;;  %1887 = vmatpush1.bf16.msra.mxu1 %v7507_v1  ;;  %v7594_v0 = vld [vmem:[#allocation2 + $0x780] ss:$16 sps:$4 sm:$0xff]   ;;  %v7597_v1 = vld [vmem:[#allocation2 + $0x788] ss:$16 sps:$4 sm:$0xff]  }
  0xc9   :  { %1724 = vmatprep.subr.bf16.mxu0 %v7512_v2  ;;  %1888 = vmatprep.subr.bf16.mxu1 %v7515_v3  ;;  %v7602_v2 = vld [vmem:[#allocation2 + $0x7a4] ss:$16 sps:$4 sm:$0xff]   ;;  %v7605_v3 = vld [vmem:[#allocation2 + $0x7ac] ss:$16 sps:$4 sm:$0xff]  }
  0xcc   :  { %1725 = vmatpush1.bf16.msra.mxu0 %v7510_v4  ;;  %1889 = vmatpush1.bf16.msra.mxu1 %v7513_v5  ;;  %v7600_v4 = vld [vmem:[#allocation2 + $0x7a0] ss:$16 sps:$4 sm:$0xff]   ;;  %v7603_v5 = vld [vmem:[#allocation2 + $0x7a8] ss:$16 sps:$4 sm:$0xff]  }
  0xcd   :  { %1726 = vmatprep.subr.bf16.mxu0 %v7518_v6  ;;  %1890 = vmatprep.subr.bf16.mxu1 %v7521_v7  ;;  %v7608_v6 = vld [vmem:[#allocation2 + $0x7c4] ss:$16 sps:$4 sm:$0xff]   ;;  %v7611_v7 = vld [vmem:[#allocation2 + $0x7cc] ss:$16 sps:$4 sm:$0xff]  }
  0xd0   :  { %1727 = vmatpush1.bf16.msra.mxu0 %v7516_v8  ;;  %1891 = vmatpush1.bf16.msra.mxu1 %v7519_v9  ;;  %v7606_v8 = vld [vmem:[#allocation2 + $0x7c0] ss:$16 sps:$4 sm:$0xff]   ;;  %v7609_v9 = vld [vmem:[#allocation2 + $0x7c8] ss:$16 sps:$4 sm:$0xff]  }
  0xd1   :  { %1737 = vmatprep.subr.bf16.mxu0 %v7524_v10  ;;  %1901 = vmatprep.subr.bf16.mxu1 %v7527_v12  ;;  %v7614_v10 = vld [vmem:[#allocation2 + $0x7e4] ss:$16 sps:$4 sm:$0xff]   ;;  %v7612_v12 = vld [vmem:[#allocation2 + $0x7e0] ss:$16 sps:$4 sm:$0xff]  }
  0xd3   :  { %1729 = vmatmul.mubr.bf16.vlgmr.msra.gmra.mrb[0].mxu0 %v308_v15  ;;  %1893 = vmatmul.mubr.bf16.vlgmr.msra.gmra.mrb[0].mxu1 %v308_v15  ;;  %v7620_v15 = vld [vmem:[%s9803_s3 + $0x4] ss:$8 sps:$4 sm:$0xff]  }
  0xd4   :  { %1738 = vmatpush1.bf16.msra.mxu0 %v7522_v13  ;;  %1902 = vmatpush1.bf16.msra.mxu1 %v7525_v14  ;;  %v7615_v13 = vld [vmem:[#allocation2 + $0x7e8] ss:$16 sps:$4 sm:$0xff]   ;;  %v46_v14 = vld [vmem:[%s9800_s0 + $0x30] sm:$0xff] }
  0xd5   :  { %1739 = vmatprep.subr.bf16.mxu0 %v7530_v16  ;;  %1903 = vmatprep.subr.bf16.mxu1 %v7533_v18  ;;  %v310_v16 = vpack.c.bf16 %v46_v14, %v46_v14  ;;  %v7623_v18 = vld [vmem:[%s9803_s3 + $0x14] ss:$8 sps:$4 sm:$0xff]   ;;  %v2670_v14 = vld [vmem:[%s9805_s5 + $0x780] sm:$0xff] }
  0xd6   :  { %1769 = vmatprep.mubr.bf16.mxu0 %v311_v21  ;;  %1933 = vmatprep.mubr.bf16.mxu1 %v311_v21  ;;  %v7624_v21 = vld [vmem:[%s9803_s3 + $0x20] ss:$8 sps:$4 sm:$0xff]  }
  0xd8   :  { %1740 = vmatpush1.bf16.msra.mxu0 %v7528_v19  ;;  %1904 = vmatpush1.bf16.msra.mxu1 %v7531_v20  ;;  %v7621_v19 = vld [vmem:[%s9803_s3 + $0x10] ss:$8 sps:$4 sm:$0xff]   ;;  %v7626_v20 = vld [vmem:[%s9803_s3 + $0x24] ss:$8 sps:$4 sm:$0xff]  }
  0xd9   :  { %1741 = vmatprep.subr.bf16.mxu0 %v7536_v22  ;;  %1905 = vmatprep.subr.bf16.mxu1 %v7539_v23  ;;  %v7629_v22 = vld [vmem:[%s9803_s3 + $0x34] ss:$8 sps:$4 sm:$0xff]   ;;  %v7627_v23 = vld [vmem:[%s9803_s3 + $0x30] ss:$8 sps:$4 sm:$0xff]  }
  0xdc   :  { %1742 = vmatpush1.bf16.msra.mxu0 %v7534_v24  ;;  %1906 = vmatpush1.bf16.msra.mxu1 %v7537_v25  ;;  %v7632_v24 = vld [vmem:[%s9803_s3 + $0x44] ss:$8 sps:$4 sm:$0xff]   ;;  %v7630_v25 = vld [vmem:[%s9803_s3 + $0x40] ss:$8 sps:$4 sm:$0xff]  }
  0xdd   :  { %1743 = vmatprep.subr.bf16.mxu0 %v7542_v26  ;;  %1907 = vmatprep.subr.bf16.mxu1 %v7545_v27  ;;  %v7635_v26 = vld [vmem:[%s9803_s3 + $0x54] ss:$8 sps:$4 sm:$0xff]   ;;  %v7633_v27 = vld [vmem:[%s9803_s3 + $0x50] ss:$8 sps:$4 sm:$0xff]  }
  0xe0   :  { %1744 = vmatpush1.bf16.msra.mxu0 %v7540_v28  ;;  %1908 = vmatpush1.bf16.msra.mxu1 %v7543_v29  ;;  %v7638_v28 = vld [vmem:[%s9803_s3 + $0x64] ss:$8 sps:$4 sm:$0xff]   ;;  %v7636_v29 = vld [vmem:[%s9803_s3 + $0x60] ss:$8 sps:$4 sm:$0xff]  }
  0xe1   :  { %1745 = vmatprep.subr.bf16.mxu0 %v7548_v30  ;;  %1909 = vmatprep.subr.bf16.mxu1 %v7551_v31  ;;  %v7641_v30 = vld [vmem:[%s9803_s3 + $0x74] ss:$8 sps:$4 sm:$0xff]   ;;  %v7639_v31 = vld [vmem:[%s9803_s3 + $0x70] ss:$8 sps:$4 sm:$0xff]  }
  0xe4   :  { %1746 = vmatpush1.bf16.msra.mxu0 %v7546_v32  ;;  %1910 = vmatpush1.bf16.msra.mxu1 %v7549_v33  ;;  %v7644_v32 = vld [vmem:[%s9803_s3 + $0x84] ss:$8 sps:$4 sm:$0xff]   ;;  %v7642_v33 = vld [vmem:[%s9803_s3 + $0x80] ss:$8 sps:$4 sm:$0xff]  }
  0xe5   :  { %1747 = vmatprep.subr.bf16.mxu0 %v7554_v34  ;;  %1911 = vmatprep.subr.bf16.mxu1 %v7557_v35  ;;  %v7647_v34 = vld [vmem:[%s9803_s3 + $0x94] ss:$8 sps:$4 sm:$0xff]   ;;  %v7645_v35 = vld [vmem:[%s9803_s3 + $0x90] ss:$8 sps:$4 sm:$0xff]  }
  0xe8   :  { %1748 = vmatpush1.bf16.msra.mxu0 %v7552_v36  ;;  %1912 = vmatpush1.bf16.msra.mxu1 %v7555_v37  ;;  %v7650_v36 = vld [vmem:[%s9803_s3 + $0xa4] ss:$8 sps:$4 sm:$0xff]   ;;  %v7648_v37 = vld [vmem:[%s9803_s3 + $0xa0] ss:$8 sps:$4 sm:$0xff]  }
  0xe9   :  { %1749 = vmatprep.subr.bf16.mxu0 %v7560_v38  ;;  %1913 = vmatprep.subr.bf16.mxu1 %v7563_v39  ;;  %v7653_v38 = vld [vmem:[%s9803_s3 + $0xb4] ss:$8 sps:$4 sm:$0xff]   ;;  %v7651_v39 = vld [vmem:[%s9803_s3 + $0xb0] ss:$8 sps:$4 sm:$0xff]  }
  0xec   :  { %1750 = vmatpush1.bf16.msra.mxu0 %v7558_v40  ;;  %1914 = vmatpush1.bf16.msra.mxu1 %v7561_v41  ;;  %v7656_v40 = vld [vmem:[%s9803_s3 + $0xc4] ss:$8 sps:$4 sm:$0xff]   ;;  %v7654_v41 = vld [vmem:[%s9803_s3 + $0xc0] ss:$8 sps:$4 sm:$0xff]  }
  0xed   :  { %1751 = vmatprep.subr.bf16.mxu0 %v7566_v42  ;;  %1915 = vmatprep.subr.bf16.mxu1 %v7569_v43  ;;  %v7659_v42 = vld [vmem:[%s9803_s3 + $0xd4] ss:$8 sps:$4 sm:$0xff]   ;;  %v7657_v43 = vld [vmem:[%s9803_s3 + $0xd0] ss:$8 sps:$4 sm:$0xff]  }
  0xf0   :  { %1752 = vmatpush1.bf16.msra.mxu0 %v7564_v44  ;;  %1916 = vmatpush1.bf16.msra.mxu1 %v7567_v45  ;;  %v7662_v44 = vld [vmem:[%s9803_s3 + $0xe4] ss:$8 sps:$4 sm:$0xff]   ;;  %v7660_v45 = vld [vmem:[%s9803_s3 + $0xe0] ss:$8 sps:$4 sm:$0xff]  }
  0xf1   :  { %1753 = vmatprep.subr.bf16.mxu0 %v7572_v46  ;;  %1917 = vmatprep.subr.bf16.mxu1 %v7575_v47  ;;  %v7665_v46 = vld [vmem:[%s9803_s3 + $0xf4] ss:$8 sps:$4 sm:$0xff]   ;;  %v7663_v47 = vld [vmem:[%s9803_s3 + $0xf0] ss:$8 sps:$4 sm:$0xff]  }
  0xf4   :  { %1754 = vmatpush1.bf16.msra.mxu0 %v7570_v48  ;;  %1918 = vmatpush1.bf16.msra.mxu1 %v7573_v49  ;;  %v7668_v48 = vld [vmem:[%s9803_s3 + $0x104] ss:$8 sps:$4 sm:$0xff]  }
  0xf5   :  { %1755 = vmatprep.subr.bf16.mxu0 %v7578_v50  ;;  %1919 = vmatprep.subr.bf16.mxu1 %v7581_v51  ;;  %v2430_v49 = vld [vmem:[%s9805_s5] sm:$0xff] }
  0xf6   :  { %v2446_v50 = vld [vmem:[%s9805_s5 + $0x80] sm:$0xff] }
  0xf7   :  { %v6685_v51 = vcombine.low %v2430_v49, %v2446_v50 }
  0xf8   :  { %1756 = vmatpush1.bf16.msra.mxu0 %v7576_v52  ;;  %1920 = vmatpush1.bf16.msra.mxu1 %v7579_v53  ;;  %v6686_v52 = vcombine.high %v2430_v49, %v2446_v50  ;;  %v2462_v53 = vld [vmem:[%s9805_s5 + $0x100] sm:$0xff] }
  0xf9   :  { %1757 = vmatprep.subr.bf16.mxu0 %v7584_v54  ;;  %1921 = vmatprep.subr.bf16.mxu1 %v7587_v55  ;;  %v2478_v54 = vld [vmem:[%s9805_s5 + $0x180] sm:$0xff] }
  0xfa   :  { %v6718_v55 = vcombine.high %v2462_v53, %v2478_v54 }
  0xfc   :  { %1758 = vmatpush1.bf16.msra.mxu0 %v7582_v56  ;;  %1922 = vmatpush1.bf16.msra.mxu1 %v7585_v57  ;;  %v6717_v56 = vcombine.low %v2462_v53, %v2478_v54  ;;  %v2494_v57 = vld [vmem:[%s9805_s5 + $0x200] sm:$0xff] }
  0xfd   :  { %1759 = vmatprep.subr.bf16.mxu0 %v7590_v58  ;;  %1923 = vmatprep.subr.bf16.mxu1 %v7593_v59  ;;  %v2510_v58 = vld [vmem:[%s9805_s5 + $0x280] sm:$0xff] }
  0xfe   :  { %v6750_v59 = vcombine.high %v2494_v57, %v2510_v58 }
 0x100   :  { %1760 = vmatpush1.bf16.msra.mxu0 %v7588_v60  ;;  %1924 = vmatpush1.bf16.msra.mxu1 %v7591_v61  ;;  %v6749_v60 = vcombine.low %v2494_v57, %v2510_v58  ;;  %v2526_v61 = vld [vmem:[%s9805_s5 + $0x300] sm:$0xff] }
 0x101   :  { %1761 = vmatprep.subr.bf16.mxu0 %v7596_v62  ;;  %1925 = vmatprep.subr.bf16.mxu1 %v7599_v63  ;;  %v2542_v62 = vld [vmem:[%s9805_s5 + $0x380] sm:$0xff] }
 0x102   :  { %v6782_v63 = vcombine.high %v2526_v61, %v2542_v62 }
 0x104   :  { %1762 = vmatpush1.bf16.msra.mxu0 %v7594_v0  ;;  %1926 = vmatpush1.bf16.msra.mxu1 %v7597_v1  ;;  %v6781_v0 = vcombine.low %v2526_v61, %v2542_v62  ;;  %v2558_v1 = vld [vmem:[%s9805_s5 + $0x400] sm:$0xff] }
 0x105   :  { %1763 = vmatprep.subr.bf16.mxu0 %v7602_v2  ;;  %1927 = vmatprep.subr.bf16.mxu1 %v7605_v3  ;;  %v2574_v2 = vld [vmem:[%s9805_s5 + $0x480] sm:$0xff] }
 0x106   :  { %v6814_v3 = vcombine.high %v2558_v1, %v2574_v2 }
 0x108   :  { %1764 = vmatpush1.bf16.msra.mxu0 %v7600_v4  ;;  %1928 = vmatpush1.bf16.msra.mxu1 %v7603_v5  ;;  %v6813_v4 = vcombine.low %v2558_v1, %v2574_v2  ;;  %v2590_v5 = vld [vmem:[%s9805_s5 + $0x500] sm:$0xff] }
 0x109   :  { %1765 = vmatprep.subr.bf16.mxu0 %v7608_v6  ;;  %1929 = vmatprep.subr.bf16.mxu1 %v7611_v7  ;;  %v2606_v6 = vld [vmem:[%s9805_s5 + $0x580] sm:$0xff] }
 0x10a   :  { %v6846_v7 = vcombine.high %v2590_v5, %v2606_v6  ;;  %v7666_v1 = vld [vmem:[%s9803_s3 + $0x100] ss:$8 sps:$4 sm:$0xff]  }
 0x10c   :  { %1766 = vmatpush1.bf16.msra.mxu0 %v7606_v8  ;;  %1930 = vmatpush1.bf16.msra.mxu1 %v7609_v9  ;;  %v6845_v8 = vcombine.low %v2590_v5, %v2606_v6  ;;  %v2622_v9 = vld [vmem:[%s9805_s5 + $0x600] sm:$0xff]  ;;  %v7669_v5 = vld [vmem:[%s9803_s3 + $0x110] ss:$8 sps:$4 sm:$0xff]  }
 0x10d   :  { %1767 = vmatprep.subr.bf16.mxu0 %v7614_v10  ;;  %1931 = vmatprep.subr.bf16.mxu1 %v7617_v11  ;;  %v2638_v10 = vld [vmem:[%s9805_s5 + $0x680] sm:$0xff] }
 0x10e   :  { %v6878_v11 = vcombine.high %v2622_v9, %v2638_v10  ;;  %v7674_v6 = vld [vmem:[%s9803_s3 + $0x124] ss:$8 sps:$4 sm:$0xff]  }
 0x110   :  { %1768 = vmatpush1.bf16.msra.mxu0 %v7612_v12  ;;  %1932 = vmatpush1.bf16.msra.mxu1 %v7615_v13  ;;  %v6877_v12 = vcombine.low %v2622_v9, %v2638_v10  ;;  %v2654_v13 = vld [vmem:[%s9805_s5 + $0x700] sm:$0xff]  ;;  %v7675_v9 = vld [vmem:[%s9803_s3 + $0x130] ss:$8 sps:$4 sm:$0xff]  }
 0x111   :  { %2346 = vmatprep.subr.bf16.mxu0 %v7620_v15  ;;  %5672 = vmatprep.subr.bf16.mxu1 %v6686_v52  ;;  %v6910_v15 = vcombine.high %v2654_v13, %v2670_v14  ;;  %v7680_v10 = vld [vmem:[%s9803_s3 + $0x144] ss:$8 sps:$4 sm:$0xff]  }
 0x113   :  { %1770 = vmatmul.mubr.bf16.vlgmr.msra.gmra.mrb[0].mxu0 %v310_v16  ;;  %1934 = vmatmul.mubr.bf16.vlgmr.msra.gmra.mrb[0].mxu1 %v310_v16  ;;  %v6909_v16 = vcombine.low %v2654_v13, %v2670_v14  ;;  %v7681_v13 = vld [vmem:[%s9803_s3 + $0x150] ss:$8 sps:$4 sm:$0xff]   ;;  %v7686_v14 = vld [vmem:[%s9803_s3 + $0x164] ss:$8 sps:$4 sm:$0xff]  }
 0x114   :  { %2347 = vmatpush1.bf16.msra.mxu0 %v7618_v17  ;;  %5673 = vmatpush1.bf16.msra.mxu1 %v6685_v51  ;;  %v2686_v17 = vld [vmem:[%s9805_s5 + $0x800] sm:$0xff] }
 0x115   :  { %2348 = vmatprep.subr.bf16.mxu0 %v7623_v18  ;;  %5674 = vmatprep.subr.bf16.mxu1 %v6718_v55  ;;  %v2702_v18 = vld [vmem:[%s9805_s5 + $0x880] sm:$0xff] }
 0x118   :  { %2349 = vmatpush1.bf16.msra.mxu0 %v7621_v19  ;;  %5675 = vmatpush1.bf16.msra.mxu1 %v6717_v56  ;;  %v6942_v19 = vcombine.high %v2686_v17, %v2702_v18 }
 0x119   :  { %2350 = vmatprep.subr.bf16.mxu0 %v7626_v20  ;;  %5676 = vmatprep.subr.bf16.mxu1 %v6750_v59  ;;  %v6941_v20 = vcombine.low %v2686_v17, %v2702_v18  ;;  %v7687_v17 = vld [vmem:[%s9803_s3 + $0x170] ss:$8 sps:$4 sm:$0xff]   ;;  %v7692_v18 = vld [vmem:[%s9803_s3 + $0x184] ss:$8 sps:$4 sm:$0xff]  }
 0x11c   :  { %2351 = vmatpush1.bf16.msra.mxu0 %v7624_v21  ;;  %5677 = vmatpush1.bf16.msra.mxu1 %v6749_v60  ;;  %v2718_v21 = vld [vmem:[%s9805_s5 + $0x900] sm:$0xff] }
 0x11d   :  { %2352 = vmatprep.subr.bf16.mxu0 %v7629_v22  ;;  %5678 = vmatprep.subr.bf16.mxu1 %v6782_v63  ;;  %v2734_v22 = vld [vmem:[%s9805_s5 + $0x980] sm:$0xff] }
 0x120   :  { %2353 = vmatpush1.bf16.msra.mxu0 %v7627_v23  ;;  %5679 = vmatpush1.bf16.msra.mxu1 %v6781_v0  ;;  %v6974_v23 = vcombine.high %v2718_v21, %v2734_v22 }
 0x121   :  { %2354 = vmatprep.subr.bf16.mxu0 %v7632_v24  ;;  %5680 = vmatprep.subr.bf16.mxu1 %v6814_v3  ;;  %v6973_v24 = vcombine.low %v2718_v21, %v2734_v22  ;;  %v7671_v3 = vld [vmem:[%s9803_s3 + $0x114] ss:$8 sps:$4 sm:$0xff]   ;;  %v7693_v21 = vld [vmem:[%s9803_s3 + $0x190] ss:$8 sps:$4 sm:$0xff]   ;;  %v7698_v22 = vld [vmem:[%s9803_s3 + $0x1a4] ss:$8 sps:$4 sm:$0xff]  }
 0x124   :  { %2355 = vmatpush1.bf16.msra.mxu0 %v7630_v25  ;;  %5681 = vmatpush1.bf16.msra.mxu1 %v6813_v4  ;;  %v2750_v25 = vld [vmem:[%s9805_s5 + $0xa00] sm:$0xff] }
 0x125   :  { %2356 = vmatprep.subr.bf16.mxu0 %v7635_v26  ;;  %5682 = vmatprep.subr.bf16.mxu1 %v6846_v7  ;;  %v2766_v26 = vld [vmem:[%s9805_s5 + $0xa80] sm:$0xff] }
 0x126   :  { %v7672_v7 = vld [vmem:[%s9803_s3 + $0x120] ss:$8 sps:$4 sm:$0xff]  }
 0x128   :  { %2357 = vmatpush1.bf16.msra.mxu0 %v7633_v27  ;;  %5683 = vmatpush1.bf16.msra.mxu1 %v6845_v8  ;;  %v7006_v27 = vcombine.high %v2750_v25, %v2766_v26  ;;  %v7677_v8 = vld [vmem:[%s9803_s3 + $0x134] ss:$8 sps:$4 sm:$0xff]  }
 0x129   :  { %2358 = vmatprep.subr.bf16.mxu0 %v7638_v28  ;;  %5684 = vmatprep.subr.bf16.mxu1 %v6878_v11  ;;  %v314_v28 = vlaneseq  ;;  %v7678_v11 = vld [vmem:[%s9803_s3 + $0x140] ss:$8 sps:$4 sm:$0xff]  }
 0x12c   :  { %2359 = vmatpush1.bf16.msra.mxu0 %v7636_v29  ;;  %5685 = vmatpush1.bf16.msra.mxu1 %v6877_v12  ;;  %v7005_v29 = vcombine.low %v2750_v25, %v2766_v26  ;;  %v7683_v12 = vld [vmem:[%s9803_s3 + $0x154] ss:$8 sps:$4 sm:$0xff]   ;;  %v7699_v25 = vld [vmem:[%s9803_s3 + $0x1b0] ss:$8 sps:$4 sm:$0xff]   ;;  %v7704_v26 = vld [vmem:[%s9803_s3 + $0x1c4] ss:$8 sps:$4 sm:$0xff]  }
 0x12d   :  { %2360 = vmatprep.subr.bf16.mxu0 %v7641_v30  ;;  %5686 = vmatprep.subr.bf16.mxu1 %v6910_v15  ;;  %v2782_v30 = vld [vmem:[%s9805_s5 + $0xb00] sm:$0xff] }
 0x12e   :  { %v7684_v15 = vld [vmem:[%s9803_s3 + $0x160] ss:$8 sps:$4 sm:$0xff]  }
 0x130   :  { %2361 = vmatpush1.bf16.msra.mxu0 %v7639_v31  ;;  %5687 = vmatpush1.bf16.msra.mxu1 %v6909_v16  ;;  %v2798_v31 = vld [vmem:[%s9805_s5 + $0xb80] sm:$0xff]  ;;  %v7689_v16 = vld [vmem:[%s9803_s3 + $0x174] ss:$8 sps:$4 sm:$0xff]  }
 0x131   :  { %2362 = vmatprep.subr.bf16.mxu0 %v7644_v32  ;;  %5688 = vmatprep.subr.bf16.mxu1 %v6942_v19  ;;  %v7038_v32 = vcombine.high %v2782_v30, %v2798_v31  ;;  %v7690_v19 = vld [vmem:[%s9803_s3 + $0x180] ss:$8 sps:$4 sm:$0xff]  }
 0x134   :  { %2363 = vmatpush1.bf16.msra.mxu0 %v7642_v33  ;;  %5689 = vmatpush1.bf16.msra.mxu1 %v6941_v20  ;;  %v7989_v33 = vshrl.u32 %v314_v28, 7  ;;  %v7695_v20 = vld [vmem:[%s9803_s3 + $0x194] ss:$8 sps:$4 sm:$0xff]  }
 0x135   :  { %2364 = vmatprep.subr.bf16.mxu0 %v7647_v34  ;;  %5690 = vmatprep.subr.bf16.mxu1 %v6974_v23  ;;  %v7037_v34 = vcombine.low %v2782_v30, %v2798_v31  ;;  %v7696_v23 = vld [vmem:[%s9803_s3 + $0x1a0] ss:$8 sps:$4 sm:$0xff]   ;;  %v7705_v30 = vld [vmem:[%s9803_s3 + $0x1d0] ss:$8 sps:$4 sm:$0xff]  }
 0x136   :  { %v8101_v28 = vsub.s32 2, %v7989_v33 }
 0x138   :  { %2365 = vmatpush1.bf16.msra.mxu0 %v7645_v35  ;;  %5691 = vmatpush1.bf16.msra.mxu1 %v6973_v24  ;;  %v2814_v35 = vld [vmem:[%s9805_s5 + $0xc00] sm:$0xff]  ;;  %v7701_v24 = vld [vmem:[%s9803_s3 + $0x1b4] ss:$8 sps:$4 sm:$0xff]  }
 0x139   :  { %2366 = vmatprep.subr.bf16.mxu0 %v7650_v36  ;;  %5692 = vmatprep.subr.bf16.mxu1 %v7006_v27  ;;  %v2830_v36 = vld [vmem:[%s9805_s5 + $0xc80] sm:$0xff] }
 0x13a   :  { %v7702_v27 = vld [vmem:[%s9803_s3 + $0x1c0] ss:$8 sps:$4 sm:$0xff]  }
 0x13c   :  { %2367 = vmatpush1.bf16.msra.mxu0 %v7648_v37  ;;  %5693 = vmatpush1.bf16.msra.mxu1 %v7005_v29  ;;  %v7070_v37 = vcombine.high %v2814_v35, %v2830_v36  ;;  %v7707_v29 = vld [vmem:[%s9803_s3 + $0x1d4] ss:$8 sps:$4 sm:$0xff]  }
 0x13d   :  { %2368 = vmatprep.subr.bf16.mxu0 %v7653_v38  ;;  %5694 = vmatprep.subr.bf16.mxu1 %v7038_v32  ;;  %v7998_v38 = vsub.s32 0, %v7989_v33  ;;  %v7710_v32 = vld [vmem:[%s9803_s3 + $0x1e4] ss:$8 sps:$4 sm:$0xff]  }
 0x140   :  { %2369 = vmatpush1.bf16.msra.mxu0 %v7651_v39  ;;  %5695 = vmatpush1.bf16.msra.mxu1 %v7037_v34  ;;  %v7069_v39 = vcombine.low %v2814_v35, %v2830_v36  ;;  %v7708_v34 = vld [vmem:[%s9803_s3 + $0x1e0] ss:$8 sps:$4 sm:$0xff]   ;;  %v7713_v36 = vld [vmem:[%s9803_s3 + $0x1f4] ss:$8 sps:$4 sm:$0xff]  }
 0x141   :  { %2370 = vmatprep.subr.bf16.mxu0 %v7656_v40  ;;  %v8003_v40 = vld [vmem:[%s9802_s2] sm:$0xf]  ;;  %5696 = vmatprep.subr.bf16.mxu1 %v7070_v37  ;;  %v2432_v37 = vld [vmem:[%s9805_s5 + $0x10] sm:$0xff] }
 0x142   :  { %v325_v31 = vrot.slane %v8003_v40, %v8101_v28 }
 0x144   :  { %2371 = vmatpush1.bf16.msra.mxu0 %v7654_v41  ;;  %v8006_v41 = vsub.s32 1, %v7989_v33  ;;  %5697 = vmatpush1.bf16.msra.mxu1 %v7069_v39  ;;  %v2448_v39 = vld [vmem:[%s9805_s5 + $0x90] sm:$0xff] }
 0x145   :  { %2372 = vmatprep.subr.bf16.mxu0 %v7659_v42  ;;  %v8009_v42 = vsub.s32 3, %v7989_v33 }
 0x147   :  { %v329_v49 = vrot.slane %v8003_v40, %v8009_v42 }
 0x148   :  { %2373 = vmatpush1.bf16.msra.mxu0 %v7657_v43  ;;  %v2846_v43 = vld [vmem:[%s9805_s5 + $0xd00] sm:$0xff] }
 0x149   :  { %2374 = vmatprep.subr.bf16.mxu0 %v7662_v44  ;;  %v2862_v44 = vld [vmem:[%s9805_s5 + $0xd80] sm:$0xff] }
 0x14c   :  { %2375 = vmatpush1.bf16.msra.mxu0 %v7660_v45  ;;  %v7102_v45 = vcombine.high %v2846_v43, %v2862_v44 }
 0x14d   :  { %2376 = vmatprep.subr.bf16.mxu0 %v7665_v46  ;;  %v317_v46 = vrot.slane %v8003_v40, %v7998_v38 }
 0x14e   :  { %5698 = vmatprep.subr.bf16.mxu1 %v7102_v45  ;;  %v2464_v45 = vld [vmem:[%s9805_s5 + $0x110] sm:$0xff] }
 0x150   :  { %2377 = vmatpush1.bf16.msra.mxu0 %v7663_v47  ;;  %v7101_v47 = vcombine.low %v2846_v43, %v2862_v44  ;;  %v6690_v44 = vcombine.high %v2432_v37, %v2448_v39 }
 0x151   :  { %2387 = vmatprep.subr.bf16.mxu0 %v7668_v48  ;;  %v321_v48 = vrot.slane %v8003_v40, %v8006_v41  ;;  %v7711_v40 = vld [vmem:[%s9803_s3 + $0x1f0] ss:$8 sps:$4 sm:$0xff]  }
 0x152   :  { %5699 = vmatpush1.bf16.msra.mxu1 %v7101_v47  ;;  %v6689_v47 = vcombine.low %v2432_v37, %v2448_v39  ;;  %v2878_v37 = vld [vmem:[%s9805_s5 + $0xe00] sm:$0xff] }
 0x153   :  { %v2894_v39 = vld [vmem:[%s9805_s5 + $0xe80] sm:$0xff] }
 0x1e6   :  { %v1771_v50 = vpop.f32.mrb[0].mxu0  ;;  %v8023_v51 = vpop.f32.mrb[0].mxu1 }
 0x1e7   :  { %v7197_v52 = vadd.f32 %v1771_v50, %v317_v46  ;;  %v1773_v53 = vpop.f32.mrb[1].mxu0  ;;  %v1937_v54 = vpop.f32.mrb[1].mxu1  ;;  %v7199_v35 = vadd.f32 %v8023_v51, %v325_v31  ;;  %v2480_v46 = vld [vmem:[%s9805_s5 + $0x190] sm:$0xff] }
 0x1e8   :  { %v7198_v55 = vadd.f32 %v1773_v53, %v321_v48  ;;  %v7200_v56 = vadd.f32 %v1937_v54, %v329_v49  ;;  %v1775_v57 = vpop.f32.mrb[2].mxu0  ;;  %v1939_v58 = vpop.f32.mrb[2].mxu1  ;;  %v6722_v49 = vcombine.high %v2464_v45, %v2480_v46  ;;  %v2496_v50 = vld [vmem:[%s9805_s5 + $0x210] sm:$0xff] }
 0x1e9   :  { %v1942_v59 = vmax.f32 %v7197_v52, 0.0  ;;  %v1776_v60 = vpop.f32.mrb[3].mxu0  ;;  %v1940_v61 = vpop.f32.mrb[3].mxu1  ;;  %v1944_v43 = vmax.f32 %v7199_v35, 0.0  ;;  %v2512_v51 = vld [vmem:[%s9805_s5 + $0x290] sm:$0xff]  ;;  %v6721_v52 = vcombine.low %v2464_v45, %v2480_v46  ;;  %v7133_v45 = vcombine.low %v2878_v37, %v2894_v39 }
 0x1ea   :  { %v1943_v62 = vmax.f32 %v7198_v55, 0.0  ;;  %v1945_v63 = vmax.f32 %v7200_v56, 0.0  ;;  %v6754_v53 = vcombine.high %v2496_v50, %v2512_v51  ;;  %v2528_v54 = vld [vmem:[%s9805_s5 + $0x310] sm:$0xff]  ;;  %v6753_v56 = vcombine.low %v2496_v50, %v2512_v51 }
 0x1eb   :  { %v2010_v2 = vpack.c.bf16 %v1942_v59, %v1942_v59  ;;  %v2012_v48 = vpack.c.bf16 %v1944_v43, %v1944_v43  ;;  %v2544_v55 = vld [vmem:[%s9805_s5 + $0x390] sm:$0xff]  ;;  %v7134_v43 = vcombine.high %v2878_v37, %v2894_v39  ;;  %v2559_v37 = vld [vmem:[%s9805_s5 + $0x408] sm:$0xff] }
 0x1ec   :  { %v2011_v0 = vpack.c.bf16 %v1943_v62, %v1943_v62  ;;  %v2013_v4 = vpack.c.bf16 %v1945_v63, %v1945_v63  ;;  %v6786_v57 = vcombine.high %v2528_v54, %v2544_v55  ;;  %v2560_v58 = vld [vmem:[%s9805_s5 + $0x410] sm:$0xff]  ;;  %v6785_v60 = vcombine.low %v2528_v54, %v2544_v55  ;;  %v2575_v39 = vld [vmem:[%s9805_s5 + $0x488] sm:$0xff] }
 0x1ed   :  { %v2576_v59 = vld [vmem:[%s9805_s5 + $0x490] sm:$0xff]  ;;  %5700 = vmatprep.subr.bf16.mxu1 %v7134_v43  ;;  %v2578_v43 = vld [vmem:[%s9805_s5 + $0x4a0] sm:$0xff] }
 0x1ee   :  { %2378 = vmatprep.mubr.bf16.mxu0 %v2011_v0  ;;  %v6818_v61 = vcombine.high %v2560_v58, %v2576_v59  ;;  %v2592_v62 = vld [vmem:[%s9805_s5 + $0x510] sm:$0xff]  ;;  %v6817_v0 = vcombine.low %v2560_v58, %v2576_v59  ;;  %5701 = vmatpush1.bf16.msra.mxu1 %v7133_v45  ;;  %v2434_v58 = vld [vmem:[%s9805_s5 + $0x20] sm:$0xff] }
 0x1ef   :  { %2379 = vmatmul.mubr.bf16.vlgmr.msra.gmra.mrb[4].mxu0 %v2010_v2  ;;  %v2608_v63 = vld [vmem:[%s9805_s5 + $0x590] sm:$0xff] }
 0x1f0   :  { %2388 = vmatpush1.bf16.msra.mxu0 %v7666_v1  ;;  %2419 = vmatprep.mubr.bf16.mxu0 %v2013_v4  ;;  %v6850_v1 = vcombine.high %v2592_v62, %v2608_v63  ;;  %v2624_v2 = vld [vmem:[%s9805_s5 + $0x610] sm:$0xff]  ;;  %v6849_v4 = vcombine.low %v2592_v62, %v2608_v63 }
 0x1f1   :  { %2389 = vmatprep.subr.bf16.mxu0 %v7671_v3  ;;  %v2640_v3 = vld [vmem:[%s9805_s5 + $0x690] sm:$0xff] }
 0x1f2   :  { %v2848_v31 = vld [vmem:[%s9805_s5 + $0xd10] sm:$0xff] }
 0x1f3   :  { %v2912_v50 = vld [vmem:[%s9805_s5 + $0xf10] sm:$0xff] }
 0x1f4   :  { %2390 = vmatpush1.bf16.msra.mxu0 %v7669_v5  ;;  %v6882_v5 = vcombine.high %v2624_v2, %v2640_v3 }
 0x1f5   :  { %2391 = vmatprep.subr.bf16.mxu0 %v7674_v6  ;;  %v2656_v6 = vld [vmem:[%s9805_s5 + $0x710] sm:$0xff] }
 0x1f8   :  { %2392 = vmatpush1.bf16.msra.mxu0 %v7672_v7  ;;  %v2672_v7 = vld [vmem:[%s9805_s5 + $0x790] sm:$0xff] }
 0x1f9   :  { %2393 = vmatprep.subr.bf16.mxu0 %v7677_v8  ;;  %v6881_v8 = vcombine.low %v2624_v2, %v2640_v3 }
 0x1fc   :  { %2394 = vmatpush1.bf16.msra.mxu0 %v7675_v9  ;;  %v6914_v9 = vcombine.high %v2656_v6, %v2672_v7 }
 0x1fd   :  { %2395 = vmatprep.subr.bf16.mxu0 %v7680_v10  ;;  %v2688_v10 = vld [vmem:[%s9805_s5 + $0x810] sm:$0xff] }
 0x200   :  { %2396 = vmatpush1.bf16.msra.mxu0 %v7678_v11  ;;  %v2704_v11 = vld [vmem:[%s9805_s5 + $0x890] sm:$0xff] }
 0x201   :  { %2397 = vmatprep.subr.bf16.mxu0 %v7683_v12  ;;  %v6913_v12 = vcombine.low %v2656_v6, %v2672_v7 }
 0x204   :  { %2398 = vmatpush1.bf16.msra.mxu0 %v7681_v13  ;;  %v6946_v13 = vcombine.high %v2688_v10, %v2704_v11 }
 0x205   :  { %2399 = vmatprep.subr.bf16.mxu0 %v7686_v14  ;;  %v2720_v14 = vld [vmem:[%s9805_s5 + $0x910] sm:$0xff] }
 0x208   :  { %2400 = vmatpush1.bf16.msra.mxu0 %v7684_v15  ;;  %v2736_v15 = vld [vmem:[%s9805_s5 + $0x990] sm:$0xff] }
 0x209   :  { %2401 = vmatprep.subr.bf16.mxu0 %v7689_v16  ;;  %v6945_v16 = vcombine.low %v2688_v10, %v2704_v11  ;;  %v2463_v11 = vld [vmem:[%s9805_s5 + $0x108] sm:$0xff] }
 0x20c   :  { %2402 = vmatpush1.bf16.msra.mxu0 %v7687_v17  ;;  %v6978_v17 = vcombine.high %v2720_v14, %v2736_v15 }
 0x20d   :  { %2403 = vmatprep.subr.bf16.mxu0 %v7692_v18  ;;  %v2752_v18 = vld [vmem:[%s9805_s5 + $0xa10] sm:$0xff] }
 0x210   :  { %2404 = vmatpush1.bf16.msra.mxu0 %v7690_v19  ;;  %v2768_v19 = vld [vmem:[%s9805_s5 + $0xa90] sm:$0xff] }
 0x211   :  { %2405 = vmatprep.subr.bf16.mxu0 %v7695_v20  ;;  %v6977_v20 = vcombine.low %v2720_v14, %v2736_v15  ;;  %v2482_v14 = vld [vmem:[%s9805_s5 + $0x1a0] sm:$0xff] }
 0x214   :  { %2406 = vmatpush1.bf16.msra.mxu0 %v7693_v21  ;;  %v7010_v21 = vcombine.high %v2752_v18, %v2768_v19 }
 0x215   :  { %2407 = vmatprep.subr.bf16.mxu0 %v7698_v22  ;;  %v2784_v22 = vld [vmem:[%s9805_s5 + $0xb10] sm:$0xff] }
 0x218   :  { %2408 = vmatpush1.bf16.msra.mxu0 %v7696_v23  ;;  %v2800_v23 = vld [vmem:[%s9805_s5 + $0xb90] sm:$0xff] }
 0x219   :  { %2409 = vmatprep.subr.bf16.mxu0 %v7701_v24  ;;  %v7009_v24 = vcombine.low %v2752_v18, %v2768_v19 }
 0x21c   :  { %2410 = vmatpush1.bf16.msra.mxu0 %v7699_v25  ;;  %v7042_v25 = vcombine.high %v2784_v22, %v2800_v23 }
 0x21d   :  { %2411 = vmatprep.subr.bf16.mxu0 %v7704_v26  ;;  %v2816_v26 = vld [vmem:[%s9805_s5 + $0xc10] sm:$0xff] }
 0x220   :  { %2412 = vmatpush1.bf16.msra.mxu0 %v7702_v27  ;;  %v2832_v27 = vld [vmem:[%s9805_s5 + $0xc90] sm:$0xff] }
 0x221   :  { %2413 = vmatprep.subr.bf16.mxu0 %v7707_v29  ;;  %v7041_v29 = vcombine.low %v2784_v22, %v2800_v23  ;;  %v2514_v22 = vld [vmem:[%s9805_s5 + $0x2a0] sm:$0xff] }
 0x224   :  { %2414 = vmatpush1.bf16.msra.mxu0 %v7705_v30  ;;  %v7074_v30 = vcombine.high %v2816_v26, %v2832_v27 }
 0x225   :  { %2415 = vmatprep.subr.bf16.mxu0 %v7710_v32  ;;  %v2864_v32 = vld [vmem:[%s9805_s5 + $0xd90] sm:$0xff] }
 0x226   :  { %v7106_v35 = vcombine.high %v2848_v31, %v2864_v32 }
 0x228   :  { %2416 = vmatpush1.bf16.msra.mxu0 %v7708_v34  ;;  %v7073_v34 = vcombine.low %v2816_v26, %v2832_v27  ;;  %v2527_v27 = vld [vmem:[%s9805_s5 + $0x308] sm:$0xff] }
 0x229   :  { %2417 = vmatprep.subr.bf16.mxu0 %v7713_v36  ;;  %v7105_v36 = vcombine.low %v2848_v31, %v2864_v32  ;;  %v2546_v31 = vld [vmem:[%s9805_s5 + $0x3a0] sm:$0xff] }
 0x22c   :  { %2418 = vmatpush1.bf16.msra.mxu0 %v7711_v40  ;;  %v2880_v40 = vld [vmem:[%s9805_s5 + $0xe10] sm:$0xff] }
 0x22d   :  { %5754 = vmatprep.subr.bf16.mxu0 %v6690_v44  ;;  %v2896_v44 = vld [vmem:[%s9805_s5 + $0xe90] sm:$0xff] }
 0x22e   :  { %v7137_v46 = vcombine.low %v2880_v40, %v2896_v44 }
 0x22f   :  { %2420 = vmatmul.mubr.bf16.vlgmr.msra.gmra.mrb[4].mxu0 %v2012_v48  ;;  %v2910_v48 = vld [vmem:[%s9805_s5 + $0xf00] sm:$0xff] }
 0x230   :  { %5755 = vmatpush1.bf16.msra.mxu0 %v6689_v47  ;;  %v7138_v47 = vcombine.high %v2880_v40, %v2896_v44  ;;  %v2562_v40 = vld [vmem:[%s9805_s5 + $0x420] sm:$0xff] }
 0x231   :  { %5756 = vmatprep.subr.bf16.mxu0 %v6722_v49  ;;  %v2926_v49 = vld [vmem:[%s9805_s5 + $0xf80] sm:$0xff] }
 0x232   :  { %v7166_v51 = vcombine.high %v2910_v48, %v2926_v49 }
 0x234   :  { %5757 = vmatpush1.bf16.msra.mxu0 %v6721_v52  ;;  %v2928_v52 = vld [vmem:[%s9805_s5 + $0xf90] sm:$0xff]  ;;  %5702 = vmatprep.subr.bf16.mxu1 %v7166_v51  ;;  %v2610_v51 = vld [vmem:[%s9805_s5 + $0x5a0] sm:$0xff] }
 0x235   :  { %5758 = vmatprep.subr.bf16.mxu0 %v6754_v53  ;;  %v7165_v53 = vcombine.low %v2910_v48, %v2926_v49  ;;  %v7169_v54 = vcombine.low %v2912_v50, %v2928_v52  ;;  %v7170_v55 = vcombine.high %v2912_v50, %v2928_v52  ;;  %v2591_v48 = vld [vmem:[%s9805_s5 + $0x508] sm:$0xff]  ;;  %v2594_v50 = vld [vmem:[%s9805_s5 + $0x520] sm:$0xff]  ;;  %v6815_v52 = vcombine.low %v2559_v37, %v2575_v39 }
 0x236   :  { %v2607_v49 = vld [vmem:[%s9805_s5 + $0x588] sm:$0xff] }
 0x237   :  { %5703 = vmatpush1.bf16.msra.mxu1 %v7165_v53  ;;  %v6821_v53 = vcombine.low %v2562_v40, %v2578_v43 }
 0x238   :  { %5759 = vmatpush1.bf16.msra.mxu0 %v6753_v56  ;;  %v2431_v56 = vld [vmem:[%s9805_s5 + $0x8] sm:$0xff] }
 0x239   :  { %5760 = vmatprep.subr.bf16.mxu0 %v6786_v57  ;;  %v2447_v57 = vld [vmem:[%s9805_s5 + $0x88] sm:$0xff] }
 0x23a   :  { %v6688_v59 = vcombine.high %v2431_v56, %v2447_v57 }
 0x23c   :  { %5761 = vmatpush1.bf16.msra.mxu0 %v6785_v60  ;;  %v2450_v60 = vld [vmem:[%s9805_s5 + $0xa0] sm:$0xff]  ;;  %5713 = vmatprep.subr.bf16.mxu1 %v6688_v59 }
 0x23d   :  { %5762 = vmatprep.subr.bf16.mxu0 %v6818_v61  ;;  %v6687_v61 = vcombine.low %v2431_v56, %v2447_v57  ;;  %v6693_v62 = vcombine.low %v2434_v58, %v2450_v60  ;;  %v6694_v63 = vcombine.high %v2434_v58, %v2450_v60  ;;  %v2623_v56 = vld [vmem:[%s9805_s5 + $0x608] sm:$0xff]  ;;  %v2626_v58 = vld [vmem:[%s9805_s5 + $0x620] sm:$0xff]  ;;  %v6847_v60 = vcombine.low %v2591_v48, %v2607_v49 }
 0x23e   :  { %v2639_v57 = vld [vmem:[%s9805_s5 + $0x688] sm:$0xff]  ;;  %v2642_v59 = vld [vmem:[%s9805_s5 + $0x6a0] sm:$0xff] }
 0x240   :  { %5763 = vmatpush1.bf16.msra.mxu0 %v6817_v0  ;;  %v2014_v0 = vld [vmem:[%s9804_s4] sm:$0x3] }
 0x241   :  { %5764 = vmatprep.subr.bf16.mxu0 %v6850_v1  ;;  %v2019_v1 = vrot.slane %v2014_v0, %v7998_v38  ;;  %v2023_v2 = vrot.slane %v2014_v0, %v8006_v41  ;;  %v2655_v0 = vld [vmem:[%s9805_s5 + $0x708] sm:$0xff] }
 0x244   :  { %5765 = vmatpush1.bf16.msra.mxu0 %v6849_v4 }
 0x245   :  { %5766 = vmatprep.subr.bf16.mxu0 %v6882_v5 }
 0x248   :  { %5767 = vmatpush1.bf16.msra.mxu0 %v6881_v8 }
 0x249   :  { %5768 = vmatprep.subr.bf16.mxu0 %v6914_v9 }
 0x24c   :  { %5769 = vmatpush1.bf16.msra.mxu0 %v6913_v12  ;;  %v2479_v12 = vld [vmem:[%s9805_s5 + $0x188] sm:$0xff] }
 0x24d   :  { %5770 = vmatprep.subr.bf16.mxu0 %v6946_v13  ;;  %v2466_v13 = vld [vmem:[%s9805_s5 + $0x120] sm:$0xff]  ;;  %v6720_v18 = vcombine.high %v2463_v11, %v2479_v12  ;;  %v6719_v23 = vcombine.low %v2463_v11, %v2479_v12 }
 0x24e   :  { %v6726_v19 = vcombine.high %v2466_v13, %v2482_v14  ;;  %v2706_v11 = vld [vmem:[%s9805_s5 + $0x8a0] sm:$0xff] }
 0x250   :  { %5771 = vmatpush1.bf16.msra.mxu0 %v6945_v16 }
 0x251   :  { %5772 = vmatprep.subr.bf16.mxu0 %v6978_v17  ;;  %v2495_v17 = vld [vmem:[%s9805_s5 + $0x208] sm:$0xff] }
 0x254   :  { %5773 = vmatpush1.bf16.msra.mxu0 %v6977_v20  ;;  %v2511_v20 = vld [vmem:[%s9805_s5 + $0x288] sm:$0xff] }
 0x255   :  { %5774 = vmatprep.subr.bf16.mxu0 %v7010_v21  ;;  %v2498_v21 = vld [vmem:[%s9805_s5 + $0x220] sm:$0xff]  ;;  %v6751_v32 = vcombine.low %v2495_v17, %v2511_v20 }
 0x256   :  { %v6758_v26 = vcombine.high %v2498_v21, %v2514_v22 }
 0x258   :  { %5775 = vmatpush1.bf16.msra.mxu0 %v7009_v24  ;;  %v6725_v24 = vcombine.low %v2466_v13, %v2482_v14 }
 0x259   :  { %5776 = vmatprep.subr.bf16.mxu0 %v7042_v25  ;;  %v6752_v25 = vcombine.high %v2495_v17, %v2511_v20  ;;  %v2722_v20 = vld [vmem:[%s9805_s5 + $0x920] sm:$0xff] }
 0x25c   :  { %5777 = vmatpush1.bf16.msra.mxu0 %v7041_v29  ;;  %v2543_v29 = vld [vmem:[%s9805_s5 + $0x388] sm:$0xff] }
 0x25d   :  { %5778 = vmatprep.subr.bf16.mxu0 %v7074_v30  ;;  %v2530_v30 = vld [vmem:[%s9805_s5 + $0x320] sm:$0xff]  ;;  %v6783_v44 = vcombine.low %v2527_v27, %v2543_v29 }
 0x25e   :  { %v6789_v45 = vcombine.low %v2530_v30, %v2546_v31 }
 0x260   :  { %5779 = vmatpush1.bf16.msra.mxu0 %v7073_v34  ;;  %v6757_v34 = vcombine.low %v2498_v21, %v2514_v22  ;;  %v2738_v21 = vld [vmem:[%s9805_s5 + $0x9a0] sm:$0xff] }
 0x261   :  { %5780 = vmatprep.subr.bf16.mxu0 %v7106_v35  ;;  %v6784_v35 = vcombine.high %v2527_v27, %v2543_v29  ;;  %v2767_v27 = vld [vmem:[%s9805_s5 + $0xa88] sm:$0xff]  ;;  %v2754_v29 = vld [vmem:[%s9805_s5 + $0xa20] sm:$0xff] }
 0x264   :  { %5781 = vmatpush1.bf16.msra.mxu0 %v7105_v36  ;;  %v6790_v36 = vcombine.high %v2530_v30, %v2546_v31  ;;  %v2770_v30 = vld [vmem:[%s9805_s5 + $0xaa0] sm:$0xff] }
 0x265   :  { %5782 = vmatprep.subr.bf16.mxu0 %v7138_v47  ;;  %v6822_v47 = vcombine.high %v2562_v40, %v2578_v43  ;;  %v2802_v40 = vld [vmem:[%s9805_s5 + $0xba0] sm:$0xff] }
 0x268   :  { %5783 = vmatpush1.bf16.msra.mxu0 %v7137_v46  ;;  %v6816_v46 = vcombine.high %v2559_v37, %v2575_v39  ;;  %v2799_v37 = vld [vmem:[%s9805_s5 + $0xb88] sm:$0xff]  ;;  %v2786_v39 = vld [vmem:[%s9805_s5 + $0xb20] sm:$0xff] }
 0x269   :  { %5784 = vmatprep.subr.bf16.mxu0 %v7170_v55  ;;  %v6854_v55 = vcombine.high %v2594_v50, %v2610_v51 }
 0x26c   :  { %5785 = vmatpush1.bf16.msra.mxu0 %v7169_v54  ;;  %v6848_v54 = vcombine.high %v2591_v48, %v2607_v49  ;;  %v2831_v48 = vld [vmem:[%s9805_s5 + $0xc88] sm:$0xff]  ;;  %v2818_v49 = vld [vmem:[%s9805_s5 + $0xc20] sm:$0xff] }
 0x26d   :  { %5836 = vmatprep.subr.bf16.mxu0 %v6694_v63  ;;  %v6886_v63 = vcombine.high %v2626_v58, %v2642_v59 }
 0x302   :  { %v2421_v3 = vpop.f32.mrb[4].mxu0 }
 0x303   :  { %v7201_v4 = vadd.f32 %v2421_v3, %v2019_v1  ;;  %v2423_v5 = vpop.f32.mrb[5].mxu0  ;;  %v2671_v1 = vld [vmem:[%s9805_s5 + $0x788] sm:$0xff]  ;;  %v2674_v3 = vld [vmem:[%s9805_s5 + $0x7a0] sm:$0xff] }
 0x304   :  { %v7202_v6 = vadd.f32 %v2423_v5, %v2023_v2  ;;  %v2425_v7 = vpop.f32.mrb[6].mxu0  ;;  %v2658_v2 = vld [vmem:[%s9805_s5 + $0x720] sm:$0xff]  ;;  %v6885_v5 = vcombine.low %v2626_v58, %v2642_v59  ;;  %v6911_v12 = vcombine.low %v2655_v0, %v2671_v1 }
 0x305   :  { %v2428_v8 = vmax.f32 %v7201_v4, 0.0  ;;  %v2426_v9 = vpop.f32.mrb[7].mxu0  ;;  %v6879_v4 = vcombine.low %v2623_v56, %v2639_v57  ;;  %v6918_v7 = vcombine.high %v2658_v2, %v2674_v3  ;;  %v6917_v13 = vcombine.low %v2658_v2, %v2674_v3  ;;  %v2866_v58 = vld [vmem:[%s9805_s5 + $0xda0] sm:$0xff] }
 0x306   :  { %v2429_v10 = vmax.f32 %v7202_v6, 0.0  ;;  %v6912_v6 = vcombine.high %v2655_v0, %v2671_v1  ;;  %v2703_v9 = vld [vmem:[%s9805_s5 + $0x888] sm:$0xff]  ;;  %v2882_v1 = vld [vmem:[%s9805_s5 + $0xe20] sm:$0xff] }
 0x307   :  { %v8263_v16 = vpack.c.bf16 %v2428_v8, %v2428_v8  ;;  %v2687_v8 = vld [vmem:[%s9805_s5 + $0x808] sm:$0xff]  ;;  %v2898_v2 = vld [vmem:[%s9805_s5 + $0xea0] sm:$0xff] }
 0x308   :  { %v8261_v15 = vpack.c.bf16 %v2429_v10, %v2429_v10  ;;  %v2690_v10 = vld [vmem:[%s9805_s5 + $0x820] sm:$0xff]  ;;  %v6944_v14 = vcombine.high %v2687_v8, %v2703_v9  ;;  %v6943_v22 = vcombine.low %v2687_v8, %v2703_v9  ;;  %v2895_v0 = vld [vmem:[%s9805_s5 + $0xe88] sm:$0xff] }
 0x309   :  { %v6950_v17 = vcombine.high %v2690_v10, %v2706_v11  ;;  %v2927_v8 = vld [vmem:[%s9805_s5 + $0xf88] sm:$0xff]  ;;  %v2914_v9 = vld [vmem:[%s9805_s5 + $0xf20] sm:$0xff] }
 0x30a   :  { %5704 = vmatprep.mubr.bf16.mxu1 %v8261_v15  ;;  %5786 = vmatprep.mubr.bf16.mxu0 %v8261_v15 }
 0x30b   :  { %5705 = vmatmul.mubr.bf16.vlgmr.msra.gmra.mrb[4].mxu1 %v8263_v16  ;;  %5787 = vmatmul.mubr.bf16.vlgmr.msra.gmra.mrb[8].mxu0 %v8263_v16 }
 0x30c   :  { %5714 = vmatpush1.bf16.msra.mxu1 %v6687_v61  ;;  %5837 = vmatpush1.bf16.msra.mxu0 %v6693_v62  ;;  %v6853_v61 = vcombine.low %v2594_v50, %v2610_v51  ;;  %v6880_v62 = vcombine.high %v2623_v56, %v2639_v57  ;;  %v2834_v50 = vld [vmem:[%s9805_s5 + $0xca0] sm:$0xff]  ;;  %v2863_v56 = vld [vmem:[%s9805_s5 + $0xd88] sm:$0xff] }
 0x30d   :  { %5745 = vmatprep.mubr.bf16.mxu1 %v8261_v15  ;;  %5868 = vmatprep.mubr.bf16.mxu0 %v8261_v15  ;;  %v2850_v57 = vld [vmem:[%s9805_s5 + $0xd20] sm:$0xff] }
 0x30e   :  { %5715 = vmatprep.subr.bf16.mxu1 %v6720_v18  ;;  %5838 = vmatprep.subr.bf16.mxu0 %v6726_v19  ;;  %v2719_v18 = vld [vmem:[%s9805_s5 + $0x908] sm:$0xff] }
 0x30f   :  { %v2735_v19 = vld [vmem:[%s9805_s5 + $0x988] sm:$0xff] }
 0x310   :  { %5716 = vmatpush1.bf16.msra.mxu1 %v6719_v23  ;;  %5839 = vmatpush1.bf16.msra.mxu0 %v6725_v24  ;;  %v6949_v23 = vcombine.low %v2690_v10, %v2706_v11  ;;  %v6976_v24 = vcombine.high %v2719_v18, %v2735_v19  ;;  %v6975_v31 = vcombine.low %v2719_v18, %v2735_v19  ;;  %v2930_v10 = vld [vmem:[%s9805_s5 + $0xfa0] sm:$0xff]  ;;  %v2449_v18 = vld [vmem:[%s9805_s5 + $0x98] sm:$0xff]  ;;  %v2436_v19 = vld [vmem:[%s9805_s5 + $0x30] sm:$0xff] }
 0x311   :  { %5717 = vmatprep.subr.bf16.mxu1 %v6752_v25  ;;  %5840 = vmatprep.subr.bf16.mxu0 %v6758_v26  ;;  %v6982_v25 = vcombine.high %v2722_v20, %v2738_v21  ;;  %v2751_v26 = vld [vmem:[%s9805_s5 + $0xa08] sm:$0xff] }
 0x312   :  { %v7007_v43 = vcombine.low %v2751_v26, %v2767_v27 }
 0x314   :  { %5718 = vmatpush1.bf16.msra.mxu1 %v6751_v32  ;;  %5841 = vmatpush1.bf16.msra.mxu0 %v6757_v34  ;;  %v6981_v32 = vcombine.low %v2722_v20, %v2738_v21  ;;  %v7008_v34 = vcombine.high %v2751_v26, %v2767_v27  ;;  %v2452_v20 = vld [vmem:[%s9805_s5 + $0xb0] sm:$0xff]  ;;  %v2481_v26 = vld [vmem:[%s9805_s5 + $0x198] sm:$0xff] }
 0x315   :  { %5719 = vmatprep.subr.bf16.mxu1 %v6784_v35  ;;  %5842 = vmatprep.subr.bf16.mxu0 %v6790_v36  ;;  %v7014_v35 = vcombine.high %v2754_v29, %v2770_v30  ;;  %v2783_v36 = vld [vmem:[%s9805_s5 + $0xb08] sm:$0xff]  ;;  %v2468_v27 = vld [vmem:[%s9805_s5 + $0x130] sm:$0xff] }
 0x316   :  { %v7039_v51 = vcombine.low %v2783_v36, %v2799_v37 }
 0x318   :  { %5720 = vmatpush1.bf16.msra.mxu1 %v6783_v44  ;;  %5843 = vmatpush1.bf16.msra.mxu0 %v6789_v45  ;;  %v7013_v44 = vcombine.low %v2754_v29, %v2770_v30  ;;  %v7040_v45 = vcombine.high %v2783_v36, %v2799_v37  ;;  %v2484_v29 = vld [vmem:[%s9805_s5 + $0x1b0] sm:$0xff]  ;;  %v2513_v36 = vld [vmem:[%s9805_s5 + $0x298] sm:$0xff] }
 0x319   :  { %5721 = vmatprep.subr.bf16.mxu1 %v6816_v46  ;;  %5844 = vmatprep.subr.bf16.mxu0 %v6822_v47  ;;  %v7046_v46 = vcombine.high %v2786_v39, %v2802_v40  ;;  %v2815_v47 = vld [vmem:[%s9805_s5 + $0xc08] sm:$0xff]  ;;  %v2500_v37 = vld [vmem:[%s9805_s5 + $0x230] sm:$0xff] }
 0x31a   :  { %v7071_v59 = vcombine.low %v2815_v47, %v2831_v48 }
 0x31c   :  { %5722 = vmatpush1.bf16.msra.mxu1 %v6815_v52  ;;  %5845 = vmatpush1.bf16.msra.mxu0 %v6821_v53  ;;  %v7045_v52 = vcombine.low %v2786_v39, %v2802_v40  ;;  %v7072_v53 = vcombine.high %v2815_v47, %v2831_v48  ;;  %v2516_v39 = vld [vmem:[%s9805_s5 + $0x2b0] sm:$0xff]  ;;  %v2545_v47 = vld [vmem:[%s9805_s5 + $0x398] sm:$0xff] }
 0x31d   :  { %5723 = vmatprep.subr.bf16.mxu1 %v6848_v54  ;;  %5846 = vmatprep.subr.bf16.mxu0 %v6854_v55  ;;  %v7078_v54 = vcombine.high %v2818_v49, %v2834_v50  ;;  %v2847_v55 = vld [vmem:[%s9805_s5 + $0xd08] sm:$0xff]  ;;  %v2532_v48 = vld [vmem:[%s9805_s5 + $0x330] sm:$0xff] }
 0x31e   :  { %v7103_v3 = vcombine.low %v2847_v55, %v2863_v56 }
 0x320   :  { %5724 = vmatpush1.bf16.msra.mxu1 %v6847_v60  ;;  %5847 = vmatpush1.bf16.msra.mxu0 %v6853_v61  ;;  %v7077_v60 = vcombine.low %v2818_v49, %v2834_v50  ;;  %v7104_v61 = vcombine.high %v2847_v55, %v2863_v56  ;;  %v2548_v49 = vld [vmem:[%s9805_s5 + $0x3b0] sm:$0xff]  ;;  %v2577_v55 = vld [vmem:[%s9805_s5 + $0x498] sm:$0xff] }
 0x321   :  { %5725 = vmatprep.subr.bf16.mxu1 %v6880_v62  ;;  %5848 = vmatprep.subr.bf16.mxu0 %v6886_v63  ;;  %v7110_v62 = vcombine.high %v2850_v57, %v2866_v58  ;;  %v2879_v63 = vld [vmem:[%s9805_s5 + $0xe08] sm:$0xff]  ;;  %v2564_v56 = vld [vmem:[%s9805_s5 + $0x430] sm:$0xff] }
 0x322   :  { %v7135_v11 = vcombine.low %v2879_v63, %v2895_v0 }
 0x324   :  { %5726 = vmatpush1.bf16.msra.mxu1 %v6879_v4  ;;  %5849 = vmatpush1.bf16.msra.mxu0 %v6885_v5  ;;  %v7109_v4 = vcombine.low %v2850_v57, %v2866_v58  ;;  %v7136_v5 = vcombine.high %v2879_v63, %v2895_v0  ;;  %v2580_v57 = vld [vmem:[%s9805_s5 + $0x4b0] sm:$0xff]  ;;  %v2609_v63 = vld [vmem:[%s9805_s5 + $0x598] sm:$0xff] }
 0x325   :  { %5727 = vmatprep.subr.bf16.mxu1 %v6912_v6  ;;  %5850 = vmatprep.subr.bf16.mxu0 %v6918_v7  ;;  %v7142_v6 = vcombine.high %v2882_v1, %v2898_v2  ;;  %v2911_v7 = vld [vmem:[%s9805_s5 + $0xf08] sm:$0xff]  ;;  %v2596_v0 = vld [vmem:[%s9805_s5 + $0x530] sm:$0xff] }
 0x326   :  { %v7167_v21 = vcombine.low %v2911_v7, %v2927_v8 }
 0x328   :  { %5728 = vmatpush1.bf16.msra.mxu1 %v6911_v12  ;;  %5851 = vmatpush1.bf16.msra.mxu0 %v6917_v13  ;;  %v7141_v12 = vcombine.low %v2882_v1, %v2898_v2  ;;  %v7168_v13 = vcombine.high %v2911_v7, %v2927_v8  ;;  %v2612_v1 = vld [vmem:[%s9805_s5 + $0x5b0] sm:$0xff]  ;;  %v2641_v7 = vld [vmem:[%s9805_s5 + $0x698] sm:$0xff] }
 0x329   :  { %5729 = vmatprep.subr.bf16.mxu1 %v6944_v14  ;;  %5852 = vmatprep.subr.bf16.mxu0 %v6950_v17  ;;  %v7174_v14 = vcombine.high %v2914_v9, %v2930_v10  ;;  %v2433_v17 = vld [vmem:[%s9805_s5 + $0x18] sm:$0xff]  ;;  %v2628_v8 = vld [vmem:[%s9805_s5 + $0x630] sm:$0xff] }
 0x32a   :  { %v6691_v30 = vcombine.low %v2433_v17, %v2449_v18 }
 0x32c   :  { %5730 = vmatpush1.bf16.msra.mxu1 %v6943_v22  ;;  %5853 = vmatpush1.bf16.msra.mxu0 %v6949_v23  ;;  %v7173_v22 = vcombine.low %v2914_v9, %v2930_v10  ;;  %v6692_v23 = vcombine.high %v2433_v17, %v2449_v18  ;;  %v2644_v9 = vld [vmem:[%s9805_s5 + $0x6b0] sm:$0xff]  ;;  %v2673_v17 = vld [vmem:[%s9805_s5 + $0x798] sm:$0xff] }
 0x32d   :  { %5731 = vmatprep.subr.bf16.mxu1 %v6976_v24  ;;  %5854 = vmatprep.subr.bf16.mxu0 %v6982_v25  ;;  %v6698_v24 = vcombine.high %v2436_v19, %v2452_v20  ;;  %v2465_v25 = vld [vmem:[%s9805_s5 + $0x118] sm:$0xff]  ;;  %v2660_v18 = vld [vmem:[%s9805_s5 + $0x730] sm:$0xff] }
 0x32e   :  { %v6723_v40 = vcombine.low %v2465_v25, %v2481_v26 }
 0x330   :  { %5732 = vmatpush1.bf16.msra.mxu1 %v6975_v31  ;;  %5855 = vmatpush1.bf16.msra.mxu0 %v6981_v32  ;;  %v6697_v31 = vcombine.low %v2436_v19, %v2452_v20  ;;  %v6724_v32 = vcombine.high %v2465_v25, %v2481_v26  ;;  %v2676_v19 = vld [vmem:[%s9805_s5 + $0x7b0] sm:$0xff]  ;;  %v2705_v25 = vld [vmem:[%s9805_s5 + $0x898] sm:$0xff] }
 0x331   :  { %5733 = vmatprep.subr.bf16.mxu1 %v7008_v34  ;;  %5856 = vmatprep.subr.bf16.mxu0 %v7014_v35  ;;  %v6730_v34 = vcombine.high %v2468_v27, %v2484_v29  ;;  %v2497_v35 = vld [vmem:[%s9805_s5 + $0x218] sm:$0xff]  ;;  %v2692_v26 = vld [vmem:[%s9805_s5 + $0x830] sm:$0xff] }
 0x332   :  { %v6755_v50 = vcombine.low %v2497_v35, %v2513_v36 }
 0x334   :  { %5734 = vmatpush1.bf16.msra.mxu1 %v7007_v43  ;;  %5857 = vmatpush1.bf16.msra.mxu0 %v7013_v44  ;;  %v6729_v43 = vcombine.low %v2468_v27, %v2484_v29  ;;  %v6756_v44 = vcombine.high %v2497_v35, %v2513_v36  ;;  %v2708_v27 = vld [vmem:[%s9805_s5 + $0x8b0] sm:$0xff]  ;;  %v2737_v35 = vld [vmem:[%s9805_s5 + $0x998] sm:$0xff] }
 0x335   :  { %5735 = vmatprep.subr.bf16.mxu1 %v7040_v45  ;;  %5858 = vmatprep.subr.bf16.mxu0 %v7046_v46  ;;  %v6762_v45 = vcombine.high %v2500_v37, %v2516_v39  ;;  %v2529_v46 = vld [vmem:[%s9805_s5 + $0x318] sm:$0xff]  ;;  %v2724_v36 = vld [vmem:[%s9805_s5 + $0x930] sm:$0xff] }
 0x336   :  { %v6787_v58 = vcombine.low %v2529_v46, %v2545_v47 }
 0x338   :  { %5736 = vmatpush1.bf16.msra.mxu1 %v7039_v51  ;;  %5859 = vmatpush1.bf16.msra.mxu0 %v7045_v52  ;;  %v6761_v51 = vcombine.low %v2500_v37, %v2516_v39  ;;  %v6788_v52 = vcombine.high %v2529_v46, %v2545_v47  ;;  %v2740_v37 = vld [vmem:[%s9805_s5 + $0x9b0] sm:$0xff]  ;;  %v2769_v46 = vld [vmem:[%s9805_s5 + $0xa98] sm:$0xff] }
 0x339   :  { %5737 = vmatprep.subr.bf16.mxu1 %v7072_v53  ;;  %5860 = vmatprep.subr.bf16.mxu0 %v7078_v54  ;;  %v6794_v53 = vcombine.high %v2532_v48, %v2548_v49  ;;  %v2561_v54 = vld [vmem:[%s9805_s5 + $0x418] sm:$0xff]  ;;  %v2756_v47 = vld [vmem:[%s9805_s5 + $0xa30] sm:$0xff] }
 0x33a   :  { %v6819_v2 = vcombine.low %v2561_v54, %v2577_v55 }
 0x33c   :  { %5738 = vmatpush1.bf16.msra.mxu1 %v7071_v59  ;;  %5861 = vmatpush1.bf16.msra.mxu0 %v7077_v60  ;;  %v6793_v59 = vcombine.low %v2532_v48, %v2548_v49  ;;  %v6820_v60 = vcombine.high %v2561_v54, %v2577_v55  ;;  %v2772_v48 = vld [vmem:[%s9805_s5 + $0xab0] sm:$0xff]  ;;  %v2801_v54 = vld [vmem:[%s9805_s5 + $0xb98] sm:$0xff] }
 0x33d   :  { %5739 = vmatprep.subr.bf16.mxu1 %v7104_v61  ;;  %5862 = vmatprep.subr.bf16.mxu0 %v7110_v62  ;;  %v6826_v61 = vcombine.high %v2564_v56, %v2580_v57  ;;  %v2593_v62 = vld [vmem:[%s9805_s5 + $0x518] sm:$0xff]  ;;  %v2788_v55 = vld [vmem:[%s9805_s5 + $0xb30] sm:$0xff] }
 0x33e   :  { %v6851_v10 = vcombine.low %v2593_v62, %v2609_v63 }
 0x340   :  { %5740 = vmatpush1.bf16.msra.mxu1 %v7103_v3  ;;  %5863 = vmatpush1.bf16.msra.mxu0 %v7109_v4  ;;  %v6825_v3 = vcombine.low %v2564_v56, %v2580_v57  ;;  %v6852_v4 = vcombine.high %v2593_v62, %v2609_v63  ;;  %v2804_v56 = vld [vmem:[%s9805_s5 + $0xbb0] sm:$0xff]  ;;  %v2833_v62 = vld [vmem:[%s9805_s5 + $0xc98] sm:$0xff] }
 0x341   :  { %5741 = vmatprep.subr.bf16.mxu1 %v7136_v5  ;;  %5864 = vmatprep.subr.bf16.mxu0 %v7142_v6  ;;  %v6858_v5 = vcombine.high %v2596_v0, %v2612_v1  ;;  %v2625_v6 = vld [vmem:[%s9805_s5 + $0x618] sm:$0xff]  ;;  %v2820_v63 = vld [vmem:[%s9805_s5 + $0xc30] sm:$0xff] }
 0x342   :  { %v6883_v20 = vcombine.low %v2625_v6, %v2641_v7 }
 0x344   :  { %5742 = vmatpush1.bf16.msra.mxu1 %v7135_v11  ;;  %5865 = vmatpush1.bf16.msra.mxu0 %v7141_v12  ;;  %v6857_v11 = vcombine.low %v2596_v0, %v2612_v1  ;;  %v6884_v12 = vcombine.high %v2625_v6, %v2641_v7  ;;  %v2836_v0 = vld [vmem:[%s9805_s5 + $0xcb0] sm:$0xff]  ;;  %v2865_v6 = vld [vmem:[%s9805_s5 + $0xd98] sm:$0xff] }
 0x345   :  { %5743 = vmatprep.subr.bf16.mxu1 %v7168_v13  ;;  %5866 = vmatprep.subr.bf16.mxu0 %v7174_v14  ;;  %v6890_v13 = vcombine.high %v2628_v8, %v2644_v9  ;;  %v2657_v14 = vld [vmem:[%s9805_s5 + $0x718] sm:$0xff]  ;;  %v2852_v7 = vld [vmem:[%s9805_s5 + $0xd30] sm:$0xff] }
 0x346   :  { %v6915_v29 = vcombine.low %v2657_v14, %v2673_v17 }
 0x348   :  { %5744 = vmatpush1.bf16.msra.mxu1 %v7167_v21  ;;  %5867 = vmatpush1.bf16.msra.mxu0 %v7173_v22  ;;  %v6889_v21 = vcombine.low %v2628_v8, %v2644_v9  ;;  %v6916_v22 = vcombine.high %v2657_v14, %v2673_v17  ;;  %v2868_v8 = vld [vmem:[%s9805_s5 + $0xdb0] sm:$0xff]  ;;  %v2897_v14 = vld [vmem:[%s9805_s5 + $0xe98] sm:$0xff] }
 0x349   :  { %5795 = vmatprep.subr.bf16.mxu1 %v6692_v23  ;;  %5918 = vmatprep.subr.bf16.mxu0 %v6698_v24  ;;  %v6922_v23 = vcombine.high %v2660_v18, %v2676_v19  ;;  %v2689_v24 = vld [vmem:[%s9805_s5 + $0x818] sm:$0xff]  ;;  %v2884_v17 = vld [vmem:[%s9805_s5 + $0xe30] sm:$0xff] }
 0x34a   :  { %v6947_v39 = vcombine.low %v2689_v24, %v2705_v25 }
 0x34b   :  { %5746 = vmatmul.mubr.bf16.vlgmr.msra.gmra.mrb[8].mxu1 %v8263_v16  ;;  %5869 = vmatmul.mubr.bf16.vlgmr.msra.gmra.mrb[12].mxu0 %v8263_v16 }
 0x34c   :  { %5796 = vmatpush1.bf16.msra.mxu1 %v6691_v30  ;;  %5827 = vmatprep.mubr.bf16.mxu1 %v8261_v15  ;;  %v6921_v30 = vcombine.low %v2660_v18, %v2676_v19  ;;  %v2900_v18 = vld [vmem:[%s9805_s5 + $0xeb0] sm:$0xff] }
 0x34d   :  { %5919 = vmatpush1.bf16.msra.mxu0 %v6697_v31  ;;  %5950 = vmatprep.mubr.bf16.mxu0 %v8261_v15  ;;  %v6948_v31 = vcombine.high %v2689_v24, %v2705_v25  ;;  %v2929_v24 = vld [vmem:[%s9805_s5 + $0xf98] sm:$0xff]  ;;  %v2916_v25 = vld [vmem:[%s9805_s5 + $0xf30] sm:$0xff] }
 0x34e   :  { %5797 = vmatprep.subr.bf16.mxu1 %v6724_v32  ;;  %5920 = vmatprep.subr.bf16.mxu0 %v6730_v34  ;;  %v6954_v32 = vcombine.high %v2692_v26, %v2708_v27  ;;  %v2721_v34 = vld [vmem:[%s9805_s5 + $0x918] sm:$0xff] }
 0x34f   :  { %v6979_v49 = vcombine.low %v2721_v34, %v2737_v35 }
 0x350   :  { %5798 = vmatpush1.bf16.msra.mxu1 %v6723_v40  ;;  %v6953_v40 = vcombine.low %v2692_v26, %v2708_v27  ;;  %v2932_v26 = vld [vmem:[%s9805_s5 + $0xfb0] sm:$0xff] }
 0x351   :  { %5921 = vmatpush1.bf16.msra.mxu0 %v6729_v43  ;;  %5799 = vmatprep.subr.bf16.mxu1 %v6756_v44  ;;  %v6980_v43 = vcombine.high %v2721_v34, %v2737_v35  ;;  %v6986_v44 = vcombine.high %v2724_v36, %v2740_v37  ;;  %v2451_v34 = vld [vmem:[%s9805_s5 + $0xa8] sm:$0xff]  ;;  %v2438_v35 = vld [vmem:[%s9805_s5 + $0x40] sm:$0xff] }
 0x352   :  { %5922 = vmatprep.subr.bf16.mxu0 %v6762_v45  ;;  %v2753_v45 = vld [vmem:[%s9805_s5 + $0xa18] sm:$0xff] }
 0x353   :  { %v7011_v57 = vcombine.low %v2753_v45, %v2769_v46 }
 0x354   :  { %5800 = vmatpush1.bf16.msra.mxu1 %v6755_v50  ;;  %v6985_v50 = vcombine.low %v2724_v36, %v2740_v37  ;;  %v2454_v36 = vld [vmem:[%s9805_s5 + $0xc0] sm:$0xff] }
 0x355   :  { %5923 = vmatpush1.bf16.msra.mxu0 %v6761_v51  ;;  %5801 = vmatprep.subr.bf16.mxu1 %v6788_v52  ;;  %v7012_v51 = vcombine.high %v2753_v45, %v2769_v46  ;;  %v7018_v52 = vcombine.high %v2756_v47, %v2772_v48  ;;  %v2483_v45 = vld [vmem:[%s9805_s5 + $0x1a8] sm:$0xff] }
 0x356   :  { %5924 = vmatprep.subr.bf16.mxu0 %v6794_v53  ;;  %v2785_v53 = vld [vmem:[%s9805_s5 + $0xb18] sm:$0xff] }
 0x357   :  { %v7043_v1 = vcombine.low %v2785_v53, %v2801_v54 }
 0x358   :  { %5802 = vmatpush1.bf16.msra.mxu1 %v6787_v58  ;;  %v7017_v58 = vcombine.low %v2756_v47, %v2772_v48  ;;  %v2470_v47 = vld [vmem:[%s9805_s5 + $0x140] sm:$0xff] }
 0x359   :  { %5925 = vmatpush1.bf16.msra.mxu0 %v6793_v59  ;;  %5803 = vmatprep.subr.bf16.mxu1 %v6820_v60  ;;  %v7044_v59 = vcombine.high %v2785_v53, %v2801_v54  ;;  %v7050_v60 = vcombine.high %v2788_v55, %v2804_v56  ;;  %v2486_v48 = vld [vmem:[%s9805_s5 + $0x1c0] sm:$0xff] }
 0x35a   :  { %5926 = vmatprep.subr.bf16.mxu0 %v6826_v61  ;;  %v2817_v61 = vld [vmem:[%s9805_s5 + $0xc18] sm:$0xff]  ;;  %v6734_v53 = vcombine.high %v2470_v47, %v2486_v48  ;;  %v2502_v54 = vld [vmem:[%s9805_s5 + $0x240] sm:$0xff] }
 0x35b   :  { %v7075_v9 = vcombine.low %v2817_v61, %v2833_v62 }
 0x35c   :  { %5804 = vmatpush1.bf16.msra.mxu1 %v6819_v2  ;;  %v7049_v2 = vcombine.low %v2788_v55, %v2804_v56  ;;  %v2518_v55 = vld [vmem:[%s9805_s5 + $0x2c0] sm:$0xff] }
 0x35d   :  { %5927 = vmatpush1.bf16.msra.mxu0 %v6825_v3  ;;  %5805 = vmatprep.subr.bf16.mxu1 %v6852_v4  ;;  %v7076_v3 = vcombine.high %v2817_v61, %v2833_v62  ;;  %v7082_v4 = vcombine.high %v2820_v63, %v2836_v0  ;;  %v2547_v61 = vld [vmem:[%s9805_s5 + $0x3a8] sm:$0xff]  ;;  %v2534_v62 = vld [vmem:[%s9805_s5 + $0x340] sm:$0xff] }
 0x35e   :  { %5928 = vmatprep.subr.bf16.mxu0 %v6858_v5  ;;  %v2849_v5 = vld [vmem:[%s9805_s5 + $0xd18] sm:$0xff] }
 0x35f   :  { %v7107_v19 = vcombine.low %v2849_v5, %v2865_v6 }
 0x360   :  { %5806 = vmatpush1.bf16.msra.mxu1 %v6851_v10  ;;  %v7081_v10 = vcombine.low %v2820_v63, %v2836_v0  ;;  %v2550_v63 = vld [vmem:[%s9805_s5 + $0x3c0] sm:$0xff] }
 0x361   :  { %5929 = vmatpush1.bf16.msra.mxu0 %v6857_v11  ;;  %5807 = vmatprep.subr.bf16.mxu1 %v6884_v12  ;;  %v7108_v11 = vcombine.high %v2849_v5, %v2865_v6  ;;  %v7114_v12 = vcombine.high %v2852_v7, %v2868_v8  ;;  %v2579_v5 = vld [vmem:[%s9805_s5 + $0x4a8] sm:$0xff]  ;;  %v2566_v6 = vld [vmem:[%s9805_s5 + $0x440] sm:$0xff] }
 0x362   :  { %5930 = vmatprep.subr.bf16.mxu0 %v6890_v13  ;;  %v2881_v13 = vld [vmem:[%s9805_s5 + $0xe18] sm:$0xff] }
 0x363   :  { %v7139_v27 = vcombine.low %v2881_v13, %v2897_v14 }
 0x364   :  { %5808 = vmatpush1.bf16.msra.mxu1 %v6883_v20  ;;  %v7113_v20 = vcombine.low %v2852_v7, %v2868_v8  ;;  %v2582_v7 = vld [vmem:[%s9805_s5 + $0x4c0] sm:$0xff] }
 0x365   :  { %5931 = vmatpush1.bf16.msra.mxu0 %v6889_v21  ;;  %5809 = vmatprep.subr.bf16.mxu1 %v6916_v22  ;;  %v7140_v21 = vcombine.high %v2881_v13, %v2897_v14  ;;  %v7146_v22 = vcombine.high %v2884_v17, %v2900_v18  ;;  %v2611_v13 = vld [vmem:[%s9805_s5 + $0x5a8] sm:$0xff]  ;;  %v2598_v14 = vld [vmem:[%s9805_s5 + $0x540] sm:$0xff] }
 0x366   :  { %5932 = vmatprep.subr.bf16.mxu0 %v6922_v23  ;;  %v2913_v23 = vld [vmem:[%s9805_s5 + $0xf18] sm:$0xff] }
 0x367   :  { %v7171_v37 = vcombine.low %v2913_v23, %v2929_v24 }
 0x368   :  { %5810 = vmatpush1.bf16.msra.mxu1 %v6915_v29  ;;  %v7145_v29 = vcombine.low %v2884_v17, %v2900_v18  ;;  %v2614_v17 = vld [vmem:[%s9805_s5 + $0x5c0] sm:$0xff] }
 0x369   :  { %5933 = vmatpush1.bf16.msra.mxu0 %v6921_v30  ;;  %5811 = vmatprep.subr.bf16.mxu1 %v6948_v31  ;;  %v7172_v30 = vcombine.high %v2913_v23, %v2929_v24  ;;  %v7178_v31 = vcombine.high %v2916_v25, %v2932_v26  ;;  %v2643_v23 = vld [vmem:[%s9805_s5 + $0x6a8] sm:$0xff]  ;;  %v2630_v24 = vld [vmem:[%s9805_s5 + $0x640] sm:$0xff] }
 0x36a   :  { %5934 = vmatprep.subr.bf16.mxu0 %v6954_v32  ;;  %v2435_v32 = vld [vmem:[%s9805_s5 + $0x28] sm:$0xff] }
 0x36b   :  { %v6695_v46 = vcombine.low %v2435_v32, %v2451_v34 }
 0x36c   :  { %5812 = vmatpush1.bf16.msra.mxu1 %v6947_v39  ;;  %v7177_v39 = vcombine.low %v2916_v25, %v2932_v26  ;;  %v2646_v25 = vld [vmem:[%s9805_s5 + $0x6c0] sm:$0xff] }
 0x36d   :  { %5935 = vmatpush1.bf16.msra.mxu0 %v6953_v40  ;;  %5813 = vmatprep.subr.bf16.mxu1 %v6980_v43  ;;  %v6696_v40 = vcombine.high %v2435_v32, %v2451_v34  ;;  %v6702_v43 = vcombine.high %v2438_v35, %v2454_v36  ;;  %v2675_v32 = vld [vmem:[%s9805_s5 + $0x7a8] sm:$0xff]  ;;  %v2662_v34 = vld [vmem:[%s9805_s5 + $0x740] sm:$0xff] }
 0x36e   :  { %5936 = vmatprep.subr.bf16.mxu0 %v6986_v44  ;;  %v2467_v44 = vld [vmem:[%s9805_s5 + $0x128] sm:$0xff] }
 0x36f   :  { %v6727_v56 = vcombine.low %v2467_v44, %v2483_v45 }
 0x370   :  { %5814 = vmatpush1.bf16.msra.mxu1 %v6979_v49  ;;  %v6701_v49 = vcombine.low %v2438_v35, %v2454_v36  ;;  %v2678_v35 = vld [vmem:[%s9805_s5 + $0x7c0] sm:$0xff] }
 0x371   :  { %5937 = vmatpush1.bf16.msra.mxu0 %v6985_v50  ;;  %5815 = vmatprep.subr.bf16.mxu1 %v7012_v51  ;;  %v6728_v50 = vcombine.high %v2467_v44, %v2483_v45  ;;  %v2499_v51 = vld [vmem:[%s9805_s5 + $0x228] sm:$0xff]  ;;  %v2694_v45 = vld [vmem:[%s9805_s5 + $0x840] sm:$0xff] }
 0x372   :  { %5938 = vmatprep.subr.bf16.mxu0 %v7018_v52  ;;  %v2515_v52 = vld [vmem:[%s9805_s5 + $0x2a8] sm:$0xff] }
 0x373   :  { %v6759_v0 = vcombine.low %v2499_v51, %v2515_v52  ;;  %v2707_v44 = vld [vmem:[%s9805_s5 + $0x8a8] sm:$0xff] }
 0x374   :  { %5816 = vmatpush1.bf16.msra.mxu1 %v7011_v57  ;;  %v6733_v57 = vcombine.low %v2470_v47, %v2486_v48  ;;  %v6925_v48 = vcombine.low %v2662_v34, %v2678_v35 }
 0x375   :  { %5939 = vmatpush1.bf16.msra.mxu0 %v7017_v58  ;;  %5817 = vmatprep.subr.bf16.mxu1 %v7044_v59  ;;  %v6760_v58 = vcombine.high %v2499_v51, %v2515_v52  ;;  %v6766_v59 = vcombine.high %v2502_v54, %v2518_v55  ;;  %v2723_v51 = vld [vmem:[%s9805_s5 + $0x928] sm:$0xff] }
 0x376   :  { %5940 = vmatprep.subr.bf16.mxu0 %v7050_v60  ;;  %v2531_v60 = vld [vmem:[%s9805_s5 + $0x328] sm:$0xff] }
 0x377   :  { %v6791_v8 = vcombine.low %v2531_v60, %v2547_v61  ;;  %v2739_v52 = vld [vmem:[%s9805_s5 + $0x9a8] sm:$0xff] }
 0x378   :  { %5818 = vmatpush1.bf16.msra.mxu1 %v7043_v1  ;;  %v6765_v1 = vcombine.low %v2502_v54, %v2518_v55  ;;  %v2742_v54 = vld [vmem:[%s9805_s5 + $0x9c0] sm:$0xff] }
 0x379   :  { %5941 = vmatpush1.bf16.msra.mxu0 %v7049_v2  ;;  %5819 = vmatprep.subr.bf16.mxu1 %v7076_v3  ;;  %v6792_v2 = vcombine.high %v2531_v60, %v2547_v61  ;;  %v6798_v3 = vcombine.high %v2534_v62, %v2550_v63  ;;  %v2771_v60 = vld [vmem:[%s9805_s5 + $0xaa8] sm:$0xff]  ;;  %v2758_v61 = vld [vmem:[%s9805_s5 + $0xa40] sm:$0xff] }
 0x37a   :  { %5942 = vmatprep.subr.bf16.mxu0 %v7082_v4  ;;  %v2563_v4 = vld [vmem:[%s9805_s5 + $0x428] sm:$0xff] }
 0x37b   :  { %v6823_v18 = vcombine.low %v2563_v4, %v2579_v5 }
 0x37c   :  { %5820 = vmatpush1.bf16.msra.mxu1 %v7075_v9  ;;  %v6797_v9 = vcombine.low %v2534_v62, %v2550_v63  ;;  %v2774_v62 = vld [vmem:[%s9805_s5 + $0xac0] sm:$0xff]  ;;  %v6983_v63 = vcombine.low %v2723_v51, %v2739_v52 }
 0x37d   :  { %5943 = vmatpush1.bf16.msra.mxu0 %v7081_v10  ;;  %5821 = vmatprep.subr.bf16.mxu1 %v7108_v11  ;;  %v6824_v10 = vcombine.high %v2563_v4, %v2579_v5  ;;  %v6830_v11 = vcombine.high %v2566_v6, %v2582_v7  ;;  %v2803_v4 = vld [vmem:[%s9805_s5 + $0xba8] sm:$0xff]  ;;  %v2790_v5 = vld [vmem:[%s9805_s5 + $0xb40] sm:$0xff] }
 0x37e   :  { %5944 = vmatprep.subr.bf16.mxu0 %v7114_v12  ;;  %v2595_v12 = vld [vmem:[%s9805_s5 + $0x528] sm:$0xff] }
 0x37f   :  { %v6855_v26 = vcombine.low %v2595_v12, %v2611_v13 }
 0x380   :  { %5822 = vmatpush1.bf16.msra.mxu1 %v7107_v19  ;;  %v6829_v19 = vcombine.low %v2566_v6, %v2582_v7  ;;  %v2806_v6 = vld [vmem:[%s9805_s5 + $0xbc0] sm:$0xff] }
 0x381   :  { %5945 = vmatpush1.bf16.msra.mxu0 %v7113_v20  ;;  %5823 = vmatprep.subr.bf16.mxu1 %v7140_v21  ;;  %v6856_v20 = vcombine.high %v2595_v12, %v2611_v13  ;;  %v6862_v21 = vcombine.high %v2598_v14, %v2614_v17  ;;  %v2835_v12 = vld [vmem:[%s9805_s5 + $0xca8] sm:$0xff]  ;;  %v2822_v13 = vld [vmem:[%s9805_s5 + $0xc40] sm:$0xff] }
 0x382   :  { %5946 = vmatprep.subr.bf16.mxu0 %v7146_v22  ;;  %v2627_v22 = vld [vmem:[%s9805_s5 + $0x628] sm:$0xff] }
 0x383   :  { %v6887_v36 = vcombine.low %v2627_v22, %v2643_v23 }
 0x384   :  { %5824 = vmatpush1.bf16.msra.mxu1 %v7139_v27  ;;  %v6861_v27 = vcombine.low %v2598_v14, %v2614_v17  ;;  %v2838_v14 = vld [vmem:[%s9805_s5 + $0xcc0] sm:$0xff] }
 0x385   :  { %5947 = vmatpush1.bf16.msra.mxu0 %v7145_v29  ;;  %5825 = vmatprep.subr.bf16.mxu1 %v7172_v30  ;;  %v6888_v29 = vcombine.high %v2627_v22, %v2643_v23  ;;  %v6894_v30 = vcombine.high %v2630_v24, %v2646_v25  ;;  %v2867_v22 = vld [vmem:[%s9805_s5 + $0xda8] sm:$0xff]  ;;  %v2854_v23 = vld [vmem:[%s9805_s5 + $0xd40] sm:$0xff] }
 0x386   :  { %5948 = vmatprep.subr.bf16.mxu0 %v7178_v31  ;;  %v2659_v31 = vld [vmem:[%s9805_s5 + $0x728] sm:$0xff] }
 0x387   :  { %v6919_v47 = vcombine.low %v2659_v31, %v2675_v32 }
 0x388   :  { %5826 = vmatpush1.bf16.msra.mxu1 %v7171_v37  ;;  %v6893_v37 = vcombine.low %v2630_v24, %v2646_v25  ;;  %v2870_v24 = vld [vmem:[%s9805_s5 + $0xdc0] sm:$0xff] }
 0x389   :  { %5949 = vmatpush1.bf16.msra.mxu0 %v7177_v39  ;;  %5877 = vmatprep.subr.bf16.mxu1 %v6696_v40  ;;  %v6920_v39 = vcombine.high %v2659_v31, %v2675_v32  ;;  %v6926_v40 = vcombine.high %v2662_v34, %v2678_v35  ;;  %v2899_v31 = vld [vmem:[%s9805_s5 + $0xea8] sm:$0xff]  ;;  %v2886_v32 = vld [vmem:[%s9805_s5 + $0xe40] sm:$0xff] }
 0x38a   :  { %6000 = vmatprep.subr.bf16.mxu0 %v6702_v43  ;;  %v2691_v43 = vld [vmem:[%s9805_s5 + $0x828] sm:$0xff]  ;;  %v2902_v34 = vld [vmem:[%s9805_s5 + $0xec0] sm:$0xff] }
 0x38b   :  { %5828 = vmatmul.mubr.bf16.vlgmr.msra.gmra.mrb[12].mxu1 %v8263_v16  ;;  %v6951_v55 = vcombine.low %v2691_v43, %v2707_v44 }
 0x38c   :  { %5951 = vmatmul.mubr.bf16.vlgmr.msra.gmra.mrb[16].mxu0 %v8263_v16  ;;  %5878 = vmatpush1.bf16.msra.mxu1 %v6695_v46  ;;  %v2710_v46 = vld [vmem:[%s9805_s5 + $0x8c0] sm:$0xff] }
 0x38d   :  { %5909 = vmatprep.mubr.bf16.mxu1 %v8261_v15  ;;  %6001 = vmatpush1.bf16.msra.mxu0 %v6701_v49  ;;  %v6952_v49 = vcombine.high %v2691_v43, %v2707_v44  ;;  %v2931_v43 = vld [vmem:[%s9805_s5 + $0xfa8] sm:$0xff]  ;;  %v2918_v44 = vld [vmem:[%s9805_s5 + $0xf40] sm:$0xff] }
 0x38e   :  { %6032 = vmatprep.mubr.bf16.mxu0 %v8261_v15  ;;  %5879 = vmatprep.subr.bf16.mxu1 %v6728_v50  ;;  %v6958_v50 = vcombine.high %v2694_v45, %v2710_v46 }
 0x38f   :  { %6002 = vmatprep.subr.bf16.mxu0 %v6734_v53  ;;  %v2726_v53 = vld [vmem:[%s9805_s5 + $0x940] sm:$0xff] }
 0x390   :  { %5880 = vmatpush1.bf16.msra.mxu1 %v6727_v56  ;;  %v6957_v56 = vcombine.low %v2694_v45, %v2710_v46  ;;  %v2934_v45 = vld [vmem:[%s9805_s5 + $0xfc0] sm:$0xff] }
 0x391   :  { %6003 = vmatpush1.bf16.msra.mxu0 %v6733_v57  ;;  %5881 = vmatprep.subr.bf16.mxu1 %v6760_v58  ;;  %v6984_v57 = vcombine.high %v2723_v51, %v2739_v52  ;;  %v6990_v58 = vcombine.high %v2726_v53, %v2742_v54  ;;  %v2453_v51 = vld [vmem:[%s9805_s5 + $0xb8] sm:$0xff]  ;;  %v2440_v52 = vld [vmem:[%s9805_s5 + $0x50] sm:$0xff] }
 0x392   :  { %6004 = vmatprep.subr.bf16.mxu0 %v6766_v59  ;;  %v2755_v59 = vld [vmem:[%s9805_s5 + $0xa28] sm:$0xff] }
 0x393   :  { %v7015_v7 = vcombine.low %v2755_v59, %v2771_v60 }
 0x394   :  { %5882 = vmatpush1.bf16.msra.mxu1 %v6759_v0  ;;  %v6989_v0 = vcombine.low %v2726_v53, %v2742_v54  ;;  %v2456_v53 = vld [vmem:[%s9805_s5 + $0xd0] sm:$0xff] }
 0x395   :  { %6005 = vmatpush1.bf16.msra.mxu0 %v6765_v1  ;;  %5883 = vmatprep.subr.bf16.mxu1 %v6792_v2  ;;  %v7016_v1 = vcombine.high %v2755_v59, %v2771_v60  ;;  %v7022_v2 = vcombine.high %v2758_v61, %v2774_v62  ;;  %v2485_v59 = vld [vmem:[%s9805_s5 + $0x1b8] sm:$0xff] }
 0x396   :  { %6006 = vmatprep.subr.bf16.mxu0 %v6798_v3  ;;  %v2787_v3 = vld [vmem:[%s9805_s5 + $0xb28] sm:$0xff] }
 0x397   :  { %v7047_v17 = vcombine.low %v2787_v3, %v2803_v4 }
 0x398   :  { %5884 = vmatpush1.bf16.msra.mxu1 %v6791_v8  ;;  %v7021_v8 = vcombine.low %v2758_v61, %v2774_v62  ;;  %v2472_v61 = vld [vmem:[%s9805_s5 + $0x150] sm:$0xff] }
 0x399   :  { %6007 = vmatpush1.bf16.msra.mxu0 %v6797_v9  ;;  %5885 = vmatprep.subr.bf16.mxu1 %v6824_v10  ;;  %v7048_v9 = vcombine.high %v2787_v3, %v2803_v4  ;;  %v7054_v10 = vcombine.high %v2790_v5, %v2806_v6  ;;  %v2488_v62 = vld [vmem:[%s9805_s5 + $0x1d0] sm:$0xff] }
 0x39a   :  { %6008 = vmatprep.subr.bf16.mxu0 %v6830_v11  ;;  %v2819_v11 = vld [vmem:[%s9805_s5 + $0xc28] sm:$0xff]  ;;  %v6738_v3 = vcombine.high %v2472_v61, %v2488_v62  ;;  %v2504_v4 = vld [vmem:[%s9805_s5 + $0x250] sm:$0xff] }
 0x39b   :  { %v7079_v25 = vcombine.low %v2819_v11, %v2835_v12 }
 0x39c   :  { %5886 = vmatpush1.bf16.msra.mxu1 %v6823_v18  ;;  %v7053_v18 = vcombine.low %v2790_v5, %v2806_v6  ;;  %v2520_v5 = vld [vmem:[%s9805_s5 + $0x2d0] sm:$0xff] }
 0x39d   :  { %6009 = vmatpush1.bf16.msra.mxu0 %v6829_v19  ;;  %5887 = vmatprep.subr.bf16.mxu1 %v6856_v20  ;;  %v7080_v19 = vcombine.high %v2819_v11, %v2835_v12  ;;  %v7086_v20 = vcombine.high %v2822_v13, %v2838_v14  ;;  %v2549_v11 = vld [vmem:[%s9805_s5 + $0x3b8] sm:$0xff]  ;;  %v2536_v12 = vld [vmem:[%s9805_s5 + $0x350] sm:$0xff] }
 0x39e   :  { %6010 = vmatprep.subr.bf16.mxu0 %v6862_v21  ;;  %v2851_v21 = vld [vmem:[%s9805_s5 + $0xd28] sm:$0xff] }
 0x39f   :  { %v7111_v35 = vcombine.low %v2851_v21, %v2867_v22 }
 0x3a0   :  { %5888 = vmatpush1.bf16.msra.mxu1 %v6855_v26  ;;  %v7085_v26 = vcombine.low %v2822_v13, %v2838_v14  ;;  %v2552_v13 = vld [vmem:[%s9805_s5 + $0x3d0] sm:$0xff] }
 0x3a1   :  { %6011 = vmatpush1.bf16.msra.mxu0 %v6861_v27  ;;  %5889 = vmatprep.subr.bf16.mxu1 %v6888_v29  ;;  %v7112_v27 = vcombine.high %v2851_v21, %v2867_v22  ;;  %v7118_v29 = vcombine.high %v2854_v23, %v2870_v24  ;;  %v2581_v21 = vld [vmem:[%s9805_s5 + $0x4b8] sm:$0xff]  ;;  %v2568_v22 = vld [vmem:[%s9805_s5 + $0x450] sm:$0xff] }
 0x3a2   :  { %6012 = vmatprep.subr.bf16.mxu0 %v6894_v30  ;;  %v2883_v30 = vld [vmem:[%s9805_s5 + $0xe28] sm:$0xff] }
 0x3a3   :  { %v7143_v46 = vcombine.low %v2883_v30, %v2899_v31 }
 0x3a4   :  { %5890 = vmatpush1.bf16.msra.mxu1 %v6887_v36  ;;  %v7117_v36 = vcombine.low %v2854_v23, %v2870_v24  ;;  %v2584_v23 = vld [vmem:[%s9805_s5 + $0x4d0] sm:$0xff] }
 0x3a5   :  { %6013 = vmatpush1.bf16.msra.mxu0 %v6893_v37  ;;  %5891 = vmatprep.subr.bf16.mxu1 %v6920_v39  ;;  %v7144_v37 = vcombine.high %v2883_v30, %v2899_v31  ;;  %v7150_v39 = vcombine.high %v2886_v32, %v2902_v34  ;;  %v2613_v30 = vld [vmem:[%s9805_s5 + $0x5b8] sm:$0xff]  ;;  %v8902_v31 = vsub.s32 4, %v7989_v33 }
 0x3a6   :  { %6014 = vmatprep.subr.bf16.mxu0 %v6926_v40  ;;  %v2915_v40 = vld [vmem:[%s9805_s5 + $0xf28] sm:$0xff] }
 0x3a7   :  { %v7175_v54 = vcombine.low %v2915_v40, %v2931_v43 }
 0x3a8   :  { %5892 = vmatpush1.bf16.msra.mxu1 %v6919_v47  ;;  %v7149_v47 = vcombine.low %v2886_v32, %v2902_v34  ;;  %v2600_v32 = vld [vmem:[%s9805_s5 + $0x550] sm:$0xff] }
 0x3a9   :  { %6015 = vmatpush1.bf16.msra.mxu0 %v6925_v48  ;;  %5893 = vmatprep.subr.bf16.mxu1 %v6952_v49  ;;  %v7176_v48 = vcombine.high %v2915_v40, %v2931_v43  ;;  %v7182_v49 = vcombine.high %v2918_v44, %v2934_v45  ;;  %v2616_v34 = vld [vmem:[%s9805_s5 + $0x5d0] sm:$0xff] }
 0x3aa   :  { %6016 = vmatprep.subr.bf16.mxu0 %v6958_v50  ;;  %v2437_v50 = vld [vmem:[%s9805_s5 + $0x38] sm:$0xff]  ;;  %v6866_v43 = vcombine.high %v2600_v32, %v2616_v34 }
 0x3ab   :  { %v6699_v60 = vcombine.low %v2437_v50, %v2453_v51 }
 0x3ac   :  { %5894 = vmatpush1.bf16.msra.mxu1 %v6951_v55  ;;  %v7181_v55 = vcombine.low %v2918_v44, %v2934_v45  ;;  %v2629_v44 = vld [vmem:[%s9805_s5 + $0x638] sm:$0xff] }
 0x3ad   :  { %6017 = vmatpush1.bf16.msra.mxu0 %v6957_v56  ;;  %5895 = vmatprep.subr.bf16.mxu1 %v6984_v57  ;;  %v6700_v56 = vcombine.high %v2437_v50, %v2453_v51  ;;  %v6706_v57 = vcombine.high %v2440_v52, %v2456_v53  ;;  %v2645_v45 = vld [vmem:[%s9805_s5 + $0x6b8] sm:$0xff] }
 0x3ae   :  { %6018 = vmatprep.subr.bf16.mxu0 %v6990_v58  ;;  %v2469_v58 = vld [vmem:[%s9805_s5 + $0x138] sm:$0xff] }
 0x3af   :  { %v6731_v6 = vcombine.low %v2469_v58, %v2485_v59 }
 0x3b0   :  { %5896 = vmatpush1.bf16.msra.mxu1 %v6983_v63  ;;  %v6705_v63 = vcombine.low %v2440_v52, %v2456_v53  ;;  %v6865_v53 = vcombine.low %v2600_v32, %v2616_v34  ;;  %v2757_v32 = vld [vmem:[%s9805_s5 + $0xa38] sm:$0xff] }
 0x3b1   :  { %6019 = vmatpush1.bf16.msra.mxu0 %v6989_v0  ;;  %5897 = vmatprep.subr.bf16.mxu1 %v7016_v1  ;;  %v6732_v0 = vcombine.high %v2469_v58, %v2485_v59  ;;  %v2501_v1 = vld [vmem:[%s9805_s5 + $0x238] sm:$0xff] }
 0x3b2   :  { %6020 = vmatprep.subr.bf16.mxu0 %v7022_v2  ;;  %v2517_v2 = vld [vmem:[%s9805_s5 + $0x2b8] sm:$0xff] }
 0x3b3   :  { %v6763_v14 = vcombine.low %v2501_v1, %v2517_v2  ;;  %v2661_v58 = vld [vmem:[%s9805_s5 + $0x738] sm:$0xff] }
 0x3b4   :  { %5898 = vmatpush1.bf16.msra.mxu1 %v7015_v7  ;;  %v6737_v7 = vcombine.low %v2472_v61, %v2488_v62  ;;  %v2677_v59 = vld [vmem:[%s9805_s5 + $0x7b8] sm:$0xff] }
 0x3b5   :  { %6021 = vmatpush1.bf16.msra.mxu0 %v7021_v8  ;;  %5899 = vmatprep.subr.bf16.mxu1 %v7048_v9  ;;  %v6764_v8 = vcombine.high %v2501_v1, %v2517_v2  ;;  %v6770_v9 = vcombine.high %v2504_v4, %v2520_v5  ;;  %v2680_v1 = vld [vmem:[%s9805_s5 + $0x7d0] sm:$0xff]  ;;  %v2773_v34 = vld [vmem:[%s9805_s5 + $0xab8] sm:$0xff] }
 0x3b6   :  { %6022 = vmatprep.subr.bf16.mxu0 %v7054_v10  ;;  %v2533_v10 = vld [vmem:[%s9805_s5 + $0x338] sm:$0xff] }
 0x3b7   :  { %v6795_v24 = vcombine.low %v2533_v10, %v2549_v11 }
 0x3b8   :  { %5900 = vmatpush1.bf16.msra.mxu1 %v7047_v17  ;;  %v6769_v17 = vcombine.low %v2504_v4, %v2520_v5 }
 0x3b9   :  { %6023 = vmatpush1.bf16.msra.mxu0 %v7053_v18  ;;  %5901 = vmatprep.subr.bf16.mxu1 %v7080_v19  ;;  %v6796_v18 = vcombine.high %v2533_v10, %v2549_v11  ;;  %v6802_v19 = vcombine.high %v2536_v12, %v2552_v13  ;;  %v6924_v10 = vcombine.high %v2661_v58, %v2677_v59 }
 0x3ba   :  { %6024 = vmatprep.subr.bf16.mxu0 %v7086_v20  ;;  %v2565_v20 = vld [vmem:[%s9805_s5 + $0x438] sm:$0xff] }
 0x3bc   :  { %5902 = vmatpush1.bf16.msra.mxu1 %v7079_v25  ;;  %v6801_v25 = vcombine.low %v2536_v12, %v2552_v13  ;;  %v2693_v12 = vld [vmem:[%s9805_s5 + $0x838] sm:$0xff] }
 0x3bd   :  { %6025 = vmatpush1.bf16.msra.mxu0 %v7085_v26  ;;  %5903 = vmatprep.subr.bf16.mxu1 %v7112_v27  ;;  %v6828_v26 = vcombine.high %v2565_v20, %v2581_v21  ;;  %v6834_v27 = vcombine.high %v2568_v22, %v2584_v23  ;;  %v2709_v13 = vld [vmem:[%s9805_s5 + $0x8b8] sm:$0xff] }
 0x3be   :  { %6026 = vmatprep.subr.bf16.mxu0 %v7118_v29  ;;  %v2597_v29 = vld [vmem:[%s9805_s5 + $0x538] sm:$0xff] }
 0x3bf   :  { %v6860_v40 = vcombine.high %v2597_v29, %v2613_v30  ;;  %v6859_v50 = vcombine.low %v2597_v29, %v2613_v30 }
 0x3c0   :  { %5904 = vmatpush1.bf16.msra.mxu1 %v7111_v35  ;;  %v6827_v35 = vcombine.low %v2565_v20, %v2581_v21  ;;  %v6956_v20 = vcombine.high %v2693_v12, %v2709_v13 }
 0x3c1   :  { %6027 = vmatpush1.bf16.msra.mxu0 %v7117_v36  ;;  %5905 = vmatprep.subr.bf16.mxu1 %v7144_v37  ;;  %v8913_v36 = vld [vmem:[%s9806_s6] sm:$0xff]  ;;  %v8916_v37 = vsub.s32 5, %v7989_v33 }
 0x3c2   :  { %6028 = vmatprep.subr.bf16.mxu0 %v7150_v39  ;;  %v6833_v39 = vcombine.low %v2568_v22, %v2584_v23  ;;  %v2959_v51 = vrot.slane %v8913_v36, %v8006_v41  ;;  %v2725_v22 = vld [vmem:[%s9805_s5 + $0x938] sm:$0xff] }
 0x3c3   :  { %v2975_v52 = vrot.slane %v8913_v36, %v8916_v37  ;;  %v2741_v23 = vld [vmem:[%s9805_s5 + $0x9b8] sm:$0xff] }
 0x3c4   :  { %5906 = vmatpush1.bf16.msra.mxu1 %v7143_v46  ;;  %v2955_v46 = vrot.slane %v8913_v36, %v7998_v38  ;;  %v6988_v29 = vcombine.high %v2725_v22, %v2741_v23 }
 0x3c5   :  { %6029 = vmatpush1.bf16.msra.mxu0 %v7149_v47  ;;  %5907 = vmatprep.subr.bf16.mxu1 %v7176_v48  ;;  %v2971_v47 = vrot.slane %v8913_v36, %v8902_v31  ;;  %v2632_v48 = vld [vmem:[%s9805_s5 + $0x650] sm:$0xff] }
 0x3c6   :  { %6030 = vmatprep.subr.bf16.mxu0 %v7182_v49  ;;  %v2648_v49 = vld [vmem:[%s9805_s5 + $0x6d0] sm:$0xff] }
 0x3c8   :  { %5908 = vmatpush1.bf16.msra.mxu1 %v7175_v54  ;;  %v6892_v54 = vcombine.high %v2629_v44, %v2645_v45 }
 0x3c9   :  { %6031 = vmatpush1.bf16.msra.mxu0 %v7181_v55  ;;  %5959 = vmatprep.subr.bf16.mxu1 %v6700_v56 }
 0x3ca   :  { %6082 = vmatprep.subr.bf16.mxu0 %v6706_v57  ;;  %v6898_v57 = vcombine.high %v2632_v48, %v2648_v49 }
 0x3cb   :  { %5910 = vmatmul.mubr.bf16.vlgmr.msra.gmra.mrb[16].mxu1 %v8263_v16 }
 0x3cc   :  { %6033 = vmatmul.mubr.bf16.vlgmr.msra.gmra.mrb[20].mxu0 %v8263_v16  ;;  %5960 = vmatpush1.bf16.msra.mxu1 %v6699_v60 }
 0x3cd   :  { %5991 = vmatprep.mubr.bf16.mxu1 %v8261_v15  ;;  %6083 = vmatpush1.bf16.msra.mxu0 %v6705_v63 }
 0x3ce   :  { %6114 = vmatprep.mubr.bf16.mxu0 %v8261_v15  ;;  %5961 = vmatprep.subr.bf16.mxu1 %v6732_v0  ;;  %v2664_v0 = vld [vmem:[%s9805_s5 + $0x750] sm:$0xff] }
 0x3cf   :  { %6084 = vmatprep.subr.bf16.mxu0 %v6738_v3  ;;  %v6930_v11 = vcombine.high %v2664_v0, %v2680_v1 }
 0x3d0   :  { %5962 = vmatpush1.bf16.msra.mxu1 %v6731_v6  ;;  %v6891_v6 = vcombine.low %v2629_v44, %v2645_v45  ;;  %v7020_v44 = vcombine.high %v2757_v32, %v2773_v34 }
 0x3d1   :  { %6085 = vmatpush1.bf16.msra.mxu0 %v6737_v7  ;;  %5963 = vmatprep.subr.bf16.mxu1 %v6764_v8 }
 0x3d2   :  { %6086 = vmatprep.subr.bf16.mxu0 %v6770_v9  ;;  %v6897_v9 = vcombine.low %v2632_v48, %v2648_v49  ;;  %v2792_v48 = vld [vmem:[%s9805_s5 + $0xb50] sm:$0xff] }
 0x3d3   :  { %v2808_v49 = vld [vmem:[%s9805_s5 + $0xbd0] sm:$0xff] }
 0x3d4   :  { %5964 = vmatpush1.bf16.msra.mxu1 %v6763_v14  ;;  %v2696_v14 = vld [vmem:[%s9805_s5 + $0x850] sm:$0xff] }
 0x3d5   :  { %6087 = vmatpush1.bf16.msra.mxu0 %v6769_v17  ;;  %5965 = vmatprep.subr.bf16.mxu1 %v6796_v18  ;;  %v2712_v17 = vld [vmem:[%s9805_s5 + $0x8d0] sm:$0xff]  ;;  %v6923_v18 = vcombine.low %v2661_v58, %v2677_v59  ;;  %v7057_v59 = vcombine.low %v2792_v48, %v2808_v49 }
 0x3d6   :  { %6088 = vmatprep.subr.bf16.mxu0 %v6802_v19  ;;  %v6929_v19 = vcombine.low %v2664_v0, %v2680_v1  ;;  %v6962_v21 = vcombine.high %v2696_v14, %v2712_v17  ;;  %v2856_v0 = vld [vmem:[%s9805_s5 + $0xd50] sm:$0xff] }
 0x3d7   :  { %v2872_v1 = vld [vmem:[%s9805_s5 + $0xdd0] sm:$0xff] }
 0x3d8   :  { %5966 = vmatpush1.bf16.msra.mxu1 %v6795_v24  ;;  %v2728_v24 = vld [vmem:[%s9805_s5 + $0x950] sm:$0xff] }
 0x3d9   :  { %6089 = vmatpush1.bf16.msra.mxu0 %v6801_v25  ;;  %5967 = vmatprep.subr.bf16.mxu1 %v6828_v26  ;;  %v2744_v25 = vld [vmem:[%s9805_s5 + $0x9d0] sm:$0xff]  ;;  %v6955_v26 = vcombine.low %v2693_v12, %v2709_v13 }
 0x3da   :  { %6090 = vmatprep.subr.bf16.mxu0 %v6834_v27  ;;  %v6961_v27 = vcombine.low %v2696_v14, %v2712_v17  ;;  %v6994_v30 = vcombine.high %v2728_v24, %v2744_v25  ;;  %v2917_v14 = vld [vmem:[%s9805_s5 + $0xf38] sm:$0xff] }
 0x3db   :  { %v2933_v17 = vld [vmem:[%s9805_s5 + $0xfb8] sm:$0xff] }
 0x3dc   :  { %5968 = vmatpush1.bf16.msra.mxu1 %v6827_v35  ;;  %v2760_v35 = vld [vmem:[%s9805_s5 + $0xa50] sm:$0xff] }
 0x3dd   :  { %6091 = vmatpush1.bf16.msra.mxu0 %v6833_v39  ;;  %5969 = vmatprep.subr.bf16.mxu1 %v6860_v40  ;;  %v2776_v39 = vld [vmem:[%s9805_s5 + $0xad0] sm:$0xff]  ;;  %v6987_v40 = vcombine.low %v2725_v22, %v2741_v23  ;;  %v7180_v22 = vcombine.high %v2917_v14, %v2933_v17 }
 0x3de   :  { %v5706_v55 = vpop.f32.mrb[4].mxu1  ;;  %v5788_v56 = vpop.f32.mrb[8].mxu0  ;;  %6092 = vmatprep.subr.bf16.mxu0 %v6866_v43  ;;  %v6993_v43 = vcombine.low %v2728_v24, %v2744_v25  ;;  %v7026_v45 = vcombine.high %v2760_v35, %v2776_v39  ;;  %v2439_v24 = vld [vmem:[%s9805_s5 + $0x48] sm:$0xff] }
 0x3df   :  { %v5707_v60 = vadd.f32 %v5706_v55, %v2955_v46  ;;  %v5789_v61 = vadd.f32 %v5788_v56, %v2971_v47  ;;  %v5708_v62 = vpop.f32.mrb[5].mxu1  ;;  %v5790_v63 = vpop.f32.mrb[9].mxu0  ;;  %v2789_v46 = vld [vmem:[%s9805_s5 + $0xb38] sm:$0xff]  ;;  %v2824_v56 = vld [vmem:[%s9805_s5 + $0xc50] sm:$0xff]  ;;  %v2455_v25 = vld [vmem:[%s9805_s5 + $0xc8] sm:$0xff] }
 0x3e0   :  { %v5709_v2 = vadd.f32 %v5708_v62, %v2959_v51  ;;  %v5791_v3 = vadd.f32 %v5790_v63, %v2975_v52  ;;  %5970 = vmatpush1.bf16.msra.mxu1 %v6859_v50  ;;  %v5710_v4 = vpop.f32.mrb[6].mxu1  ;;  %v5792_v5 = vpop.f32.mrb[10].mxu0  ;;  %v2805_v47 = vld [vmem:[%s9805_s5 + $0xbb8] sm:$0xff]  ;;  %v7019_v50 = vcombine.low %v2757_v32, %v2773_v34  ;;  %v7025_v51 = vcombine.low %v2760_v35, %v2776_v39  ;;  %v2471_v35 = vld [vmem:[%s9805_s5 + $0x148] sm:$0xff] }
 0x3e1   :  { %6328 = vst [vmem:[%s9807_s7] sm:$0xff] %v5707_v60  ;;  %6332 = vst [vmem:[%s9807_s7 + $0x20] sm:$0xff] %v5789_v61  ;;  %6093 = vmatpush1.bf16.msra.mxu0 %v6865_v53  ;;  %v5711_v7 = vpop.f32.mrb[7].mxu1  ;;  %v5793_v8 = vpop.f32.mrb[11].mxu0  ;;  %5971 = vmatprep.subr.bf16.mxu1 %v6892_v54  ;;  %v7052_v52 = vcombine.high %v2789_v46, %v2805_v47  ;;  %v7058_v53 = vcombine.high %v2792_v48, %v2808_v49  ;;  %v2821_v54 = vld [vmem:[%s9805_s5 + $0xc38] sm:$0xff]  ;;  %v2487_v39 = vld [vmem:[%s9805_s5 + $0x1c8] sm:$0xff] }
 0x3e2   :  { %6329 = vst [vmem:[%s9807_s7 + $0x8] sm:$0xff] %v5709_v2  ;;  %6333 = vst [vmem:[%s9807_s7 + $0x28] sm:$0xff] %v5791_v3  ;;  %6094 = vmatprep.subr.bf16.mxu0 %v6898_v57  ;;  %v2837_v55 = vld [vmem:[%s9805_s5 + $0xcb8] sm:$0xff]  ;;  %v2840_v57 = vld [vmem:[%s9805_s5 + $0xcd0] sm:$0xff]  ;;  %v7051_v58 = vcombine.low %v2789_v46, %v2805_v47  ;;  %v7122_v5 = vcombine.high %v2856_v0, %v2872_v1  ;;  %v6704_v32 = vcombine.high %v2439_v24, %v2455_v25 }
 0x3e3   :  { %v7084_v60 = vcombine.high %v2821_v54, %v2837_v55  ;;  %v7090_v61 = vcombine.high %v2824_v56, %v2840_v57  ;;  %v2853_v62 = vld [vmem:[%s9805_s5 + $0xd38] sm:$0xff]  ;;  %v7083_v2 = vcombine.low %v2821_v54, %v2837_v55  ;;  %v7089_v3 = vcombine.low %v2824_v56, %v2840_v57  ;;  %v2888_v8 = vld [vmem:[%s9805_s5 + $0xe50] sm:$0xff]  ;;  %v2503_v47 = vld [vmem:[%s9805_s5 + $0x248] sm:$0xff] }
 0x3e4   :  { %5972 = vmatpush1.bf16.msra.mxu1 %v6891_v6  ;;  %v2869_v63 = vld [vmem:[%s9805_s5 + $0xdb8] sm:$0xff]  ;;  %v6736_v46 = vcombine.high %v2471_v35, %v2487_v39  ;;  %v2519_v48 = vld [vmem:[%s9805_s5 + $0x2c8] sm:$0xff] }
 0x3e5   :  { %6095 = vmatpush1.bf16.msra.mxu0 %v6897_v9  ;;  %5973 = vmatprep.subr.bf16.mxu1 %v6924_v10  ;;  %v7116_v4 = vcombine.high %v2853_v62, %v2869_v63  ;;  %v2885_v6 = vld [vmem:[%s9805_s5 + $0xe38] sm:$0xff]  ;;  %v2904_v9 = vld [vmem:[%s9805_s5 + $0xed0] sm:$0xff]  ;;  %v7115_v10 = vcombine.low %v2853_v62, %v2869_v63  ;;  %v6768_v54 = vcombine.high %v2503_v47, %v2519_v48  ;;  %v2535_v56 = vld [vmem:[%s9805_s5 + $0x348] sm:$0xff] }
 0x3e6   :  { %6096 = vmatprep.subr.bf16.mxu0 %v6930_v11  ;;  %v2901_v7 = vld [vmem:[%s9805_s5 + $0xeb8] sm:$0xff]  ;;  %v7121_v11 = vcombine.low %v2856_v0, %v2872_v1  ;;  %v7154_v13 = vcombine.high %v2888_v8, %v2904_v9  ;;  %v2551_v57 = vld [vmem:[%s9805_s5 + $0x3c8] sm:$0xff] }
 0x3e7   :  { %v7148_v12 = vcombine.high %v2885_v6, %v2901_v7  ;;  %v6800_v62 = vcombine.high %v2535_v56, %v2551_v57  ;;  %v2567_v0 = vld [vmem:[%s9805_s5 + $0x448] sm:$0xff] }
 0x3e8   :  { %5974 = vmatpush1.bf16.msra.mxu1 %v6923_v18  ;;  %v2920_v18 = vld [vmem:[%s9805_s5 + $0xf50] sm:$0xff]  ;;  %v2583_v1 = vld [vmem:[%s9805_s5 + $0x4c8] sm:$0xff] }
 0x3e9   :  { %6097 = vmatpush1.bf16.msra.mxu0 %v6929_v19  ;;  %5975 = vmatprep.subr.bf16.mxu1 %v6956_v20  ;;  %v2936_v19 = vld [vmem:[%s9805_s5 + $0xfd0] sm:$0xff]  ;;  %v7147_v20 = vcombine.low %v2885_v6, %v2901_v7  ;;  %v6832_v6 = vcombine.high %v2567_v0, %v2583_v1 }
 0x3ea   :  { %6098 = vmatprep.subr.bf16.mxu0 %v6962_v21  ;;  %v7153_v21 = vcombine.low %v2888_v8, %v2904_v9  ;;  %v7186_v23 = vcombine.high %v2920_v18, %v2936_v19  ;;  %v2599_v8 = vld [vmem:[%s9805_s5 + $0x548] sm:$0xff] }
 0x3eb   :  { %v2615_v9 = vld [vmem:[%s9805_s5 + $0x5c8] sm:$0xff] }
 0x3ec   :  { %5976 = vmatpush1.bf16.msra.mxu1 %v6955_v26  ;;  %v2442_v26 = vld [vmem:[%s9805_s5 + $0x60] sm:$0xff] }
 0x3ed   :  { %6099 = vmatpush1.bf16.msra.mxu0 %v6961_v27  ;;  %5977 = vmatprep.subr.bf16.mxu1 %v6988_v29  ;;  %v2458_v27 = vld [vmem:[%s9805_s5 + $0xe0] sm:$0xff]  ;;  %v7179_v29 = vcombine.low %v2917_v14, %v2933_v17  ;;  %v6864_v17 = vcombine.high %v2599_v8, %v2615_v9 }
 0x3ee   :  { %6100 = vmatprep.subr.bf16.mxu0 %v6994_v30  ;;  %v7185_v30 = vcombine.low %v2920_v18, %v2936_v19  ;;  %v6710_v34 = vcombine.high %v2442_v26, %v2458_v27  ;;  %v2631_v19 = vld [vmem:[%s9805_s5 + $0x648] sm:$0xff] }
 0x3f0   :  { %5978 = vmatpush1.bf16.msra.mxu1 %v6987_v40  ;;  %v6703_v40 = vcombine.low %v2439_v24, %v2455_v25  ;;  %v2650_v24 = vld [vmem:[%s9805_s5 + $0x6e0] sm:$0xff]  ;;  %v2967_v25 = vrot.slane %v8913_v36, %v8009_v42 }
 0x3f1   :  { %6101 = vmatpush1.bf16.msra.mxu0 %v6993_v43  ;;  %5979 = vmatprep.subr.bf16.mxu1 %v7020_v44  ;;  %v2474_v43 = vld [vmem:[%s9805_s5 + $0x160] sm:$0xff] }
 0x3f2   :  { %6102 = vmatprep.subr.bf16.mxu0 %v7026_v45  ;;  %v2490_v44 = vld [vmem:[%s9805_s5 + $0x1e0] sm:$0xff]  ;;  %v6709_v45 = vcombine.low %v2442_v26, %v2458_v27  ;;  %v6863_v27 = vcombine.low %v2599_v8, %v2615_v9 }
 0x3f3   :  { %v6742_v49 = vcombine.high %v2474_v43, %v2490_v44 }
 0x3f4   :  { %5980 = vmatpush1.bf16.msra.mxu1 %v7019_v50  ;;  %v2506_v50 = vld [vmem:[%s9805_s5 + $0x260] sm:$0xff] }
 0x3f5   :  { %6103 = vmatpush1.bf16.msra.mxu0 %v7025_v51  ;;  %5981 = vmatprep.subr.bf16.mxu1 %v7052_v52  ;;  %v2522_v51 = vld [vmem:[%s9805_s5 + $0x2e0] sm:$0xff]  ;;  %v6735_v52 = vcombine.low %v2471_v35, %v2487_v39  ;;  %v2663_v39 = vld [vmem:[%s9805_s5 + $0x748] sm:$0xff] }
 0x3f6   :  { %6104 = vmatprep.subr.bf16.mxu0 %v7058_v53  ;;  %v6741_v53 = vcombine.low %v2474_v43, %v2490_v44  ;;  %v6774_v55 = vcombine.high %v2506_v50, %v2522_v51 }
 0x3f8   :  { %5982 = vmatpush1.bf16.msra.mxu1 %v7051_v58  ;;  %v2538_v58 = vld [vmem:[%s9805_s5 + $0x360] sm:$0xff] }
 0x3f9   :  { %6105 = vmatpush1.bf16.msra.mxu0 %v7057_v59  ;;  %5983 = vmatprep.subr.bf16.mxu1 %v7084_v60  ;;  %v2554_v59 = vld [vmem:[%s9805_s5 + $0x3e0] sm:$0xff]  ;;  %v6767_v60 = vcombine.low %v2503_v47, %v2519_v48 }
 0x3fa   :  { %6106 = vmatprep.subr.bf16.mxu0 %v7090_v61  ;;  %v6773_v61 = vcombine.low %v2506_v50, %v2522_v51  ;;  %v6806_v63 = vcombine.high %v2538_v58, %v2554_v59  ;;  %v2666_v47 = vld [vmem:[%s9805_s5 + $0x760] sm:$0xff] }
 0x3fb   :  { %v2682_v48 = vld [vmem:[%s9805_s5 + $0x7e0] sm:$0xff] }
 0x3fc   :  { %5984 = vmatpush1.bf16.msra.mxu1 %v7083_v2  ;;  %v2570_v2 = vld [vmem:[%s9805_s5 + $0x460] sm:$0xff] }
 0x3fd   :  { %6107 = vmatpush1.bf16.msra.mxu0 %v7089_v3  ;;  %5985 = vmatprep.subr.bf16.mxu1 %v7116_v4  ;;  %v2586_v3 = vld [vmem:[%s9805_s5 + $0x4e0] sm:$0xff]  ;;  %v6799_v4 = vcombine.low %v2535_v56, %v2551_v57 }
 0x3fe   :  { %6108 = vmatprep.subr.bf16.mxu0 %v7122_v5  ;;  %v6805_v5 = vcombine.low %v2538_v58, %v2554_v59  ;;  %v6838_v7 = vcombine.high %v2570_v2, %v2586_v3  ;;  %v6837_v14 = vcombine.low %v2570_v2, %v2586_v3  ;;  %v6934_v58 = vcombine.high %v2666_v47, %v2682_v48  ;;  %v2695_v59 = vld [vmem:[%s9805_s5 + $0x848] sm:$0xff] }
 0x3ff   :  { %v2727_v3 = vld [vmem:[%s9805_s5 + $0x948] sm:$0xff] }
 0x400   :  { %5986 = vmatpush1.bf16.msra.mxu1 %v7115_v10  ;;  %v2602_v10 = vld [vmem:[%s9805_s5 + $0x560] sm:$0xff] }
 0x401   :  { %6109 = vmatpush1.bf16.msra.mxu0 %v7121_v11  ;;  %5987 = vmatprep.subr.bf16.mxu1 %v7148_v12  ;;  %v2618_v11 = vld [vmem:[%s9805_s5 + $0x5e0] sm:$0xff]  ;;  %v6831_v12 = vcombine.low %v2567_v0, %v2583_v1  ;;  %v6933_v0 = vcombine.low %v2666_v47, %v2682_v48  ;;  %v2871_v47 = vld [vmem:[%s9805_s5 + $0xdc8] sm:$0xff] }
 0x402   :  { %6110 = vmatprep.subr.bf16.mxu0 %v7154_v13  ;;  %v9137_v13 = vld [vmem:[%s9806_s6 + $0x8] sm:$0xff]  ;;  %v6870_v18 = vcombine.high %v2602_v10, %v2618_v11  ;;  %v2858_v48 = vld [vmem:[%s9805_s5 + $0xd60] sm:$0xff] }
 0x403   :  { %v2991_v26 = vrot.slane %v9137_v13, %v8006_v41 }
 0x404   :  { %5988 = vmatpush1.bf16.msra.mxu1 %v7147_v20  ;;  %v2647_v20 = vld [vmem:[%s9805_s5 + $0x6c8] sm:$0xff] }
 0x405   :  { %6111 = vmatpush1.bf16.msra.mxu0 %v7153_v21  ;;  %5989 = vmatprep.subr.bf16.mxu1 %v7180_v22  ;;  %v2963_v21 = vrot.slane %v8913_v36, %v8101_v28  ;;  %v2987_v22 = vrot.slane %v9137_v13, %v7998_v38 }
 0x406   :  { %6112 = vmatprep.subr.bf16.mxu0 %v7186_v23  ;;  %v2634_v23 = vld [vmem:[%s9805_s5 + $0x660] sm:$0xff] }
 0x407   :  { %v6902_v35 = vcombine.high %v2634_v23, %v2650_v24  ;;  %v6901_v56 = vcombine.low %v2634_v23, %v2650_v24  ;;  %v2807_v23 = vld [vmem:[%s9805_s5 + $0xbc8] sm:$0xff]  ;;  %v2794_v24 = vld [vmem:[%s9805_s5 + $0xb60] sm:$0xff] }
 0x408   :  { %5990 = vmatpush1.bf16.msra.mxu1 %v7179_v29  ;;  %v6869_v29 = vcombine.low %v2602_v10, %v2618_v11  ;;  %v2759_v11 = vld [vmem:[%s9805_s5 + $0xa48] sm:$0xff] }
 0x409   :  { %6113 = vmatpush1.bf16.msra.mxu0 %v7185_v30  ;;  %6041 = vmatprep.subr.bf16.mxu1 %v6704_v32  ;;  %v6896_v30 = vcombine.high %v2631_v19, %v2647_v20 }
 0x40a   :  { %6164 = vmatprep.subr.bf16.mxu0 %v6710_v34 }
 0x40b   :  { %5992 = vmatmul.mubr.bf16.vlgmr.msra.gmra.mrb[20].mxu1 %v8263_v16 }
 0x40c   :  { %6115 = vmatmul.mubr.bf16.vlgmr.msra.gmra.mrb[24].mxu0 %v8263_v16  ;;  %6042 = vmatpush1.bf16.msra.mxu1 %v6703_v40  ;;  %v2679_v40 = vld [vmem:[%s9805_s5 + $0x7c8] sm:$0xff] }
 0x40d   :  { %6073 = vmatprep.mubr.bf16.mxu1 %v8261_v15  ;;  %6165 = vmatpush1.bf16.msra.mxu0 %v6709_v45  ;;  %v6928_v57 = vcombine.high %v2663_v39, %v2679_v40 }
 0x40e   :  { %6196 = vmatprep.mubr.bf16.mxu0 %v8261_v15  ;;  %6043 = vmatprep.subr.bf16.mxu1 %v6736_v46 }
 0x40f   :  { %6166 = vmatprep.subr.bf16.mxu0 %v6742_v49 }
 0x410   :  { %6044 = vmatpush1.bf16.msra.mxu1 %v6735_v52 }
 0x411   :  { %6167 = vmatpush1.bf16.msra.mxu0 %v6741_v53  ;;  %6045 = vmatprep.subr.bf16.mxu1 %v6768_v54  ;;  %v6895_v53 = vcombine.low %v2631_v19, %v2647_v20 }
 0x412   :  { %6168 = vmatprep.subr.bf16.mxu0 %v6774_v55 }
 0x414   :  { %6046 = vmatpush1.bf16.msra.mxu1 %v6767_v60  ;;  %v2711_v60 = vld [vmem:[%s9805_s5 + $0x8c8] sm:$0xff] }
 0x415   :  { %6169 = vmatpush1.bf16.msra.mxu0 %v6773_v61  ;;  %6047 = vmatprep.subr.bf16.mxu1 %v6800_v62  ;;  %v2698_v61 = vld [vmem:[%s9805_s5 + $0x860] sm:$0xff]  ;;  %v6960_v1 = vcombine.high %v2695_v59, %v2711_v60 }
 0x416   :  { %6170 = vmatprep.subr.bf16.mxu0 %v6806_v63  ;;  %v2714_v62 = vld [vmem:[%s9805_s5 + $0x8e0] sm:$0xff]  ;;  %v6927_v63 = vcombine.low %v2663_v39, %v2679_v40 }
 0x417   :  { %v6966_v2 = vcombine.high %v2698_v61, %v2714_v62  ;;  %v6965_v8 = vcombine.low %v2698_v61, %v2714_v62  ;;  %v2842_v39 = vld [vmem:[%s9805_s5 + $0xce0] sm:$0xff]  ;;  %v2919_v62 = vld [vmem:[%s9805_s5 + $0xf48] sm:$0xff] }
 0x418   :  { %6048 = vmatpush1.bf16.msra.mxu1 %v6799_v4  ;;  %v2743_v4 = vld [vmem:[%s9805_s5 + $0x9c8] sm:$0xff] }
 0x419   :  { %6171 = vmatpush1.bf16.msra.mxu0 %v6805_v5  ;;  %6049 = vmatprep.subr.bf16.mxu1 %v6832_v6  ;;  %v2730_v5 = vld [vmem:[%s9805_s5 + $0x960] sm:$0xff]  ;;  %v6992_v9 = vcombine.high %v2727_v3, %v2743_v4 }
 0x41a   :  { %6172 = vmatprep.subr.bf16.mxu0 %v6838_v7  ;;  %v2746_v6 = vld [vmem:[%s9805_s5 + $0x9e0] sm:$0xff]  ;;  %v6959_v7 = vcombine.low %v2695_v59, %v2711_v60 }
 0x41b   :  { %v6998_v10 = vcombine.high %v2730_v5, %v2746_v6  ;;  %v6997_v19 = vcombine.low %v2730_v5, %v2746_v6  ;;  %v2441_v6 = vld [vmem:[%s9805_s5 + $0x58] sm:$0xff] }
 0x41c   :  { %6050 = vmatpush1.bf16.msra.mxu1 %v6831_v12  ;;  %v2775_v12 = vld [vmem:[%s9805_s5 + $0xac8] sm:$0xff] }
 0x41d   :  { %6173 = vmatpush1.bf16.msra.mxu0 %v6837_v14  ;;  %6051 = vmatprep.subr.bf16.mxu1 %v6864_v17  ;;  %v2762_v14 = vld [vmem:[%s9805_s5 + $0xa60] sm:$0xff]  ;;  %v7024_v20 = vcombine.high %v2759_v11, %v2775_v12 }
 0x41e   :  { %v5747_v32 = vpop.f32.mrb[8].mxu1  ;;  %v5870_v34 = vpop.f32.mrb[12].mxu0  ;;  %6174 = vmatprep.subr.bf16.mxu0 %v6870_v18  ;;  %v2778_v17 = vld [vmem:[%s9805_s5 + $0xae0] sm:$0xff]  ;;  %v6991_v18 = vcombine.low %v2727_v3, %v2743_v4 }
 0x41f   :  { %v5748_v43 = vadd.f32 %v5747_v32, %v2963_v21  ;;  %v5871_v44 = vadd.f32 %v5870_v34, %v2987_v22  ;;  %v5749_v45 = vpop.f32.mrb[9].mxu1  ;;  %v5872_v46 = vpop.f32.mrb[13].mxu0  ;;  %v7030_v21 = vcombine.high %v2762_v14, %v2778_v17  ;;  %v2791_v22 = vld [vmem:[%s9805_s5 + $0xb48] sm:$0xff] }
 0x420   :  { %v5750_v49 = vadd.f32 %v5749_v45, %v2967_v25  ;;  %v5873_v50 = vadd.f32 %v5872_v46, %v2991_v26  ;;  %v5751_v51 = vpop.f32.mrb[10].mxu1  ;;  %v5874_v52 = vpop.f32.mrb[14].mxu0  ;;  %6052 = vmatpush1.bf16.msra.mxu1 %v6863_v27  ;;  %v2810_v25 = vld [vmem:[%s9805_s5 + $0xbe0] sm:$0xff]  ;;  %v7023_v26 = vcombine.low %v2759_v11, %v2775_v12  ;;  %v7029_v27 = vcombine.low %v2762_v14, %v2778_v17  ;;  %v2823_v32 = vld [vmem:[%s9805_s5 + $0xc48] sm:$0xff]  ;;  %v2473_v17 = vld [vmem:[%s9805_s5 + $0x158] sm:$0xff] }
 0x421   :  { %6330 = vst [vmem:[%s9807_s7 + $0x10] sm:$0xff] %v5748_v43  ;;  %6336 = vst [vmem:[%s9807_s7 + $0x40] sm:$0xff] %v5871_v44  ;;  %6175 = vmatpush1.bf16.msra.mxu0 %v6869_v29  ;;  %v5752_v54 = vpop.f32.mrb[11].mxu1  ;;  %v5875_v55 = vpop.f32.mrb[15].mxu0  ;;  %6053 = vmatprep.subr.bf16.mxu1 %v6896_v30  ;;  %v7056_v29 = vcombine.high %v2791_v22, %v2807_v23  ;;  %v7062_v30 = vcombine.high %v2794_v24, %v2810_v25  ;;  %v2839_v34 = vld [vmem:[%s9805_s5 + $0xcc8] sm:$0xff] }
 0x422   :  { %6331 = vst [vmem:[%s9807_s7 + $0x18] sm:$0xff] %v5750_v49  ;;  %6337 = vst [vmem:[%s9807_s7 + $0x48] sm:$0xff] %v5873_v50  ;;  %6176 = vmatprep.subr.bf16.mxu0 %v6902_v35  ;;  %v2826_v35 = vld [vmem:[%s9805_s5 + $0xc60] sm:$0xff]  ;;  %v7055_v40 = vcombine.low %v2791_v22, %v2807_v23  ;;  %v7061_v43 = vcombine.low %v2794_v24, %v2810_v25  ;;  %v7088_v44 = vcombine.high %v2823_v32, %v2839_v34  ;;  %v2855_v46 = vld [vmem:[%s9805_s5 + $0xd48] sm:$0xff] }
 0x423   :  { %v7094_v45 = vcombine.high %v2826_v35, %v2842_v39  ;;  %v2874_v49 = vld [vmem:[%s9805_s5 + $0xde0] sm:$0xff]  ;;  %v7087_v50 = vcombine.low %v2823_v32, %v2839_v34  ;;  %v7093_v51 = vcombine.low %v2826_v35, %v2842_v39  ;;  %v7120_v52 = vcombine.high %v2855_v46, %v2871_v47  ;;  %v2887_v54 = vld [vmem:[%s9805_s5 + $0xe48] sm:$0xff]  ;;  %v2505_v24 = vld [vmem:[%s9805_s5 + $0x258] sm:$0xff] }
 0x424   :  { %6054 = vmatpush1.bf16.msra.mxu1 %v6895_v53  ;;  %v7126_v53 = vcombine.high %v2858_v48, %v2874_v49  ;;  %v2903_v55 = vld [vmem:[%s9805_s5 + $0xec8] sm:$0xff]  ;;  %v7125_v59 = vcombine.low %v2858_v48, %v2874_v49  ;;  %v2521_v25 = vld [vmem:[%s9805_s5 + $0x2d8] sm:$0xff] }
 0x425   :  { %6177 = vmatpush1.bf16.msra.mxu0 %v6901_v56  ;;  %6055 = vmatprep.subr.bf16.mxu1 %v6928_v57  ;;  %v2890_v56 = vld [vmem:[%s9805_s5 + $0xe60] sm:$0xff]  ;;  %v7152_v60 = vcombine.high %v2887_v54, %v2903_v55  ;;  %v6772_v34 = vcombine.high %v2505_v24, %v2521_v25  ;;  %v2537_v39 = vld [vmem:[%s9805_s5 + $0x358] sm:$0xff] }
 0x426   :  { %6178 = vmatprep.subr.bf16.mxu0 %v6934_v58  ;;  %v2906_v57 = vld [vmem:[%s9805_s5 + $0xee0] sm:$0xff]  ;;  %v7119_v58 = vcombine.low %v2855_v46, %v2871_v47  ;;  %v2569_v49 = vld [vmem:[%s9805_s5 + $0x458] sm:$0xff] }
 0x427   :  { %v7158_v61 = vcombine.high %v2890_v56, %v2906_v57  ;;  %v7157_v3 = vcombine.low %v2890_v56, %v2906_v57  ;;  %v2601_v57 = vld [vmem:[%s9805_s5 + $0x558] sm:$0xff] }
 0x428   :  { %6056 = vmatpush1.bf16.msra.mxu1 %v6927_v63  ;;  %v2935_v63 = vld [vmem:[%s9805_s5 + $0xfc8] sm:$0xff] }
 0x429   :  { %6179 = vmatpush1.bf16.msra.mxu0 %v6933_v0  ;;  %6057 = vmatprep.subr.bf16.mxu1 %v6960_v1  ;;  %v2922_v0 = vld [vmem:[%s9805_s5 + $0xf60] sm:$0xff]  ;;  %v7184_v4 = vcombine.high %v2919_v62, %v2935_v63 }
 0x42a   :  { %6180 = vmatprep.subr.bf16.mxu0 %v6966_v2  ;;  %v2938_v1 = vld [vmem:[%s9805_s5 + $0xfe0] sm:$0xff]  ;;  %v7151_v2 = vcombine.low %v2887_v54, %v2903_v55 }
 0x42b   :  { %v7190_v5 = vcombine.high %v2922_v0, %v2938_v1  ;;  %v7189_v11 = vcombine.low %v2922_v0, %v2938_v1 }
 0x42c   :  { %6058 = vmatpush1.bf16.msra.mxu1 %v6959_v7  ;;  %v2457_v7 = vld [vmem:[%s9805_s5 + $0xd8] sm:$0xff] }
 0x42d   :  { %6181 = vmatpush1.bf16.msra.mxu0 %v6965_v8  ;;  %6059 = vmatprep.subr.bf16.mxu1 %v6992_v9  ;;  %v2444_v8 = vld [vmem:[%s9805_s5 + $0x70] sm:$0xff]  ;;  %v6708_v12 = vcombine.high %v2441_v6, %v2457_v7 }
 0x42e   :  { %6182 = vmatprep.subr.bf16.mxu0 %v6998_v10  ;;  %v2460_v9 = vld [vmem:[%s9805_s5 + $0xf0] sm:$0xff]  ;;  %v7183_v10 = vcombine.low %v2919_v62, %v2935_v63  ;;  %v9359_v63 = vsub.s32 7, %v7989_v33 }
 0x42f   :  { %v6714_v14 = vcombine.high %v2444_v8, %v2460_v9  ;;  %v6713_v22 = vcombine.low %v2444_v8, %v2460_v9 }
 0x430   :  { %6060 = vmatpush1.bf16.msra.mxu1 %v6991_v18  ;;  %v2489_v18 = vld [vmem:[%s9805_s5 + $0x1d8] sm:$0xff]  ;;  %v2983_v8 = vrot.slane %v8913_v36, %v9359_v63 }
 0x431   :  { %6183 = vmatpush1.bf16.msra.mxu0 %v6997_v19  ;;  %6061 = vmatprep.subr.bf16.mxu1 %v7024_v20  ;;  %v6707_v19 = vcombine.low %v2441_v6, %v2457_v7  ;;  %v2476_v20 = vld [vmem:[%s9805_s5 + $0x170] sm:$0xff]  ;;  %v6740_v23 = vcombine.high %v2473_v17, %v2489_v18  ;;  %v3003_v7 = vrot.slane %v9137_v13, %v8902_v31 }
 0x432   :  { %6184 = vmatprep.subr.bf16.mxu0 %v7030_v21  ;;  %v2492_v21 = vld [vmem:[%s9805_s5 + $0x1f0] sm:$0xff] }
 0x433   :  { %v6745_v32 = vcombine.low %v2476_v20, %v2492_v21  ;;  %v2652_v6 = vld [vmem:[%s9805_s5 + $0x6f0] sm:$0xff] }
 0x434   :  { %6062 = vmatpush1.bf16.msra.mxu1 %v7023_v26  ;;  %v6746_v26 = vcombine.high %v2476_v20, %v2492_v21 }
 0x435   :  { %6185 = vmatpush1.bf16.msra.mxu0 %v7029_v27  ;;  %6063 = vmatprep.subr.bf16.mxu1 %v7056_v29  ;;  %v2508_v27 = vld [vmem:[%s9805_s5 + $0x270] sm:$0xff] }
 0x436   :  { %6186 = vmatprep.subr.bf16.mxu0 %v7062_v30  ;;  %v2524_v29 = vld [vmem:[%s9805_s5 + $0x2f0] sm:$0xff]  ;;  %v6739_v30 = vcombine.low %v2473_v17, %v2489_v18  ;;  %v2665_v18 = vld [vmem:[%s9805_s5 + $0x758] sm:$0xff] }
 0x437   :  { %v6778_v35 = vcombine.high %v2508_v27, %v2524_v29  ;;  %v6777_v46 = vcombine.low %v2508_v27, %v2524_v29 }
 0x438   :  { %6064 = vmatpush1.bf16.msra.mxu1 %v7055_v40  ;;  %v2553_v40 = vld [vmem:[%s9805_s5 + $0x3d8] sm:$0xff] }
 0x439   :  { %6187 = vmatpush1.bf16.msra.mxu0 %v7061_v43  ;;  %6065 = vmatprep.subr.bf16.mxu1 %v7088_v44  ;;  %v2540_v43 = vld [vmem:[%s9805_s5 + $0x370] sm:$0xff]  ;;  %v6804_v47 = vcombine.high %v2537_v39, %v2553_v40 }
 0x43a   :  { %6188 = vmatprep.subr.bf16.mxu0 %v7094_v45  ;;  %v2556_v44 = vld [vmem:[%s9805_s5 + $0x3f0] sm:$0xff]  ;;  %v6771_v45 = vcombine.low %v2505_v24, %v2521_v25 }
 0x43b   :  { %v6810_v48 = vcombine.high %v2540_v43, %v2556_v44  ;;  %v6809_v54 = vcombine.low %v2540_v43, %v2556_v44  ;;  %v2697_v44 = vld [vmem:[%s9805_s5 + $0x858] sm:$0xff] }
 0x43c   :  { %6066 = vmatpush1.bf16.msra.mxu1 %v7087_v50  ;;  %v2585_v50 = vld [vmem:[%s9805_s5 + $0x4d8] sm:$0xff] }
 0x43d   :  { %6189 = vmatpush1.bf16.msra.mxu0 %v7093_v51  ;;  %6067 = vmatprep.subr.bf16.mxu1 %v7120_v52  ;;  %v2572_v51 = vld [vmem:[%s9805_s5 + $0x470] sm:$0xff]  ;;  %v6836_v55 = vcombine.high %v2569_v49, %v2585_v50  ;;  %v6835_v62 = vcombine.low %v2569_v49, %v2585_v50 }
 0x43e   :  { %6190 = vmatprep.subr.bf16.mxu0 %v7126_v53  ;;  %v2588_v52 = vld [vmem:[%s9805_s5 + $0x4f0] sm:$0xff]  ;;  %v6803_v53 = vcombine.low %v2537_v39, %v2553_v40 }
 0x43f   :  { %v6842_v56 = vcombine.high %v2572_v51, %v2588_v52  ;;  %v6841_v0 = vcombine.low %v2572_v51, %v2588_v52  ;;  %v2729_v52 = vld [vmem:[%s9805_s5 + $0x958] sm:$0xff] }
 0x440   :  { %6068 = vmatpush1.bf16.msra.mxu1 %v7119_v58  ;;  %v2617_v58 = vld [vmem:[%s9805_s5 + $0x5d8] sm:$0xff] }
 0x441   :  { %6191 = vmatpush1.bf16.msra.mxu0 %v7125_v59  ;;  %6069 = vmatprep.subr.bf16.mxu1 %v7152_v60  ;;  %v9350_v59 = vsub.s32 6, %v7989_v33  ;;  %v2604_v60 = vld [vmem:[%s9805_s5 + $0x570] sm:$0xff]  ;;  %v6868_v1 = vcombine.high %v2601_v57, %v2617_v58  ;;  %v6867_v9 = vcombine.low %v2601_v57, %v2617_v58 }
 0x442   :  { %6192 = vmatprep.subr.bf16.mxu0 %v7158_v61  ;;  %v2620_v61 = vld [vmem:[%s9805_s5 + $0x5f0] sm:$0xff] }
 0x443   :  { %v2636_v33 = vld [vmem:[%s9805_s5 + $0x670] sm:$0xff] }
 0x444   :  { %6070 = vmatpush1.bf16.msra.mxu1 %v7151_v2  ;;  %v6874_v2 = vcombine.high %v2604_v60, %v2620_v61  ;;  %v6906_v17 = vcombine.high %v2636_v33, %v2652_v6 }
 0x445   :  { %6193 = vmatpush1.bf16.msra.mxu0 %v7157_v3  ;;  %6071 = vmatprep.subr.bf16.mxu1 %v7184_v4  ;;  %v2633_v3 = vld [vmem:[%s9805_s5 + $0x658] sm:$0xff] }
 0x446   :  { %6194 = vmatprep.subr.bf16.mxu0 %v7190_v5  ;;  %v2649_v4 = vld [vmem:[%s9805_s5 + $0x6d8] sm:$0xff]  ;;  %v2979_v5 = vrot.slane %v8913_v36, %v9350_v59 }
 0x447   :  { %v6899_v29 = vcombine.low %v2633_v3, %v2649_v4 }
 0x448   :  { %6072 = vmatpush1.bf16.msra.mxu1 %v7183_v10  ;;  %v3007_v10 = vrot.slane %v9137_v13, %v8916_v37 }
 0x449   :  { %6195 = vmatpush1.bf16.msra.mxu0 %v7189_v11  ;;  %6123 = vmatprep.subr.bf16.mxu1 %v6708_v12  ;;  %v6873_v11 = vcombine.low %v2604_v60, %v2620_v61  ;;  %v6900_v12 = vcombine.high %v2633_v3, %v2649_v4  ;;  %v2761_v61 = vld [vmem:[%s9805_s5 + $0xa58] sm:$0xff] }
 0x44a   :  { %6246 = vmatprep.subr.bf16.mxu0 %v6714_v14 }
 0x44b   :  { %6074 = vmatmul.mubr.bf16.vlgmr.msra.gmra.mrb[24].mxu1 %v8263_v16 }
 0x44c   :  { %6197 = vmatmul.mubr.bf16.vlgmr.msra.gmra.mrb[28].mxu0 %v8263_v16  ;;  %6124 = vmatpush1.bf16.msra.mxu1 %v6707_v19  ;;  %v2681_v19 = vld [vmem:[%s9805_s5 + $0x7d8] sm:$0xff] }
 0x44d   :  { %6155 = vmatprep.mubr.bf16.mxu1 %v8261_v15  ;;  %6247 = vmatpush1.bf16.msra.mxu0 %v6713_v22  ;;  %v2668_v22 = vld [vmem:[%s9805_s5 + $0x770] sm:$0xff]  ;;  %v6932_v39 = vcombine.high %v2665_v18, %v2681_v19 }
 0x44e   :  { %6278 = vmatprep.mubr.bf16.mxu0 %v8261_v15  ;;  %6125 = vmatprep.subr.bf16.mxu1 %v6740_v23  ;;  %v2684_v23 = vld [vmem:[%s9805_s5 + $0x7f0] sm:$0xff] }
 0x44f   :  { %6248 = vmatprep.subr.bf16.mxu0 %v6746_v26  ;;  %v6938_v43 = vcombine.high %v2668_v22, %v2684_v23  ;;  %v6937_v49 = vcombine.low %v2668_v22, %v2684_v23  ;;  %v2857_v23 = vld [vmem:[%s9805_s5 + $0xd58] sm:$0xff] }
 0x450   :  { %6126 = vmatpush1.bf16.msra.mxu1 %v6739_v30 }
 0x451   :  { %6249 = vmatpush1.bf16.msra.mxu0 %v6745_v32  ;;  %6127 = vmatprep.subr.bf16.mxu1 %v6772_v34 }
 0x452   :  { %6250 = vmatprep.subr.bf16.mxu0 %v6778_v35  ;;  %v6905_v35 = vcombine.low %v2636_v33, %v2652_v6  ;;  %v2793_v33 = vld [vmem:[%s9805_s5 + $0xb58] sm:$0xff] }
 0x453   :  { %v2809_v6 = vld [vmem:[%s9805_s5 + $0xbd8] sm:$0xff] }
 0x454   :  { %6128 = vmatpush1.bf16.msra.mxu1 %v6771_v45  ;;  %v2713_v45 = vld [vmem:[%s9805_s5 + $0x8d8] sm:$0xff] }
 0x455   :  { %6251 = vmatpush1.bf16.msra.mxu0 %v6777_v46  ;;  %6129 = vmatprep.subr.bf16.mxu1 %v6804_v47  ;;  %v2700_v46 = vld [vmem:[%s9805_s5 + $0x870] sm:$0xff]  ;;  %v6964_v50 = vcombine.high %v2697_v44, %v2713_v45 }
 0x456   :  { %6252 = vmatprep.subr.bf16.mxu0 %v6810_v48  ;;  %v2716_v47 = vld [vmem:[%s9805_s5 + $0x8f0] sm:$0xff]  ;;  %v6931_v48 = vcombine.low %v2665_v18, %v2681_v19 }
 0x457   :  { %v6970_v51 = vcombine.high %v2700_v46, %v2716_v47  ;;  %v6969_v57 = vcombine.low %v2700_v46, %v2716_v47  ;;  %v2828_v18 = vld [vmem:[%s9805_s5 + $0xc70] sm:$0xff]  ;;  %v2921_v47 = vld [vmem:[%s9805_s5 + $0xf58] sm:$0xff] }
 0x458   :  { %6130 = vmatpush1.bf16.msra.mxu1 %v6803_v53  ;;  %v2745_v53 = vld [vmem:[%s9805_s5 + $0x9d8] sm:$0xff]  ;;  %v2844_v19 = vld [vmem:[%s9805_s5 + $0xcf0] sm:$0xff] }
 0x459   :  { %6253 = vmatpush1.bf16.msra.mxu0 %v6809_v54  ;;  %6131 = vmatprep.subr.bf16.mxu1 %v6836_v55  ;;  %v2732_v54 = vld [vmem:[%s9805_s5 + $0x970] sm:$0xff]  ;;  %v6996_v58 = vcombine.high %v2729_v52, %v2745_v53  ;;  %v7098_v22 = vcombine.high %v2828_v18, %v2844_v19 }
 0x45a   :  { %6254 = vmatprep.subr.bf16.mxu0 %v6842_v56  ;;  %v2748_v55 = vld [vmem:[%s9805_s5 + $0x9f0] sm:$0xff]  ;;  %v6963_v56 = vcombine.low %v2697_v44, %v2713_v45 }
 0x45b   :  { %v7002_v60 = vcombine.high %v2732_v54, %v2748_v55  ;;  %v7001_v3 = vcombine.low %v2732_v54, %v2748_v55  ;;  %v2443_v55 = vld [vmem:[%s9805_s5 + $0x68] sm:$0xff] }
 0x45c   :  { %6132 = vmatpush1.bf16.msra.mxu1 %v6835_v62  ;;  %v2777_v62 = vld [vmem:[%s9805_s5 + $0xad8] sm:$0xff] }
 0x45d   :  { %6255 = vmatpush1.bf16.msra.mxu0 %v6841_v0  ;;  %6133 = vmatprep.subr.bf16.mxu1 %v6868_v1  ;;  %v2764_v0 = vld [vmem:[%s9805_s5 + $0xa70] sm:$0xff]  ;;  %v7028_v4 = vcombine.high %v2761_v61, %v2777_v62 }
 0x45e   :  { %v5829_v14 = vpop.f32.mrb[12].mxu1  ;;  %6256 = vmatprep.subr.bf16.mxu0 %v6874_v2  ;;  %v2780_v1 = vld [vmem:[%s9805_s5 + $0xaf0] sm:$0xff]  ;;  %v6995_v2 = vcombine.low %v2729_v52, %v2745_v53 }
 0x45f   :  { %v5830_v36 = vadd.f32 %v5829_v14, %v2979_v5  ;;  %v5952_v20 = vpop.f32.mrb[16].mxu0  ;;  %v5831_v21 = vpop.f32.mrb[13].mxu1  ;;  %v7034_v5 = vcombine.high %v2764_v0, %v2780_v1  ;;  %v2825_v14 = vld [vmem:[%s9805_s5 + $0xc58] sm:$0xff] }
 0x460   :  { %v5953_v24 = vadd.f32 %v5952_v20, %v3003_v7  ;;  %v5832_v25 = vadd.f32 %v5831_v21, %v2983_v8  ;;  %v5954_v26 = vpop.f32.mrb[17].mxu0  ;;  %v5833_v27 = vpop.f32.mrb[14].mxu1  ;;  %6134 = vmatpush1.bf16.msra.mxu1 %v6867_v9  ;;  %v2796_v7 = vld [vmem:[%s9805_s5 + $0xb70] sm:$0xff]  ;;  %v7027_v9 = vcombine.low %v2761_v61, %v2777_v62  ;;  %v2475_v61 = vld [vmem:[%s9805_s5 + $0x168] sm:$0xff] }
 0x461   :  { %6334 = vst [vmem:[%s9807_s7 + $0x30] sm:$0xff] %v5830_v36  ;;  %v5955_v30 = vadd.f32 %v5954_v26, %v3007_v10  ;;  %v5956_v32 = vpop.f32.mrb[18].mxu0  ;;  %6257 = vmatpush1.bf16.msra.mxu0 %v6873_v11  ;;  %v5834_v34 = vpop.f32.mrb[15].mxu1  ;;  %6135 = vmatprep.subr.bf16.mxu1 %v6900_v12  ;;  %v2812_v8 = vld [vmem:[%s9805_s5 + $0xbf0] sm:$0xff]  ;;  %v7033_v10 = vcombine.low %v2764_v0, %v2780_v1  ;;  %v2491_v62 = vld [vmem:[%s9805_s5 + $0x1e8] sm:$0xff] }
 0x462   :  { %6340 = vst [vmem:[%s9807_s7 + $0x60] sm:$0xff] %v5953_v24  ;;  %6335 = vst [vmem:[%s9807_s7 + $0x38] sm:$0xff] %v5832_v25  ;;  %v5957_v40 = vpop.f32.mrb[19].mxu0  ;;  %6258 = vmatprep.subr.bf16.mxu0 %v6906_v17  ;;  %v7060_v11 = vcombine.high %v2793_v33, %v2809_v6  ;;  %v7066_v12 = vcombine.high %v2796_v7, %v2812_v8  ;;  %v2841_v17 = vld [vmem:[%s9805_s5 + $0xcd8] sm:$0xff]  ;;  %v7059_v36 = vcombine.low %v2793_v33, %v2809_v6  ;;  %v2860_v25 = vld [vmem:[%s9805_s5 + $0xd70] sm:$0xff] }
 0x463   :  { %6341 = vst [vmem:[%s9807_s7 + $0x68] sm:$0xff] %v5955_v30  ;;  %v7065_v20 = vcombine.low %v2796_v7, %v2812_v8  ;;  %v7092_v21 = vcombine.high %v2825_v14, %v2841_v17  ;;  %v2873_v24 = vld [vmem:[%s9805_s5 + $0xdd8] sm:$0xff]  ;;  %v2876_v26 = vld [vmem:[%s9805_s5 + $0xdf0] sm:$0xff]  ;;  %v7091_v27 = vcombine.low %v2825_v14, %v2841_v17  ;;  %v6744_v1 = vcombine.high %v2475_v61, %v2491_v62  ;;  %v2539_v33 = vld [vmem:[%s9805_s5 + $0x368] sm:$0xff] }
 0x464   :  { %6136 = vmatpush1.bf16.msra.mxu1 %v6899_v29  ;;  %v7097_v29 = vcombine.low %v2828_v18, %v2844_v19  ;;  %v7124_v30 = vcombine.high %v2857_v23, %v2873_v24  ;;  %v7130_v32 = vcombine.high %v2860_v25, %v2876_v26  ;;  %v2889_v34 = vld [vmem:[%s9805_s5 + $0xe58] sm:$0xff]  ;;  %v2908_v40 = vld [vmem:[%s9805_s5 + $0xef0] sm:$0xff]  ;;  %v7129_v44 = vcombine.low %v2860_v25, %v2876_v26  ;;  %v2555_v6 = vld [vmem:[%s9805_s5 + $0x3e8] sm:$0xff] }
 0x465   :  { %6259 = vmatpush1.bf16.msra.mxu0 %v6905_v35  ;;  %6137 = vmatprep.subr.bf16.mxu1 %v6932_v39  ;;  %v2905_v35 = vld [vmem:[%s9805_s5 + $0xed8] sm:$0xff]  ;;  %v2892_v39 = vld [vmem:[%s9805_s5 + $0xe70] sm:$0xff]  ;;  %v6808_v8 = vcombine.high %v2539_v33, %v2555_v6  ;;  %v2603_v14 = vld [vmem:[%s9805_s5 + $0x568] sm:$0xff] }
 0x466   :  { %6260 = vmatprep.subr.bf16.mxu0 %v6938_v43  ;;  %v7123_v43 = vcombine.low %v2857_v23, %v2873_v24  ;;  %v7156_v45 = vcombine.high %v2889_v34, %v2905_v35  ;;  %v7162_v46 = vcombine.high %v2892_v39, %v2908_v40  ;;  %v7161_v52 = vcombine.low %v2892_v39, %v2908_v40  ;;  %v2619_v17 = vld [vmem:[%s9805_s5 + $0x5e8] sm:$0xff]  ;;  %v9543_v19 = vld [vmem:[%s9806_s6 + $0x10] sm:$0xff] }
 0x467   :  { %v3019_v23 = vrot.slane %v9543_v19, %v7998_v38  ;;  %v2999_v24 = vrot.slane %v9137_v13, %v8009_v42  ;;  %v6871_v25 = vcombine.low %v2603_v14, %v2619_v17  ;;  %v3023_v26 = vrot.slane %v9543_v19, %v8006_v41 }
 0x468   :  { %6138 = vmatpush1.bf16.msra.mxu1 %v6931_v48  ;;  %v2937_v48 = vld [vmem:[%s9805_s5 + $0xfd8] sm:$0xff] }
 0x469   :  { %6261 = vmatpush1.bf16.msra.mxu0 %v6937_v49  ;;  %6139 = vmatprep.subr.bf16.mxu1 %v6964_v50  ;;  %v2924_v49 = vld [vmem:[%s9805_s5 + $0xf70] sm:$0xff]  ;;  %v7188_v53 = vcombine.high %v2921_v47, %v2937_v48 }
 0x46a   :  { %6262 = vmatprep.subr.bf16.mxu0 %v6970_v51  ;;  %v2940_v50 = vld [vmem:[%s9805_s5 + $0xff0] sm:$0xff]  ;;  %v7155_v51 = vcombine.low %v2889_v34, %v2905_v35 }
 0x46b   :  { %v7194_v54 = vcombine.high %v2924_v49, %v2940_v50 }
 0x46c   :  { %6140 = vmatpush1.bf16.msra.mxu1 %v6963_v56  ;;  %v2459_v56 = vld [vmem:[%s9805_s5 + $0xe8] sm:$0xff] }
 0x46d   :  { %6263 = vmatpush1.bf16.msra.mxu0 %v6969_v57  ;;  %6141 = vmatprep.subr.bf16.mxu1 %v6996_v58  ;;  %v7187_v57 = vcombine.low %v2921_v47, %v2937_v48  ;;  %v7193_v58 = vcombine.low %v2924_v49, %v2940_v50  ;;  %v6711_v0 = vcombine.low %v2443_v55, %v2459_v56 }
 0x46e   :  { %6264 = vmatprep.subr.bf16.mxu0 %v7002_v60  ;;  %v6712_v60 = vcombine.high %v2443_v55, %v2459_v56  ;;  %v2731_v55 = vld [vmem:[%s9805_s5 + $0x968] sm:$0xff] }
 0x46f   :  { %v2747_v56 = vld [vmem:[%s9805_s5 + $0x9e8] sm:$0xff] }
 0x470   :  { %6142 = vmatpush1.bf16.msra.mxu1 %v6995_v2  ;;  %v2507_v2 = vld [vmem:[%s9805_s5 + $0x268] sm:$0xff] }
 0x471   :  { %6265 = vmatpush1.bf16.msra.mxu0 %v7001_v3  ;;  %6143 = vmatprep.subr.bf16.mxu1 %v7028_v4  ;;  %v2523_v3 = vld [vmem:[%s9805_s5 + $0x2e8] sm:$0xff]  ;;  %v6743_v4 = vcombine.low %v2475_v61, %v2491_v62  ;;  %v6999_v62 = vcombine.low %v2731_v55, %v2747_v56 }
 0x472   :  { %6266 = vmatprep.subr.bf16.mxu0 %v7034_v5  ;;  %v6776_v5 = vcombine.high %v2507_v2, %v2523_v3  ;;  %v6775_v7 = vcombine.low %v2507_v2, %v2523_v3  ;;  %v2779_v61 = vld [vmem:[%s9805_s5 + $0xae8] sm:$0xff] }
 0x473   :  { %v2811_v2 = vld [vmem:[%s9805_s5 + $0xbe8] sm:$0xff] }
 0x474   :  { %6144 = vmatpush1.bf16.msra.mxu1 %v7027_v9  ;;  %v2571_v9 = vld [vmem:[%s9805_s5 + $0x468] sm:$0xff] }
 0x475   :  { %6267 = vmatpush1.bf16.msra.mxu0 %v7033_v10  ;;  %6145 = vmatprep.subr.bf16.mxu1 %v7060_v11  ;;  %v2587_v10 = vld [vmem:[%s9805_s5 + $0x4e8] sm:$0xff]  ;;  %v6807_v11 = vcombine.low %v2539_v33, %v2555_v6 }
 0x476   :  { %6268 = vmatprep.subr.bf16.mxu0 %v7066_v12  ;;  %v6840_v12 = vcombine.high %v2571_v9, %v2587_v10  ;;  %v6839_v18 = vcombine.low %v2571_v9, %v2587_v10  ;;  %v2843_v33 = vld [vmem:[%s9805_s5 + $0xce8] sm:$0xff] }
 0x477   :  { %v2875_v9 = vld [vmem:[%s9805_s5 + $0xde8] sm:$0xff] }
 0x478   :  { %6146 = vmatpush1.bf16.msra.mxu1 %v7059_v36  ;;  %v6872_v36 = vcombine.high %v2603_v14, %v2619_v17  ;;  %v2907_v14 = vld [vmem:[%s9805_s5 + $0xee8] sm:$0xff] }
 0x479   :  { %6269 = vmatpush1.bf16.msra.mxu0 %v7065_v20  ;;  %6147 = vmatprep.subr.bf16.mxu1 %v7092_v21  ;;  %v2635_v20 = vld [vmem:[%s9805_s5 + $0x668] sm:$0xff] }
 0x47a   :  { %6270 = vmatprep.subr.bf16.mxu0 %v7098_v22  ;;  %v2651_v21 = vld [vmem:[%s9805_s5 + $0x6e8] sm:$0xff]  ;;  %v2995_v22 = vrot.slane %v9137_v13, %v8101_v28 }
 0x47c   :  { %6148 = vmatpush1.bf16.msra.mxu1 %v7091_v27  ;;  %v6904_v27 = vcombine.high %v2635_v20, %v2651_v21 }
 0x47d   :  { %6271 = vmatpush1.bf16.msra.mxu0 %v7097_v29  ;;  %6149 = vmatprep.subr.bf16.mxu1 %v7124_v30  ;;  %v2667_v30 = vld [vmem:[%s9805_s5 + $0x768] sm:$0xff] }
 0x47e   :  { %6272 = vmatprep.subr.bf16.mxu0 %v7130_v32  ;;  %v2683_v32 = vld [vmem:[%s9805_s5 + $0x7e8] sm:$0xff] }
 0x47f   :  { %v6936_v49 = vcombine.high %v2667_v30, %v2683_v32 }
 0x480   :  { %6150 = vmatpush1.bf16.msra.mxu1 %v7123_v43 }
 0x481   :  { %6273 = vmatpush1.bf16.msra.mxu0 %v7129_v44  ;;  %6151 = vmatprep.subr.bf16.mxu1 %v7156_v45  ;;  %v6903_v45 = vcombine.low %v2635_v20, %v2651_v21  ;;  %v2939_v20 = vld [vmem:[%s9805_s5 + $0xfe8] sm:$0xff] }
 0x482   :  { %6274 = vmatprep.subr.bf16.mxu0 %v7162_v46 }
 0x484   :  { %6152 = vmatpush1.bf16.msra.mxu1 %v7155_v51  ;;  %v2699_v51 = vld [vmem:[%s9805_s5 + $0x868] sm:$0xff] }
 0x485   :  { %6275 = vmatpush1.bf16.msra.mxu0 %v7161_v52  ;;  %6153 = vmatprep.subr.bf16.mxu1 %v7188_v53  ;;  %v2715_v52 = vld [vmem:[%s9805_s5 + $0x8e8] sm:$0xff]  ;;  %v6935_v53 = vcombine.low %v2667_v30, %v2683_v32 }
 0x486   :  { %6276 = vmatprep.subr.bf16.mxu0 %v7194_v54  ;;  %v6968_v54 = vcombine.high %v2699_v51, %v2715_v52 }
 0x488   :  { %6154 = vmatpush1.bf16.msra.mxu1 %v7187_v57  ;;  %v6967_v57 = vcombine.low %v2699_v51, %v2715_v52 }
 0x489   :  { %6277 = vmatpush1.bf16.msra.mxu0 %v7193_v58  ;;  %6205 = vmatprep.subr.bf16.mxu1 %v6712_v60  ;;  %v7000_v58 = vcombine.high %v2731_v55, %v2747_v56  ;;  %v2763_v60 = vld [vmem:[%s9805_s5 + $0xa68] sm:$0xff] }
 0x48a   :  { %v7031_v3 = vcombine.low %v2763_v60, %v2779_v61  ;;  %v7714_v55 = vld [vmem:[%s9806_s6 + $0x8] sm:$0xff] }
 0x48b   :  { %6156 = vmatmul.mubr.bf16.vlgmr.msra.gmra.mrb[28].mxu1 %v8263_v16  ;;  %v3011_v56 = vrot.slane %v7714_v55, %v9350_v59 }
 0x48c   :  { %6279 = vmatmul.mubr.bf16.vlgmr.msra.gmra.mrb[32].mxu0 %v8263_v16  ;;  %6206 = vmatpush1.bf16.msra.mxu1 %v6711_v0  ;;  %v7032_v0 = vcombine.high %v2763_v60, %v2779_v61  ;;  %v3039_v61 = vrot.slane %v9543_v19, %v8916_v37 }
 0x48d   :  { %6237 = vmatprep.mubr.bf16.mxu1 %v8261_v15  ;;  %6207 = vmatprep.subr.bf16.mxu1 %v6744_v1  ;;  %v2795_v1 = vld [vmem:[%s9805_s5 + $0xb68] sm:$0xff] }
 0x48e   :  { %v7063_v6 = vcombine.low %v2795_v1, %v2811_v2 }
 0x490   :  { %6208 = vmatpush1.bf16.msra.mxu1 %v6743_v4  ;;  %v7064_v4 = vcombine.high %v2795_v1, %v2811_v2  ;;  %v2669_v1 = vld [vmem:[%s9805_s5 + $0x778] sm:$0xff] }
 0x491   :  { %6209 = vmatprep.subr.bf16.mxu1 %v6776_v5  ;;  %v2827_v5 = vld [vmem:[%s9805_s5 + $0xc68] sm:$0xff]  ;;  %v2685_v2 = vld [vmem:[%s9805_s5 + $0x7f8] sm:$0xff] }
 0x492   :  { %v7095_v10 = vcombine.low %v2827_v5, %v2843_v33 }
 0x494   :  { %6210 = vmatpush1.bf16.msra.mxu1 %v6775_v7  ;;  %v7096_v7 = vcombine.high %v2827_v5, %v2843_v33 }
 0x495   :  { %6211 = vmatprep.subr.bf16.mxu1 %v6808_v8  ;;  %v2859_v8 = vld [vmem:[%s9805_s5 + $0xd68] sm:$0xff] }
 0x496   :  { %v7127_v17 = vcombine.low %v2859_v8, %v2875_v9 }
 0x498   :  { %6212 = vmatpush1.bf16.msra.mxu1 %v6807_v11  ;;  %v7128_v11 = vcombine.high %v2859_v8, %v2875_v9 }
 0x499   :  { %6213 = vmatprep.subr.bf16.mxu1 %v6840_v12  ;;  %v2891_v12 = vld [vmem:[%s9805_s5 + $0xe68] sm:$0xff] }
 0x49a   :  { %v7159_v21 = vcombine.low %v2891_v12, %v2907_v14 }
 0x49c   :  { %6214 = vmatpush1.bf16.msra.mxu1 %v6839_v18  ;;  %v7160_v18 = vcombine.high %v2891_v12, %v2907_v14  ;;  %v6940_v14 = vcombine.high %v2669_v1, %v2685_v2 }
 0x49d   :  { %6215 = vmatprep.subr.bf16.mxu1 %v6872_v36  ;;  %v2923_v36 = vld [vmem:[%s9805_s5 + $0xf68] sm:$0xff] }
 0x49e   :  { %v5911_v29 = vpop.f32.mrb[16].mxu1 }
 0x49f   :  { %v5912_v34 = vadd.f32 %v5911_v29, %v2995_v22  ;;  %v6034_v35 = vpop.f32.mrb[20].mxu0  ;;  %v5913_v39 = vpop.f32.mrb[17].mxu1  ;;  %v7192_v22 = vcombine.high %v2923_v36, %v2939_v20  ;;  %v2493_v29 = vld [vmem:[%s9805_s5 + $0x1f8] sm:$0xff] }
 0x4a0   :  { %v6035_v40 = vadd.f32 %v6034_v35, %v3019_v23  ;;  %v5914_v13 = vadd.f32 %v5913_v39, %v2999_v24  ;;  %v6036_v43 = vpop.f32.mrb[21].mxu0  ;;  %v5915_v44 = vpop.f32.mrb[18].mxu1  ;;  %6216 = vmatpush1.bf16.msra.mxu1 %v6871_v25  ;;  %v2445_v23 = vld [vmem:[%s9805_s5 + $0x78] sm:$0xff]  ;;  %v7191_v25 = vcombine.low %v2923_v36, %v2939_v20  ;;  %v6939_v20 = vcombine.low %v2669_v1, %v2685_v2 }
 0x4a1   :  { %6338 = vst [vmem:[%s9807_s7 + $0x50] sm:$0xff] %v5912_v34  ;;  %v6037_v46 = vadd.f32 %v6036_v43, %v3023_v26  ;;  %v6038_v47 = vpop.f32.mrb[22].mxu0  ;;  %v5916_v48 = vpop.f32.mrb[19].mxu1  ;;  %6217 = vmatprep.subr.bf16.mxu1 %v6904_v27  ;;  %v2461_v24 = vld [vmem:[%s9805_s5 + $0xf8] sm:$0xff] }
 0x4a2   :  { %6344 = vst [vmem:[%s9807_s7 + $0x80] sm:$0xff] %v6035_v40  ;;  %6339 = vst [vmem:[%s9807_s7 + $0x58] sm:$0xff] %v5914_v13  ;;  %v6039_v50 = vpop.f32.mrb[23].mxu0  ;;  %v6716_v26 = vcombine.high %v2445_v23, %v2461_v24  ;;  %v2477_v27 = vld [vmem:[%s9805_s5 + $0x178] sm:$0xff]  ;;  %v6715_v30 = vcombine.low %v2445_v23, %v2461_v24 }
 0x4a3   :  { %6345 = vst [vmem:[%s9807_s7 + $0x88] sm:$0xff] %v6037_v46  ;;  %v6748_v32 = vcombine.high %v2477_v27, %v2493_v29  ;;  %v2509_v34 = vld [vmem:[%s9805_s5 + $0x278] sm:$0xff]  ;;  %v6747_v39 = vcombine.low %v2477_v27, %v2493_v29 }
 0x4a4   :  { %6218 = vmatpush1.bf16.msra.mxu1 %v6903_v45  ;;  %v2525_v35 = vld [vmem:[%s9805_s5 + $0x2f8] sm:$0xff] }
 0x4a5   :  { %6219 = vmatprep.subr.bf16.mxu1 %v6936_v49  ;;  %v6780_v40 = vcombine.high %v2509_v34, %v2525_v35  ;;  %v2541_v13 = vld [vmem:[%s9805_s5 + $0x378] sm:$0xff]  ;;  %v6779_v44 = vcombine.low %v2509_v34, %v2525_v35 }
 0x4a6   :  { %v2557_v43 = vld [vmem:[%s9805_s5 + $0x3f8] sm:$0xff] }
 0x4a7   :  { %v6812_v45 = vcombine.high %v2541_v13, %v2557_v43  ;;  %v2573_v46 = vld [vmem:[%s9805_s5 + $0x478] sm:$0xff]  ;;  %v6811_v47 = vcombine.low %v2541_v13, %v2557_v43 }
 0x4a8   :  { %6220 = vmatpush1.bf16.msra.mxu1 %v6935_v53  ;;  %v2605_v49 = vld [vmem:[%s9805_s5 + $0x578] sm:$0xff] }
 0x4a9   :  { %6221 = vmatprep.subr.bf16.mxu1 %v6968_v54  ;;  %v2621_v50 = vld [vmem:[%s9805_s5 + $0x5f8] sm:$0xff] }
 0x4aa   :  { %v6876_v52 = vcombine.high %v2605_v49, %v2621_v50  ;;  %v2637_v53 = vld [vmem:[%s9805_s5 + $0x678] sm:$0xff]  ;;  %v6875_v60 = vcombine.low %v2605_v49, %v2621_v50 }
 0x4ab   :  { %v2653_v54 = vld [vmem:[%s9805_s5 + $0x6f8] sm:$0xff] }
 0x4ac   :  { %6222 = vmatpush1.bf16.msra.mxu1 %v6967_v57  ;;  %v3035_v57 = vrot.slane %v9543_v19, %v8902_v31  ;;  %v6907_v9 = vcombine.low %v2637_v53, %v2653_v54  ;;  %v2717_v36 = vld [vmem:[%s9805_s5 + $0x8f8] sm:$0xff] }
 0x4ad   :  { %6223 = vmatprep.subr.bf16.mxu1 %v7000_v58  ;;  %v3015_v58 = vrot.slane %v7714_v55, %v9359_v63  ;;  %v2749_v23 = vld [vmem:[%s9805_s5 + $0x9f8] sm:$0xff] }
 0x4ae   :  { %v2781_v27 = vld [vmem:[%s9805_s5 + $0xaf8] sm:$0xff] }
 0x4af   :  { %v2813_v34 = vld [vmem:[%s9805_s5 + $0xbf8] sm:$0xff] }
 0x4b0   :  { %6224 = vmatpush1.bf16.msra.mxu1 %v6999_v62  ;;  %v6908_v62 = vcombine.high %v2637_v53, %v2653_v54  ;;  %v2845_v13 = vld [vmem:[%s9805_s5 + $0xcf8] sm:$0xff] }
 0x4b1   :  { %6225 = vmatprep.subr.bf16.mxu1 %v7032_v0  ;;  %v2909_v49 = vld [vmem:[%s9805_s5 + $0xef8] sm:$0xff] }
 0x4b2   :  { %v2941_v53 = vld [vmem:[%s9805_s5 + $0xff8] sm:$0xff] }
 0x4b4   :  { %6226 = vmatpush1.bf16.msra.mxu1 %v7031_v3 }
 0x4b5   :  { %6227 = vmatprep.subr.bf16.mxu1 %v7064_v4 }
 0x4b8   :  { %6228 = vmatpush1.bf16.msra.mxu1 %v7063_v6 }
 0x4b9   :  { %6229 = vmatprep.subr.bf16.mxu1 %v7096_v7 }
 0x4bc   :  { %6230 = vmatpush1.bf16.msra.mxu1 %v7095_v10 }
 0x4bd   :  { %6231 = vmatprep.subr.bf16.mxu1 %v7128_v11 }
 0x4c0   :  { %6232 = vmatpush1.bf16.msra.mxu1 %v7127_v17 }
 0x4c1   :  { %6233 = vmatprep.subr.bf16.mxu1 %v7160_v18  ;;  %v2701_v18 = vld [vmem:[%s9805_s5 + $0x878] sm:$0xff] }
 0x4c2   :  { %v6971_v24 = vcombine.low %v2701_v18, %v2717_v36 }
 0x4c4   :  { %6234 = vmatpush1.bf16.msra.mxu1 %v7159_v21  ;;  %v6972_v21 = vcombine.high %v2701_v18, %v2717_v36 }
 0x4c5   :  { %6235 = vmatprep.subr.bf16.mxu1 %v7192_v22  ;;  %v2733_v22 = vld [vmem:[%s9805_s5 + $0x978] sm:$0xff] }
 0x4c6   :  { %v7003_v29 = vcombine.low %v2733_v22, %v2749_v23 }
 0x4c8   :  { %6236 = vmatpush1.bf16.msra.mxu1 %v7191_v25  ;;  %v7004_v25 = vcombine.high %v2733_v22, %v2749_v23 }
 0x4c9   :  { %6287 = vmatprep.subr.bf16.mxu1 %v6716_v26  ;;  %v2765_v26 = vld [vmem:[%s9805_s5 + $0xa78] sm:$0xff] }
 0x4ca   :  { %v7035_v35 = vcombine.low %v2765_v26, %v2781_v27 }
 0x4cb   :  { %6238 = vmatmul.mubr.bf16.vlgmr.msra.gmra.mrb[32].mxu1 %v8263_v16 }
 0x4cc   :  { %6288 = vmatpush1.bf16.msra.mxu1 %v6715_v30  ;;  %6319 = vmatprep.mubr.bf16.mxu1 %v8261_v15  ;;  %v2589_v15 = vld [vmem:[%s9805_s5 + $0x4f8] sm:$0xff]  ;;  %v7036_v30 = vcombine.high %v2765_v26, %v2781_v27 }
 0x4cd   :  { %6289 = vmatprep.subr.bf16.mxu1 %v6748_v32  ;;  %v6844_v48 = vcombine.high %v2573_v46, %v2589_v15  ;;  %v6843_v51 = vcombine.low %v2573_v46, %v2589_v15  ;;  %v2797_v32 = vld [vmem:[%s9805_s5 + $0xb78] sm:$0xff] }
 0x4ce   :  { %v7067_v43 = vcombine.low %v2797_v32, %v2813_v34  ;;  %v2877_v46 = vld [vmem:[%s9805_s5 + $0xdf8] sm:$0xff] }
 0x4d0   :  { %6290 = vmatpush1.bf16.msra.mxu1 %v6747_v39  ;;  %v7068_v39 = vcombine.high %v2797_v32, %v2813_v34 }
 0x4d1   :  { %6291 = vmatprep.subr.bf16.mxu1 %v6780_v40  ;;  %v2829_v40 = vld [vmem:[%s9805_s5 + $0xc78] sm:$0xff] }
 0x4d2   :  { %v7099_v15 = vcombine.low %v2829_v40, %v2845_v13 }
 0x4d4   :  { %6292 = vmatpush1.bf16.msra.mxu1 %v6779_v44  ;;  %v7100_v44 = vcombine.high %v2829_v40, %v2845_v13 }
 0x4d5   :  { %6293 = vmatprep.subr.bf16.mxu1 %v6812_v45  ;;  %v2861_v45 = vld [vmem:[%s9805_s5 + $0xd78] sm:$0xff] }
 0x4d6   :  { %v7131_v50 = vcombine.low %v2861_v45, %v2877_v46 }
 0x4d8   :  { %6294 = vmatpush1.bf16.msra.mxu1 %v6811_v47  ;;  %v7132_v47 = vcombine.high %v2861_v45, %v2877_v46 }
 0x4d9   :  { %6295 = vmatprep.subr.bf16.mxu1 %v6844_v48  ;;  %v2893_v48 = vld [vmem:[%s9805_s5 + $0xe78] sm:$0xff] }
 0x4da   :  { %v7163_v54 = vcombine.low %v2893_v48, %v2909_v49 }
 0x4dc   :  { %6296 = vmatpush1.bf16.msra.mxu1 %v6843_v51  ;;  %v7164_v51 = vcombine.high %v2893_v48, %v2909_v49 }
 0x4dd   :  { %6297 = vmatprep.subr.bf16.mxu1 %v6876_v52  ;;  %v2925_v52 = vld [vmem:[%s9805_s5 + $0xf78] sm:$0xff] }
 0x4de   :  { %v5993_v0 = vpop.f32.mrb[20].mxu1  ;;  %v7196_v55 = vcombine.high %v2925_v52, %v2941_v53 }
 0x4df   :  { %v5994_v3 = vadd.f32 %v5993_v0, %v3011_v56  ;;  %v6116_v4 = vpop.f32.mrb[24].mxu0  ;;  %v5995_v5 = vpop.f32.mrb[21].mxu1  ;;  %v7195_v56 = vcombine.low %v2925_v52, %v2941_v53 }
 0x4e0   :  { %v6117_v33 = vadd.f32 %v6116_v4, %v3035_v57  ;;  %v5996_v6 = vadd.f32 %v5995_v5, %v3015_v58  ;;  %v6118_v7 = vpop.f32.mrb[25].mxu0  ;;  %v5997_v8 = vpop.f32.mrb[22].mxu1  ;;  %6298 = vmatpush1.bf16.msra.mxu1 %v6875_v60  ;;  %v2947_v57 = vld [vmem:[%s9806_s6 + $0x18] sm:$0xff]  ;;  %v3027_v58 = vrot.slane %v9543_v19, %v8101_v28 }
 0x4e1   :  { %6342 = vst [vmem:[%s9807_s7 + $0x70] sm:$0xff] %v5994_v3  ;;  %v6119_v10 = vadd.f32 %v6118_v7, %v3039_v61  ;;  %v6120_v11 = vpop.f32.mrb[26].mxu0  ;;  %v5998_v12 = vpop.f32.mrb[23].mxu1  ;;  %6299 = vmatprep.subr.bf16.mxu1 %v6908_v62  ;;  %v3051_v60 = vrot.slane %v2947_v57, %v7998_v38  ;;  %v3031_v61 = vrot.slane %v9543_v19, %v8009_v42 }
 0x4e2   :  { %6348 = vst [vmem:[%s9807_s7 + $0xa0] sm:$0xff] %v6117_v33  ;;  %6343 = vst [vmem:[%s9807_s7 + $0x78] sm:$0xff] %v5996_v6  ;;  %v6121_v17 = vpop.f32.mrb[27].mxu0  ;;  %v3055_v62 = vrot.slane %v2947_v57, %v8006_v41  ;;  %v3043_v8 = vrot.slane %v9543_v19, %v9350_v59  ;;  %v3071_v11 = vrot.slane %v2947_v57, %v8916_v37 }
 0x4e3   :  { %6349 = vst [vmem:[%s9807_s7 + $0xa8] sm:$0xff] %v6119_v10  ;;  %v3047_v10 = vrot.slane %v9543_v19, %v9359_v63  ;;  %v3059_v19 = vrot.slane %v2947_v57, %v8101_v28  ;;  %v3079_v28 = vrot.slane %v2947_v57, %v9359_v63 }
 0x4e4   :  { %6300 = vmatpush1.bf16.msra.mxu1 %v6907_v9  ;;  %v3067_v9 = vrot.slane %v2947_v57, %v8902_v31 }
 0x4e5   :  { %6301 = vmatprep.subr.bf16.mxu1 %v6940_v14 }
 0x4e8   :  { %6302 = vmatpush1.bf16.msra.mxu1 %v6939_v20 }
 0x4e9   :  { %6303 = vmatprep.subr.bf16.mxu1 %v6972_v21 }
 0x4ec   :  { %6304 = vmatpush1.bf16.msra.mxu1 %v6971_v24 }
 0x4ed   :  { %6305 = vmatprep.subr.bf16.mxu1 %v7004_v25  ;;  %v3063_v25 = vrot.slane %v2947_v57, %v8009_v42 }
 0x4f0   :  { %6306 = vmatpush1.bf16.msra.mxu1 %v7003_v29 }
 0x4f1   :  { %6307 = vmatprep.subr.bf16.mxu1 %v7036_v30 }
 0x4f4   :  { %6308 = vmatpush1.bf16.msra.mxu1 %v7035_v35  ;;  %v3075_v35 = vrot.slane %v2947_v57, %v9350_v59 }
 0x4f5   :  { %6309 = vmatprep.subr.bf16.mxu1 %v7068_v39 }
 0x4f8   :  { %6310 = vmatpush1.bf16.msra.mxu1 %v7067_v43 }
 0x4f9   :  { %6311 = vmatprep.subr.bf16.mxu1 %v7100_v44 }
 0x4fc   :  { %6312 = vmatpush1.bf16.msra.mxu1 %v7099_v15 }
 0x4fd   :  { %6313 = vmatprep.subr.bf16.mxu1 %v7132_v47 }
 0x500   :  { %6314 = vmatpush1.bf16.msra.mxu1 %v7131_v50 }
 0x501   :  { %6315 = vmatprep.subr.bf16.mxu1 %v7164_v51 }
 0x504   :  { %6316 = vmatpush1.bf16.msra.mxu1 %v7163_v54 }
 0x505   :  { %6317 = vmatprep.subr.bf16.mxu1 %v7196_v55 }
 0x508   :  { %6318 = vmatpush1.bf16.msra.mxu1 %v7195_v56 }
 0x50b   :  { %6320 = vmatmul.mubr.bf16.vlgmr.msra.gmra.mrb[36].mxu1 %v8263_v16 }
 0x51e   :  { %v6075_v0 = vpop.f32.mrb[24].mxu1 }
 0x51f   :  { %v6076_v1 = vadd.f32 %v6075_v0, %v3027_v58  ;;  %v6198_v2 = vpop.f32.mrb[28].mxu0  ;;  %v6077_v3 = vpop.f32.mrb[25].mxu1 }
 0x520   :  { %v6199_v4 = vadd.f32 %v6198_v2, %v3051_v60  ;;  %v6078_v16 = vadd.f32 %v6077_v3, %v3031_v61  ;;  %v6200_v5 = vpop.f32.mrb[29].mxu0  ;;  %v6079_v33 = vpop.f32.mrb[26].mxu1 }
 0x521   :  { %6346 = vst [vmem:[%s9807_s7 + $0x90] sm:$0xff] %v6076_v1  ;;  %v6201_v6 = vadd.f32 %v6200_v5, %v3055_v62  ;;  %v6202_v7 = vpop.f32.mrb[30].mxu0  ;;  %v6080_v38 = vpop.f32.mrb[27].mxu1 }
 0x522   :  { %6352 = vst [vmem:[%s9807_s7 + $0xc0] sm:$0xff] %v6199_v4  ;;  %6347 = vst [vmem:[%s9807_s7 + $0x98] sm:$0xff] %v6078_v16  ;;  %v6203_v41 = vpop.f32.mrb[31].mxu0 }
 0x523   :  { %6353 = vst [vmem:[%s9807_s7 + $0xc8] sm:$0xff] %v6201_v6 }
 0x55e   :  { %v6157_v12 = vpop.f32.mrb[28].mxu1 }
 0x55f   :  { %v6158_v14 = vadd.f32 %v6157_v12, %v3043_v8  ;;  %v6280_v17 = vpop.f32.mrb[32].mxu0  ;;  %v6159_v18 = vpop.f32.mrb[29].mxu1 }
 0x560   :  { %v6281_v36 = vadd.f32 %v6280_v17, %v3067_v9  ;;  %v6160_v20 = vadd.f32 %v6159_v18, %v3047_v10  ;;  %v6282_v21 = vpop.f32.mrb[33].mxu0  ;;  %v6161_v22 = vpop.f32.mrb[30].mxu1 }
 0x561   :  { %6350 = vst [vmem:[%s9807_s7 + $0xb0] sm:$0xff] %v6158_v14  ;;  %v6283_v23 = vadd.f32 %v6282_v21, %v3071_v11  ;;  %v6284_v24 = vpop.f32.mrb[34].mxu0  ;;  %v6162_v31 = vpop.f32.mrb[31].mxu1 }
 0x562   :  { %6356 = vst [vmem:[%s9807_s7 + $0xe0] sm:$0xff] %v6281_v36  ;;  %6351 = vst [vmem:[%s9807_s7 + $0xb8] sm:$0xff] %v6160_v20  ;;  %v6285_v37 = vpop.f32.mrb[35].mxu0 }
 0x563   :  { %6357 = vst [vmem:[%s9807_s7 + $0xe8] sm:$0xff] %v6283_v23 }
 0x59e   :  { %v6239_v26 = vpop.f32.mrb[32].mxu1 }
 0x59f   :  { %v6240_v27 = vadd.f32 %v6239_v26, %v3059_v19  ;;  %v6241_v29 = vpop.f32.mrb[33].mxu1 }
 0x5a0   :  { %v6242_v30 = vadd.f32 %v6241_v29, %v3063_v25  ;;  %v6243_v32 = vpop.f32.mrb[34].mxu1 }
 0x5a1   :  { %6354 = vst [vmem:[%s9807_s7 + $0xd0] sm:$0xff] %v6240_v27  ;;  %v6244_v34 = vpop.f32.mrb[35].mxu1 }
 0x5a2   :  { %6355 = vst [vmem:[%s9807_s7 + $0xd8] sm:$0xff] %v6242_v30 }
 0x5de   :  { %v6321_v39 = vpop.f32.mrb[36].mxu1 }
 0x5df   :  { %v6322_v42 = vadd.f32 %v6321_v39, %v3075_v35  ;;  %v6323_v40 = vpop.f32.mrb[37].mxu1 }
 0x5e0   :  { %v6324_v13 = vadd.f32 %v6323_v40, %v3079_v28  ;;  %v6325_v43 = vpop.f32.mrb[38].mxu1 }
 0x5e1   :  { %6358 = vst [vmem:[%s9807_s7 + $0xf0] sm:$0xff] %v6322_v42  ;;  %v6326_v44 = vpop.f32.mrb[39].mxu1 }
 0x5e2   :  { %6359 = vst [vmem:[%s9807_s7 + $0xf8] sm:$0xff] %v6324_v13 }
 0x5e3   :  { %6364 = vsyncpa [#allocation3], 1 }

</bundles_post_ra>
